<compile_context>
chip_gen: v7x
topology: tpu7x:2x2x1
jax: 0.10.0
libtpu: 0.0.40
codegen_flags: <defaults>
</compile_context>

<pallas_src>
import functools

import numpy as np
import jax
import jax.numpy as jnp
from jax import lax
from jax.experimental import pallas as pl
from jax.experimental.pallas import tpu as pltpu

_HIGH = lax.Precision.HIGHEST


# --------------------------------------------------------------------------
# Constant masks / select / averaging matrices (numpy, built once, all tiny)
# --------------------------------------------------------------------------

@functools.lru_cache(maxsize=None)
def _pad_mask(h, w, batch):
    """(9, batch*h*w) 0/1 mask: tap (dy,dx) at output position (b,y,x) keeps
    its flat-shifted read iff the true source pixel (y+dy-1, x+dx-1) lies
    inside the h x w image (zero padding / cross-batch / guard reads -> 0)."""
    m = np.zeros((9, batch * h * w), np.float32)
    for dy in range(3):
        for dx in range(3):
            t = dy * 3 + dx
            for b in range(batch):
                for y in range(h):
                    for x in range(w):
                        if 0 <= y + dy - 1 < h and 0 <= x + dx - 1 < w:
                            m[t, b * h * w + y * w + x] = 1.0
    return m


@functools.lru_cache(maxsize=None)
def _pool_select(h, w):
    """Batch-independent 0/1 select for 2x2/stride-2 max pool: picks the
    window-max at dense flat offset 2*yo*w + 2*xo into a dense row-major
    (h//2)x(w//2) output."""
    ho, wo = h // 2, w // 2
    n_in = 2 * (ho - 1) * w + 2 * (wo - 1) + 1
    s = np.zeros((n_in, ho * wo), np.float32)
    for yo in range(ho):
        for xo in range(wo):
            s[2 * yo * w + 2 * xo, yo * wo + xo] = 1.0
    return s


@functools.lru_cache(maxsize=None)
def _avg_matrix(batch, n):
    """AdaptiveAvgPool2d((1,1)): averages each batch's n spatial positions."""
    a = np.zeros((batch * n, batch), np.float32)
    for b in range(batch):
        a[b * n:(b + 1) * n, b] = 1.0 / n
    return a


# --------------------------------------------------------------------------
# The single fused Pallas kernel
# --------------------------------------------------------------------------

def _fused_kernel(x1, w1, b1, w2, b2, w3, b3, w4, b4,
                  mk2, mk3, mk4, s2, s3, pavg,
                  l1w, l1b, l2w, l2b, l3w, l3b, l4w, l4b,
                  o_ref,
                  c1s, p1s, x2s, c2s, p2s, x3s, c3s, p3s, x4s,
                  *, batch):
    f32 = jnp.float32

    def dot(a, b):
        return jnp.dot(a, b, precision=_HIGH, preferred_element_type=f32)

    def conv(p_ref, guard, w_img, x_ref, mk_ref, w_ref, b_ref, cin, n):
        # im2col: 9 flat-shifted, mask-padded copies of the previous pooled
        # activation into (9*cin, n) scratch, then ONE MXU dot.
        for dy in range(3):
            for dx in range(3):
                t = dy * 3 + dx
                off = (dy - 1) * w_img + (dx - 1)
                x_ref[t * cin:(t + 1) * cin, :] = (
                    p_ref[:, guard + off: guard + off + n]
                    * mk_ref[t:t + 1, :])
        return jnp.maximum(dot(w_ref[...], x_ref[...]) + b_ref[...], 0.0)

    def pool(c_ref, w_img, n_img, sel_ref, p_ref, guard, n_out):
        # 2x2/stride-2 max pool: per batch element, max of 4 shifted views of
        # the dense conv output, then a tiny batch-independent select matmul
        # into the next layer's guarded dense layout.
        k = sel_ref.shape[0]
        ch = p_ref.shape[0]
        p_ref[:, 0:guard] = jnp.zeros((ch, guard), f32)
        p_ref[:, guard + batch * n_out: 2 * guard + batch * n_out] = (
            jnp.zeros((ch, guard), f32))
        for b in range(batch):
            base = b * n_img
            m_b = jnp.maximum(
                jnp.maximum(c_ref[:, base: base + k],
                            c_ref[:, base + 1: base + 1 + k]),
                jnp.maximum(c_ref[:, base + w_img: base + w_img + k],
                            c_ref[:, base + w_img + 1: base + w_img + 1 + k]))
            p_ref[:, guard + b * n_out: guard + (b + 1) * n_out] = dot(
                m_b, sel_ref[...])

    n1 = batch * 225        # 15x15 pool-1 grid
    n3 = batch * 49         # 7x7  pool-2 grid
    n4 = batch * 9          # 3x3  pool-3 grid

    # ---- conv1 (phase-blocked) + pool1: no select matmul needed ----------
    c1s[...] = dot(w1[...], x1[...])                       # (32, n1), 4 phases
    pooled = jnp.maximum(jnp.maximum(c1s[0:8, :], c1s[8:16, :]),
                         jnp.maximum(c1s[16:24, :], c1s[24:32, :]))
    p1s[:, 0:16] = jnp.zeros((8, 16), f32)
    p1s[:, 16 + n1: 32 + n1] = jnp.zeros((8, 16), f32)
    p1s[:, 16:16 + n1] = jnp.maximum(pooled + b1[...], 0.0)

    # ---- conv2 + pool2 ----------------------------------------------------
    c2s[...] = conv(p1s, 16, 15, x2s, mk2, w2, b2, 8, n1)  # (16, n1)
    pool(c2s, 15, 225, s2, p2s, 8, 49)

    # ---- conv3 + pool3 ----------------------------------------------------
    c3s[...] = conv(p2s, 8, 7, x3s, mk3, w3, b3, 16, n3)   # (32, n3)
    pool(c3s, 7, 49, s3, p3s, 4, 9)

    # ---- conv4 + adaptive average pool + MLP head --------------------------
    c4 = conv(p3s, 4, 3, x4s, mk4, w4, b4, 32, n4)         # (64, n4)
    g = dot(c4, pavg[...])                                 # (64, B)
    h = jnp.maximum(dot(l1w[...], g) + l1b[...], 0.0)      # (32, B)
    h = jnp.maximum(dot(l2w[...], h) + l2b[...], 0.0)      # (16, B)
    h = jnp.maximum(dot(l3w[...], h) + l3b[...], 0.0)      # (8,  B)
    o_ref[...] = dot(l4w[...], h) + l4b[...]               # (1,  B)


# --------------------------------------------------------------------------
# Wrapper (tiny input layout plumbing + pallas_call)
# --------------------------------------------------------------------------

def _full_spec(arr):
    nd = arr.ndim
    return pl.BlockSpec(arr.shape, lambda i, _nd=nd: (0,) * _nd)


@jax.jit
def tunnel_yaw_forward(x_nchw, packed):
    """x_nchw: (B, 1, 30, 30) float32 (PyTorch NCHW). Returns (B, 1) logits."""
    batch = x_nchw.shape[0]

    # Phase-blocked im2col for conv1, built in the wrapper (tiny XLA work):
    # row index = phase(jy,jx)*9 + tap(dy,dx); lane = b*225 + yo*15 + xo.
    x = x_nchw.astype(jnp.float32)[:, 0]                   # (B, 30, 30)
    xpad = jnp.pad(x, ((0, 0), (1, 1), (1, 1)))            # (B, 32, 32)
    rows = []
    for jy in range(2):
        for jx in range(2):
            for dy in range(3):
                for dx in range(3):
                    s = xpad[:, jy + dy: jy + dy + 29: 2,
                             jx + dx: jx + dx + 29: 2]     # (B, 15, 15)
                    rows.append(s.reshape(batch * 225))
    x1 = jnp.stack(rows)                                   # (36, B*225)

    # Tiny constants (baked into the HLO); batch-independent except masks/avg.
    mk2 = jnp.asarray(_pad_mask(15, 15, batch))            # (9, B*225)
    mk3 = jnp.asarray(_pad_mask(7, 7, batch))              # (9, B*49)
    mk4 = jnp.asarray(_pad_mask(3, 3, batch))              # (9, B*9)
    s2 = jnp.asarray(_pool_select(15, 15))                 # (193, 49)
    s3 = jnp.asarray(_pool_select(7, 7))                   # (33, 9)
    pavg = jnp.asarray(_avg_matrix(batch, 9))              # (B*9, B)

    args = (x1,
            packed["c1_w"], packed["c1_b"], packed["c2_w"], packed["c2_b"],
            packed["c3_w"], packed["c3_b"], packed["c4_w"], packed["c4_b"],
            mk2, mk3, mk4, s2, s3, pavg,
            packed["l1_w"], packed["l1_b"], packed["l2_w"], packed["l2_b"],
            packed["l3_w"], packed["l3_b"], packed["l4_w"], packed["l4_b"])

    n1, n3, n4 = batch * 225, batch * 49, batch * 9
    scratch = [
        pltpu.VMEM((32, n1), jnp.float32),         # conv1 (phase-blocked)
        pltpu.VMEM((8, 32 + n1), jnp.float32),     # pooled1 (guarded)
        pltpu.VMEM((72, n1), jnp.float32),         # conv2 im2col
        pltpu.VMEM((16, n1), jnp.float32),         # conv2 out
        pltpu.VMEM((16, 16 + n3), jnp.float32),    # pooled2 (guarded)
        pltpu.VMEM((144, n3), jnp.float32),        # conv3 im2col
        pltpu.VMEM((32, n3), jnp.float32),         # conv3 out
        pltpu.VMEM((32, 8 + n4), jnp.float32),     # pooled3 (guarded)
        pltpu.VMEM((288, n4), jnp.float32),        # conv4 im2col
    ]

    out = pl.pallas_call(
        functools.partial(_fused_kernel, batch=batch),
        out_shape=jax.ShapeDtypeStruct((1, batch), jnp.float32),
        grid=(1,),
        in_specs=[_full_spec(a) for a in args],
        out_specs=pl.BlockSpec((1, batch), lambda i: (0, 0)),
        scratch_shapes=scratch,
        compiler_params=pltpu.CompilerParams(
            dimension_semantics=("arbitrary",)),
    )(*args)
    return out.reshape(batch, 1)


# --------------------------------------------------------------------------
# One-time weight repacking (done outside the jitted forward)
# --------------------------------------------------------------------------

def pack_params(params):
    def conv_mat(w):        # (Cout, Cin, 3, 3) -> (Cout, 9*Cin), tap-major
        cout, cin = w.shape[0], w.shape[1]
        return jnp.transpose(w, (0, 2, 3, 1)).reshape(cout, 9 * cin)

    def col(b):
        return b.reshape(-1, 1)

    w1m = conv_mat(params["c1_w"])                           # (8, 9)
    packed = {
        # conv1 weight block-diagonal over the 4 pool-1 phases -> (32, 36)
        "c1_w": jnp.kron(jnp.eye(4, dtype=jnp.float32), w1m),
        "c1_b": col(params["c1_b"]),
        "c2_w": conv_mat(params["c2_w"]), "c2_b": col(params["c2_b"]),
        "c3_w": conv_mat(params["c3_w"]), "c3_b": col(params["c3_b"]),
        "c4_w": conv_mat(params["c4_w"]), "c4_b": col(params["c4_b"]),
    }
    for i in range(1, 5):
        packed[f"l{i}_w"] = params[f"l{i}_w"]                # (out, in) as-is
        packed[f"l{i}_b"] = col(params[f"l{i}_b"])
    return packed


# --------------------------------------------------------------------------
# Pure-JAX reference (for self-validation of the Pallas path)
# --------------------------------------------------------------------------

def reference_forward(x_nchw, params):
    x = jnp.transpose(x_nchw, (0, 2, 3, 1)).astype(jnp.float32)

    def conv(x, w, b):
        y = lax.conv_general_dilated(
            x, jnp.transpose(w, (2, 3, 1, 0)), (1, 1), ((1, 1), (1, 1)),
            dimension_numbers=("NHWC", "HWIO", "NHWC"), precision=_HIGH)
        return jnp.maximum(y + b, 0.0)

    def pool(x):
        B, H, W, C = x.shape
        Ho, Wo = H // 2, W // 2
        return jnp.max(x[:, :2 * Ho, :2 * Wo, :].reshape(B, Ho, 2, Wo, 2, C),
                       axis=(2, 4))

    x = pool(conv(x, params["c1_w"], params["c1_b"]))
    x = pool(conv(x, params["c2_w"], params["c2_b"]))
    x = pool(conv(x, params["c3_w"], params["c3_b"]))
    x = conv(x, params["c4_w"], params["c4_b"])
    x = jnp.mean(x, axis=(1, 2))                             # (B, 64)

    def lin(x, w, b):
        return jnp.dot(x, w.T, precision=_HIGH) + b

    x = jnp.maximum(lin(x, params["l1_w"], params["l1_b"]), 0.0)
    x = jnp.maximum(lin(x, params["l2_w"], params["l2_b"]), 0.0)
    x = jnp.maximum(lin(x, params["l3_w"], params["l3_b"]), 0.0)
    return lin(x, params["l4_w"], params["l4_b"])


# --------------------------------------------------------------------------
# Deterministic parameter init (PyTorch-native shapes), example run
# --------------------------------------------------------------------------

def init_params(key):
    keys = iter(jax.random.split(key, 16))

    def n(shape, scale=0.1):
        return jax.random.normal(next(keys), shape, jnp.float32) * scale

    return {
        "c1_w": n((8, 1, 3, 3)),   "c1_b": n((8,)),
        "c2_w": n((16, 8, 3, 3)),  "c2_b": n((16,)),
        "c3_w": n((32, 16, 3, 3)), "c3_b": n((32,)),
        "c4_w": n((64, 32, 3, 3)), "c4_b": n((64,)),
        "l1_w": n((32, 64)),       "l1_b": n((32,)),
        "l2_w": n((16, 32)),       "l2_b": n((16,)),
        "l3_w": n((8, 16)),        "l3_b": n((8,)),
        "l4_w": n((1, 8)),         "l4_b": n((1,)),
    }


if __name__ == "__main__":
    key = jax.random.PRNGKey(0)
    pkey, xkey = jax.random.split(key)
    params = init_params(pkey)
    packed = pack_params(params)
    # Module hardcodes 30x30 single-channel input; batch=2.
    x = jax.random.normal(xkey, (2, 1, 30, 30), jnp.float32)

    out = jax.block_until_ready(tunnel_yaw_forward(x, packed))
    ref = jax.block_until_ready(reference_forward(x, params))

    assert out.shape == (2, 1), out.shape
    if not jnp.allclose(out, ref, atol=1e-4, rtol=1e-4):
        raise AssertionError(f"mismatch vs reference: {out} vs {ref}")
    print("KERNEL_OK")
</pallas_src>

<mosaic_0001>
module attributes {stable_mosaic.version = 11 : i64} {
  func.func @_fused_kernel(%arg0: i32, %arg1: memref<36x450xf32, #tpu.memory_space<vmem>>, %arg2: memref<32x36xf32, #tpu.memory_space<vmem>>, %arg3: memref<8x1xf32, #tpu.memory_space<vmem>>, %arg4: memref<16x72xf32, #tpu.memory_space<vmem>>, %arg5: memref<16x1xf32, #tpu.memory_space<vmem>>, %arg6: memref<32x144xf32, #tpu.memory_space<vmem>>, %arg7: memref<32x1xf32, #tpu.memory_space<vmem>>, %arg8: memref<64x288xf32, #tpu.memory_space<vmem>>, %arg9: memref<64x1xf32, #tpu.memory_space<vmem>>, %arg10: memref<9x450xf32, #tpu.memory_space<vmem>>, %arg11: memref<9x98xf32, #tpu.memory_space<vmem>>, %arg12: memref<9x18xf32, #tpu.memory_space<vmem>>, %arg13: memref<193x49xf32, #tpu.memory_space<vmem>>, %arg14: memref<33x9xf32, #tpu.memory_space<vmem>>, %arg15: memref<18x2xf32, #tpu.memory_space<vmem>>, %arg16: memref<32x64xf32, #tpu.memory_space<vmem>>, %arg17: memref<32x1xf32, #tpu.memory_space<vmem>>, %arg18: memref<16x32xf32, #tpu.memory_space<vmem>>, %arg19: memref<16x1xf32, #tpu.memory_space<vmem>>, %arg20: memref<8x16xf32, #tpu.memory_space<vmem>>, %arg21: memref<8x1xf32, #tpu.memory_space<vmem>>, %arg22: memref<1x8xf32, #tpu.memory_space<vmem>>, %arg23: memref<1x1xf32, #tpu.memory_space<vmem>>, %arg24: memref<1x2xf32, #tpu.memory_space<vmem>>, %arg25: memref<32x450xf32, #tpu.memory_space<vmem>>, %arg26: memref<8x482xf32, #tpu.memory_space<vmem>>, %arg27: memref<72x450xf32, #tpu.memory_space<vmem>>, %arg28: memref<16x450xf32, #tpu.memory_space<vmem>>, %arg29: memref<16x114xf32, #tpu.memory_space<vmem>>, %arg30: memref<144x98xf32, #tpu.memory_space<vmem>>, %arg31: memref<32x98xf32, #tpu.memory_space<vmem>>, %arg32: memref<32x26xf32, #tpu.memory_space<vmem>>, %arg33: memref<288x18xf32, #tpu.memory_space<vmem>>) attributes {dimension_semantics = [#tpu.dimension_semantics<arbitrary>], iteration_bounds = array<i64: 1>, scalar_prefetch = 0 : i64, scratch_operands = 9 : i64, tpu.core_type = #tpu.core_type<tc>, window_params = [{pipeline_mode = #tpu.pipeline_mode<synchronous>, transform_indices = @transform_0, window_bounds = array<i64: 36, 450>}, {pipeline_mode = #tpu.pipeline_mode<synchronous>, transform_indices = @transform_1, window_bounds = array<i64: 32, 36>}, {pipeline_mode = #tpu.pipeline_mode<synchronous>, transform_indices = @transform_2, window_bounds = array<i64: 8, 1>}, {pipeline_mode = #tpu.pipeline_mode<synchronous>, transform_indices = @transform_3, window_bounds = array<i64: 16, 72>}, {pipeline_mode = #tpu.pipeline_mode<synchronous>, transform_indices = @transform_4, window_bounds = array<i64: 16, 1>}, {pipeline_mode = #tpu.pipeline_mode<synchronous>, transform_indices = @transform_5, window_bounds = array<i64: 32, 144>}, {pipeline_mode = #tpu.pipeline_mode<synchronous>, transform_indices = @transform_6, window_bounds = array<i64: 32, 1>}, {pipeline_mode = #tpu.pipeline_mode<synchronous>, transform_indices = @transform_7, window_bounds = array<i64: 64, 288>}, {pipeline_mode = #tpu.pipeline_mode<synchronous>, transform_indices = @transform_8, window_bounds = array<i64: 64, 1>}, {pipeline_mode = #tpu.pipeline_mode<synchronous>, transform_indices = @transform_9, window_bounds = array<i64: 9, 450>}, {pipeline_mode = #tpu.pipeline_mode<synchronous>, transform_indices = @transform_10, window_bounds = array<i64: 9, 98>}, {pipeline_mode = #tpu.pipeline_mode<synchronous>, transform_indices = @transform_11, window_bounds = array<i64: 9, 18>}, {pipeline_mode = #tpu.pipeline_mode<synchronous>, transform_indices = @transform_12, window_bounds = array<i64: 193, 49>}, {pipeline_mode = #tpu.pipeline_mode<synchronous>, transform_indices = @transform_13, window_bounds = array<i64: 33, 9>}, {pipeline_mode = #tpu.pipeline_mode<synchronous>, transform_indices = @transform_14, window_bounds = array<i64: 18, 2>}, {pipeline_mode = #tpu.pipeline_mode<synchronous>, transform_indices = @transform_15, window_bounds = array<i64: 32, 64>}, {pipeline_mode = #tpu.pipeline_mode<synchronous>, transform_indices = @transform_16, window_bounds = array<i64: 32, 1>}, {pipeline_mode = #tpu.pipeline_mode<synchronous>, transform_indices = @transform_17, window_bounds = array<i64: 16, 32>}, {pipeline_mode = #tpu.pipeline_mode<synchronous>, transform_indices = @transform_18, window_bounds = array<i64: 16, 1>}, {pipeline_mode = #tpu.pipeline_mode<synchronous>, transform_indices = @transform_19, window_bounds = array<i64: 8, 16>}, {pipeline_mode = #tpu.pipeline_mode<synchronous>, transform_indices = @transform_20, window_bounds = array<i64: 8, 1>}, {pipeline_mode = #tpu.pipeline_mode<synchronous>, transform_indices = @transform_21, window_bounds = array<i64: 1, 8>}, {pipeline_mode = #tpu.pipeline_mode<synchronous>, transform_indices = @transform_22, window_bounds = array<i64: 1, 1>}, {pipeline_mode = #tpu.pipeline_mode<synchronous>, transform_indices = @transform_23, window_bounds = array<i64: 1, 2>}]} {
    %c0 = arith.constant 0 : index
    %c0_0 = arith.constant 0 : index
    %0 = vector.load %arg2[%c0, %c0_0] : memref<32x36xf32, #tpu.memory_space<vmem>>, vector<32x36xf32>
    %c0_1 = arith.constant 0 : index
    %c0_2 = arith.constant 0 : index
    %1 = vector.load %arg1[%c0_1, %c0_2] : memref<36x450xf32, #tpu.memory_space<vmem>>, vector<36x450xf32>
    %cst = arith.constant dense<0.000000e+00> : vector<32x450xf32>
    %2 = tpu.matmul %0, %1, %cst {dimension_numbers = #tpu.dot_dimension_numbers<[1], [0], [0], [1], [0, 0, 1, 1], [], []>, precision = #tpu.contract_precision<fp32>} : vector<32x36xf32>, vector<36x450xf32>, vector<32x450xf32> -> vector<32x450xf32>
    %c0_3 = arith.constant 0 : index
    %c0_4 = arith.constant 0 : index
    %3 = vector.load %arg25[%c0_3, %c0_4] : memref<32x450xf32, #tpu.memory_space<vmem>>, vector<32x450xf32>
    tpu.vector_store %arg25[%c0_3, %c0_4], %2 {strides = array<i32>} : memref<32x450xf32, #tpu.memory_space<vmem>>, vector<32x450xf32>,
    %c0_5 = arith.constant 0 : index
    %c0_6 = arith.constant 0 : index
    %4 = vector.load %arg25[%c0_5, %c0_6] : memref<32x450xf32, #tpu.memory_space<vmem>>, vector<8x450xf32>
    %c8 = arith.constant 8 : index
    %c0_7 = arith.constant 0 : index
    %5 = vector.load %arg25[%c8, %c0_7] : memref<32x450xf32, #tpu.memory_space<vmem>>, vector<8x450xf32>
    %6 = arith.maximumf %4, %5 : vector<8x450xf32>
    %c16 = arith.constant 16 : index
    %c0_8 = arith.constant 0 : index
    %7 = vector.load %arg25[%c16, %c0_8] : memref<32x450xf32, #tpu.memory_space<vmem>>, vector<8x450xf32>
    %c24 = arith.constant 24 : index
    %c0_9 = arith.constant 0 : index
    %8 = vector.load %arg25[%c24, %c0_9] : memref<32x450xf32, #tpu.memory_space<vmem>>, vector<8x450xf32>
    %9 = arith.maximumf %7, %8 : vector<8x450xf32>
    %10 = arith.maximumf %6, %9 : vector<8x450xf32>
    %cst_10 = arith.constant 0.000000e+00 : f32
    %11 = vector.broadcast %cst_10 : f32 to vector<8x16xf32>
    %c0_11 = arith.constant 0 : index
    %c0_12 = arith.constant 0 : index
    %12 = vector.load %arg26[%c0_11, %c0_12] : memref<8x482xf32, #tpu.memory_space<vmem>>, vector<8x16xf32>
    tpu.vector_store %arg26[%c0_11, %c0_12], %11 {strides = array<i32>} : memref<8x482xf32, #tpu.memory_space<vmem>>, vector<8x16xf32>,
    %cst_13 = arith.constant 0.000000e+00 : f32
    %13 = vector.broadcast %cst_13 : f32 to vector<8x16xf32>
    %c0_14 = arith.constant 0 : index
    %c466 = arith.constant 466 : index
    %14 = vector.load %arg26[%c0_14, %c466] : memref<8x482xf32, #tpu.memory_space<vmem>>, vector<8x16xf32>
    tpu.vector_store %arg26[%c0_14, %c466], %13 {strides = array<i32>} : memref<8x482xf32, #tpu.memory_space<vmem>>, vector<8x16xf32>,
    %c0_15 = arith.constant 0 : index
    %c0_16 = arith.constant 0 : index
    %15 = vector.load %arg3[%c0_15, %c0_16] : memref<8x1xf32, #tpu.memory_space<vmem>>, vector<8x1xf32>
    %16 = vector.broadcast %15 : vector<8x1xf32> to vector<8x450xf32>
    %17 = arith.addf %10, %16 : vector<8x450xf32>
    %cst_17 = arith.constant 0.000000e+00 : f32
    %18 = vector.broadcast %cst_17 : f32 to vector<8x450xf32>
    %19 = arith.maximumf %17, %18 : vector<8x450xf32>
    %c0_18 = arith.constant 0 : index
    %c16_19 = arith.constant 16 : index
    %20 = vector.load %arg26[%c0_18, %c16_19] : memref<8x482xf32, #tpu.memory_space<vmem>>, vector<8x450xf32>
    tpu.vector_store %arg26[%c0_18, %c16_19], %19 {strides = array<i32>} : memref<8x482xf32, #tpu.memory_space<vmem>>, vector<8x450xf32>,
    %c0_20 = arith.constant 0 : index
    %c0_21 = arith.constant 0 : index
    %21 = vector.load %arg26[%c0_20, %c0_21] : memref<8x482xf32, #tpu.memory_space<vmem>>, vector<8x450xf32>
    %c0_22 = arith.constant 0 : index
    %c0_23 = arith.constant 0 : index
    %22 = vector.load %arg10[%c0_22, %c0_23] : memref<9x450xf32, #tpu.memory_space<vmem>>, vector<1x450xf32>
    %23 = vector.broadcast %22 : vector<1x450xf32> to vector<8x450xf32>
    %24 = arith.mulf %21, %23 : vector<8x450xf32>
    %c0_24 = arith.constant 0 : index
    %c0_25 = arith.constant 0 : index
    %25 = vector.load %arg27[%c0_24, %c0_25] : memref<72x450xf32, #tpu.memory_space<vmem>>, vector<8x450xf32>
    tpu.vector_store %arg27[%c0_24, %c0_25], %24 {strides = array<i32>} : memref<72x450xf32, #tpu.memory_space<vmem>>, vector<8x450xf32>,
    %c0_26 = arith.constant 0 : index
    %c1 = arith.constant 1 : index
    %26 = vector.load %arg26[%c0_26, %c1] : memref<8x482xf32, #tpu.memory_space<vmem>>, vector<8x450xf32>
    %c1_27 = arith.constant 1 : index
    %c0_28 = arith.constant 0 : index
    %27 = vector.load %arg10[%c1_27, %c0_28] : memref<9x450xf32, #tpu.memory_space<vmem>>, vector<1x450xf32>
    %28 = vector.broadcast %27 : vector<1x450xf32> to vector<8x450xf32>
    %29 = arith.mulf %26, %28 : vector<8x450xf32>
    %c8_29 = arith.constant 8 : index
    %c0_30 = arith.constant 0 : index
    %30 = vector.load %arg27[%c8_29, %c0_30] : memref<72x450xf32, #tpu.memory_space<vmem>>, vector<8x450xf32>
    tpu.vector_store %arg27[%c8_29, %c0_30], %29 {strides = array<i32>} : memref<72x450xf32, #tpu.memory_space<vmem>>, vector<8x450xf32>,
    %c0_31 = arith.constant 0 : index
    %c2 = arith.constant 2 : index
    %31 = vector.load %arg26[%c0_31, %c2] : memref<8x482xf32, #tpu.memory_space<vmem>>, vector<8x450xf32>
    %c2_32 = arith.constant 2 : index
    %c0_33 = arith.constant 0 : index
    %32 = vector.load %arg10[%c2_32, %c0_33] : memref<9x450xf32, #tpu.memory_space<vmem>>, vector<1x450xf32>
    %33 = vector.broadcast %32 : vector<1x450xf32> to vector<8x450xf32>
    %34 = arith.mulf %31, %33 : vector<8x450xf32>
    %c16_34 = arith.constant 16 : index
    %c0_35 = arith.constant 0 : index
    %35 = vector.load %arg27[%c16_34, %c0_35] : memref<72x450xf32, #tpu.memory_space<vmem>>, vector<8x450xf32>
    tpu.vector_store %arg27[%c16_34, %c0_35], %34 {strides = array<i32>} : memref<72x450xf32, #tpu.memory_space<vmem>>, vector<8x450xf32>,
    %c0_36 = arith.constant 0 : index
    %c15 = arith.constant 15 : index
    %36 = vector.load %arg26[%c0_36, %c15] : memref<8x482xf32, #tpu.memory_space<vmem>>, vector<8x450xf32>
    %c3 = arith.constant 3 : index
    %c0_37 = arith.constant 0 : index
    %37 = vector.load %arg10[%c3, %c0_37] : memref<9x450xf32, #tpu.memory_space<vmem>>, vector<1x450xf32>
    %38 = vector.broadcast %37 : vector<1x450xf32> to vector<8x450xf32>
    %39 = arith.mulf %36, %38 : vector<8x450xf32>
    %c24_38 = arith.constant 24 : index
    %c0_39 = arith.constant 0 : index
    %40 = vector.load %arg27[%c24_38, %c0_39] : memref<72x450xf32, #tpu.memory_space<vmem>>, vector<8x450xf32>
    tpu.vector_store %arg27[%c24_38, %c0_39], %39 {strides = array<i32>} : memref<72x450xf32, #tpu.memory_space<vmem>>, vector<8x450xf32>,
    %c0_40 = arith.constant 0 : index
    %c16_41 = arith.constant 16 : index
    %41 = vector.load %arg26[%c0_40, %c16_41] : memref<8x482xf32, #tpu.memory_space<vmem>>, vector<8x450xf32>
    %c4 = arith.constant 4 : index
    %c0_42 = arith.constant 0 : index
    %42 = vector.load %arg10[%c4, %c0_42] : memref<9x450xf32, #tpu.memory_space<vmem>>, vector<1x450xf32>
    %43 = vector.broadcast %42 : vector<1x450xf32> to vector<8x450xf32>
    %44 = arith.mulf %41, %43 : vector<8x450xf32>
    %c32 = arith.constant 32 : index
    %c0_43 = arith.constant 0 : index
    %45 = vector.load %arg27[%c32, %c0_43] : memref<72x450xf32, #tpu.memory_space<vmem>>, vector<8x450xf32>
    tpu.vector_store %arg27[%c32, %c0_43], %44 {strides = array<i32>} : memref<72x450xf32, #tpu.memory_space<vmem>>, vector<8x450xf32>,
    %c0_44 = arith.constant 0 : index
    %c17 = arith.constant 17 : index
    %46 = vector.load %arg26[%c0_44, %c17] : memref<8x482xf32, #tpu.memory_space<vmem>>, vector<8x450xf32>
    %c5 = arith.constant 5 : index
    %c0_45 = arith.constant 0 : index
    %47 = vector.load %arg10[%c5, %c0_45] : memref<9x450xf32, #tpu.memory_space<vmem>>, vector<1x450xf32>
    %48 = vector.broadcast %47 : vector<1x450xf32> to vector<8x450xf32>
    %49 = arith.mulf %46, %48 : vector<8x450xf32>
    %c40 = arith.constant 40 : index
    %c0_46 = arith.constant 0 : index
    %50 = vector.load %arg27[%c40, %c0_46] : memref<72x450xf32, #tpu.memory_space<vmem>>, vector<8x450xf32>
    tpu.vector_store %arg27[%c40, %c0_46], %49 {strides = array<i32>} : memref<72x450xf32, #tpu.memory_space<vmem>>, vector<8x450xf32>,
    %c0_47 = arith.constant 0 : index
    %c30 = arith.constant 30 : index
    %51 = vector.load %arg26[%c0_47, %c30] : memref<8x482xf32, #tpu.memory_space<vmem>>, vector<8x450xf32>
    %c6 = arith.constant 6 : index
    %c0_48 = arith.constant 0 : index
    %52 = vector.load %arg10[%c6, %c0_48] : memref<9x450xf32, #tpu.memory_space<vmem>>, vector<1x450xf32>
    %53 = vector.broadcast %52 : vector<1x450xf32> to vector<8x450xf32>
    %54 = arith.mulf %51, %53 : vector<8x450xf32>
    %c48 = arith.constant 48 : index
    %c0_49 = arith.constant 0 : index
    %55 = vector.load %arg27[%c48, %c0_49] : memref<72x450xf32, #tpu.memory_space<vmem>>, vector<8x450xf32>
    tpu.vector_store %arg27[%c48, %c0_49], %54 {strides = array<i32>} : memref<72x450xf32, #tpu.memory_space<vmem>>, vector<8x450xf32>,
    %c0_50 = arith.constant 0 : index
    %c31 = arith.constant 31 : index
    %56 = vector.load %arg26[%c0_50, %c31] : memref<8x482xf32, #tpu.memory_space<vmem>>, vector<8x450xf32>
    %c7 = arith.constant 7 : index
    %c0_51 = arith.constant 0 : index
    %57 = vector.load %arg10[%c7, %c0_51] : memref<9x450xf32, #tpu.memory_space<vmem>>, vector<1x450xf32>
    %58 = vector.broadcast %57 : vector<1x450xf32> to vector<8x450xf32>
    %59 = arith.mulf %56, %58 : vector<8x450xf32>
    %c56 = arith.constant 56 : index
    %c0_52 = arith.constant 0 : index
    %60 = vector.load %arg27[%c56, %c0_52] : memref<72x450xf32, #tpu.memory_space<vmem>>, vector<8x450xf32>
    tpu.vector_store %arg27[%c56, %c0_52], %59 {strides = array<i32>} : memref<72x450xf32, #tpu.memory_space<vmem>>, vector<8x450xf32>,
    %c0_53 = arith.constant 0 : index
    %c32_54 = arith.constant 32 : index
    %61 = vector.load %arg26[%c0_53, %c32_54] : memref<8x482xf32, #tpu.memory_space<vmem>>, vector<8x450xf32>
    %c8_55 = arith.constant 8 : index
    %c0_56 = arith.constant 0 : index
    %62 = vector.load %arg10[%c8_55, %c0_56] : memref<9x450xf32, #tpu.memory_space<vmem>>, vector<1x450xf32>
    %63 = vector.broadcast %62 : vector<1x450xf32> to vector<8x450xf32>
    %64 = arith.mulf %61, %63 : vector<8x450xf32>
    %c64 = arith.constant 64 : index
    %c0_57 = arith.constant 0 : index
    %65 = vector.load %arg27[%c64, %c0_57] : memref<72x450xf32, #tpu.memory_space<vmem>>, vector<8x450xf32>
    tpu.vector_store %arg27[%c64, %c0_57], %64 {strides = array<i32>} : memref<72x450xf32, #tpu.memory_space<vmem>>, vector<8x450xf32>,
    %c0_58 = arith.constant 0 : index
    %c0_59 = arith.constant 0 : index
    %66 = vector.load %arg4[%c0_58, %c0_59] : memref<16x72xf32, #tpu.memory_space<vmem>>, vector<16x72xf32>
    %c0_60 = arith.constant 0 : index
    %c0_61 = arith.constant 0 : index
    %67 = vector.load %arg27[%c0_60, %c0_61] : memref<72x450xf32, #tpu.memory_space<vmem>>, vector<72x450xf32>
    %cst_62 = arith.constant dense<0.000000e+00> : vector<16x450xf32>
    %68 = tpu.matmul %66, %67, %cst_62 {dimension_numbers = #tpu.dot_dimension_numbers<[1], [0], [0], [1], [0, 0, 1, 1], [], []>, precision = #tpu.contract_precision<fp32>} : vector<16x72xf32>, vector<72x450xf32>, vector<16x450xf32> -> vector<16x450xf32>
    %c0_63 = arith.constant 0 : index
    %c0_64 = arith.constant 0 : index
    %69 = vector.load %arg5[%c0_63, %c0_64] : memref<16x1xf32, #tpu.memory_space<vmem>>, vector<16x1xf32>
    %70 = vector.broadcast %69 : vector<16x1xf32> to vector<16x450xf32>
    %71 = arith.addf %68, %70 : vector<16x450xf32>
    %cst_65 = arith.constant 0.000000e+00 : f32
    %72 = vector.broadcast %cst_65 : f32 to vector<16x450xf32>
    %73 = arith.maximumf %71, %72 : vector<16x450xf32>
    %c0_66 = arith.constant 0 : index
    %c0_67 = arith.constant 0 : index
    %74 = vector.load %arg28[%c0_66, %c0_67] : memref<16x450xf32, #tpu.memory_space<vmem>>, vector<16x450xf32>
    tpu.vector_store %arg28[%c0_66, %c0_67], %73 {strides = array<i32>} : memref<16x450xf32, #tpu.memory_space<vmem>>, vector<16x450xf32>,
    %cst_68 = arith.constant 0.000000e+00 : f32
    %75 = vector.broadcast %cst_68 : f32 to vector<16x8xf32>
    %c0_69 = arith.constant 0 : index
    %c0_70 = arith.constant 0 : index
    %76 = vector.load %arg29[%c0_69, %c0_70] : memref<16x114xf32, #tpu.memory_space<vmem>>, vector<16x8xf32>
    tpu.vector_store %arg29[%c0_69, %c0_70], %75 {strides = array<i32>} : memref<16x114xf32, #tpu.memory_space<vmem>>, vector<16x8xf32>,
    %cst_71 = arith.constant 0.000000e+00 : f32
    %77 = vector.broadcast %cst_71 : f32 to vector<16x8xf32>
    %c0_72 = arith.constant 0 : index
    %c106 = arith.constant 106 : index
    %78 = vector.load %arg29[%c0_72, %c106] : memref<16x114xf32, #tpu.memory_space<vmem>>, vector<16x8xf32>
    tpu.vector_store %arg29[%c0_72, %c106], %77 {strides = array<i32>} : memref<16x114xf32, #tpu.memory_space<vmem>>, vector<16x8xf32>,
    %c0_73 = arith.constant 0 : index
    %c0_74 = arith.constant 0 : index
    %79 = vector.load %arg28[%c0_73, %c0_74] : memref<16x450xf32, #tpu.memory_space<vmem>>, vector<16x193xf32>
    %c0_75 = arith.constant 0 : index
    %c1_76 = arith.constant 1 : index
    %80 = vector.load %arg28[%c0_75, %c1_76] : memref<16x450xf32, #tpu.memory_space<vmem>>, vector<16x193xf32>
    %81 = arith.maximumf %79, %80 : vector<16x193xf32>
    %c0_77 = arith.constant 0 : index
    %c15_78 = arith.constant 15 : index
    %82 = vector.load %arg28[%c0_77, %c15_78] : memref<16x450xf32, #tpu.memory_space<vmem>>, vector<16x193xf32>
    %c0_79 = arith.constant 0 : index
    %c16_80 = arith.constant 16 : index
    %83 = vector.load %arg28[%c0_79, %c16_80] : memref<16x450xf32, #tpu.memory_space<vmem>>, vector<16x193xf32>
    %84 = arith.maximumf %82, %83 : vector<16x193xf32>
    %85 = arith.maximumf %81, %84 : vector<16x193xf32>
    %c0_81 = arith.constant 0 : index
    %c0_82 = arith.constant 0 : index
    %86 = vector.load %arg13[%c0_81, %c0_82] : memref<193x49xf32, #tpu.memory_space<vmem>>, vector<193x49xf32>
    %cst_83 = arith.constant dense<0.000000e+00> : vector<16x49xf32>
    %87 = tpu.matmul %85, %86, %cst_83 {dimension_numbers = #tpu.dot_dimension_numbers<[1], [0], [0], [1], [0, 0, 1, 1], [], []>, precision = #tpu.contract_precision<fp32>} : vector<16x193xf32>, vector<193x49xf32>, vector<16x49xf32> -> vector<16x49xf32>
    %c0_84 = arith.constant 0 : index
    %c8_85 = arith.constant 8 : index
    %88 = vector.load %arg29[%c0_84, %c8_85] : memref<16x114xf32, #tpu.memory_space<vmem>>, vector<16x49xf32>
    tpu.vector_store %arg29[%c0_84, %c8_85], %87 {strides = array<i32>} : memref<16x114xf32, #tpu.memory_space<vmem>>, vector<16x49xf32>,
    %c0_86 = arith.constant 0 : index
    %c225 = arith.constant 225 : index
    %89 = vector.load %arg28[%c0_86, %c225] : memref<16x450xf32, #tpu.memory_space<vmem>>, vector<16x193xf32>
    %c0_87 = arith.constant 0 : index
    %c226 = arith.constant 226 : index
    %90 = vector.load %arg28[%c0_87, %c226] : memref<16x450xf32, #tpu.memory_space<vmem>>, vector<16x193xf32>
    %91 = arith.maximumf %89, %90 : vector<16x193xf32>
    %c0_88 = arith.constant 0 : index
    %c240 = arith.constant 240 : index
    %92 = vector.load %arg28[%c0_88, %c240] : memref<16x450xf32, #tpu.memory_space<vmem>>, vector<16x193xf32>
    %c0_89 = arith.constant 0 : index
    %c241 = arith.constant 241 : index
    %93 = vector.load %arg28[%c0_89, %c241] : memref<16x450xf32, #tpu.memory_space<vmem>>, vector<16x193xf32>
    %94 = arith.maximumf %92, %93 : vector<16x193xf32>
    %95 = arith.maximumf %91, %94 : vector<16x193xf32>
    %c0_90 = arith.constant 0 : index
    %c0_91 = arith.constant 0 : index
    %96 = vector.load %arg13[%c0_90, %c0_91] : memref<193x49xf32, #tpu.memory_space<vmem>>, vector<193x49xf32>
    %cst_92 = arith.constant dense<0.000000e+00> : vector<16x49xf32>
    %97 = tpu.matmul %95, %96, %cst_92 {dimension_numbers = #tpu.dot_dimension_numbers<[1], [0], [0], [1], [0, 0, 1, 1], [], []>, precision = #tpu.contract_precision<fp32>} : vector<16x193xf32>, vector<193x49xf32>, vector<16x49xf32> -> vector<16x49xf32>
    %c0_93 = arith.constant 0 : index
    %c57 = arith.constant 57 : index
    %98 = vector.load %arg29[%c0_93, %c57] : memref<16x114xf32, #tpu.memory_space<vmem>>, vector<16x49xf32>
    tpu.vector_store %arg29[%c0_93, %c57], %97 {strides = array<i32>} : memref<16x114xf32, #tpu.memory_space<vmem>>, vector<16x49xf32>,
    %c0_94 = arith.constant 0 : index
    %c0_95 = arith.constant 0 : index
    %99 = vector.load %arg29[%c0_94, %c0_95] : memref<16x114xf32, #tpu.memory_space<vmem>>, vector<16x98xf32>
    %c0_96 = arith.constant 0 : index
    %c0_97 = arith.constant 0 : index
    %100 = vector.load %arg11[%c0_96, %c0_97] : memref<9x98xf32, #tpu.memory_space<vmem>>, vector<1x98xf32>
    %101 = vector.broadcast %100 : vector<1x98xf32> to vector<16x98xf32>
    %102 = arith.mulf %99, %101 : vector<16x98xf32>
    %c0_98 = arith.constant 0 : index
    %c0_99 = arith.constant 0 : index
    %103 = vector.load %arg30[%c0_98, %c0_99] : memref<144x98xf32, #tpu.memory_space<vmem>>, vector<16x98xf32>
    tpu.vector_store %arg30[%c0_98, %c0_99], %102 {strides = array<i32>} : memref<144x98xf32, #tpu.memory_space<vmem>>, vector<16x98xf32>,
    %c0_100 = arith.constant 0 : index
    %c1_101 = arith.constant 1 : index
    %104 = vector.load %arg29[%c0_100, %c1_101] : memref<16x114xf32, #tpu.memory_space<vmem>>, vector<16x98xf32>
    %c1_102 = arith.constant 1 : index
    %c0_103 = arith.constant 0 : index
    %105 = vector.load %arg11[%c1_102, %c0_103] : memref<9x98xf32, #tpu.memory_space<vmem>>, vector<1x98xf32>
    %106 = vector.broadcast %105 : vector<1x98xf32> to vector<16x98xf32>
    %107 = arith.mulf %104, %106 : vector<16x98xf32>
    %c16_104 = arith.constant 16 : index
    %c0_105 = arith.constant 0 : index
    %108 = vector.load %arg30[%c16_104, %c0_105] : memref<144x98xf32, #tpu.memory_space<vmem>>, vector<16x98xf32>
    tpu.vector_store %arg30[%c16_104, %c0_105], %107 {strides = array<i32>} : memref<144x98xf32, #tpu.memory_space<vmem>>, vector<16x98xf32>,
    %c0_106 = arith.constant 0 : index
    %c2_107 = arith.constant 2 : index
    %109 = vector.load %arg29[%c0_106, %c2_107] : memref<16x114xf32, #tpu.memory_space<vmem>>, vector<16x98xf32>
    %c2_108 = arith.constant 2 : index
    %c0_109 = arith.constant 0 : index
    %110 = vector.load %arg11[%c2_108, %c0_109] : memref<9x98xf32, #tpu.memory_space<vmem>>, vector<1x98xf32>
    %111 = vector.broadcast %110 : vector<1x98xf32> to vector<16x98xf32>
    %112 = arith.mulf %109, %111 : vector<16x98xf32>
    %c32_110 = arith.constant 32 : index
    %c0_111 = arith.constant 0 : index
    %113 = vector.load %arg30[%c32_110, %c0_111] : memref<144x98xf32, #tpu.memory_space<vmem>>, vector<16x98xf32>
    tpu.vector_store %arg30[%c32_110, %c0_111], %112 {strides = array<i32>} : memref<144x98xf32, #tpu.memory_space<vmem>>, vector<16x98xf32>,
    %c0_112 = arith.constant 0 : index
    %c7_113 = arith.constant 7 : index
    %114 = vector.load %arg29[%c0_112, %c7_113] : memref<16x114xf32, #tpu.memory_space<vmem>>, vector<16x98xf32>
    %c3_114 = arith.constant 3 : index
    %c0_115 = arith.constant 0 : index
    %115 = vector.load %arg11[%c3_114, %c0_115] : memref<9x98xf32, #tpu.memory_space<vmem>>, vector<1x98xf32>
    %116 = vector.broadcast %115 : vector<1x98xf32> to vector<16x98xf32>
    %117 = arith.mulf %114, %116 : vector<16x98xf32>
    %c48_116 = arith.constant 48 : index
    %c0_117 = arith.constant 0 : index
    %118 = vector.load %arg30[%c48_116, %c0_117] : memref<144x98xf32, #tpu.memory_space<vmem>>, vector<16x98xf32>
    tpu.vector_store %arg30[%c48_116, %c0_117], %117 {strides = array<i32>} : memref<144x98xf32, #tpu.memory_space<vmem>>, vector<16x98xf32>,
    %c0_118 = arith.constant 0 : index
    %c8_119 = arith.constant 8 : index
    %119 = vector.load %arg29[%c0_118, %c8_119] : memref<16x114xf32, #tpu.memory_space<vmem>>, vector<16x98xf32>
    %c4_120 = arith.constant 4 : index
    %c0_121 = arith.constant 0 : index
    %120 = vector.load %arg11[%c4_120, %c0_121] : memref<9x98xf32, #tpu.memory_space<vmem>>, vector<1x98xf32>
    %121 = vector.broadcast %120 : vector<1x98xf32> to vector<16x98xf32>
    %122 = arith.mulf %119, %121 : vector<16x98xf32>
    %c64_122 = arith.constant 64 : index
    %c0_123 = arith.constant 0 : index
    %123 = vector.load %arg30[%c64_122, %c0_123] : memref<144x98xf32, #tpu.memory_space<vmem>>, vector<16x98xf32>
    tpu.vector_store %arg30[%c64_122, %c0_123], %122 {strides = array<i32>} : memref<144x98xf32, #tpu.memory_space<vmem>>, vector<16x98xf32>,
    %c0_124 = arith.constant 0 : index
    %c9 = arith.constant 9 : index
    %124 = vector.load %arg29[%c0_124, %c9] : memref<16x114xf32, #tpu.memory_space<vmem>>, vector<16x98xf32>
    %c5_125 = arith.constant 5 : index
    %c0_126 = arith.constant 0 : index
    %125 = vector.load %arg11[%c5_125, %c0_126] : memref<9x98xf32, #tpu.memory_space<vmem>>, vector<1x98xf32>
    %126 = vector.broadcast %125 : vector<1x98xf32> to vector<16x98xf32>
    %127 = arith.mulf %124, %126 : vector<16x98xf32>
    %c80 = arith.constant 80 : index
    %c0_127 = arith.constant 0 : index
    %128 = vector.load %arg30[%c80, %c0_127] : memref<144x98xf32, #tpu.memory_space<vmem>>, vector<16x98xf32>
    tpu.vector_store %arg30[%c80, %c0_127], %127 {strides = array<i32>} : memref<144x98xf32, #tpu.memory_space<vmem>>, vector<16x98xf32>,
    %c0_128 = arith.constant 0 : index
    %c14 = arith.constant 14 : index
    %129 = vector.load %arg29[%c0_128, %c14] : memref<16x114xf32, #tpu.memory_space<vmem>>, vector<16x98xf32>
    %c6_129 = arith.constant 6 : index
    %c0_130 = arith.constant 0 : index
    %130 = vector.load %arg11[%c6_129, %c0_130] : memref<9x98xf32, #tpu.memory_space<vmem>>, vector<1x98xf32>
    %131 = vector.broadcast %130 : vector<1x98xf32> to vector<16x98xf32>
    %132 = arith.mulf %129, %131 : vector<16x98xf32>
    %c96 = arith.constant 96 : index
    %c0_131 = arith.constant 0 : index
    %133 = vector.load %arg30[%c96, %c0_131] : memref<144x98xf32, #tpu.memory_space<vmem>>, vector<16x98xf32>
    tpu.vector_store %arg30[%c96, %c0_131], %132 {strides = array<i32>} : memref<144x98xf32, #tpu.memory_space<vmem>>, vector<16x98xf32>,
    %c0_132 = arith.constant 0 : index
    %c15_133 = arith.constant 15 : index
    %134 = vector.load %arg29[%c0_132, %c15_133] : memref<16x114xf32, #tpu.memory_space<vmem>>, vector<16x98xf32>
    %c7_134 = arith.constant 7 : index
    %c0_135 = arith.constant 0 : index
    %135 = vector.load %arg11[%c7_134, %c0_135] : memref<9x98xf32, #tpu.memory_space<vmem>>, vector<1x98xf32>
    %136 = vector.broadcast %135 : vector<1x98xf32> to vector<16x98xf32>
    %137 = arith.mulf %134, %136 : vector<16x98xf32>
    %c112 = arith.constant 112 : index
    %c0_136 = arith.constant 0 : index
    %138 = vector.load %arg30[%c112, %c0_136] : memref<144x98xf32, #tpu.memory_space<vmem>>, vector<16x98xf32>
    tpu.vector_store %arg30[%c112, %c0_136], %137 {strides = array<i32>} : memref<144x98xf32, #tpu.memory_space<vmem>>, vector<16x98xf32>,
    %c0_137 = arith.constant 0 : index
    %c16_138 = arith.constant 16 : index
    %139 = vector.load %arg29[%c0_137, %c16_138] : memref<16x114xf32, #tpu.memory_space<vmem>>, vector<16x98xf32>
    %c8_139 = arith.constant 8 : index
    %c0_140 = arith.constant 0 : index
    %140 = vector.load %arg11[%c8_139, %c0_140] : memref<9x98xf32, #tpu.memory_space<vmem>>, vector<1x98xf32>
    %141 = vector.broadcast %140 : vector<1x98xf32> to vector<16x98xf32>
    %142 = arith.mulf %139, %141 : vector<16x98xf32>
    %c128 = arith.constant 128 : index
    %c0_141 = arith.constant 0 : index
    %143 = vector.load %arg30[%c128, %c0_141] : memref<144x98xf32, #tpu.memory_space<vmem>>, vector<16x98xf32>
    tpu.vector_store %arg30[%c128, %c0_141], %142 {strides = array<i32>} : memref<144x98xf32, #tpu.memory_space<vmem>>, vector<16x98xf32>,
    %c0_142 = arith.constant 0 : index
    %c0_143 = arith.constant 0 : index
    %144 = vector.load %arg6[%c0_142, %c0_143] : memref<32x144xf32, #tpu.memory_space<vmem>>, vector<32x144xf32>
    %c0_144 = arith.constant 0 : index
    %c0_145 = arith.constant 0 : index
    %145 = vector.load %arg30[%c0_144, %c0_145] : memref<144x98xf32, #tpu.memory_space<vmem>>, vector<144x98xf32>
    %cst_146 = arith.constant dense<0.000000e+00> : vector<32x98xf32>
    %146 = tpu.matmul %144, %145, %cst_146 {dimension_numbers = #tpu.dot_dimension_numbers<[1], [0], [0], [1], [0, 0, 1, 1], [], []>, precision = #tpu.contract_precision<fp32>} : vector<32x144xf32>, vector<144x98xf32>, vector<32x98xf32> -> vector<32x98xf32>
    %c0_147 = arith.constant 0 : index
    %c0_148 = arith.constant 0 : index
    %147 = vector.load %arg7[%c0_147, %c0_148] : memref<32x1xf32, #tpu.memory_space<vmem>>, vector<32x1xf32>
    %148 = vector.broadcast %147 : vector<32x1xf32> to vector<32x98xf32>
    %149 = arith.addf %146, %148 : vector<32x98xf32>
    %cst_149 = arith.constant 0.000000e+00 : f32
    %150 = vector.broadcast %cst_149 : f32 to vector<32x98xf32>
    %151 = arith.maximumf %149, %150 : vector<32x98xf32>
    %c0_150 = arith.constant 0 : index
    %c0_151 = arith.constant 0 : index
    %152 = vector.load %arg31[%c0_150, %c0_151] : memref<32x98xf32, #tpu.memory_space<vmem>>, vector<32x98xf32>
    tpu.vector_store %arg31[%c0_150, %c0_151], %151 {strides = array<i32>} : memref<32x98xf32, #tpu.memory_space<vmem>>, vector<32x98xf32>,
    %cst_152 = arith.constant 0.000000e+00 : f32
    %153 = vector.broadcast %cst_152 : f32 to vector<32x4xf32>
    %c0_153 = arith.constant 0 : index
    %c0_154 = arith.constant 0 : index
    %154 = vector.load %arg32[%c0_153, %c0_154] : memref<32x26xf32, #tpu.memory_space<vmem>>, vector<32x4xf32>
    tpu.vector_store %arg32[%c0_153, %c0_154], %153 {strides = array<i32>} : memref<32x26xf32, #tpu.memory_space<vmem>>, vector<32x4xf32>,
    %cst_155 = arith.constant 0.000000e+00 : f32
    %155 = vector.broadcast %cst_155 : f32 to vector<32x4xf32>
    %c0_156 = arith.constant 0 : index
    %c22 = arith.constant 22 : index
    %156 = vector.load %arg32[%c0_156, %c22] : memref<32x26xf32, #tpu.memory_space<vmem>>, vector<32x4xf32>
    tpu.vector_store %arg32[%c0_156, %c22], %155 {strides = array<i32>} : memref<32x26xf32, #tpu.memory_space<vmem>>, vector<32x4xf32>,
    %c0_157 = arith.constant 0 : index
    %c0_158 = arith.constant 0 : index
    %157 = vector.load %arg31[%c0_157, %c0_158] : memref<32x98xf32, #tpu.memory_space<vmem>>, vector<32x33xf32>
    %c0_159 = arith.constant 0 : index
    %c1_160 = arith.constant 1 : index
    %158 = vector.load %arg31[%c0_159, %c1_160] : memref<32x98xf32, #tpu.memory_space<vmem>>, vector<32x33xf32>
    %159 = arith.maximumf %157, %158 : vector<32x33xf32>
    %c0_161 = arith.constant 0 : index
    %c7_162 = arith.constant 7 : index
    %160 = vector.load %arg31[%c0_161, %c7_162] : memref<32x98xf32, #tpu.memory_space<vmem>>, vector<32x33xf32>
    %c0_163 = arith.constant 0 : index
    %c8_164 = arith.constant 8 : index
    %161 = vector.load %arg31[%c0_163, %c8_164] : memref<32x98xf32, #tpu.memory_space<vmem>>, vector<32x33xf32>
    %162 = arith.maximumf %160, %161 : vector<32x33xf32>
    %163 = arith.maximumf %159, %162 : vector<32x33xf32>
    %c0_165 = arith.constant 0 : index
    %c0_166 = arith.constant 0 : index
    %164 = vector.load %arg14[%c0_165, %c0_166] : memref<33x9xf32, #tpu.memory_space<vmem>>, vector<33x9xf32>
    %cst_167 = arith.constant dense<0.000000e+00> : vector<32x9xf32>
    %165 = tpu.matmul %163, %164, %cst_167 {dimension_numbers = #tpu.dot_dimension_numbers<[1], [0], [0], [1], [0, 0, 1, 1], [], []>, precision = #tpu.contract_precision<fp32>} : vector<32x33xf32>, vector<33x9xf32>, vector<32x9xf32> -> vector<32x9xf32>
    %c0_168 = arith.constant 0 : index
    %c4_169 = arith.constant 4 : index
    %166 = vector.load %arg32[%c0_168, %c4_169] : memref<32x26xf32, #tpu.memory_space<vmem>>, vector<32x9xf32>
    tpu.vector_store %arg32[%c0_168, %c4_169], %165 {strides = array<i32>} : memref<32x26xf32, #tpu.memory_space<vmem>>, vector<32x9xf32>,
    %c0_170 = arith.constant 0 : index
    %c49 = arith.constant 49 : index
    %167 = vector.load %arg31[%c0_170, %c49] : memref<32x98xf32, #tpu.memory_space<vmem>>, vector<32x33xf32>
    %c0_171 = arith.constant 0 : index
    %c50 = arith.constant 50 : index
    %168 = vector.load %arg31[%c0_171, %c50] : memref<32x98xf32, #tpu.memory_space<vmem>>, vector<32x33xf32>
    %169 = arith.maximumf %167, %168 : vector<32x33xf32>
    %c0_172 = arith.constant 0 : index
    %c56_173 = arith.constant 56 : index
    %170 = vector.load %arg31[%c0_172, %c56_173] : memref<32x98xf32, #tpu.memory_space<vmem>>, vector<32x33xf32>
    %c0_174 = arith.constant 0 : index
    %c57_175 = arith.constant 57 : index
    %171 = vector.load %arg31[%c0_174, %c57_175] : memref<32x98xf32, #tpu.memory_space<vmem>>, vector<32x33xf32>
    %172 = arith.maximumf %170, %171 : vector<32x33xf32>
    %173 = arith.maximumf %169, %172 : vector<32x33xf32>
    %c0_176 = arith.constant 0 : index
    %c0_177 = arith.constant 0 : index
    %174 = vector.load %arg14[%c0_176, %c0_177] : memref<33x9xf32, #tpu.memory_space<vmem>>, vector<33x9xf32>
    %cst_178 = arith.constant dense<0.000000e+00> : vector<32x9xf32>
    %175 = tpu.matmul %173, %174, %cst_178 {dimension_numbers = #tpu.dot_dimension_numbers<[1], [0], [0], [1], [0, 0, 1, 1], [], []>, precision = #tpu.contract_precision<fp32>} : vector<32x33xf32>, vector<33x9xf32>, vector<32x9xf32> -> vector<32x9xf32>
    %c0_179 = arith.constant 0 : index
    %c13 = arith.constant 13 : index
    %176 = vector.load %arg32[%c0_179, %c13] : memref<32x26xf32, #tpu.memory_space<vmem>>, vector<32x9xf32>
    tpu.vector_store %arg32[%c0_179, %c13], %175 {strides = array<i32>} : memref<32x26xf32, #tpu.memory_space<vmem>>, vector<32x9xf32>,
    %c0_180 = arith.constant 0 : index
    %c0_181 = arith.constant 0 : index
    %177 = vector.load %arg32[%c0_180, %c0_181] : memref<32x26xf32, #tpu.memory_space<vmem>>, vector<32x18xf32>
    %c0_182 = arith.constant 0 : index
    %c0_183 = arith.constant 0 : index
    %178 = vector.load %arg12[%c0_182, %c0_183] : memref<9x18xf32, #tpu.memory_space<vmem>>, vector<1x18xf32>
    %179 = vector.broadcast %178 : vector<1x18xf32> to vector<32x18xf32>
    %180 = arith.mulf %177, %179 : vector<32x18xf32>
    %c0_184 = arith.constant 0 : index
    %c0_185 = arith.constant 0 : index
    %181 = vector.load %arg33[%c0_184, %c0_185] : memref<288x18xf32, #tpu.memory_space<vmem>>, vector<32x18xf32>
    tpu.vector_store %arg33[%c0_184, %c0_185], %180 {strides = array<i32>} : memref<288x18xf32, #tpu.memory_space<vmem>>, vector<32x18xf32>,
    %c0_186 = arith.constant 0 : index
    %c1_187 = arith.constant 1 : index
    %182 = vector.load %arg32[%c0_186, %c1_187] : memref<32x26xf32, #tpu.memory_space<vmem>>, vector<32x18xf32>
    %c1_188 = arith.constant 1 : index
    %c0_189 = arith.constant 0 : index
    %183 = vector.load %arg12[%c1_188, %c0_189] : memref<9x18xf32, #tpu.memory_space<vmem>>, vector<1x18xf32>
    %184 = vector.broadcast %183 : vector<1x18xf32> to vector<32x18xf32>
    %185 = arith.mulf %182, %184 : vector<32x18xf32>
    %c32_190 = arith.constant 32 : index
    %c0_191 = arith.constant 0 : index
    %186 = vector.load %arg33[%c32_190, %c0_191] : memref<288x18xf32, #tpu.memory_space<vmem>>, vector<32x18xf32>
    tpu.vector_store %arg33[%c32_190, %c0_191], %185 {strides = array<i32>} : memref<288x18xf32, #tpu.memory_space<vmem>>, vector<32x18xf32>,
    %c0_192 = arith.constant 0 : index
    %c2_193 = arith.constant 2 : index
    %187 = vector.load %arg32[%c0_192, %c2_193] : memref<32x26xf32, #tpu.memory_space<vmem>>, vector<32x18xf32>
    %c2_194 = arith.constant 2 : index
    %c0_195 = arith.constant 0 : index
    %188 = vector.load %arg12[%c2_194, %c0_195] : memref<9x18xf32, #tpu.memory_space<vmem>>, vector<1x18xf32>
    %189 = vector.broadcast %188 : vector<1x18xf32> to vector<32x18xf32>
    %190 = arith.mulf %187, %189 : vector<32x18xf32>
    %c64_196 = arith.constant 64 : index
    %c0_197 = arith.constant 0 : index
    %191 = vector.load %arg33[%c64_196, %c0_197] : memref<288x18xf32, #tpu.memory_space<vmem>>, vector<32x18xf32>
    tpu.vector_store %arg33[%c64_196, %c0_197], %190 {strides = array<i32>} : memref<288x18xf32, #tpu.memory_space<vmem>>, vector<32x18xf32>,
    %c0_198 = arith.constant 0 : index
    %c3_199 = arith.constant 3 : index
    %192 = vector.load %arg32[%c0_198, %c3_199] : memref<32x26xf32, #tpu.memory_space<vmem>>, vector<32x18xf32>
    %c3_200 = arith.constant 3 : index
    %c0_201 = arith.constant 0 : index
    %193 = vector.load %arg12[%c3_200, %c0_201] : memref<9x18xf32, #tpu.memory_space<vmem>>, vector<1x18xf32>
    %194 = vector.broadcast %193 : vector<1x18xf32> to vector<32x18xf32>
    %195 = arith.mulf %192, %194 : vector<32x18xf32>
    %c96_202 = arith.constant 96 : index
    %c0_203 = arith.constant 0 : index
    %196 = vector.load %arg33[%c96_202, %c0_203] : memref<288x18xf32, #tpu.memory_space<vmem>>, vector<32x18xf32>
    tpu.vector_store %arg33[%c96_202, %c0_203], %195 {strides = array<i32>} : memref<288x18xf32, #tpu.memory_space<vmem>>, vector<32x18xf32>,
    %c0_204 = arith.constant 0 : index
    %c4_205 = arith.constant 4 : index
    %197 = vector.load %arg32[%c0_204, %c4_205] : memref<32x26xf32, #tpu.memory_space<vmem>>, vector<32x18xf32>
    %c4_206 = arith.constant 4 : index
    %c0_207 = arith.constant 0 : index
    %198 = vector.load %arg12[%c4_206, %c0_207] : memref<9x18xf32, #tpu.memory_space<vmem>>, vector<1x18xf32>
    %199 = vector.broadcast %198 : vector<1x18xf32> to vector<32x18xf32>
    %200 = arith.mulf %197, %199 : vector<32x18xf32>
    %c128_208 = arith.constant 128 : index
    %c0_209 = arith.constant 0 : index
    %201 = vector.load %arg33[%c128_208, %c0_209] : memref<288x18xf32, #tpu.memory_space<vmem>>, vector<32x18xf32>
    tpu.vector_store %arg33[%c128_208, %c0_209], %200 {strides = array<i32>} : memref<288x18xf32, #tpu.memory_space<vmem>>, vector<32x18xf32>,
    %c0_210 = arith.constant 0 : index
    %c5_211 = arith.constant 5 : index
    %202 = vector.load %arg32[%c0_210, %c5_211] : memref<32x26xf32, #tpu.memory_space<vmem>>, vector<32x18xf32>
    %c5_212 = arith.constant 5 : index
    %c0_213 = arith.constant 0 : index
    %203 = vector.load %arg12[%c5_212, %c0_213] : memref<9x18xf32, #tpu.memory_space<vmem>>, vector<1x18xf32>
    %204 = vector.broadcast %203 : vector<1x18xf32> to vector<32x18xf32>
    %205 = arith.mulf %202, %204 : vector<32x18xf32>
    %c160 = arith.constant 160 : index
    %c0_214 = arith.constant 0 : index
    %206 = vector.load %arg33[%c160, %c0_214] : memref<288x18xf32, #tpu.memory_space<vmem>>, vector<32x18xf32>
    tpu.vector_store %arg33[%c160, %c0_214], %205 {strides = array<i32>} : memref<288x18xf32, #tpu.memory_space<vmem>>, vector<32x18xf32>,
    %c0_215 = arith.constant 0 : index
    %c6_216 = arith.constant 6 : index
    %207 = vector.load %arg32[%c0_215, %c6_216] : memref<32x26xf32, #tpu.memory_space<vmem>>, vector<32x18xf32>
    %c6_217 = arith.constant 6 : index
    %c0_218 = arith.constant 0 : index
    %208 = vector.load %arg12[%c6_217, %c0_218] : memref<9x18xf32, #tpu.memory_space<vmem>>, vector<1x18xf32>
    %209 = vector.broadcast %208 : vector<1x18xf32> to vector<32x18xf32>
    %210 = arith.mulf %207, %209 : vector<32x18xf32>
    %c192 = arith.constant 192 : index
    %c0_219 = arith.constant 0 : index
    %211 = vector.load %arg33[%c192, %c0_219] : memref<288x18xf32, #tpu.memory_space<vmem>>, vector<32x18xf32>
    tpu.vector_store %arg33[%c192, %c0_219], %210 {strides = array<i32>} : memref<288x18xf32, #tpu.memory_space<vmem>>, vector<32x18xf32>,
    %c0_220 = arith.constant 0 : index
    %c7_221 = arith.constant 7 : index
    %212 = vector.load %arg32[%c0_220, %c7_221] : memref<32x26xf32, #tpu.memory_space<vmem>>, vector<32x18xf32>
    %c7_222 = arith.constant 7 : index
    %c0_223 = arith.constant 0 : index
    %213 = vector.load %arg12[%c7_222, %c0_223] : memref<9x18xf32, #tpu.memory_space<vmem>>, vector<1x18xf32>
    %214 = vector.broadcast %213 : vector<1x18xf32> to vector<32x18xf32>
    %215 = arith.mulf %212, %214 : vector<32x18xf32>
    %c224 = arith.constant 224 : index
    %c0_224 = arith.constant 0 : index
    %216 = vector.load %arg33[%c224, %c0_224] : memref<288x18xf32, #tpu.memory_space<vmem>>, vector<32x18xf32>
    tpu.vector_store %arg33[%c224, %c0_224], %215 {strides = array<i32>} : memref<288x18xf32, #tpu.memory_space<vmem>>, vector<32x18xf32>,
    %c0_225 = arith.constant 0 : index
    %c8_226 = arith.constant 8 : index
    %217 = vector.load %arg32[%c0_225, %c8_226] : memref<32x26xf32, #tpu.memory_space<vmem>>, vector<32x18xf32>
    %c8_227 = arith.constant 8 : index
    %c0_228 = arith.constant 0 : index
    %218 = vector.load %arg12[%c8_227, %c0_228] : memref<9x18xf32, #tpu.memory_space<vmem>>, vector<1x18xf32>
    %219 = vector.broadcast %218 : vector<1x18xf32> to vector<32x18xf32>
    %220 = arith.mulf %217, %219 : vector<32x18xf32>
    %c256 = arith.constant 256 : index
    %c0_229 = arith.constant 0 : index
    %221 = vector.load %arg33[%c256, %c0_229] : memref<288x18xf32, #tpu.memory_space<vmem>>, vector<32x18xf32>
    tpu.vector_store %arg33[%c256, %c0_229], %220 {strides = array<i32>} : memref<288x18xf32, #tpu.memory_space<vmem>>, vector<32x18xf32>,
    %c0_230 = arith.constant 0 : index
    %c0_231 = arith.constant 0 : index
    %222 = vector.load %arg8[%c0_230, %c0_231] : memref<64x288xf32, #tpu.memory_space<vmem>>, vector<64x288xf32>
    %c0_232 = arith.constant 0 : index
    %c0_233 = arith.constant 0 : index
    %223 = vector.load %arg33[%c0_232, %c0_233] : memref<288x18xf32, #tpu.memory_space<vmem>>, vector<288x18xf32>
    %cst_234 = arith.constant dense<0.000000e+00> : vector<64x18xf32>
    %224 = tpu.matmul %222, %223, %cst_234 {dimension_numbers = #tpu.dot_dimension_numbers<[1], [0], [0], [1], [0, 0, 1, 1], [], []>, precision = #tpu.contract_precision<fp32>} : vector<64x288xf32>, vector<288x18xf32>, vector<64x18xf32> -> vector<64x18xf32>
    %c0_235 = arith.constant 0 : index
    %c0_236 = arith.constant 0 : index
    %225 = vector.load %arg9[%c0_235, %c0_236] : memref<64x1xf32, #tpu.memory_space<vmem>>, vector<64x1xf32>
    %226 = vector.broadcast %225 : vector<64x1xf32> to vector<64x18xf32>
    %227 = arith.addf %224, %226 : vector<64x18xf32>
    %cst_237 = arith.constant 0.000000e+00 : f32
    %228 = vector.broadcast %cst_237 : f32 to vector<64x18xf32>
    %229 = arith.maximumf %227, %228 : vector<64x18xf32>
    %c0_238 = arith.constant 0 : index
    %c0_239 = arith.constant 0 : index
    %230 = vector.load %arg15[%c0_238, %c0_239] : memref<18x2xf32, #tpu.memory_space<vmem>>, vector<18x2xf32>
    %cst_240 = arith.constant dense<0.000000e+00> : vector<64x2xf32>
    %231 = tpu.matmul %229, %230, %cst_240 {dimension_numbers = #tpu.dot_dimension_numbers<[1], [0], [0], [1], [0, 0, 1, 1], [], []>, precision = #tpu.contract_precision<fp32>} : vector<64x18xf32>, vector<18x2xf32>, vector<64x2xf32> -> vector<64x2xf32>
    %c0_241 = arith.constant 0 : index
    %c0_242 = arith.constant 0 : index
    %232 = vector.load %arg16[%c0_241, %c0_242] : memref<32x64xf32, #tpu.memory_space<vmem>>, vector<32x64xf32>
    %cst_243 = arith.constant dense<0.000000e+00> : vector<32x2xf32>
    %233 = tpu.matmul %232, %231, %cst_243 {dimension_numbers = #tpu.dot_dimension_numbers<[1], [0], [0], [1], [0, 0, 1, 1], [], []>, precision = #tpu.contract_precision<fp32>} : vector<32x64xf32>, vector<64x2xf32>, vector<32x2xf32> -> vector<32x2xf32>
    %c0_244 = arith.constant 0 : index
    %c0_245 = arith.constant 0 : index
    %234 = vector.load %arg17[%c0_244, %c0_245] : memref<32x1xf32, #tpu.memory_space<vmem>>, vector<32x1xf32>
    %235 = vector.broadcast %234 : vector<32x1xf32> to vector<32x2xf32>
    %236 = arith.addf %233, %235 : vector<32x2xf32>
    %cst_246 = arith.constant 0.000000e+00 : f32
    %237 = vector.broadcast %cst_246 : f32 to vector<32x2xf32>
    %238 = arith.maximumf %236, %237 : vector<32x2xf32>
    %c0_247 = arith.constant 0 : index
    %c0_248 = arith.constant 0 : index
    %239 = vector.load %arg18[%c0_247, %c0_248] : memref<16x32xf32, #tpu.memory_space<vmem>>, vector<16x32xf32>
    %cst_249 = arith.constant dense<0.000000e+00> : vector<16x2xf32>
    %240 = tpu.matmul %239, %238, %cst_249 {dimension_numbers = #tpu.dot_dimension_numbers<[1], [0], [0], [1], [0, 0, 1, 1], [], []>, precision = #tpu.contract_precision<fp32>} : vector<16x32xf32>, vector<32x2xf32>, vector<16x2xf32> -> vector<16x2xf32>
    %c0_250 = arith.constant 0 : index
    %c0_251 = arith.constant 0 : index
    %241 = vector.load %arg19[%c0_250, %c0_251] : memref<16x1xf32, #tpu.memory_space<vmem>>, vector<16x1xf32>
    %242 = vector.broadcast %241 : vector<16x1xf32> to vector<16x2xf32>
    %243 = arith.addf %240, %242 : vector<16x2xf32>
    %cst_252 = arith.constant 0.000000e+00 : f32
    %244 = vector.broadcast %cst_252 : f32 to vector<16x2xf32>
    %245 = arith.maximumf %243, %244 : vector<16x2xf32>
    %c0_253 = arith.constant 0 : index
    %c0_254 = arith.constant 0 : index
    %246 = vector.load %arg20[%c0_253, %c0_254] : memref<8x16xf32, #tpu.memory_space<vmem>>, vector<8x16xf32>
    %cst_255 = arith.constant dense<0.000000e+00> : vector<8x2xf32>
    %247 = tpu.matmul %246, %245, %cst_255 {dimension_numbers = #tpu.dot_dimension_numbers<[1], [0], [0], [1], [0, 0, 1, 1], [], []>, precision = #tpu.contract_precision<fp32>} : vector<8x16xf32>, vector<16x2xf32>, vector<8x2xf32> -> vector<8x2xf32>
    %c0_256 = arith.constant 0 : index
    %c0_257 = arith.constant 0 : index
    %248 = vector.load %arg21[%c0_256, %c0_257] : memref<8x1xf32, #tpu.memory_space<vmem>>, vector<8x1xf32>
    %249 = vector.broadcast %248 : vector<8x1xf32> to vector<8x2xf32>
    %250 = arith.addf %247, %249 : vector<8x2xf32>
    %cst_258 = arith.constant 0.000000e+00 : f32
    %251 = vector.broadcast %cst_258 : f32 to vector<8x2xf32>
    %252 = arith.maximumf %250, %251 : vector<8x2xf32>
    %c0_259 = arith.constant 0 : index
    %c0_260 = arith.constant 0 : index
    %253 = vector.load %arg22[%c0_259, %c0_260] : memref<1x8xf32, #tpu.memory_space<vmem>>, vector<1x8xf32>
    %cst_261 = arith.constant dense<0.000000e+00> : vector<1x2xf32>
    %254 = tpu.matmul %253, %252, %cst_261 {dimension_numbers = #tpu.dot_dimension_numbers<[1], [0], [0], [1], [0, 0, 1, 1], [], []>, precision = #tpu.contract_precision<fp32>} : vector<1x8xf32>, vector<8x2xf32>, vector<1x2xf32> -> vector<1x2xf32>
    %c0_262 = arith.constant 0 : index
    %c0_263 = arith.constant 0 : index
    %255 = vector.load %arg23[%c0_262, %c0_263] : memref<1x1xf32, #tpu.memory_space<vmem>>, vector<1x1xf32>
    %256 = vector.broadcast %255 : vector<1x1xf32> to vector<1x2xf32>
    %257 = arith.addf %254, %256 : vector<1x2xf32>
    %c0_264 = arith.constant 0 : index
    %c0_265 = arith.constant 0 : index
    %258 = vector.load %arg24[%c0_264, %c0_265] : memref<1x2xf32, #tpu.memory_space<vmem>>, vector<1x2xf32>
    tpu.vector_store %arg24[%c0_264, %c0_265], %257 {strides = array<i32>} : memref<1x2xf32, #tpu.memory_space<vmem>>, vector<1x2xf32>,
    return
  }
  func.func @transform_0(%arg0: i32) -> (i32, i32) {
    %c0_i32 = arith.constant 0 : i32
    %c0_i32_0 = arith.constant 0 : i32
    %c0_i32_1 = arith.constant 0 : i32
    return %c0_i32, %c0_i32_0 : i32, i32
  }
  func.func @transform_1(%arg0: i32) -> (i32, i32) {
    %c0_i32 = arith.constant 0 : i32
    %c0_i32_0 = arith.constant 0 : i32
    %c0_i32_1 = arith.constant 0 : i32
    return %c0_i32, %c0_i32_0 : i32, i32
  }
  func.func @transform_2(%arg0: i32) -> (i32, i32) {
    %c0_i32 = arith.constant 0 : i32
    %c0_i32_0 = arith.constant 0 : i32
    %c0_i32_1 = arith.constant 0 : i32
    return %c0_i32, %c0_i32_0 : i32, i32
  }
  func.func @transform_3(%arg0: i32) -> (i32, i32) {
    %c0_i32 = arith.constant 0 : i32
    %c0_i32_0 = arith.constant 0 : i32
    %c0_i32_1 = arith.constant 0 : i32
    return %c0_i32, %c0_i32_0 : i32, i32
  }
  func.func @transform_4(%arg0: i32) -> (i32, i32) {
    %c0_i32 = arith.constant 0 : i32
    %c0_i32_0 = arith.constant 0 : i32
    %c0_i32_1 = arith.constant 0 : i32
    return %c0_i32, %c0_i32_0 : i32, i32
  }
  func.func @transform_5(%arg0: i32) -> (i32, i32) {
    %c0_i32 = arith.constant 0 : i32
    %c0_i32_0 = arith.constant 0 : i32
    %c0_i32_1 = arith.constant 0 : i32
    return %c0_i32, %c0_i32_0 : i32, i32
  }
  func.func @transform_6(%arg0: i32) -> (i32, i32) {
    %c0_i32 = arith.constant 0 : i32
    %c0_i32_0 = arith.constant 0 : i32
    %c0_i32_1 = arith.constant 0 : i32
    return %c0_i32, %c0_i32_0 : i32, i32
  }
  func.func @transform_7(%arg0: i32) -> (i32, i32) {
    %c0_i32 = arith.constant 0 : i32
    %c0_i32_0 = arith.constant 0 : i32
    %c0_i32_1 = arith.constant 0 : i32
    return %c0_i32, %c0_i32_0 : i32, i32
  }
  func.func @transform_8(%arg0: i32) -> (i32, i32) {
    %c0_i32 = arith.constant 0 : i32
    %c0_i32_0 = arith.constant 0 : i32
    %c0_i32_1 = arith.constant 0 : i32
    return %c0_i32, %c0_i32_0 : i32, i32
  }
  func.func @transform_9(%arg0: i32) -> (i32, i32) {
    %c0_i32 = arith.constant 0 : i32
    %c0_i32_0 = arith.constant 0 : i32
    %c0_i32_1 = arith.constant 0 : i32
    return %c0_i32, %c0_i32_0 : i32, i32
  }
  func.func @transform_10(%arg0: i32) -> (i32, i32) {
    %c0_i32 = arith.constant 0 : i32
    %c0_i32_0 = arith.constant 0 : i32
    %c0_i32_1 = arith.constant 0 : i32
    return %c0_i32, %c0_i32_0 : i32, i32
  }
  func.func @transform_11(%arg0: i32) -> (i32, i32) {
    %c0_i32 = arith.constant 0 : i32
    %c0_i32_0 = arith.constant 0 : i32
    %c0_i32_1 = arith.constant 0 : i32
    return %c0_i32, %c0_i32_0 : i32, i32
  }
  func.func @transform_12(%arg0: i32) -> (i32, i32) {
    %c0_i32 = arith.constant 0 : i32
    %c0_i32_0 = arith.constant 0 : i32
    %c0_i32_1 = arith.constant 0 : i32
    return %c0_i32, %c0_i32_0 : i32, i32
  }
  func.func @transform_13(%arg0: i32) -> (i32, i32) {
    %c0_i32 = arith.constant 0 : i32
    %c0_i32_0 = arith.constant 0 : i32
    %c0_i32_1 = arith.constant 0 : i32
    return %c0_i32, %c0_i32_0 : i32, i32
  }
  func.func @transform_14(%arg0: i32) -> (i32, i32) {
    %c0_i32 = arith.constant 0 : i32
    %c0_i32_0 = arith.constant 0 : i32
    %c0_i32_1 = arith.constant 0 : i32
    return %c0_i32, %c0_i32_0 : i32, i32
  }
  func.func @transform_15(%arg0: i32) -> (i32, i32) {
    %c0_i32 = arith.constant 0 : i32
    %c0_i32_0 = arith.constant 0 : i32
    %c0_i32_1 = arith.constant 0 : i32
    return %c0_i32, %c0_i32_0 : i32, i32
  }
  func.func @transform_16(%arg0: i32) -> (i32, i32) {
    %c0_i32 = arith.constant 0 : i32
    %c0_i32_0 = arith.constant 0 : i32
    %c0_i32_1 = arith.constant 0 : i32
    return %c0_i32, %c0_i32_0 : i32, i32
  }
  func.func @transform_17(%arg0: i32) -> (i32, i32) {
    %c0_i32 = arith.constant 0 : i32
    %c0_i32_0 = arith.constant 0 : i32
    %c0_i32_1 = arith.constant 0 : i32
    return %c0_i32, %c0_i32_0 : i32, i32
  }
  func.func @transform_18(%arg0: i32) -> (i32, i32) {
    %c0_i32 = arith.constant 0 : i32
    %c0_i32_0 = arith.constant 0 : i32
    %c0_i32_1 = arith.constant 0 : i32
    return %c0_i32, %c0_i32_0 : i32, i32
  }
  func.func @transform_19(%arg0: i32) -> (i32, i32) {
    %c0_i32 = arith.constant 0 : i32
    %c0_i32_0 = arith.constant 0 : i32
    %c0_i32_1 = arith.constant 0 : i32
    return %c0_i32, %c0_i32_0 : i32, i32
  }
  func.func @transform_20(%arg0: i32) -> (i32, i32) {
    %c0_i32 = arith.constant 0 : i32
    %c0_i32_0 = arith.constant 0 : i32
    %c0_i32_1 = arith.constant 0 : i32
    return %c0_i32, %c0_i32_0 : i32, i32
  }
  func.func @transform_21(%arg0: i32) -> (i32, i32) {
    %c0_i32 = arith.constant 0 : i32
    %c0_i32_0 = arith.constant 0 : i32
    %c0_i32_1 = arith.constant 0 : i32
    return %c0_i32, %c0_i32_0 : i32, i32
  }
  func.func @transform_22(%arg0: i32) -> (i32, i32) {
    %c0_i32 = arith.constant 0 : i32
    %c0_i32_0 = arith.constant 0 : i32
    %c0_i32_1 = arith.constant 0 : i32
    return %c0_i32, %c0_i32_0 : i32, i32
  }
  func.func @transform_23(%arg0: i32) -> (i32, i32) {
    %c0_i32 = arith.constant 0 : i32
    %c0_i32_0 = arith.constant 0 : i32
    %c0_i32_1 = arith.constant 0 : i32
    return %c0_i32, %c0_i32_0 : i32, i32
  }
}

</mosaic_0001>

<bundles_post_ra>
// kernel: tunnel_yaw_forward.1
= control target key start
LH: loop header
LB: loop body
LE: loop exit
PB: predicated region body
PF: predicated region fallthrough
CT: control target
= control target key end

     0   :  { %s21972_s0 = inlined_call_operand.vmem [shape: f32[36,450], index: 0, kind: input, shape index: {}]   ;;  %s21973_s1 = inlined_call_operand.vmem [shape: f32[32,36], index: 1, kind: input, shape index: {}]   ;;  %s21974_s2 = inlined_call_operand.vmem [shape: f32[8,1], index: 2, kind: input, shape index: {}]   ;;  %s21975_s3 = inlined_call_operand.vmem [shape: f32[16,72], index: 3, kind: input, shape index: {}]   ;;  %s21976_s4 = inlined_call_operand.vmem [shape: f32[16,1], index: 4, kind: input, shape index: {}]   ;;  %s21977_s5 = inlined_call_operand.vmem [shape: f32[32,144], index: 5, kind: input, shape index: {}]   ;;  %s21978_s6 = inlined_call_operand.vmem [shape: f32[32,1], index: 6, kind: input, shape index: {}]   ;;  %s21979_s7 = inlined_call_operand.vmem [shape: f32[64,288], index: 7, kind: input, shape index: {}]   ;;  %s21980_s8 = inlined_call_operand.vmem [shape: f32[64,1], index: 8, kind: input, shape index: {}]   ;;  %s21981_s9 = inlined_call_operand.vmem [shape: f32[9,450], index: 9, kind: input, shape index: {}]   ;;  %s21982_s10 = inlined_call_operand.vmem [shape: f32[9,98], index: 10, kind: input, shape index: {}]   ;;  %s21983_s11 = inlined_call_operand.vmem [shape: f32[9,18], index: 11, kind: input, shape index: {}]   ;;  %s21984_s12 = inlined_call_operand.vmem [shape: f32[193,49], index: 12, kind: input, shape index: {}]   ;;  %s21985_s13 = inlined_call_operand.vmem [shape: f32[33,9], index: 13, kind: input, shape index: {}]   ;;  %s21986_s14 = inlined_call_operand.vmem [shape: f32[18,2], index: 14, kind: input, shape index: {}]   ;;  %s21987_s15 = inlined_call_operand.vmem [shape: f32[32,64], index: 15, kind: input, shape index: {}]   ;;  %s21988_s16 = inlined_call_operand.vmem [shape: f32[32,1], index: 16, kind: input, shape index: {}]   ;;  %s21989_s17 = inlined_call_operand.vmem [shape: f32[16,32], index: 17, kind: input, shape index: {}]   ;;  %s21990_s18 = inlined_call_operand.vmem [shape: f32[16,1], index: 18, kind: input, shape index: {}]   ;;  %s21991_s19 = inlined_call_operand.vmem [shape: f32[8,16], index: 19, kind: input, shape index: {}]   ;;  %s21992_s20 = inlined_call_operand.vmem [shape: f32[8,1], index: 20, kind: input, shape index: {}]   ;;  %s21993_s21 = inlined_call_operand.vmem [shape: f32[1,8], index: 21, kind: input, shape index: {}]   ;;  %s21994_s22 = inlined_call_operand.<no memory space> [shape: f32[1,1], index: 22, kind: input, shape index: {}]   ;;  %s21995_s23 = inlined_call_operand.hbm [shape: f32[1,2], index: 23, kind: output, shape index: {}]  }
   0x1   :  { %22256 = sst [smem:[#allocation72_spill]] %s21972_s0  ;;  %v28_v0 = vstv %s21994_s22 }
   0x2   :  { %22257 = sst [smem:[#allocation73_spill]] %s21973_s1  ;;  %29 = vst [vmem:[#allocation11] sm:$0x1] %v28_v0 }
   0x3   :  { %22258 = sst [smem:[#allocation74_spill]] %s21974_s2 }
   0x4   :  { %22259 = sst [smem:[#allocation75_spill]] %s21975_s3 }
   0x5   :  { %22260 = sst [smem:[#allocation76_spill]] %s21976_s4 }
   0x6   :  { %22261 = sst [smem:[#allocation77_spill]] %s21977_s5 }
   0x7   :  { %22262 = sst [smem:[#allocation78_spill]] %s21978_s6 }
   0x8   :  { %22263 = sst [smem:[#allocation79_spill]] %s21979_s7 }
   0x9   :  { %s22264_s5 = sld [smem:[#allocation72_spill]]  ;;  %vm114_vm0 = vcmask 1043456   ;;  %v22023_v10 = vmov 0.0   ;;  %vm101_vm1 = vcmask 293888   ;;  %s22265_s0 = sld [smem:[#allocation73_spill]] }
   0xa   :  { %201 = vmatprep.mubr.f32.mxu0 %v22023_v10  ;;  %917 = vmatprep.mubr.f32.mxu1 %v22023_v10 }
   0xf   :  { %v82_v1 = vld [vmem:[%s22264_s5 + $0x8] sm:$0xff]  ;;  %v84_v3 = vld [vmem:[%s22264_s5 + $0x18] sm:$0xff]  ;;  %v81_v8 = vld [vmem:[%s22264_s5] sm:$0xff] }
  0x10   :  { %v86_v2 = vld [vmem:[%s22264_s5 + $0x28] sm:$0xff]  ;;  %v127_v4 = vand.u32 4294901760, %v82_v1  ;;  %v88_v6 = vld [vmem:[%s22264_s5 + $0x38] sm:$0xff]  ;;  %v843_v7 = vand.u32 4294901760, %v84_v3  ;;  %v85_v9 = vld [vmem:[%s22264_s5 + $0x20] sm:$0xff]  ;;  %v129_v12 = vand.u32 4294901760, %v81_v8 }
  0x11   :  { %v131_v5 = vand.u32 4294901760, %v86_v2  ;;  %v847_v11 = vand.u32 4294901760, %v88_v6  ;;  %v133_v13 = vand.u32 4294901760, %v85_v9  ;;  %v83_v14 = vld [vmem:[%s22264_s5 + $0x10] sm:$0xff]  ;;  %v90_v16 = vld [vmem:[%s22264_s5 + $0x48] sm:$0xff]  ;;  %v92_v22 = vld [vmem:[%s22264_s5 + $0x58] sm:$0xff] }
  0x12   :  { %v87_v15 = vld [vmem:[%s22264_s5 + $0x30] sm:$0xff]  ;;  %v17192_v18 = vsub.f32 %v82_v1, %v127_v4  ;;  %v17196_v20 = vsub.f32 %v84_v3, %v843_v7  ;;  %v94_v21 = vld [vmem:[%s22264_s5 + $0x68] sm:$0xff]  ;;  %v96_v23 = vld [vmem:[%s22264_s5 + $0x78] sm:$0xff]  ;;  %v17213_v27 = vsub.f32 %v81_v8, %v129_v12  ;;  %v845_v30 = vand.u32 4294901760, %v83_v14 }
  0x13   :  { %v17190_v17 = vpack.c.bf16 %v131_v5, %v127_v4  ;;  %v17194_v19 = vsub.f32 %v86_v2, %v131_v5  ;;  %v17207_v24 = vpack.c.bf16 %v847_v11, %v843_v7  ;;  %v17209_v25 = vsub.f32 %v88_v6, %v847_v11  ;;  %v89_v28 = vld [vmem:[%s22264_s5 + $0x40] sm:$0xff]  ;;  %v91_v38 = vld [vmem:[%s22264_s5 + $0x50] sm:$0xff]  ;;  %v98_v44 = vld [vmem:[%s22264_s5 + $0x88] sm:$0xf] }
  0x14   :  { %v17211_v26 = vpack.c.bf16 %v133_v13, %v129_v12  ;;  %v17219_v29 = vsub.f32 %v85_v9, %v133_v13  ;;  %v849_v31 = vand.u32 4294901760, %v87_v15  ;;  %v135_v32 = vand.u32 4294901760, %v90_v16  ;;  %v93_v33 = vld [vmem:[%s22264_s5 + $0x60] sm:$0xff]  ;;  %v95_v39 = vld [vmem:[%s22264_s5 + $0x70] sm:$0xff]  ;;  %v100_v45 = vld [vmem:[%s22264_s5 + $0x98] sm:$0xf] }
  0x15   :  { %15127 = vmatprep.subr.bf16.mxu0 %v17190_v17  ;;  %15175 = vmatprep.subr.bf16.mxu1 %v17207_v24  ;;  %v139_v34 = vand.u32 4294901760, %v94_v21  ;;  %v851_v35 = vand.u32 4294901760, %v92_v22  ;;  %v855_v36 = vand.u32 4294901760, %v96_v23  ;;  %v137_v37 = vand.u32 4294901760, %v89_v28  ;;  %v97_v46 = vld [vmem:[%s22264_s5 + $0x80] sm:$0xf] }
  0x16   :  { %15129 = vmatpush1.bf16.msra.mxu0 %v17211_v26  ;;  %v17232_v40 = vpack.c.bf16 %v849_v31, %v845_v30  ;;  %v17234_v41 = vsub.f32 %v83_v14, %v845_v30  ;;  %v17236_v42 = vsub.f32 %v87_v15, %v849_v31  ;;  %v17238_v43 = vsub.f32 %v90_v16, %v135_v32  ;;  %v99_v55 = vld [vmem:[%s22264_s5 + $0x90] sm:$0xf]  ;;  %v77_v56 = vld [vmem:[%s22265_s0] sm:$0xff]  ;;  %v78_v57 = vld [vmem:[%s22265_s0 + $0x8] sm:$0xff] }
  0x17   :  { %v17249_v47 = vpack.c.bf16 %v139_v34, %v135_v32  ;;  %v17251_v48 = vsub.f32 %v94_v21, %v139_v34  ;;  %v17253_v49 = vpack.c.bf16 %v855_v36, %v851_v35  ;;  %v17255_v50 = vsub.f32 %v92_v22, %v851_v35 }
  0x18   :  { %15177 = vmatpush1.bf16.msra.mxu1 %v17232_v40  ;;  %v17258_v51 = vsub.f32 %v96_v23, %v855_v36  ;;  %v141_v52 = vand.u32 4294901760, %v93_v33  ;;  %v17260_v53 = vsub.f32 %v89_v28, %v137_v37  ;;  %v853_v54 = vand.u32 4294901760, %v91_v38 }
  0x19   :  { %15131 = vmatprep.subr.bf16.mxu0 %v17249_v47  ;;  %15179 = vmatprep.subr.bf16.mxu1 %v17253_v49  ;;  %v857_v58 = vand.u32 4294901760, %v95_v39  ;;  %v17274_v59 = vsel %vm114_vm0, %v98_v44, 0  ;;  %v17277_v60 = vsel %vm114_vm0, %v100_v45, 0  ;;  %v116_v61 = vsel %vm114_vm0, %v97_v46, 0 }
  0x1a   :  { %30 = vsyncpa [#allocation13], 0  ;;  %v17280_v62 = vpack.c.bf16 %v141_v52, %v137_v37  ;;  %v17282_v63 = vsub.f32 %v93_v33, %v141_v52  ;;  %v17284_v0 = vsub.f32 %v91_v38, %v853_v54  ;;  %v17287_v1 = vand.u32 4294901760, %v17274_v59  ;;  %s22266_s7 = sld [smem:[#allocation74_spill]]  ;;  %s22143_s22 = smov 1  }
  0x1b   :  { %v17289_v2 = vpack.c.bf16 %v857_v58, %v853_v54  ;;  %v17291_v3 = vsub.f32 %v95_v39, %v857_v58  ;;  %v17294_v4 = vand.u32 4294901760, %v17277_v60  ;;  %v17296_v5 = vand.u32 4294901760, %v116_v61  ;;  %v79_v54 = vld [vmem:[%s22265_s0 + $0x10] sm:$0xff]  ;;  %s22144_s3 = smov 2   ;;  %s17002_s30 = smov 15  }
  0x1c   :  { %15133 = vmatpush1.bf16.msra.mxu0 %v17280_v62  ;;  %v122_v6 = vsel %vm114_vm0, %v99_v55, 0  ;;  %v103_v7 = vsel %vm101_vm1, %v77_v56, 0  ;;  %v106_v8 = vsel %vm101_vm1, %v78_v57, 0  ;;  %v248_v9 = vand.u32 4294901760, %v17192_v18  ;;  %s17003_s25 = smov 16   ;;  %s17004_s2 = smov 17  }
  0x1d   :  { %15181 = vmatpush1.bf16.msra.mxu1 %v17289_v2  ;;  %144 = vmatprep.subr.mxu0 %v17287_v1  ;;  %v17306_v11 = vsub.f32 %v116_v61, %v17296_v5  ;;  %v17308_v12 = vand.u32 4294901760, %v122_v6  ;;  %v17310_v13 = vand.u32 4294901760, %v103_v7  ;;  %v17312_v14 = vand.u32 4294901760, %v106_v8  ;;  %s17005_s29 = smov 30   ;;  %s17007_s24 = smov 32  }
  0x1e   :  { %860 = vmatprep.subr.mxu1 %v17294_v4  ;;  %v249_v15 = vsub.f32 %v17192_v18, %v248_v9  ;;  %v260_v16 = vand.u32 4294901760, %v17194_v19  ;;  %v22014_v21 = vand.u32 4294901760, %v17196_v20  ;;  %v22013_v22 = vand.u32 4294901760, %v17209_v25  ;;  %s17010_s6 = smov 112   ;;  %s17011_s27 = smov 113  }
  0x1f   :  { %v17322_v23 = vsub.f32 %v122_v6, %v17308_v12  ;;  %v17325_v28 = vsub.f32 %v103_v7, %v17310_v13  ;;  %v17328_v30 = vsub.f32 %v106_v8, %v17312_v14  ;;  %v22011_v31 = vand.u32 4294901760, %v17213_v27  ;;  %s17013_s28 = smov 97   ;;  %s17015_s4 = smov 96  }
  0x20   :  { %146 = vmatpush1.msra.mxu0 %v17296_v5  ;;  %v250_v32 = vand.u32 4294901760, %v249_v15  ;;  %v261_v33 = vsub.f32 %v17194_v19, %v260_v16  ;;  %v965_v34 = vsub.f32 %v17196_v20, %v22014_v21  ;;  %v977_v35 = vsub.f32 %v17209_v25, %v22013_v22  ;;  %s22282_s1 = sld [smem:[#allocation76_spill]] }
  0x21   :  { %862 = vmatpush1.msra.mxu1 %v17308_v12  ;;  %v17343_v36 = vand.u32 4294901760, %v17325_v28  ;;  %v17346_v37 = vand.u32 4294901760, %v17328_v30  ;;  %v255_v38 = vsub.f32 %v17213_v27, %v22011_v31  ;;  %v22003_v39 = vand.u32 4294901760, %v17219_v29 }
  0x22   :  { %v262_v44 = vand.u32 4294901760, %v261_v33  ;;  %v966_v45 = vand.u32 4294901760, %v965_v34  ;;  %v978_v46 = vand.u32 4294901760, %v977_v35  ;;  %v22010_v52 = vand.u32 4294901760, %v17234_v41 }
  0x23   :  { %v205_v55 = vsub.f32 %v17325_v28, %v17343_v36  ;;  %v216_v56 = vsub.f32 %v17328_v30, %v17346_v37  ;;  %v256_v57 = vand.u32 4294901760, %v255_v38  ;;  %v267_v58 = vsub.f32 %v17219_v29, %v22003_v39 }
  0x24   :  { %v15134_v61 = vpack.c.bf16 %v262_v44, %v250_v32  ;;  %v15182_v6 = vpack.c.bf16 %v978_v46, %v966_v45  ;;  %v971_v7 = vsub.f32 %v17234_v41, %v22010_v52  ;;  %v22007_v8 = vand.u32 4294901760, %v17236_v42 }
  0x25   :  { %v206_v15 = vand.u32 4294901760, %v205_v55  ;;  %v217_v33 = vand.u32 4294901760, %v216_v56  ;;  %v268_v34 = vand.u32 4294901760, %v267_v58  ;;  %v109_v35 = vsel %vm101_vm1, %v79_v54, 0 }
  0x26   :  { %15135 = vmatprep.subr.bf16.mxu0 %v15134_v61  ;;  %15183 = vmatprep.subr.bf16.mxu1 %v15182_v6  ;;  %v972_v38 = vand.u32 4294901760, %v971_v7  ;;  %v983_v39 = vsub.f32 %v17236_v42, %v22007_v8  ;;  %v17371_v32 = vand.u32 4294901760, %v109_v35  ;;  %v22004_v44 = vand.u32 4294901760, %v17238_v43 }
  0x27   :  { %207 = vmatmul.mubr.f32.vlgmr.msra.gmra.mrb[0].mxu0 %v206_v15  ;;  %923 = vmatmul.mubr.f32.vlgmr.msra.gmra.mrb[0].mxu1 %v206_v15  ;;  %v15136_v45 = vpack.c.bf16 %v268_v34, %v256_v57  ;;  %v22005_v46 = vand.u32 4294901760, %v17251_v48  ;;  %v22006_v55 = vand.u32 4294901760, %v17255_v50  ;;  %v22008_v54 = vand.u32 4294901760, %v17258_v51 }
  0x28   :  { %212 = vmatprep.mubr.f32.mxu0 %v22023_v10  ;;  %928 = vmatprep.mubr.f32.mxu1 %v22023_v10  ;;  %v984_v56 = vand.u32 4294901760, %v983_v39  ;;  %v17380_v58 = vsub.f32 %v109_v35, %v17371_v32  ;;  %v273_v61 = vsub.f32 %v17238_v43, %v22004_v44  ;;  %v22009_v57 = vand.u32 4294901760, %v17260_v53 }
  0x29   :  { %15137 = vmatpush1.bf16.msra.mxu0 %v15136_v45  ;;  %v285_v6 = vsub.f32 %v17251_v48, %v22005_v46  ;;  %v989_v7 = vsub.f32 %v17255_v50, %v22006_v55  ;;  %v1001_v39 = vsub.f32 %v17258_v51, %v22008_v54  ;;  %v22012_v15 = vand.u32 4294901760, %v17282_v63  ;;  %v80_v46 = vld [vmem:[%s22265_s0 + $0x18] sm:$0xff]  ;;  %s17006_s0 = smov 31  }
  0x2a   :  { %v15184_v34 = vpack.c.bf16 %v984_v56, %v972_v38  ;;  %v17397_v35 = vand.u32 4294901760, %v17380_v58  ;;  %v274_v44 = vand.u32 4294901760, %v273_v61  ;;  %v279_v45 = vsub.f32 %v17260_v53, %v22009_v57 }
  0x2b   :  { %218 = vmatmul.mubr.f32.gmra.mrb[2].mxu0 %v217_v33  ;;  %934 = vmatmul.mubr.f32.gmra.mrb[2].mxu1 %v217_v33  ;;  %v286_v55 = vand.u32 4294901760, %v285_v6  ;;  %v990_v8 = vand.u32 4294901760, %v989_v7  ;;  %v1002_v54 = vand.u32 4294901760, %v1001_v39  ;;  %v291_v38 = vsub.f32 %v17282_v63, %v22012_v15 }
  0x2c   :  { %223 = vmatprep.mubr.f32.mxu0 %v22023_v10  ;;  %939 = vmatprep.mubr.f32.mxu1 %v22023_v10  ;;  %v227_v56 = vsub.f32 %v17380_v58, %v17397_v35  ;;  %v280_v61 = vand.u32 4294901760, %v279_v45  ;;  %v994_v57 = vand.u32 4294901760, %v17284_v0  ;;  %v1006_v52 = vand.u32 4294901760, %v17291_v3 }
  0x2d   :  { %15185 = vmatpush1.bf16.msra.mxu1 %v15184_v34  ;;  %v15138_v33 = vpack.c.bf16 %v286_v55, %v274_v44  ;;  %v15186_v6 = vpack.c.bf16 %v1002_v54, %v990_v8  ;;  %v292_v7 = vand.u32 4294901760, %v291_v38  ;;  %v112_v39 = vsel %vm101_vm1, %v80_v46, 0 }
  0x2e   :  { %v228_v31 = vand.u32 4294901760, %v227_v56  ;;  %v995_v15 = vsub.f32 %v17284_v0, %v994_v57  ;;  %v1007_v22 = vsub.f32 %v17291_v3, %v1006_v52  ;;  %v17421_v45 = vand.u32 4294901760, %v112_v39 }
  0x2f   :  { %15139 = vmatprep.subr.bf16.mxu0 %v15138_v33  ;;  %15187 = vmatprep.subr.bf16.mxu1 %v15186_v6  ;;  %v15140_v21 = vpack.c.bf16 %v292_v7, %v280_v61  ;;  %v17425_v8 = vsub.f32 %v17274_v59, %v17287_v1  ;;  %v17429_v44 = vsub.f32 %v17277_v60, %v17294_v4  ;;  %v22016_v46 = vand.u32 4294901760, %v17306_v11 }
  0x30   :  { %229 = vmatmul.mubr.f32.gmra.mrb[4].mxu0 %v228_v31  ;;  %945 = vmatmul.mubr.f32.gmra.mrb[4].mxu1 %v228_v31  ;;  %v996_v55 = vand.u32 4294901760, %v995_v15  ;;  %v1008_v54 = vand.u32 4294901760, %v1007_v22  ;;  %v17433_v34 = vsub.f32 %v112_v39, %v17421_v45  ;;  %v22015_v38 = vand.u32 4294901760, %v17322_v23 }
  0x31   :  { %234 = vmatprep.mubr.f32.mxu0 %v22023_v10  ;;  %15141 = vmatpush1.bf16.msra.mxu0 %v15140_v21  ;;  %v296_v59 = vand.u32 4294901760, %v17425_v8  ;;  %v1012_v56 = vand.u32 4294901760, %v17429_v44  ;;  %v303_v60 = vsub.f32 %v17306_v11, %v22016_v46  ;;  %v15190_v46 = vpack.c.bf16 %v17209_v25, %v17196_v20 }
  0x32   :  { %950 = vmatprep.mubr.f32.mxu1 %v22023_v10  ;;  %v15188_v31 = vpack.c.bf16 %v1008_v54, %v996_v55  ;;  %v17444_v22 = vand.u32 4294901760, %v17433_v34  ;;  %v1019_v15 = vsub.f32 %v17322_v23, %v22015_v38  ;;  %v15142_v38 = vpack.c.bf16 %v17194_v19, %v17192_v18 }
  0x33   :  { %v297_v21 = vsub.f32 %v17425_v8, %v296_v59  ;;  %v1013_v61 = vsub.f32 %v17429_v44, %v1012_v56  ;;  %v304_v39 = vand.u32 4294901760, %v303_v60  ;;  %v15144_v60 = vpack.c.bf16 %v17219_v29, %v17213_v27 }
  0x34   :  { %15189 = vmatpush1.bf16.msra.mxu1 %v15188_v31  ;;  %v238_v33 = vsub.f32 %v17433_v34, %v17444_v22  ;;  %v1020_v54 = vand.u32 4294901760, %v1019_v15  ;;  %v15192_v31 = vpack.c.bf16 %v17236_v42, %v17234_v41  ;;  %v1653_v15 = vlaneseq }
  0x35   :  { %v298_v6 = vand.u32 4294901760, %v297_v21  ;;  %v1014_v7 = vand.u32 4294901760, %v1013_v61  ;;  %v15146_v21 = vpack.c.bf16 %v17251_v48, %v17238_v43  ;;  %v15194_v61 = vpack.c.bf16 %v17258_v51, %v17255_v50 }
  0x36   :  { %v239_v55 = vand.u32 4294901760, %v238_v33  ;;  %v17479_v33 = vshrl.u32 %v1653_v15, 7  ;;  %v22268_v15 = vand.u32 4294901760, %v17209_v25  ;;  %v22270_v25 = vand.u32 4294901760, %v17219_v29 }
  0x37   :  { %299 = vmatprep.subr.mxu0 %v298_v6  ;;  %1015 = vmatprep.subr.mxu1 %v1014_v7  ;;  %v17493_v7 = vld [vmem:[%s21981_s9 + $0x1] ss:$8 sm:$0xf]  ;;  %vm1604_vm2 = vcmask 130048   ;;  %vm1562_vm3 = vcmask 539648   ;;  %vm1606_vm4 = vcmask 802448  }
  0x38   :  { %240 = vmatmul.mubr.f32.gmra.mrb[6].mxu0 %v239_v55  ;;  %956 = vmatmul.mubr.f32.gmra.mrb[6].mxu1 %v239_v55  ;;  %v17486_v6 = vsub.s32 1, %v17479_v33  ;;  %v1608_v55 = vld [vmem:[%s22266_s7] sm:$0xff]  ;;  %1605 = vst.msk [vmem:[#allocation3] sm:$0xff] %vm1604_vm2, %v22023_v10  ;;  %vm1641_vm5 = vcmask 1047680   ;;  %vm1645_vm6 = vcmask 670720   ;;  %s17012_s7 = smov 111  }
  0x39   :  { %305 = vmatpush1.msra.mxu0 %v304_v39  ;;  %360 = vmatprep.mubr.f32.mxu0 %v22023_v10  ;;  %1607 = vst.msk [vmem:[#allocation3 + $0x18] sm:$0xff] %vm1606_vm4, %v22023_v10  ;;  %vm1712_vm7 = vcmask 7168   ;;  %vm1779_vm8 = vcmask 15360   ;;  %vm1846_vm9 = vcmask 121856   ;;  %vm1979_vm10 = vcmask 138240  }
  0x3a   :  { %1021 = vmatpush1.msra.mxu1 %v1020_v54  ;;  %1076 = vmatprep.mubr.f32.mxu1 %v22023_v10  ;;  %v1695_v39 = vrot.slane %v17493_v7, %v17486_v6  ;;  %v16999_v54 = vmov 0   ;;  %vm2046_vm11 = vcmask 244736   ;;  %vm2113_vm12 = vcmask 252928  }
  0x3b   :  { %15143 = vmatprep.subr.bf16.mxu0 %v15142_v38  ;;  %15191 = vmatprep.subr.bf16.mxu1 %v15190_v46  ;;  %v15148_v38 = vpack.c.bf16 %v17282_v63, %v17260_v53  ;;  %v15196_v46 = vpack.c.bf16 %v17291_v3, %v17284_v0  ;;  %vm2180_vm13 = vcmask 261120   ;;  %vm2266_vm14 = vcmask 588800  }
  0x3c   :  { %362 = vmatmul.mubr.f32.vlgmr.msra.gmra.mrb[0].mxu0 %v17310_v13  ;;  %1078 = vmatmul.mubr.f32.vlgmr.msra.gmra.mrb[0].mxu1 %v17310_v13  ;;  %vm1736_vm15 = vcmask 1039360   ;;  %vm1803_vm0 = vcmask 1031168   ;;  %vm1870_vm1 = vcmask 924672   ;;  %vm1936_vm4 = vcmask 916480  }
  0x3d   :  { %367 = vmatprep.mubr.f32.mxu0 %v22023_v10  ;;  %1083 = vmatprep.mubr.f32.mxu1 %v22023_v10 }
  0x3e   :  { %15145 = vmatpush1.bf16.msra.mxu0 %v15144_v60  ;;  %15193 = vmatpush1.bf16.msra.mxu1 %v15192_v31  ;;  %v17531_v60 = vsub.s32 2, %v17479_v33  ;;  %v22267_v31 = vand.u32 4294901760, %v17196_v20  ;;  %v22269_v20 = vand.u32 4294901760, %v17213_v27  ;;  %v22276_v27 = vand.u32 4294901760, %v17258_v51 }
  0x3f   :  { %15147 = vmatprep.subr.bf16.mxu0 %v15146_v21  ;;  %15195 = vmatprep.subr.bf16.mxu1 %v15194_v61  ;;  %v13691_v51 = vld [vmem:[%s21981_s9 + $0x2] ss:$8 sm:$0xf] }
  0x40   :  { %369 = vmatmul.mubr.f32.gmra.mrb[2].mxu0 %v17312_v14  ;;  %1085 = vmatmul.mubr.f32.gmra.mrb[2].mxu1 %v17312_v14  ;;  %v15206_v21 = vpack.c.bf16 %v22268_v15, %v22267_v31  ;;  %v1699_v19 = vrot.slane %v17493_v7, %v17531_v60  ;;  %v1762_v0 = vrot.slane %v13691_v51, %v17486_v6 }
  0x41   :  { %374 = vmatprep.mubr.f32.mxu0 %v22023_v10  ;;  %1090 = vmatprep.mubr.f32.mxu1 %v22023_v10 }
  0x42   :  { %15149 = vmatpush1.bf16.msra.mxu0 %v15148_v38  ;;  %15197 = vmatpush1.bf16.msra.mxu1 %v15196_v46  ;;  %v22274_v38 = vand.u32 4294901760, %v17251_v48  ;;  %v15212_v48 = vpack.c.bf16 %v1006_v52, %v994_v57 }
  0x43   :  { %415 = vmatprep.subr.mxu0 %v17425_v8  ;;  %1131 = vmatprep.subr.mxu1 %v17429_v44 }
  0x44   :  { %376 = vmatmul.mubr.f32.gmra.mrb[4].mxu0 %v17371_v32  ;;  %1092 = vmatmul.mubr.f32.gmra.mrb[4].mxu1 %v17371_v32 }
  0x45   :  { %381 = vmatprep.mubr.f32.mxu0 %v22023_v10  ;;  %1097 = vmatprep.mubr.f32.mxu1 %v22023_v10 }
  0x46   :  { %418 = vmatpush1.msra.mxu0 %v17306_v11  ;;  %1134 = vmatpush1.msra.mxu1 %v17322_v23 }
  0x47   :  { %15151 = vmatprep.subr.bf16.mxu0 %v17190_v17  ;;  %15199 = vmatprep.subr.bf16.mxu1 %v17207_v24 }
  0x48   :  { %383 = vmatmul.mubr.f32.gmra.mrb[6].mxu0 %v17421_v45  ;;  %1099 = vmatmul.mubr.f32.gmra.mrb[6].mxu1 %v17421_v45 }
  0x49   :  { %473 = vmatprep.mubr.f32.mxu0 %v22023_v10  ;;  %1189 = vmatprep.mubr.f32.mxu1 %v22023_v10 }
  0x4a   :  { %16972 = vset.pattern.permute.xlu0 %v16999_v54  ;;  %1706 = vrot.lane.b32.xlu1 %v1695_v39, %s22143_s22  ;;  %v22275_v39 = vand.u32 4294901760, %v17255_v50  ;;  %v17592_v50 = vsub.s32 0, %v17479_v33 }
  0x4b   :  { %1611 = vperm.xlu0 %16972, %v1608_v55   ;;  %16973 = vset.pattern.permute.xlu1 %v16999_v54 }
  0x4c   :  { %476 = vmatmul.mubr.f32.vlgmr.msra.gmra.mrb[0].mxu0 %v17325_v28  ;;  %1192 = vmatmul.mubr.f32.vlgmr.msra.gmra.mrb[0].mxu1 %v17325_v28  ;;  %v17528_v28 = vsub.s32 3, %v17479_v33  ;;  %v15210_v29 = vpack.c.bf16 %v22276_v27, %v22275_v39  ;;  %22279 = vst [vmem:[#allocation15_spill] sm:$0xff] %v17592_v50  ;;  %v1691_v3 = vrot.slane %v17493_v7, %v17592_v50 }
  0x4d   :  { %481 = vmatprep.mubr.f32.mxu0 %v22023_v10  ;;  %1197 = vmatprep.mubr.f32.mxu1 %v22023_v10 }
  0x4e   :  { %15153 = vmatpush1.bf16.msra.mxu0 %v17211_v26  ;;  %15201 = vmatpush1.bf16.msra.mxu1 %v17232_v40  ;;  %v1703_v18 = vrot.slane %v17493_v7, %v17528_v28 }
  0x4f   :  { %15155 = vmatprep.subr.bf16.mxu0 %v17249_v47  ;;  %15203 = vmatprep.subr.bf16.mxu1 %v17253_v49 }
  0x50   :  { %484 = vmatmul.mubr.f32.gmra.mrb[2].mxu0 %v17328_v30  ;;  %1200 = vmatmul.mubr.f32.gmra.mrb[2].mxu1 %v17328_v30  ;;  %v15158_v30 = vpack.c.bf16 %v260_v16, %v248_v9  ;;  %v15160_v9 = vpack.c.bf16 %v22270_v25, %v22269_v20  ;;  %v22271_v16 = vand.u32 4294901760, %v17234_v41  ;;  %v22277_v41 = vand.u32 4294901760, %v17260_v53 }
  0x51   :  { %489 = vmatprep.mubr.f32.mxu0 %v22023_v10  ;;  %1205 = vmatprep.mubr.f32.mxu1 %v22023_v10  ;;  %v22280_v53 = vand.u32 4294901760, %v17306_v11  ;;  %v17689_v11 = vld [vmem:[%s21981_s9 + $0x5] ss:$8 sm:$0xf] }
  0x52   :  { %15157 = vmatpush1.bf16.msra.mxu0 %v17280_v62  ;;  %15205 = vmatpush1.bf16.msra.mxu1 %v17289_v2 }
  0x53   :  { %523 = vmatprep.subr.mxu0 %v17287_v1  ;;  %1239 = vmatprep.subr.mxu1 %v17294_v4 }
  0x54   :  { %492 = vmatmul.mubr.f32.gmra.mrb[4].mxu0 %v17380_v58  ;;  %1208 = vmatmul.mubr.f32.gmra.mrb[4].mxu1 %v17380_v58  ;;  %v22272_v58 = vand.u32 4294901760, %v17236_v42  ;;  %v22278_v42 = vand.u32 4294901760, %v17282_v63  ;;  %v22281_v63 = vand.u32 4294901760, %v17322_v23  ;;  %v1962_v23 = vrot.slane %v17689_v11, %v17486_v6 }
  0x55   :  { %497 = vmatprep.mubr.f32.mxu0 %v22023_v10  ;;  %1213 = vmatprep.mubr.f32.mxu1 %v22023_v10 }
  0x56   :  { %525 = vmatpush1.msra.mxu0 %v17296_v5  ;;  %1241 = vmatpush1.msra.mxu1 %v17308_v12  ;;  %v15208_v61 = vpack.c.bf16 %v22272_v58, %v22271_v16 }
  0x57   :  { %15159 = vmatprep.subr.bf16.mxu0 %v15158_v30  ;;  %15207 = vmatprep.subr.bf16.mxu1 %v15206_v21 }
  0x58   :  { %500 = vmatmul.mubr.f32.gmra.mrb[6].mxu0 %v17433_v34  ;;  %1216 = vmatmul.mubr.f32.gmra.mrb[6].mxu1 %v17433_v34  ;;  %v22273_v34 = vand.u32 4294901760, %v17238_v43  ;;  %v15164_v43 = vpack.c.bf16 %v22278_v42, %v22277_v41 }
  0x59   :  { %580 = vmatprep.mubr.f32.mxu0 %v22023_v10  ;;  %1296 = vmatprep.mubr.f32.mxu1 %v22023_v10 }
  0x5a   :  { %1710 = vrot.lane.b32.xlu1 %v1703_v18, %s22143_s22  ;;  %1708 = vrot.lane.b32.xlu0 %v1699_v19, %s22143_s22  ;;  %v15162_v46 = vpack.c.bf16 %v22274_v38, %v22273_v34 }
  0x5c   :  { %584 = vmatmul.mubr.f32.vlgmr.msra.gmra.mrb[0].mxu0 %v17343_v36  ;;  %1300 = vmatmul.mubr.f32.vlgmr.msra.gmra.mrb[0].mxu1 %v17343_v36  ;;  %v1970_v36 = vrot.slane %v17689_v11, %v17528_v28 }
  0x5d   :  { %589 = vmatprep.mubr.f32.mxu0 %v22023_v10  ;;  %1305 = vmatprep.mubr.f32.mxu1 %v22023_v10 }
  0x5e   :  { %15161 = vmatpush1.bf16.msra.mxu0 %v15160_v9  ;;  %15209 = vmatpush1.bf16.msra.mxu1 %v15208_v61 }
  0x5f   :  { %15163 = vmatprep.subr.bf16.mxu0 %v15162_v46  ;;  %15211 = vmatprep.subr.bf16.mxu1 %v15210_v29 }
  0x60   :  { %593 = vmatmul.mubr.f32.gmra.mrb[2].mxu0 %v17346_v37  ;;  %1309 = vmatmul.mubr.f32.gmra.mrb[2].mxu1 %v17346_v37 }
  0x61   :  { %598 = vmatprep.mubr.f32.mxu0 %v22023_v10  ;;  %1314 = vmatprep.mubr.f32.mxu1 %v22023_v10 }
  0x62   :  { %15165 = vmatpush1.bf16.msra.mxu0 %v15164_v43  ;;  %15213 = vmatpush1.bf16.msra.mxu1 %v15212_v48 }
  0x63   :  { %652 = vmatprep.subr.mxu0 %v296_v59  ;;  %1368 = vmatprep.subr.mxu1 %v1012_v56 }
  0x64   :  { %602 = vmatmul.mubr.f32.gmra.mrb[4].mxu0 %v17397_v35  ;;  %1318 = vmatmul.mubr.f32.gmra.mrb[4].mxu1 %v17397_v35 }
  0x65   :  { %607 = vmatprep.mubr.f32.mxu0 %v22023_v10  ;;  %1323 = vmatprep.mubr.f32.mxu1 %v22023_v10 }
  0x66   :  { %656 = vmatpush1.msra.mxu0 %v22280_v53  ;;  %1372 = vmatpush1.msra.mxu1 %v22281_v63  ;;  %v1958_v63 = vrot.slane %v17689_v11, %v17592_v50 }
  0x67   :  { %15167 = vmatprep.subr.bf16.mxu0 %v17190_v17  ;;  %15215 = vmatprep.subr.bf16.mxu1 %v17207_v24  ;;  %v1770_v17 = vrot.slane %v13691_v51, %v17528_v28  ;;  %v1766_v24 = vrot.slane %v13691_v51, %v17531_v60 }
  0x68   :  { %611 = vmatmul.mubr.f32.gmra.mrb[6].mxu0 %v17444_v22  ;;  %1327 = vmatmul.mubr.f32.gmra.mrb[6].mxu1 %v17444_v22 }
  0x69   :  { %711 = vmatprep.mubr.f32.mxu0 %v22023_v10  ;;  %1427 = vmatprep.mubr.f32.mxu1 %v22023_v10 }
  0x6a   :  { %1773 = vrot.lane.b32.xlu1 %v1762_v0, %s22144_s3  ;;  %1704 = vrot.lane.b32.xlu0 %v1691_v3, %s22143_s22  ;;  %v13695_v3 = vld [vmem:[%s21981_s9 + $0x6] ss:$8 sm:$0xf] }
  0x6c   :  { %713 = vmatmul.mubr.f32.vlgmr.msra.gmra.mrb[0].mxu0 %v17310_v13  ;;  %1429 = vmatmul.mubr.f32.vlgmr.msra.gmra.mrb[0].mxu1 %v17310_v13 }
  0x6d   :  { %718 = vmatprep.mubr.f32.mxu0 %v22023_v10  ;;  %1434 = vmatprep.mubr.f32.mxu1 %v22023_v10 }
  0x6e   :  { %15169 = vmatpush1.bf16.msra.mxu0 %v17211_v26  ;;  %15217 = vmatpush1.bf16.msra.mxu1 %v17232_v40  ;;  %v13692_v26 = vld [vmem:[%s21981_s9 + $0x3] ss:$8 sm:$0xf] }
  0x6f   :  { %15171 = vmatprep.subr.bf16.mxu0 %v17249_v47  ;;  %15219 = vmatprep.subr.bf16.mxu1 %v17253_v49  ;;  %v1833_v40 = vrot.slane %v13692_v26, %v17531_v60  ;;  %v1829_v47 = vrot.slane %v13692_v26, %v17486_v6  ;;  %v1758_v49 = vrot.slane %v13691_v51, %v17592_v50 }
  0x70   :  { %720 = vmatmul.mubr.f32.gmra.mrb[2].mxu0 %v17312_v14  ;;  %1436 = vmatmul.mubr.f32.gmra.mrb[2].mxu1 %v17312_v14 }
  0x71   :  { %725 = vmatprep.mubr.f32.mxu0 %v22023_v10  ;;  %1441 = vmatprep.mubr.f32.mxu1 %v22023_v10 }
  0x72   :  { %15173 = vmatpush1.bf16.msra.mxu0 %v17280_v62  ;;  %15221 = vmatpush1.bf16.msra.mxu1 %v17289_v2  ;;  %v1837_v62 = vrot.slane %v13692_v26, %v17528_v28  ;;  %v13693_v2 = vld [vmem:[%s21981_s9 + $0x4] ss:$8 sm:$0xf] }
  0x73   :  { %757 = vmatprep.subr.mxu0 %v17287_v1  ;;  %1473 = vmatprep.subr.mxu1 %v17294_v4  ;;  %v1825_v1 = vrot.slane %v13692_v26, %v17592_v50  ;;  %v1896_v4 = vrot.slane %v13693_v2, %v17486_v6  ;;  %v2029_v26 = vrot.slane %v13695_v3, %v17486_v6 }
  0x74   :  { %727 = vmatmul.mubr.f32.gmra.mrb[4].mxu0 %v17371_v32  ;;  %1443 = vmatmul.mubr.f32.gmra.mrb[4].mxu1 %v17371_v32 }
  0x75   :  { %732 = vmatprep.mubr.f32.mxu0 %v22023_v10  ;;  %1448 = vmatprep.mubr.f32.mxu1 %v22023_v10 }
  0x76   :  { %759 = vmatpush1.msra.mxu0 %v17296_v5  ;;  %1475 = vmatpush1.msra.mxu1 %v17308_v12  ;;  %v1904_v5 = vrot.slane %v13693_v2, %v17528_v28  ;;  %v1966_v12 = vrot.slane %v17689_v11, %v17531_v60 }
  0x77   :  { %1777 = vrot.lane.b32.xlu1 %v1770_v17, %s22144_s3  ;;  %1775 = vrot.lane.b32.xlu0 %v1766_v24, %s22144_s3  ;;  %v2033_v24 = vrot.slane %v13695_v3, %v17531_v60 }
  0x78   :  { %734 = vmatmul.mubr.f32.gmra.mrb[6].mxu0 %v17421_v45  ;;  %1450 = vmatmul.mubr.f32.gmra.mrb[6].mxu1 %v17421_v45 }
  0x79   :  { %814 = vmatprep.mubr.f32.mxu0 %v22023_v10  ;;  %1530 = vmatprep.mubr.f32.mxu1 %v22023_v10 }
  0x7b   :  { %1842 = vrot.lane.b32.xlu1 %v1833_v40, %s17002_s30  ;;  %1840 = vrot.lane.b32.xlu0 %v1829_v47, %s17002_s30  ;;  %v13696_v40 = vld [vmem:[%s21981_s9 + $0x7] ss:$8 sm:$0xf] }
  0x7c   :  { %816 = vmatmul.mubr.f32.vlgmr.msra.gmra.mrb[0].mxu0 %v17310_v13  ;;  %1532 = vmatmul.mubr.f32.vlgmr.msra.gmra.mrb[0].mxu1 %v17310_v13  ;;  %v1900_v13 = vrot.slane %v13693_v2, %v17531_v60  ;;  %v2096_v47 = vrot.slane %v13696_v40, %v17486_v6 }
  0x7d   :  { %821 = vmatprep.mubr.f32.mxu0 %v22023_v10  ;;  %1537 = vmatprep.mubr.f32.mxu1 %v22023_v10 }
  0x7f   :  { %1771 = vrot.lane.b32.xlu1 %v1758_v49, %s22144_s3  ;;  %1844 = vrot.lane.b32.xlu0 %v1837_v62, %s17002_s30  ;;  %v2037_v49 = vrot.slane %v13695_v3, %v17528_v28  ;;  %v2104_v62 = vrot.slane %v13696_v40, %v17528_v28 }
  0x80   :  { %823 = vmatmul.mubr.f32.gmra.mrb[2].mxu0 %v17312_v14  ;;  %1539 = vmatmul.mubr.f32.gmra.mrb[2].mxu1 %v17312_v14  ;;  %v1892_v14 = vrot.slane %v13693_v2, %v17592_v50  ;;  %v2092_v2 = vrot.slane %v13696_v40, %v17592_v50 }
  0x81   :  { %828 = vmatprep.mubr.f32.mxu0 %v22023_v10  ;;  %1544 = vmatprep.mubr.f32.mxu1 %v22023_v10 }
  0x83   :  { %1838 = vrot.lane.b32.xlu0 %v1825_v1, %s17002_s30  ;;  %1907 = vrot.lane.b32.xlu1 %v1896_v4, %s17003_s25  ;;  %v2100_v1 = vrot.slane %v13696_v40, %v17531_v60  ;;  %v2025_v4 = vrot.slane %v13695_v3, %v17592_v50 }
  0x84   :  { %830 = vmatmul.mubr.f32.gmra.mrb[4].mxu0 %v17371_v32  ;;  %1546 = vmatmul.mubr.f32.gmra.mrb[4].mxu1 %v17371_v32 }
  0x85   :  { %835 = vmatprep.mubr.f32.mxu0 %v22023_v10  ;;  %1551 = vmatprep.mubr.f32.mxu1 %v22023_v10 }
  0x87   :  { %1911 = vrot.lane.b32.xlu1 %v1904_v5, %s17003_s25  ;;  %1909 = vrot.lane.b32.xlu0 %v1900_v13, %s17003_s25  ;;  %v13697_v5 = vld [vmem:[%s21981_s9 + $0x20] ss:$8 sm:$0xf] }
  0x88   :  { %837 = vmatmul.mubr.f32.gmra.mrb[6].mxu0 %v17421_v45  ;;  %1553 = vmatmul.mubr.f32.gmra.mrb[6].mxu1 %v17421_v45  ;;  %v2167_v11 = vrot.slane %v13697_v5, %v17531_v60  ;;  %v2159_v13 = vrot.slane %v13697_v5, %v17592_v50 }
  0x89   :  { %3077 = vmatprep.mubr.f32.mxu1 %v22023_v10  ;;  %2355 = vmatprep.mubr.f32.mxu0 %v22023_v10 }
  0x8b   :  { %1975 = vrot.lane.b32.xlu1 %v1966_v12, %s17004_s2  ;;  %1973 = vrot.lane.b32.xlu0 %v1962_v23, %s17004_s2  ;;  %v2163_v12 = vrot.slane %v13697_v5, %v17486_v6 }
  0x8f   :  { %1905 = vrot.lane.b32.xlu1 %v1892_v14, %s17003_s25  ;;  %1977 = vrot.lane.b32.xlu0 %v1970_v36, %s17004_s2  ;;  %v2171_v14 = vrot.slane %v13697_v5, %v17528_v28 }
  0xbc   :  { %v17743_v23 = vpop.permute.xlu1 %1706 }
  0xca   :  { %v1612_v20 = vpop.permute.xlu0 %1611 }
  0xce   :  { %v17745_v36 = vpop.permute.xlu0 %1708 }
 0x14f   :  { %v817_v37 = vpop.f32.mrb[0].mxu0  ;;  %v1533_v52 = vpop.f32.mrb[0].mxu1 }
 0x150   :  { %v819_v32 = vpop.f32.mrb[1].mxu0  ;;  %v1535_v57 = vpop.f32.mrb[1].mxu1 }
 0x151   :  { %1563 = vst.msk [vmem:[#allocation2 + $0x18] sm:$0xff] %vm1562_vm3, %v1535_v57 }
 0x153   :  { %v824_v35 = vpop.f32.mrb[2].mxu0  ;;  %v1540_v45 = vpop.f32.mrb[2].mxu1 }
 0x154   :  { %v826_v8 = vpop.f32.mrb[3].mxu0  ;;  %v1542_v44 = vpop.f32.mrb[3].mxu1  ;;  %v1586_v59 = vmax.f32 %v1533_v52, %v1540_v45  ;;  %v1584_v56 = vmax.f32 %v817_v37, %v824_v35 }
 0x155   :  { %1567 = vst.msk [vmem:[#allocation2 + $0x38] sm:$0xff] %vm1562_vm3, %v1542_v44  ;;  %v1585_v22 = vmax.f32 %v819_v32, %v826_v8  ;;  %v17747_v37 = vpop.permute.xlu1 %1710  ;;  %v17749_v52 = vpop.permute.xlu0 %1704 }
 0x157   :  { %v831_v33 = vpop.f32.mrb[4].mxu0  ;;  %v1547_v7 = vpop.f32.mrb[4].mxu1 }
 0x158   :  { %v833_v55 = vpop.f32.mrb[5].mxu0  ;;  %v1549_v54 = vpop.f32.mrb[5].mxu1  ;;  %v1579_v29 = vld [vmem:[#allocation2 + $0x18] sm:$0xff] }
 0x159   :  { %1571 = vst.msk [vmem:[#allocation2 + $0x58] sm:$0xff] %vm1562_vm3, %v1549_v54  ;;  %v17751_v32 = vpop.permute.xlu1 %1773  ;;  %v17753_v57 = vpop.permute.xlu0 %1775 }
 0x15b   :  { %v838_v30 = vpop.f32.mrb[6].mxu0  ;;  %v1554_v31 = vpop.f32.mrb[6].mxu1 }
 0x15c   :  { %v840_v15 = vpop.f32.mrb[7].mxu0  ;;  %v1556_v21 = vpop.f32.mrb[7].mxu1  ;;  %v1598_v18 = vmax.f32 %v1547_v7, %v1554_v31  ;;  %v1596_v19 = vmax.f32 %v831_v33, %v838_v30  ;;  %v1583_v39 = vld [vmem:[#allocation2 + $0x38] sm:$0xff] }
 0x15d   :  { %1575 = vst.msk [vmem:[#allocation2 + $0x78] sm:$0xff] %vm1562_vm3, %v1556_v21  ;;  %v1597_v25 = vmax.f32 %v833_v55, %v840_v15  ;;  %v1587_v43 = vmax.f32 %v1579_v29, %v1583_v39  ;;  %v17755_v35 = vpop.permute.xlu1 %1777  ;;  %v17757_v45 = vpop.permute.xlu0 %1840  ;;  %v1651_v31 = vld [vmem:[%s21981_s9] ss:$8 sm:$0xf]  ;;  %s17008_s9 = smov 126  }
 0x15e   :  { %v1602_v9 = vmax.f32 %v1586_v59, %v1598_v18  ;;  %v1600_v16 = vmax.f32 %v1584_v56, %v1596_v19  ;;  %v1660_v18 = vrot.slane %v1651_v31, %v17486_v6  ;;  %v1664_v19 = vrot.slane %v1651_v31, %v17531_v60 }
 0x15f   :  { %v1601_v58 = vmax.f32 %v1585_v22, %v1597_v25  ;;  %v1782_v5 = vsel %vm1779_vm8, %v17753_v57, %v17755_v35 }
 0x160   :  { %v1616_v61 = vadd.f32 %v1612_v20, %v1602_v9  ;;  %v1614_v34 = vadd.f32 %v1612_v20, %v1600_v16  ;;  %v1591_v41 = vld [vmem:[#allocation2 + $0x58] sm:$0xff]  ;;  %v1656_v9 = vrot.slane %v1651_v31, %v17592_v50 }
 0x161   :  { %v1615_v27 = vadd.f32 %v1612_v20, %v1601_v58  ;;  %v17759_v8 = vpop.permute.xlu1 %1842  ;;  %v17761_v44 = vpop.permute.xlu0 %1844 }
 0x162   :  { %v1620_v38 = vmax.f32 %v1616_v61, 0.0  ;;  %v1618_v46 = vmax.f32 %v1614_v34, 0.0  ;;  %v1848_v35 = vsel %vm1846_vm9, %v17757_v45, %v17759_v8 }
 0x163   :  { %v1619_v51 = vmax.f32 %v1615_v27, 0.0 }
 0x164   :  { %1630 = vrot.lane.b32.xlu1 %v1620_v38, %s17003_s25  ;;  %1626 = vrot.lane.b32.xlu0 %v1618_v46, %s17003_s25  ;;  %v1595_v42 = vld [vmem:[#allocation2 + $0x78] sm:$0xff] }
 0x165   :  { %v1599_v48 = vmax.f32 %v1591_v41, %v1595_v42  ;;  %v17763_v59 = vpop.permute.xlu1 %1771  ;;  %v17765_v56 = vpop.permute.xlu0 %1838 }
 0x167   :  { %v1603_v53 = vmax.f32 %v1587_v43, %v1599_v48 }
 0x168   :  { %1628 = vrot.lane.b32.xlu0 %v1619_v51, %s17003_s25  ;;  %v1668_v51 = vrot.slane %v1651_v31, %v17528_v28 }
 0x169   :  { %v1617_v0 = vadd.f32 %v1612_v20, %v1603_v53  ;;  %v17767_v22 = vpop.permute.xlu1 %1907  ;;  %v17769_v33 = vpop.permute.xlu0 %1909 }
 0x16b   :  { %v1621_v17 = vmax.f32 %v1617_v0, 0.0 }
 0x16c   :  { %1971 = vrot.lane.b32.xlu0 %v1958_v63, %s17004_s2  ;;  %s17009_s2 = smov 127  }
 0x16d   :  { %1632 = vrot.lane.b32.xlu1 %v1621_v17, %s17003_s25  ;;  %v17771_v7 = vpop.permute.xlu1 %1911  ;;  %v17773_v55 = vpop.permute.xlu0 %1973 }
 0x170   :  { %2042 = vrot.lane.b32.xlu0 %v2033_v24, %s17005_s29 }
 0x171   :  { %2040 = vrot.lane.b32.xlu1 %v2029_v26, %s17005_s29  ;;  %v17775_v54 = vpop.permute.xlu1 %1975  ;;  %v17777_v30 = vpop.permute.xlu0 %1977 }
 0x174   :  { %2107 = vrot.lane.b32.xlu0 %v2096_v47, %s17006_s0 }
 0x175   :  { %2044 = vrot.lane.b32.xlu1 %v2037_v49, %s17005_s29  ;;  %v17782_v15 = vpop.permute.xlu1 %1905 }
 0x178   :  { %2111 = vrot.lane.b32.xlu0 %v2104_v62, %s17006_s0  ;;  %v1715_v62 = vsel %vm1712_vm7, %v17745_v36, %v17747_v37 }
 0x179   :  { %2109 = vrot.lane.b32.xlu1 %v2100_v1, %s17006_s0  ;;  %v1714_v1 = vsel %vm1712_vm7, %v17743_v23, %v17745_v36  ;;  %v1781_v36 = vsel %vm1779_vm8, %v17751_v32, %v17753_v57  ;;  %v1915_v57 = vsel %vm1604_vm2, %v17769_v33, %v17771_v7  ;;  %v1914_v7 = vsel %vm1604_vm2, %v17767_v22, %v17769_v33 }
 0x17c   :  { %2105 = vrot.lane.b32.xlu0 %v2092_v2, %s17006_s0 }
 0x17d   :  { %2038 = vrot.lane.b32.xlu1 %v2025_v4, %s17005_s29  ;;  %s17014_s29 = smov 98  }
 0x180   :  { %2176 = vrot.lane.b32.xlu0 %v2167_v11, %s17007_s24  ;;  %v1713_v11 = vsel %vm1712_vm7, %v17749_v52, %v17743_v23  ;;  %vm2137_vm7 = vcmask 793600  }
 0x181   :  { %2174 = vrot.lane.b32.xlu1 %v2163_v12, %s17007_s24 }
 0x184   :  { %2172 = vrot.lane.b32.xlu0 %v2159_v13, %s17007_s24 }
 0x185   :  { %2178 = vrot.lane.b32.xlu1 %v2171_v14, %s17007_s24  ;;  %v1849_v14 = vsel %vm1846_vm9, %v17759_v8, %v17761_v44  ;;  %v1982_v8 = vsel %vm1979_vm10, %v17775_v54, %v17777_v30  ;;  %v1981_v30 = vsel %vm1979_vm10, %v17773_v55, %v17775_v54  ;;  %s22474_s24 = sld [smem:[#allocation78_spill]] }
 0x1d6   :  { %v1627_v21 = vpop.permute.xlu0 %1626  ;;  %v1631_v20 = vpop.permute.xlu1 %1630 }
 0x1d7   :  { %1642 = vst.msk [vmem:[#allocation3] sm:$0xff] %vm1641_vm5, %v1627_v21  ;;  %vm2003_vm5 = vcmask 908288  }
 0x1da   :  { %v1629_v25 = vpop.permute.xlu0 %1628 }
 0x1db   :  { %v17788_v16 = vsel %vm1604_vm2, %v1627_v21, %v1629_v25  ;;  %v17791_v58 = vsel %vm1604_vm2, %v1629_v25, %v1631_v20  ;;  %v1913_v25 = vsel %vm1604_vm2, %v17782_v15, %v17767_v22 }
 0x1dc   :  { %v17794_v61 = vmul.f32 %v1660_v18, %v17788_v16  ;;  %v17797_v34 = vmul.f32 %v1664_v19, %v17791_v58  ;;  %v1722_v4 = vmul.f32 %v1714_v1, %v17791_v58  ;;  %v1721_v13 = vmul.f32 %v1713_v11, %v17788_v16 }
 0x1dd   :  { %v1789_v23 = vmul.f32 %v1781_v36, %v17791_v58  ;;  %v1856_v31 = vmul.f32 %v1848_v35, %v17791_v58 }
 0x1de   :  { %v17799_v38 = vld [vmem:[#allocation3] sm:$0xff]  ;;  %v17801_v6 = vpop.permute.xlu0 %1971 }
 0x1df   :  { %v17804_v60 = vmul.f32 %v1656_v9, %v17799_v38  ;;  %v1633_v46 = vpop.permute.xlu1 %1632  ;;  %v1787_v39 = vmul.f32 %v17763_v59, %v17799_v38  ;;  %v1720_v29 = vmul.f32 %v17749_v52, %v17799_v38  ;;  %v1920_v43 = vmul.f32 %v17782_v15, %v17799_v38 }
 0x1e0   :  { %v1636_v27 = vsel %vm1604_vm2, %v1631_v20, %v1633_v46  ;;  %v1854_v48 = vmul.f32 %v17765_v56, %v17799_v38  ;;  %v1987_v3 = vmul.f32 %v17801_v6, %v17799_v38  ;;  %v1847_v52 = vsel %vm1846_vm9, %v17765_v56, %v17757_v45 }
 0x1e1   :  { %1646 = vst.msk [vmem:[#allocation3 + $0x18] sm:$0xff] %vm1645_vm6, %v1636_v27  ;;  %1795 = vrot.lane.b32.xlu1 %v1787_v39, %s17008_s9  ;;  %1728 = vrot.lane.b32.xlu0 %v1720_v29, %s17009_s2  ;;  %v1855_v44 = vmul.f32 %v1847_v52, %v17788_v16  ;;  %v1780_v56 = vsel %vm1779_vm8, %v17763_v59, %v17751_v32  ;;  %v2275_v11 = vand.u32 4294901760, %v17804_v60  ;;  %vm2070_vm6 = vcmask 801792  }
 0x1e2   :  { %v17813_v41 = vpop.permute.xlu0 %2042  ;;  %v1788_v45 = vmul.f32 %v1780_v56, %v17788_v16  ;;  %v1980_v32 = vsel %vm1979_vm10, %v17801_v6, %v17773_v55  ;;  %v1922_v59 = vmul.f32 %v1914_v7, %v17791_v58  ;;  %v1989_v20 = vmul.f32 %v1981_v30, %v17791_v58 }
 0x1e3   :  { %v17815_v42 = vpop.permute.xlu1 %2040  ;;  %v1988_v19 = vmul.f32 %v1980_v32, %v17788_v16  ;;  %v1921_v6 = vmul.f32 %v1913_v25, %v17788_v16  ;;  %vm2204_vm8 = vcmask 785408   ;;  %vm3812_vm9 = vcmask 531456  }
 0x1e4   :  { %v2048_v46 = vsel %vm2046_vm11, %v17815_v42, %v17813_v41  ;;  %vm3733_vm10 = vcmask 64512  }
 0x1e5   :  { %1928 = vrot.lane.b32.xlu1 %v1920_v43, %s17010_s6  ;;  %1862 = vrot.lane.b32.xlu0 %v1854_v48, %s17011_s27  ;;  %v2056_v15 = vmul.f32 %v2048_v46, %v17791_v58 }
 0x1e6   :  { %v17824_v53 = vpop.permute.xlu0 %2107 }
 0x1e7   :  { %v2045_v63 = vpop.permute.xlu1 %2044 }
 0x1e8   :  { %v17826_v0 = vld [vmem:[#allocation3 + $0x18] sm:$0xff]  ;;  %v2049_v33 = vsel %vm2046_vm11, %v17813_v41, %v2045_v63 }
 0x1e9   :  { %v1676_v17 = vmul.f32 %v1668_v51, %v17826_v0  ;;  %1995 = vrot.lane.b32.xlu0 %v1987_v3, %s17012_s7  ;;  %v1723_v2 = vmul.f32 %v1715_v62, %v17826_v0  ;;  %v1790_v12 = vmul.f32 %v1782_v5, %v17826_v0  ;;  %v1857_v37 = vmul.f32 %v1849_v14, %v17826_v0 }
 0x1ea   :  { %v17832_v28 = vpop.permute.xlu0 %2111  ;;  %v1923_v21 = vmul.f32 %v1915_v57, %v17826_v0  ;;  %v1990_v18 = vmul.f32 %v1982_v8, %v17826_v0  ;;  %v2057_v55 = vmul.f32 %v2049_v33, %v17826_v0  ;;  %v2997_v5 = vand.u32 4294901760, %v17797_v34 }
 0x1eb   :  { %1680 = vst.msk [vmem:[#allocation4 + $0x18] sm:$0xff] %vm1562_vm3, %v1676_v17  ;;  %v17835_v24 = vpop.permute.xlu1 %2109 }
 0x1ec   :  { %v2116_v54 = vsel %vm2113_vm12, %v17835_v24, %v17832_v28  ;;  %v2115_v27 = vsel %vm2113_vm12, %v17824_v53, %v17835_v24  ;;  %v17981_v52 = vsub.f32 %v17797_v34, %v2997_v5 }
 0x1ed   :  { %v2124_v39 = vmul.f32 %v2116_v54, %v17826_v0  ;;  %v2123_v51 = vmul.f32 %v2115_v27, %v17791_v58 }
 0x1ee   :  { %v17837_v26 = vpop.permute.xlu0 %2105  ;;  %v22020_v34 = vand.u32 4294901760, %v17981_v52 }
 0x1ef   :  { %v17839_v40 = vpop.permute.xlu1 %2038  ;;  %v2121_v47 = vmul.f32 %v17837_v26, %v17799_v38  ;;  %v2114_v22 = vsel %vm2113_vm12, %v17837_v26, %v17824_v53 }
 0x1f0   :  { %v2054_v49 = vmul.f32 %v17839_v40, %v17799_v38  ;;  %v2122_v43 = vmul.f32 %v2114_v22, %v17788_v16  ;;  %v2047_v63 = vsel %vm2046_vm11, %v17839_v40, %v17815_v42  ;;  %vm3736_vm11 = vcmask 933712  }
 0x1f1   :  { %2129 = vrot.lane.b32.xlu0 %v2121_v47, %s17013_s28  ;;  %v2055_v17 = vmul.f32 %v2047_v63, %v17788_v16 }
 0x1f2   :  { %2062 = vrot.lane.b32.xlu1 %v2054_v49, %s17014_s29  ;;  %v2177_v41 = vpop.permute.xlu0 %2176  ;;  %v2221_v14 = vld [vmem:[#allocation4 + $0x18] sm:$0xff] }
 0x1f3   :  { %v2175_v9 = vpop.permute.xlu1 %2174  ;;  %v2995_v57 = vand.u32 4294901760, %v2221_v14 }
 0x1f4   :  { %v2182_v28 = vsel %vm2180_vm13, %v2175_v9, %v2177_v41 }
 0x1f5   :  { %1734 = vrot.lane.b32.xlu0 %v1723_v2, %s17009_s2  ;;  %v2190_v26 = vmul.f32 %v2182_v28, %v17791_v58  ;;  %v2273_v2 = vand.u32 4294901760, %v17794_v61 }
 0x1f6   :  { %1732 = vrot.lane.b32.xlu1 %v1722_v4, %s17009_s2  ;;  %v2173_v3 = vpop.permute.xlu0 %2172 }
 0x1f7   :  { %v2179_v29 = vpop.permute.xlu1 %2178  ;;  %v2188_v24 = vmul.f32 %v2173_v3, %v17799_v38  ;;  %v2181_v42 = vsel %vm2180_vm13, %v2173_v3, %v2175_v9  ;;  %v17977_v36 = vsub.f32 %v17794_v61, %v2273_v2 }
 0x1f8   :  { %v2183_v48 = vsel %vm2180_vm13, %v2177_v41, %v2179_v29  ;;  %v2189_v40 = vmul.f32 %v2181_v42, %v17788_v16 }
 0x1f9   :  { %1801 = vrot.lane.b32.xlu0 %v1790_v12, %s17008_s9  ;;  %v2191_v53 = vmul.f32 %v2183_v48, %v17826_v0  ;;  %v2255_v0 = vld [vmem:[%s22282_s1 + $0x8] sm:$0xff]  ;;  %v22018_v61 = vand.u32 4294901760, %v17977_v36 }
 0x1fa   :  { %1730 = vrot.lane.b32.xlu1 %v1721_v13, %s17009_s2 }
 0x1fd   :  { %1868 = vrot.lane.b32.xlu0 %v1857_v37, %s17011_s27 }
 0x1fe   :  { %1799 = vrot.lane.b32.xlu1 %v1789_v23, %s17008_s9 }
 0x201   :  { %1864 = vrot.lane.b32.xlu0 %v1855_v44, %s17011_s27 }
 0x202   :  { %1866 = vrot.lane.b32.xlu1 %v1856_v31, %s17011_s27  ;;  %v17985_v31 = vsub.f32 %v17804_v60, %v2275_v11 }
 0x204   :  { %v22017_v60 = vand.u32 4294901760, %v17985_v31 }
 0x205   :  { %1934 = vrot.lane.b32.xlu0 %v1923_v21, %s17010_s6 }
 0x206   :  { %1797 = vrot.lane.b32.xlu1 %v1788_v45, %s17008_s9  ;;  %v18026_v29 = vsub.f32 %v17985_v31, %v22017_v60 }
 0x209   :  { %2001 = vrot.lane.b32.xlu0 %v1990_v18, %s17012_s7 }
 0x20a   :  { %1932 = vrot.lane.b32.xlu1 %v1922_v59, %s17010_s6  ;;  %v17997_v59 = vsub.f32 %v2221_v14, %v2995_v57 }
 0x20c   :  { %v22022_v48 = vand.u32 4294901760, %v17997_v59 }
 0x20d   :  { %1997 = vrot.lane.b32.xlu0 %v1988_v19, %s17012_s7 }
 0x20e   :  { %1999 = vrot.lane.b32.xlu1 %v1989_v20, %s17012_s7  ;;  %s17019_s7 = smov 7  }
 0x211   :  { %2068 = vrot.lane.b32.xlu0 %v2057_v55, %s17014_s29  ;;  %v18007_v55 = vsub.f32 %v17977_v36, %v22018_v61 }
 0x212   :  { %1930 = vrot.lane.b32.xlu1 %v1921_v6, %s17010_s6 }
 0x215   :  { %2135 = vrot.lane.b32.xlu0 %v2124_v39, %s17013_s28 }
 0x216   :  { %2066 = vrot.lane.b32.xlu1 %v2056_v15, %s17014_s29  ;;  %v18020_v15 = vsub.f32 %v17981_v52, %v22020_v34 }
 0x219   :  { %2131 = vrot.lane.b32.xlu0 %v2122_v43, %s17013_s28 }
 0x21a   :  { %2133 = vrot.lane.b32.xlu1 %v2123_v51, %s17013_s28  ;;  %s22283_s28 = sld [smem:[#allocation75_spill]] }
 0x21d   :  { %2202 = vrot.lane.b32.xlu0 %v2191_v53, %s17015_s4 }
 0x21e   :  { %2064 = vrot.lane.b32.xlu1 %v2055_v17, %s17014_s29  ;;  %s17029_s29 = smov 5  }
 0x220   :  { %v2216_v16 = vld [vmem:[%s22283_s28] sm:$0xff]  ;;  %v2217_v12 = vld [vmem:[%s22283_s28 + $0x8] sm:$0xff]  ;;  %s17021_s28 = smov 14  }
 0x221   :  { %2196 = vrot.lane.b32.xlu0 %v2188_v24, %s17015_s4  ;;  %v2268_v37 = vsel %vm2266_vm14, %v2216_v16, 0  ;;  %v2271_v35 = vsel %vm2266_vm14, %v2217_v12, 0  ;;  %vm5626_vm14 = vcmask 867784  }
 0x222   :  { %2200 = vrot.lane.b32.xlu1 %v2190_v26, %s17015_s4  ;;  %v17987_v56 = vand.u32 4294901760, %v2268_v37  ;;  %v17990_v8 = vand.u32 4294901760, %v2271_v35 }
 0x224   :  { %22284 = vst [vmem:[#allocation16_spill] sm:$0xff] %v17990_v8  ;;  %v18000_v33 = vsub.f32 %v2268_v37, %v17987_v56  ;;  %v18010_v54 = vsub.f32 %v2271_v35, %v17990_v8 }
 0x225   :  { %2263 = vperm.xlu0 %16972, %v2255_v0   ;;  %v3110_v0 = vand.u32 4294901760, %v18020_v15 }
 0x226   :  { %2198 = vrot.lane.b32.xlu1 %v2189_v40, %s17015_s4  ;;  %22285 = vst [vmem:[#allocation17_spill] sm:$0xff] %v18000_v33  ;;  %22286 = vst [vmem:[#allocation18_spill] sm:$0xff] %v18010_v54  ;;  %v18035_v51 = vand.u32 4294901760, %v18000_v33  ;;  %v18042_v28 = vand.u32 4294901760, %v18010_v54  ;;  %s17025_s4 = smov 114  }
 0x228   :  { %22290 = vst [vmem:[#allocation22_spill] sm:$0xff] %v18035_v51  ;;  %22292 = vst [vmem:[#allocation24_spill] sm:$0xff] %v18042_v28  ;;  %v2359_v12 = vsub.f32 %v18000_v33, %v18035_v51 }
 0x253   :  { %v1729_v47 = vpop.permute.xlu0 %1728  ;;  %v17957_v62 = vpop.permute.xlu1 %1795 }
 0x257   :  { %v17955_v49 = vpop.permute.xlu0 %1862  ;;  %v17961_v58 = vpop.permute.xlu1 %1928 }
 0x25b   :  { %v17959_v38 = vpop.permute.xlu0 %1995 }
 0x263   :  { %v17963_v1 = vpop.permute.xlu0 %2129 }
 0x264   :  { %v17966_v4 = vpop.permute.xlu1 %2062 }
 0x267   :  { %v1735_v13 = vpop.permute.xlu0 %1734 }
 0x268   :  { %v1733_v23 = vpop.permute.xlu1 %1732  ;;  %1747 = vst.msk [vmem:[#allocation4 + $0x38] sm:$0xff] %vm1562_vm3, %v1735_v13 }
 0x269   :  { %v1739_v44 = vsel %vm1736_vm15, %v1733_v23, %v1735_v13 }
 0x26a   :  { %v3001_v45 = vand.u32 4294901760, %v1739_v44 }
 0x26b   :  { %v1802_v21 = vpop.permute.xlu0 %1801 }
 0x26c   :  { %v1731_v7 = vpop.permute.xlu1 %1730  ;;  %1814 = vst.msk [vmem:[#allocation4 + $0x58] sm:$0xff] %vm1562_vm3, %v1802_v21  ;;  %v18002_v9 = vsub.f32 %v1739_v44, %v3001_v45  ;;  %v18037_v53 = vpack.c.bf16 %v3001_v45, %v2997_v5  ;;  %v2370_v44 = vsub.f32 %v18010_v54, %v18042_v28 }
 0x26d   :  { %v1737_v18 = vsel %vm1736_vm15, %v1729_v47, %v1731_v7  ;;  %v1738_v32 = vsel %vm1736_vm15, %v1731_v7, %v1733_v23 }
 0x26e   :  { %v2277_v30 = vand.u32 4294901760, %v1738_v32  ;;  %v2279_v19 = vand.u32 4294901760, %v1737_v18  ;;  %22291 = vst [vmem:[#allocation23_spill] sm:$0xff] %v18037_v53  ;;  %v22019_v17 = vand.u32 4294901760, %v18002_v9 }
 0x26f   :  { %v1869_v20 = vpop.permute.xlu0 %1868  ;;  %v2225_v25 = vld [vmem:[#allocation4 + $0x38] sm:$0xff] }
 0x270   :  { %v1800_v6 = vpop.permute.xlu1 %1799  ;;  %1881 = vst.msk [vmem:[#allocation4 + $0x78] sm:$0xff] %vm1562_vm3, %v1869_v20  ;;  %v2999_v46 = vand.u32 4294901760, %v2225_v25  ;;  %v18013_v39 = vpack.c.bf16 %v2277_v30, %v2273_v2  ;;  %v18015_v22 = vpack.c.bf16 %v2279_v19, %v2275_v11  ;;  %v18047_v42 = vsub.f32 %v1738_v32, %v2277_v30 }
 0x271   :  { %v1806_v27 = vsel %vm1803_vm0, %v1800_v6, %v1802_v21  ;;  %v3121_v35 = vsub.f32 %v18002_v9, %v22019_v17  ;;  %v18070_v21 = vsub.f32 %v1737_v18, %v2279_v19 }
 0x272   :  { %22287 = vst [vmem:[#allocation19_spill] sm:$0xff] %v18013_v39  ;;  %22288 = vst [vmem:[#allocation20_spill] sm:$0xff] %v18015_v22  ;;  %v18028_v41 = vpack.c.bf16 %v2999_v46, %v2995_v57  ;;  %v18030_v43 = vsub.f32 %v2225_v25, %v2999_v46  ;;  %15223 = vmatprep.subr.bf16.mxu0 %v18013_v39  ;;  %v3005_v37 = vand.u32 4294901760, %v1806_v27  ;;  %v22025_v32 = vand.u32 4294901760, %v18047_v42 }
 0x273   :  { %v1865_v63 = vpop.permute.xlu0 %1864  ;;  %15225 = vmatpush1.bf16.msra.mxu0 %v18015_v22  ;;  %v2229_v3 = vld [vmem:[#allocation4 + $0x58] sm:$0xff] }
 0x274   :  { %22289 = vst [vmem:[#allocation21_spill] sm:$0xff] %v18028_v41  ;;  %v1867_v24 = vpop.permute.xlu1 %1866  ;;  %v1871_v26 = vsel %vm1870_vm1, %v17955_v49, %v1865_v63  ;;  %15319 = vmatprep.subr.bf16.mxu1 %v18028_v41  ;;  %v3003_v5 = vand.u32 4294901760, %v2229_v3  ;;  %v18060_v49 = vsub.f32 %v17997_v59, %v22022_v48  ;;  %v22021_v11 = vand.u32 4294901760, %v18030_v43 }
 0x275   :  { %v1873_v47 = vsel %vm1870_vm1, %v1867_v24, %v1869_v20  ;;  %v18053_v2 = vsel %vm1870_vm1, %v1865_v63, %v1867_v24  ;;  %15321 = vmatpush1.bf16.msra.mxu1 %v18037_v53  ;;  %v2287_v7 = vand.u32 4294901760, %v1871_v26 }
 0x276   :  { %v3009_v23 = vand.u32 4294901760, %v1873_v47  ;;  %v18077_v25 = vsub.f32 %v2229_v3, %v3003_v5  ;;  %v2285_v46 = vand.u32 4294901760, %v18053_v2  ;;  %v3115_v19 = vsub.f32 %v18030_v43, %v22021_v11 }
 0x277   :  { %v1935_v13 = vpop.permute.xlu0 %1934  ;;  %v2233_v14 = vld [vmem:[#allocation4 + $0x78] sm:$0xff]  ;;  %v3104_v34 = vand.u32 4294901760, %v18060_v49  ;;  %v2393_v49 = vsub.f32 %v18047_v42, %v22025_v32 }
 0x278   :  { %v1798_v57 = vpop.permute.xlu1 %1797  ;;  %1947 = vst.msk [vmem:[#allocation4 + $0x98] sm:$0xff] %vm1562_vm3, %v1935_v13  ;;  %v3007_v45 = vand.u32 4294901760, %v2233_v14  ;;  %v18087_v61 = vpack.c.bf16 %v3009_v23, %v3005_v37 }
 0x279   :  { %v1804_v30 = vsel %vm1803_vm0, %v17957_v62, %v1798_v57  ;;  %v1805_v20 = vsel %vm1803_vm0, %v1798_v57, %v1800_v6  ;;  %v18089_v62 = vsub.f32 %v1806_v27, %v3005_v37  ;;  %v3122_v6 = vand.u32 4294901760, %v3121_v35 }
 0x27a   :  { %v18080_v15 = vpack.c.bf16 %v3007_v45, %v3003_v5  ;;  %v2281_v63 = vand.u32 4294901760, %v1805_v20  ;;  %v2283_v18 = vand.u32 4294901760, %v1804_v30  ;;  %v18085_v60 = vsub.f32 %v2233_v14, %v3007_v45  ;;  %22294 = vst [vmem:[#allocation26_spill] sm:$0xff] %v18087_v61 }
 0x27b   :  { %v2002_v24 = vpop.permute.xlu0 %2001  ;;  %v18093_v5 = vsub.f32 %v1873_v47, %v3009_v23  ;;  %v18102_v27 = vand.u32 4294901760, %v2359_v12  ;;  %v22026_v37 = vand.u32 4294901760, %v18070_v21  ;;  %v2254_v47 = vld [vmem:[%s22282_s1] sm:$0xff]  ;;  %v3116_v23 = vand.u32 4294901760, %v3115_v19 }
 0x27c   :  { %22293 = vst [vmem:[#allocation25_spill] sm:$0xff] %v18080_v15  ;;  %v1933_v3 = vpop.permute.xlu1 %1932  ;;  %2014 = vst.msk [vmem:[#allocation4 + $0xb8] sm:$0xff] %vm1562_vm3, %v2002_v24  ;;  %15323 = vmatprep.subr.bf16.mxu1 %v18080_v15  ;;  %v18095_v57 = vpack.c.bf16 %v2285_v46, %v2281_v63  ;;  %v18097_v17 = vpack.c.bf16 %v2287_v7, %v2283_v18  ;;  %2258 = vperm.xlu1 %16973, %v2254_v47   ;;  %v22027_v10 = vand.u32 4294901760, %v18085_v60  ;;  %vm6742_vm0 = vcmask 31744  }
 0x27d   :  { %v1939_v14 = vsel %vm1936_vm4, %v1933_v3, %v1935_v13  ;;  %15325 = vmatpush1.bf16.msra.mxu1 %v18087_v61  ;;  %v18113_v13 = vand.u32 4294901760, %v2370_v44  ;;  %v18116_v45 = vsub.f32 %v1871_v26, %v2287_v7  ;;  %v18118_v48 = vpack.c.bf16 %v3122_v6, %v3110_v0 }
 0x27e   :  { %22295 = vst [vmem:[#allocation27_spill] sm:$0xff] %v18095_v57  ;;  %22296 = vst [vmem:[#allocation28_spill] sm:$0xff] %v18097_v17  ;;  %15227 = vmatprep.subr.bf16.mxu0 %v18095_v57  ;;  %v22033_v19 = vand.u32 4294901760, %v18089_v62  ;;  %v18124_v32 = vsub.f32 %v1805_v20, %v2281_v63  ;;  %v18130_v0 = vsub.f32 %v18053_v2, %v2285_v46  ;;  %v22297_v20 = vand.u32 4294901760, %v18077_v25 }
 0x27f   :  { %v1998_v12 = vpop.permute.xlu0 %1997  ;;  %15229 = vmatpush1.bf16.msra.mxu0 %v18097_v17  ;;  %v2237_v11 = vld [vmem:[#allocation4 + $0x98] sm:$0xff]  ;;  %v2399_v7 = vsub.f32 %v18070_v21, %v22026_v37  ;;  %v2394_v47 = vand.u32 4294901760, %v2393_v49  ;;  %v3139_v46 = vsub.f32 %v18085_v60, %v22027_v10  ;;  %v3013_v37 = vand.u32 4294901760, %v1939_v14 }
 0x280   :  { %v2000_v16 = vpop.permute.xlu1 %1999  ;;  %v2004_v40 = vsel %vm2003_vm5, %v17959_v38, %v1998_v12  ;;  %v3011_v44 = vand.u32 4294901760, %v2237_v11  ;;  %v18137_v38 = vpack.c.bf16 %v3116_v23, %v3104_v34  ;;  %v3127_v63 = vsub.f32 %v18077_v25, %v22297_v20 }
 0x281   :  { %v2006_v35 = vsel %vm2003_vm5, %v2000_v16, %v2002_v24  ;;  %v2005_v26 = vsel %vm2003_vm5, %v1998_v12, %v2000_v16  ;;  %v18142_v24 = vsub.f32 %v1804_v30, %v2283_v18  ;;  %v22299_v49 = vand.u32 4294901760, %v18093_v5 }
 0x282   :  { %v18135_v6 = vsub.f32 %v2237_v11, %v3011_v44  ;;  %v3017_v2 = vand.u32 4294901760, %v2006_v35  ;;  %v3133_v11 = vsub.f32 %v18089_v62, %v22033_v19  ;;  %v2293_v50 = vand.u32 4294901760, %v2005_v26 }
 0x283   :  { %22298 = vst [vmem:[#allocation29_spill] sm:$0xff] %v18142_v24  ;;  %v2069_v16 = vpop.permute.xlu0 %2068  ;;  %v2241_v12 = vld [vmem:[#allocation4 + $0xb8] sm:$0xff]  ;;  %v3145_v30 = vsub.f32 %v18093_v5, %v22299_v49  ;;  %v2295_v28 = vand.u32 4294901760, %v2004_v40  ;;  %v3128_v22 = vand.u32 4294901760, %v3127_v63  ;;  %v3140_v49 = vand.u32 4294901760, %v3139_v46 }
 0x284   :  { %v1931_v34 = vpop.permute.xlu1 %1930  ;;  %2081 = vst.msk [vmem:[#allocation4 + $0xd8] sm:$0xff] %vm1562_vm3, %v2069_v16  ;;  %v3015_v23 = vand.u32 4294901760, %v2241_v12  ;;  %v18161_v54 = vpack.c.bf16 %v3017_v2, %v3013_v37  ;;  %v22306_v63 = vand.u32 4294901760, %v18007_v55  ;;  %vm8180_vm5 = vcmask 179304  }
 0x285   :  { %v1937_v20 = vsel %vm1936_vm4, %v17961_v58, %v1931_v34  ;;  %v1938_v10 = vsel %vm1936_vm4, %v1931_v34, %v1933_v3  ;;  %v18166_v58 = vsub.f32 %v1939_v14, %v3013_v37  ;;  %v2400_v34 = vand.u32 4294901760, %v2399_v7 }
 0x286   :  { %v18158_v51 = vpack.c.bf16 %v3015_v23, %v3011_v44  ;;  %v2289_v19 = vand.u32 4294901760, %v1938_v10  ;;  %v2291_v17 = vand.u32 4294901760, %v1937_v20  ;;  %22301 = vst [vmem:[#allocation31_spill] sm:$0xff] %v18161_v54  ;;  %v18175_v15 = vsub.f32 %v2241_v12, %v3015_v23 }
 0x287   :  { %v2136_v61 = vpop.permute.xlu0 %2135  ;;  %22302 = vst [vmem:[#allocation32_spill] sm:$0xff] %v18166_v58  ;;  %v18180_v46 = vpack.c.bf16 %v2394_v47, %v22306_v63  ;;  %v3146_v18 = vand.u32 4294901760, %v3145_v30  ;;  %v3134_v14 = vand.u32 4294901760, %v3133_v11  ;;  %v22307_v37 = vand.u32 4294901760, %v18135_v6 }
 0x288   :  { %22300 = vst [vmem:[#allocation30_spill] sm:$0xff] %v18158_v51  ;;  %v2067_v39 = vpop.permute.xlu1 %2066  ;;  %2148 = vst.msk [vmem:[#allocation4 + $0xf8] sm:$0xff] %vm1562_vm3, %v2136_v61  ;;  %15327 = vmatprep.subr.bf16.mxu1 %v18158_v51  ;;  %v18168_v3 = vpack.c.bf16 %v2293_v50, %v2289_v19  ;;  %v18170_v44 = vpack.c.bf16 %v2295_v28, %v2291_v17  ;;  %v18195_v47 = vsub.f32 %v2004_v40, %v2295_v28  ;;  %vm7460_vm4 = vcmask 105504  }
 0x289   :  { %v18173_v57 = vsel %vm2070_vm6, %v2067_v39, %v2069_v16  ;;  %22305 = vst [vmem:[#allocation35_spill] sm:$0xff] %v18175_v15  ;;  %15329 = vmatpush1.bf16.msra.mxu1 %v18161_v54  ;;  %v18186_v7 = vsub.f32 %v18135_v6, %v22307_v37  ;;  %v22308_v16 = vand.u32 4294901760, %v18124_v32  ;;  %v18192_v54 = vsub.f32 %v2006_v35, %v3017_v2 }
 0x28a   :  { %22303 = vst [vmem:[#allocation33_spill] sm:$0xff] %v18168_v3  ;;  %22304 = vst [vmem:[#allocation34_spill] sm:$0xff] %v18170_v44  ;;  %15231 = vmatprep.subr.bf16.mxu0 %v18168_v3  ;;  %v18197_v30 = vpack.c.bf16 %v3140_v49, %v3128_v22  ;;  %v22309_v11 = vand.u32 4294901760, %v18130_v0  ;;  %v22310_v35 = vand.u32 4294901760, %v18026_v29  ;;  %v18213_v49 = vpack.c.bf16 %v3146_v18, %v3134_v14 }
 0x28b   :  { %v2405_v12 = vsub.f32 %v18124_v32, %v22308_v16  ;;  %v2132_v55 = vpop.permute.xlu0 %2131  ;;  %15233 = vmatpush1.bf16.msra.mxu0 %v18170_v44  ;;  %v18204_v16 = vsub.f32 %v2005_v26, %v2293_v50  ;;  %v2245_v23 = vld [vmem:[#allocation4 + $0xd8] sm:$0xff]  ;;  %v18216_v44 = vsub.f32 %v1938_v10, %v2289_v19  ;;  %v3021_v14 = vand.u32 4294901760, %v18173_v57 }
 0x28c   :  { %v2417_v63 = vsub.f32 %v18130_v0, %v22309_v11  ;;  %v2134_v37 = vpop.permute.xlu1 %2133  ;;  %v2138_v3 = vsel %vm2137_vm7, %v17963_v1, %v2132_v55  ;;  %v18208_v2 = vpack.c.bf16 %v2400_v34, %v22310_v35  ;;  %v22066_v11 = vand.u32 4294901760, %v18175_v15 }
 0x28d   :  { %v2140_v22 = vsel %vm2137_vm7, %v2134_v37, %v2136_v61  ;;  %v2139_v40 = vsel %vm2137_vm7, %v2132_v55, %v2134_v37  ;;  %v18218_v1 = vsub.f32 %v1937_v20, %v2291_v17  ;;  %v2406_v26 = vand.u32 4294901760, %v2405_v12 }
 0x28e   :  { %v3019_v35 = vand.u32 4294901760, %v2245_v23  ;;  %v3025_v51 = vand.u32 4294901760, %v2140_v22  ;;  %v2418_v28 = vand.u32 4294901760, %v2417_v63  ;;  %v22311_v10 = vand.u32 4294901760, %v18166_v58 }
 0x28f   :  { %v2203_v29 = vpop.permute.xlu0 %2202  ;;  %v2249_v34 = vld [vmem:[#allocation4 + $0xf8] sm:$0xff]  ;;  %v22312_v19 = vand.u32 4294901760, %v18142_v24  ;;  %v2303_v63 = vand.u32 4294901760, %v2138_v3  ;;  %v3163_v37 = vsub.f32 %v18175_v15, %v22066_v11  ;;  %vm10706_vm7 = vcmask 1041408  }
 0x290   :  { %v2065_v53 = vpop.permute.xlu1 %2064  ;;  %2215 = vst.msk [vmem:[#allocation4 + $0x118] sm:$0xff] %vm1562_vm3, %v2203_v29  ;;  %v3023_v18 = vand.u32 4294901760, %v2249_v34  ;;  %v18227_v17 = vsub.f32 %v18166_v58, %v22311_v10  ;;  %v2301_v10 = vand.u32 4294901760, %v2139_v40  ;;  %v18242_v41 = vsub.f32 %v2245_v23, %v3019_v35 }
 0x291   :  { %v18232_v20 = vsub.f32 %v18142_v24, %v22312_v19  ;;  %v2071_v12 = vsel %vm2070_vm6, %v17966_v4, %v2065_v53  ;;  %v2072_v55 = vsel %vm2070_vm6, %v2065_v53, %v2067_v39  ;;  %v18244_v58 = vpack.c.bf16 %v3025_v51, %v3021_v14 }
 0x292   :  { %v18240_v50 = vpack.c.bf16 %v3023_v18, %v3019_v35  ;;  %v2297_v61 = vand.u32 4294901760, %v2072_v55  ;;  %v2299_v33 = vand.u32 4294901760, %v2071_v12  ;;  %v22315_v19 = vand.u32 4294901760, %v18192_v54 }
 0x293   :  { %22314 = vst [vmem:[#allocation37_spill] sm:$0xff] %v18244_v58  ;;  %v18251_v24 = vsub.f32 %v2249_v34, %v3023_v18  ;;  %v18257_v15 = vpack.c.bf16 %v2418_v28, %v2406_v26  ;;  %v18262_v35 = vsub.f32 %v18173_v57, %v3021_v14  ;;  %v18269_v34 = vsub.f32 %v2138_v3, %v2303_v63  ;;  %v2197_v39 = vpop.permute.xlu0 %2196 }
 0x294   :  { %22313 = vst [vmem:[#allocation36_spill] sm:$0xff] %v18240_v50  ;;  %v3169_v4 = vsub.f32 %v18192_v54, %v22315_v19  ;;  %v2201_v53 = vpop.permute.xlu1 %2200  ;;  %15331 = vmatprep.subr.bf16.mxu1 %v18240_v50  ;;  %v18253_v11 = vpack.c.bf16 %v2301_v10, %v2297_v61  ;;  %v18255_v8 = vpack.c.bf16 %v2303_v63, %v2299_v33  ;;  %v3158_v19 = vand.u32 4294901760, %v18227_v17 }
 0x295   :  { %v2207_v23 = vsel %vm2204_vm8, %v2201_v53, %v2203_v29  ;;  %15333 = vmatpush1.bf16.msra.mxu1 %v18244_v58  ;;  %v18266_v50 = vsub.f32 %v2140_v22, %v3025_v51  ;;  %v3164_v18 = vand.u32 4294901760, %v3163_v37  ;;  %v2412_v28 = vand.u32 4294901760, %v18232_v20 }
 0x296   :  { %22316 = vst [vmem:[#allocation38_spill] sm:$0xff] %v18253_v11  ;;  %22317 = vst [vmem:[#allocation39_spill] sm:$0xff] %v18255_v8  ;;  %15235 = vmatprep.subr.bf16.mxu0 %v18253_v11  ;;  %v18272_v26 = vsub.f32 %v2139_v40, %v2301_v10  ;;  %v3170_v57 = vand.u32 4294901760, %v3169_v4  ;;  %v22318_v14 = vand.u32 4294901760, %v18116_v45  ;;  %v22075_v51 = vand.u32 4294901760, %v18242_v41 }
 0x297   :  { %15237 = vmatpush1.bf16.msra.mxu0 %v18255_v8  ;;  %v2253_v29 = vld [vmem:[#allocation4 + $0x118] sm:$0xff]  ;;  %v18279_v11 = vsub.f32 %v2072_v55, %v2297_v61  ;;  %v18281_v3 = vsub.f32 %v2071_v12, %v2299_v33  ;;  %v18288_v10 = vand.u32 4294901760, %v2207_v23  ;;  %v22321_v55 = vand.u32 4294901760, %v18186_v7 }
 0x298   :  { %v2423_v17 = vsub.f32 %v18116_v45, %v22318_v14  ;;  %v2199_v22 = vpop.permute.xlu1 %2198  ;;  %v18283_v63 = vand.u32 4294901760, %v2253_v29  ;;  %v22322_v4 = vand.u32 4294901760, %v18216_v44  ;;  %v22323_v12 = vand.u32 4294901760, %v18251_v24 }
 0x299   :  { %v2206_v20 = vsel %vm2204_vm8, %v2199_v22, %v2201_v53  ;;  %v2205_v37 = vsel %vm2204_vm8, %v2197_v39, %v2199_v22  ;;  %22320 = vst [vmem:[#allocation41_spill] sm:$0xff] %v18288_v10  ;;  %v15342_v53 = vpack.c.bf16 %v3164_v18, %v22321_v55  ;;  %v3175_v22 = vsub.f32 %v18242_v41, %v22075_v51 }
 0x29a   :  { %22319 = vst [vmem:[#allocation40_spill] sm:$0xff] %v18283_v63  ;;  %3028 = vmatprep.subr.mxu1 %v18283_v63  ;;  %v18292_v14 = vand.u32 4294901760, %v2206_v20  ;;  %v18294_v61 = vand.u32 4294901760, %v2205_v37  ;;  %v2424_v39 = vand.u32 4294901760, %v2423_v17  ;;  %v2429_v40 = vsub.f32 %v18216_v44, %v22322_v4 }
 0x29b   :  { %3030 = vmatpush1.msra.mxu1 %v18288_v10  ;;  %v3187_v33 = vsub.f32 %v18251_v24, %v22323_v12  ;;  %v18314_v18 = vsub.f32 %v2253_v29, %v18283_v63  ;;  %v15344_v4 = vpack.c.bf16 %v3170_v57, %v3158_v19  ;;  %v22325_v7 = vand.u32 4294901760, %v18266_v50 }
 0x29c   :  { %15335 = vmatprep.subr.bf16.mxu1 %v18137_v38  ;;  %3083 = vmatmul.mubr.f32.vlgmr.msra.gmra.mrb[8].mxu1 %v18102_v27  ;;  %v22324_v38 = vand.u32 4294901760, %v18204_v16  ;;  %v15244_v29 = vpack.c.bf16 %v2424_v39, %v2412_v28  ;;  %v22326_v17 = vand.u32 4294901760, %v18218_v1  ;;  %v2430_v12 = vand.u32 4294901760, %v2429_v40 }
 0x29d   :  { %15337 = vmatpush1.bf16.msra.mxu1 %v18118_v48  ;;  %2306 = vmatprep.subr.mxu0 %v18292_v14  ;;  %v3193_v48 = vsub.f32 %v18266_v50, %v22325_v7  ;;  %v22327_v28 = vand.u32 4294901760, %v18279_v11  ;;  %v3188_v7 = vand.u32 4294901760, %v3187_v33  ;;  %v22329_v51 = vmov 0.0  }
 0x29e   :  { %v2441_v55 = vsub.f32 %v18204_v16, %v22324_v38  ;;  %15339 = vmatprep.subr.bf16.mxu1 %v18197_v30  ;;  %2308 = vmatpush1.msra.mxu0 %v18294_v61  ;;  %v2435_v19 = vsub.f32 %v18218_v1, %v22326_v17  ;;  %v18334_v38 = vsub.f32 %v2207_v23, %v18288_v10  ;;  %v3176_v30 = vand.u32 4294901760, %v3175_v22 }
 0x29f   :  { %15239 = vmatprep.subr.bf16.mxu0 %v18180_v46  ;;  %2361 = vmatmul.mubr.f32.vlgmr.msra.gmra.mrb[8].mxu0 %v18102_v27  ;;  %v2453_v39 = vsub.f32 %v18279_v11, %v22327_v28  ;;  %v22328_v17 = vand.u32 4294901760, %v18195_v47  ;;  %v22330_v40 = vand.u32 4294901760, %v18262_v35  ;;  %v22331_v33 = vand.u32 4294901760, %v18272_v26  ;;  %3734 = vst.msk [vmem:[#allocation6] sm:$0xff] %vm3733_vm10, %v22329_v51  ;;  %3735 = vst.msk [vmem:[#allocation6 + $0x8] sm:$0xff] %vm3733_vm10, %v22329_v51 }
 0x2a0   :  { %15241 = vmatpush1.bf16.msra.mxu0 %v18208_v2  ;;  %3088 = vmatprep.mubr.f32.mxu1 %v22329_v51  ;;  %v2442_v27 = vand.u32 4294901760, %v2441_v55  ;;  %v18357_v28 = vsub.f32 %v2206_v20, %v18292_v14  ;;  %v3194_v46 = vand.u32 4294901760, %v3193_v48  ;;  %v22333_v48 = vand.u32 4294901760, %v18314_v18  ;;  %3737 = vst.msk [vmem:[#allocation6] sm:$0xff] %vm3736_vm11, %v22329_v51  ;;  %3738 = vst.msk [vmem:[#allocation6 + $0x8] sm:$0xff] %vm3736_vm11, %v22329_v51 }
 0x2a1   :  { %v2447_v57 = vsub.f32 %v18195_v47, %v22328_v17  ;;  %15341 = vmatpush1.bf16.msra.mxu1 %v18213_v49  ;;  %15243 = vmatprep.subr.bf16.mxu0 %v18257_v15  ;;  %v3181_v2 = vsub.f32 %v18262_v35, %v22330_v40  ;;  %v2465_v22 = vsub.f32 %v18272_v26, %v22331_v33  ;;  %v2436_v49 = vand.u32 4294901760, %v2435_v19 }
 0x2a2   :  { %v18360_v17 = vsub.f32 %v2205_v37, %v18294_v61  ;;  %15343 = vmatprep.subr.bf16.mxu1 %v15342_v53  ;;  %3094 = vmatmul.mubr.f32.gmra.mrb[10].mxu1 %v18113_v13  ;;  %v22332_v15 = vand.u32 4294901760, %v18281_v3  ;;  %v15246_v40 = vpack.c.bf16 %v2442_v27, %v2430_v12  ;;  %v2454_v23 = vand.u32 4294901760, %v2453_v39 }
 0x2a3   :  { %3254 = vmatprep.mubr.f32.mxu1 %v22329_v51  ;;  %2366 = vmatprep.mubr.f32.mxu0 %v22329_v51  ;;  %v22079_v20 = vand.u32 4294901760, %v18357_v28  ;;  %v15346_v37 = vpack.c.bf16 %v3188_v7, %v3176_v30  ;;  %v2448_v53 = vand.u32 4294901760, %v2447_v57  ;;  %v3199_v19 = vsub.f32 %v18314_v18, %v22333_v48 }
 0x2a4   :  { %v2459_v55 = vsub.f32 %v18281_v3, %v22332_v15  ;;  %15245 = vmatpush1.bf16.msra.mxu0 %v15244_v29  ;;  %v22334_v33 = vand.u32 4294901760, %v18269_v34  ;;  %v3182_v39 = vand.u32 4294901760, %v3181_v2  ;;  %v2466_v27 = vand.u32 4294901760, %v2465_v22 }
 0x2a5   :  { %15345 = vmatpush1.bf16.msra.mxu1 %v15344_v4  ;;  %15247 = vmatprep.subr.bf16.mxu0 %v15246_v40  ;;  %v15248_v15 = vpack.c.bf16 %v2448_v53, %v2436_v49  ;;  %v22078_v29 = vand.u32 4294901760, %v18360_v17  ;;  %v22335_v7 = vand.u32 4294901760, %v18334_v38  ;;  %v2477_v4 = vsub.f32 %v18357_v28, %v22079_v20 }
 0x2a6   :  { %v2471_v12 = vsub.f32 %v18269_v34, %v22334_v33  ;;  %15347 = vmatprep.subr.bf16.mxu1 %v15346_v37  ;;  %v2460_v10 = vand.u32 4294901760, %v2459_v55  ;;  %2372 = vmatmul.mubr.f32.gmra.mrb[10].mxu0 %v18113_v13  ;;  %v15348_v57 = vpack.c.bf16 %v3194_v46, %v3182_v39  ;;  %v15250_v30 = vpack.c.bf16 %v2466_v27, %v2454_v23  ;;  %v22336_v39 = vld [vmem:[#allocation35_spill] sm:$0xff] }
 0x2a7   :  { %v3205_v48 = vsub.f32 %v18334_v38, %v22335_v7  ;;  %2532 = vmatprep.mubr.f32.mxu0 %v22329_v51  ;;  %v3200_v2 = vand.u32 4294901760, %v3199_v19  ;;  %v2483_v23 = vsub.f32 %v18360_v17, %v22078_v29  ;;  %v2478_v49 = vand.u32 4294901760, %v2477_v4  ;;  %v22339_v7 = vld [vmem:[#allocation32_spill] sm:$0xff]  ;;  %v22358_v29 = vld [vmem:[#allocation41_spill] sm:$0xff] }
 0x2a8   :  { %15249 = vmatpush1.bf16.msra.mxu0 %v15248_v15  ;;  %v2472_v22 = vand.u32 4294901760, %v2471_v12  ;;  %v15350_v55 = vpack.c.bf16 %v18030_v43, %v17997_v59  ;;  %v15352_v40 = vpack.c.bf16 %v18002_v9, %v17981_v52  ;;  %v15254_v53 = vpack.c.bf16 %v18047_v42, %v17977_v36  ;;  %v22337_v15 = vld [vmem:[#allocation16_spill] sm:$0xff] }
 0x2a9   :  { %15349 = vmatpush1.bf16.msra.mxu1 %v15348_v57  ;;  %15251 = vmatprep.subr.bf16.mxu0 %v15250_v30  ;;  %v3206_v46 = vand.u32 4294901760, %v3205_v48  ;;  %v2484_v37 = vand.u32 4294901760, %v2483_v23  ;;  %v15256_v19 = vpack.c.bf16 %v18070_v21, %v17985_v31  ;;  %v15356_v33 = vpack.c.bf16 %v18093_v5, %v18089_v62  ;;  %v22338_v57 = vld [vmem:[#allocation29_spill] sm:$0xff] }
 0x2aa   :  { %3201 = vmatprep.subr.mxu1 %v3200_v2  ;;  %v15252_v13 = vpack.c.bf16 %v2472_v22, %v2460_v10  ;;  %v15354_v10 = vpack.c.bf16 %v18085_v60, %v18077_v25  ;;  %v15258_v12 = vpack.c.bf16 %v18130_v0, %v18124_v32  ;;  %v15358_v27 = vpack.c.bf16 %v22336_v39, %v18135_v6 }
 0x2ab   :  { %v15260_v30 = vpack.c.bf16 %v18116_v45, %v22338_v57  ;;  %v15360_v48 = vpack.c.bf16 %v18192_v54, %v22339_v7  ;;  %v15262_v4 = vpack.c.bf16 %v18204_v16, %v18216_v44  ;;  %v15362_v2 = vpack.c.bf16 %v18251_v24, %v18242_v41 }
 0x2ac   :  { %15253 = vmatpush1.bf16.msra.mxu0 %v15252_v13  ;;  %v15264_v22 = vpack.c.bf16 %v18195_v47, %v18218_v1  ;;  %v15364_v13 = vpack.c.bf16 %v18266_v50, %v18262_v35  ;;  %v15266_v23 = vpack.c.bf16 %v18272_v26, %v18279_v11  ;;  %v22360_v20 = vand.u32 4294901760, %v18002_v9 }
 0x2ad   :  { %3207 = vmatpush1.msra.mxu1 %v3206_v46  ;;  %2479 = vmatprep.subr.mxu0 %v2478_v49  ;;  %v15268_v46 = vpack.c.bf16 %v18269_v34, %v18281_v3  ;;  %v22340_v49 = vld [vmem:[#allocation21_spill] sm:$0xff]  ;;  %v22367_v9 = vand.u32 4294901760, %v18070_v21  ;;  %vm11511_vm8 = vcmask 523264  }
 0x2ae   :  { %15351 = vmatprep.subr.bf16.mxu1 %v15350_v55  ;;  %3256 = vmatmul.mubr.f32.vlgmr.msra.gmra.mrb[8].mxu1 %v17987_v56  ;;  %v22341_v55 = vld [vmem:[#allocation17_spill] sm:$0xff] }
 0x2af   :  { %15353 = vmatpush1.bf16.msra.mxu1 %v15352_v40  ;;  %3261 = vmatprep.mubr.f32.mxu1 %v22329_v51  ;;  %v22342_v40 = vld [vmem:[#allocation23_spill] sm:$0xff] }
 0x2b0   :  { %15355 = vmatprep.subr.bf16.mxu1 %v15354_v10  ;;  %2485 = vmatpush1.msra.mxu0 %v2484_v37  ;;  %v22343_v10 = vld [vmem:[#allocation25_spill] sm:$0xff]  ;;  %v22344_v37 = vld [vmem:[#allocation19_spill] sm:$0xff] }
 0x2b1   :  { %15255 = vmatprep.subr.bf16.mxu0 %v15254_v53  ;;  %2534 = vmatmul.mubr.f32.vlgmr.msra.gmra.mrb[8].mxu0 %v17987_v56  ;;  %v22345_v53 = vld [vmem:[#allocation20_spill] sm:$0xff] }
 0x2b2   :  { %15257 = vmatpush1.bf16.msra.mxu0 %v15256_v19  ;;  %3263 = vmatmul.mubr.f32.gmra.mrb[10].mxu1 %v22337_v15  ;;  %v22346_v19 = vld [vmem:[#allocation18_spill] sm:$0xff] }
 0x2b3   :  { %15357 = vmatpush1.bf16.msra.mxu1 %v15356_v33  ;;  %15259 = vmatprep.subr.bf16.mxu0 %v15258_v12  ;;  %v22347_v33 = vld [vmem:[#allocation26_spill] sm:$0xff]  ;;  %v22348_v12 = vld [vmem:[#allocation27_spill] sm:$0xff] }
 0x2b4   :  { %15359 = vmatprep.subr.bf16.mxu1 %v15358_v27  ;;  %3369 = vmatprep.mubr.f32.mxu1 %v22329_v51  ;;  %v22349_v27 = vld [vmem:[#allocation30_spill] sm:$0xff] }
 0x2b5   :  { %2539 = vmatprep.mubr.f32.mxu0 %v22329_v51 }
 0x2b6   :  { %15261 = vmatpush1.bf16.msra.mxu0 %v15260_v30  ;;  %v22350_v30 = vld [vmem:[#allocation28_spill] sm:$0xff] }
 0x2b7   :  { %15361 = vmatpush1.bf16.msra.mxu1 %v15360_v48  ;;  %15263 = vmatprep.subr.bf16.mxu0 %v15262_v4  ;;  %v22351_v48 = vld [vmem:[#allocation31_spill] sm:$0xff]  ;;  %v22352_v4 = vld [vmem:[#allocation33_spill] sm:$0xff] }
 0x2b8   :  { %15363 = vmatprep.subr.bf16.mxu1 %v15362_v2  ;;  %2541 = vmatmul.mubr.f32.gmra.mrb[10].mxu0 %v22337_v15  ;;  %v22353_v2 = vld [vmem:[#allocation36_spill] sm:$0xff] }
 0x2b9   :  { %2647 = vmatprep.mubr.f32.mxu0 %v22329_v51 }
 0x2ba   :  { %15265 = vmatpush1.bf16.msra.mxu0 %v15264_v22  ;;  %v22354_v22 = vld [vmem:[#allocation34_spill] sm:$0xff] }
 0x2bb   :  { %15365 = vmatpush1.bf16.msra.mxu1 %v15364_v13  ;;  %15267 = vmatprep.subr.bf16.mxu0 %v15266_v23  ;;  %v22355_v13 = vld [vmem:[#allocation38_spill] sm:$0xff]  ;;  %v22356_v23 = vand.u32 4294901760, %v17997_v59 }
 0x2bc   :  { %3319 = vmatprep.subr.mxu1 %v18314_v18 }
 0x2be   :  { %15269 = vmatpush1.bf16.msra.mxu0 %v15268_v46  ;;  %v22357_v46 = vand.u32 4294901760, %v18030_v43  ;;  %v22364_v43 = vand.u32 4294901760, %v17977_v36  ;;  %v22370_v36 = vand.u32 4294901760, %v18124_v32  ;;  %v22377_v32 = vand.u32 4294901760, %v22339_v7 }
 0x2bf   :  { %3322 = vmatpush1.msra.mxu1 %v18334_v38  ;;  %2597 = vmatprep.subr.mxu0 %v18357_v28  ;;  %v22383_v7 = vand.u32 4294901760, %v18218_v1  ;;  %v22390_v1 = vand.u32 4294901760, %v18281_v3  ;;  %v22396_v3 = vld [vmem:[#allocation38_spill] sm:$0xff] }
 0x2c0   :  { %15367 = vmatprep.subr.bf16.mxu1 %v22340_v49  ;;  %3372 = vmatmul.mubr.f32.vlgmr.msra.gmra.mrb[8].mxu1 %v22341_v55 }
 0x2c1   :  { %15369 = vmatpush1.bf16.msra.mxu1 %v22342_v40  ;;  %3377 = vmatprep.mubr.f32.mxu1 %v22329_v51 }
 0x2c2   :  { %15371 = vmatprep.subr.bf16.mxu1 %v22343_v10  ;;  %2600 = vmatpush1.msra.mxu0 %v18360_v17 }
 0x2c3   :  { %15271 = vmatprep.subr.bf16.mxu0 %v22344_v37  ;;  %2650 = vmatmul.mubr.f32.vlgmr.msra.gmra.mrb[8].mxu0 %v22341_v55  ;;  %v15382_v55 = vpack.c.bf16 %v22357_v46, %v22356_v23  ;;  %v22365_v23 = vand.u32 4294901760, %v18047_v42  ;;  %v22371_v42 = vand.u32 4294901760, %v18130_v0  ;;  %v22378_v0 = vand.u32 4294901760, %v18192_v54 }
 0x2c4   :  { %15273 = vmatpush1.bf16.msra.mxu0 %v22345_v53  ;;  %3380 = vmatmul.mubr.f32.gmra.mrb[10].mxu1 %v22346_v19  ;;  %v22384_v54 = vand.u32 4294901760, %v18195_v47  ;;  %v22389_v47 = vand.u32 4294901760, %v18314_v18  ;;  %v22397_v18 = vld [vmem:[#allocation40_spill] sm:$0xff] }
 0x2c5   :  { %15373 = vmatpush1.bf16.msra.mxu1 %v22347_v33  ;;  %15275 = vmatprep.subr.bf16.mxu0 %v22348_v12  ;;  %v15286_v46 = vpack.c.bf16 %v22365_v23, %v22364_v43 }
 0x2c6   :  { %15375 = vmatprep.subr.bf16.mxu1 %v22349_v27  ;;  %3468 = vmatprep.mubr.f32.mxu1 %v22329_v51  ;;  %v15296_v23 = vpack.c.bf16 %v22384_v54, %v22383_v7 }
 0x2c7   :  { %2655 = vmatprep.mubr.f32.mxu0 %v22329_v51 }
 0x2c8   :  { %15277 = vmatpush1.bf16.msra.mxu0 %v22350_v30 }
 0x2c9   :  { %15377 = vmatpush1.bf16.msra.mxu1 %v22351_v48  ;;  %15279 = vmatprep.subr.bf16.mxu0 %v22352_v4 }
 0x2ca   :  { %15379 = vmatprep.subr.bf16.mxu1 %v22353_v2  ;;  %2658 = vmatmul.mubr.f32.gmra.mrb[10].mxu0 %v22346_v19  ;;  %v22359_v19 = vand.u32 4294901760, %v17981_v52  ;;  %v22366_v52 = vand.u32 4294901760, %v17985_v31  ;;  %v22373_v31 = vand.u32 4294901760, %v22336_v39  ;;  %v22379_v39 = vand.u32 4294901760, %v18216_v44 }
 0x2cb   :  { %2746 = vmatprep.mubr.f32.mxu0 %v22329_v51  ;;  %v22385_v44 = vand.u32 4294901760, %v18262_v35  ;;  %v22391_v35 = vand.u32 4294901760, %v18269_v34  ;;  %v22394_v34 = vand.u32 4294901760, %v18360_v17 }
 0x2cc   :  { %15281 = vmatpush1.bf16.msra.mxu0 %v22354_v22 }
 0x2cd   :  { %15381 = vmatpush1.bf16.msra.mxu1 %v18244_v58  ;;  %15283 = vmatprep.subr.bf16.mxu0 %v22355_v13  ;;  %v15384_v58 = vpack.c.bf16 %v22360_v20, %v22359_v19  ;;  %v22361_v13 = vld [vmem:[#allocation22_spill] sm:$0xff]  ;;  %v15288_v20 = vpack.c.bf16 %v22367_v9, %v22366_v52  ;;  %v22380_v19 = vand.u32 4294901760, %v18204_v16  ;;  %v22386_v16 = vand.u32 4294901760, %v18266_v50 }
 0x2ce   :  { %3419 = vmatprep.subr.mxu1 %v18283_v63  ;;  %v22362_v63 = vand.u32 4294901760, %v18077_v25  ;;  %v15300_v9 = vpack.c.bf16 %v22391_v35, %v22390_v1  ;;  %v22392_v50 = vand.u32 4294901760, %v18334_v38  ;;  %v22398_v38 = vld [vmem:[#allocation39_spill] sm:$0xff] }
 0x2d0   :  { %15285 = vmatpush1.bf16.msra.mxu0 %v18255_v8  ;;  %v22363_v8 = vand.u32 4294901760, %v18085_v60  ;;  %v22368_v60 = vand.u32 4294901760, %v18089_v62  ;;  %v22375_v62 = vand.u32 4294901760, %v22338_v57  ;;  %v22381_v57 = vand.u32 4294901760, %v18242_v41 }
 0x2d1   :  { %3421 = vmatpush1.msra.mxu1 %v22358_v29  ;;  %2697 = vmatprep.subr.mxu0 %v18292_v14  ;;  %v22387_v41 = vand.u32 4294901760, %v18279_v11  ;;  %v22393_v11 = vand.u32 4294901760, %v18357_v28 }
 0x2d2   :  { %15383 = vmatprep.subr.bf16.mxu1 %v15382_v55  ;;  %3472 = vmatmul.mubr.f32.vlgmr.msra.gmra.mrb[8].mxu1 %v22361_v13  ;;  %v15386_v59 = vpack.c.bf16 %v22363_v8, %v22362_v63  ;;  %v22369_v8 = vand.u32 4294901760, %v18093_v5  ;;  %v22372_v63 = vand.u32 4294901760, %v18135_v6  ;;  %v22374_v55 = vld [vmem:[#allocation24_spill] sm:$0xff]  ;;  %v22376_v5 = vand.u32 4294901760, %v18116_v45 }
 0x2d3   :  { %15385 = vmatpush1.bf16.msra.mxu1 %v15384_v58  ;;  %3477 = vmatprep.mubr.f32.mxu1 %v22329_v51  ;;  %v15290_v58 = vpack.c.bf16 %v22371_v42, %v22370_v36  ;;  %v15392_v6 = vpack.c.bf16 %v22378_v0, %v22377_v32  ;;  %v22382_v45 = vand.u32 4294901760, %v18251_v24  ;;  %v22388_v24 = vand.u32 4294901760, %v18272_v26  ;;  %v22395_v26 = vld [vmem:[#allocation37_spill] sm:$0xff] }
 0x2d4   :  { %15387 = vmatprep.subr.bf16.mxu1 %v15386_v59  ;;  %2699 = vmatpush1.msra.mxu0 %v18294_v61  ;;  %v15388_v25 = vpack.c.bf16 %v22369_v8, %v22368_v60  ;;  %v15390_v21 = vpack.c.bf16 %v22373_v31, %v22372_v63  ;;  %v15294_v59 = vpack.c.bf16 %v22380_v19, %v22379_v39  ;;  %v3787_v31 = vld [vmem:[%s21984_s12] sm:$0xff]  ;;  %v3790_v32 = vld [vmem:[%s21984_s12 + $0x18] sm:$0xff]  ;;  %v3792_v39 = vld [vmem:[%s21984_s12 + $0x28] sm:$0xff] }
 0x2d5   :  { %15287 = vmatprep.subr.bf16.mxu0 %v15286_v46  ;;  %2750 = vmatmul.mubr.f32.vlgmr.msra.gmra.mrb[8].mxu0 %v22361_v13  ;;  %v15292_v13 = vpack.c.bf16 %v22376_v5, %v22375_v62  ;;  %v15394_v43 = vpack.c.bf16 %v22382_v45, %v22381_v57  ;;  %v15396_v46 = vpack.c.bf16 %v22386_v16, %v22385_v44  ;;  %v22085_v62 = vmov 0.0|0.0   ;;  %v3793_v45 = vld [vmem:[%s21984_s12 + $0x30] sm:$0xff]  ;;  %v3795_v16 = vld [vmem:[%s21984_s12 + $0x40] sm:$0xff] }
 0x2d6   :  { %15289 = vmatpush1.bf16.msra.mxu0 %v15288_v20  ;;  %3481 = vmatmul.mubr.f32.gmra.mrb[10].mxu1 %v22374_v55  ;;  %v15298_v52 = vpack.c.bf16 %v22388_v24, %v22387_v41  ;;  %v3824_v5 = vand.u32 4294901760, %v3787_v31  ;;  %v3833_v19 = vand.u32 4294901760, %v3790_v32  ;;  %v3839_v57 = vand.u32 4294901760, %v3792_v39 }
 0x2d7   :  { %15389 = vmatpush1.bf16.msra.mxu1 %v15388_v25  ;;  %15291 = vmatprep.subr.bf16.mxu0 %v15290_v58  ;;  %v3842_v1 = vand.u32 4294901760, %v3793_v45 }
 0x2d8   :  { %15391 = vmatprep.subr.bf16.mxu1 %v15390_v21  ;;  %3605 = vmatprep.mubr.f32.mxu1 %v22329_v51  ;;  %v3788_v21 = vld [vmem:[%s21984_s12 + $0x8] sm:$0xff]  ;;  %v18641_v54 = vsub.f32 %v3787_v31, %v3824_v5  ;;  %v18655_v24 = vsub.f32 %v3790_v32, %v3833_v19 }
 0x2d9   :  { %2755 = vmatprep.mubr.f32.mxu0 %v22329_v51 }
 0x2da   :  { %15293 = vmatpush1.bf16.msra.mxu0 %v15292_v13  ;;  %v3827_v13 = vand.u32 4294901760, %v3788_v21 }
 0x2db   :  { %15393 = vmatpush1.bf16.msra.mxu1 %v15392_v6  ;;  %15295 = vmatprep.subr.bf16.mxu0 %v15294_v59  ;;  %v3791_v6 = vld [vmem:[%s21984_s12 + $0x20] sm:$0xff] }
 0x2dc   :  { %15395 = vmatprep.subr.bf16.mxu1 %v15394_v43  ;;  %2759 = vmatmul.mubr.f32.gmra.mrb[10].mxu0 %v22374_v55  ;;  %v3789_v55 = vld [vmem:[%s21984_s12 + $0x10] sm:$0xff]  ;;  %v3836_v59 = vand.u32 4294901760, %v3791_v6  ;;  %v3794_v43 = vld [vmem:[%s21984_s12 + $0x38] sm:$0xff]  ;;  %v18639_v7 = vpack.c.bf16 %v3827_v13, %v3824_v5 }
 0x2dd   :  { %2883 = vmatprep.mubr.f32.mxu0 %v22329_v51  ;;  %v3830_v0 = vand.u32 4294901760, %v3789_v55  ;;  %v3845_v35 = vand.u32 4294901760, %v3794_v43 }
 0x2de   :  { %15297 = vmatpush1.bf16.msra.mxu0 %v15296_v23  ;;  %v18643_v23 = vsub.f32 %v3788_v21, %v3827_v13  ;;  %v3801_v21 = vld [vmem:[%s21984_s12 + $0x70] sm:$0xff] }
 0x2df   :  { %15397 = vmatpush1.bf16.msra.mxu1 %v15396_v46  ;;  %15299 = vmatprep.subr.bf16.mxu0 %v15298_v52  ;;  %v18645_v44 = vsub.f32 %v3789_v55, %v3830_v0  ;;  %v3796_v46 = vld [vmem:[%s21984_s12 + $0x48] sm:$0xff]  ;;  %v18653_v41 = vpack.c.bf16 %v3833_v19, %v3830_v0  ;;  %v18657_v52 = vsub.f32 %v3791_v6, %v3836_v59  ;;  %v3802_v55 = vld [vmem:[%s21984_s12 + $0x78] sm:$0xff]  ;;  %v3866_v13 = vand.u32 4294901760, %v3801_v21 }
 0x2e0   :  { %3554 = vmatprep.subr.mxu1 %v22389_v47  ;;  %v18660_v47 = vsub.f32 %v3792_v39, %v3839_v57  ;;  %v3869_v32 = vand.u32 4294901760, %v3802_v55 }
 0x2e2   :  { %15301 = vmatpush1.bf16.msra.mxu0 %v15300_v9  ;;  %v3848_v9 = vand.u32 4294901760, %v3795_v16 }
 0x2e3   :  { %3558 = vmatpush1.msra.mxu1 %v22392_v50  ;;  %2832 = vmatprep.subr.mxu0 %v22393_v11  ;;  %v3851_v50 = vand.u32 4294901760, %v3796_v46  ;;  %v18666_v11 = vsub.f32 %v3793_v45, %v3842_v1  ;;  %v18747_v45 = vsub.f32 %v3802_v55, %v3869_v32 }
 0x2e4   :  { %15399 = vmatprep.subr.bf16.mxu1 %v22340_v49  ;;  %3607 = vmatmul.mubr.f32.vlgmr.msra.gmra.mrb[8].mxu1 %v17987_v56 }
 0x2e5   :  { %15401 = vmatpush1.bf16.msra.mxu1 %v22342_v40  ;;  %3612 = vmatprep.mubr.f32.mxu1 %v22329_v51  ;;  %v2264_v40 = vpop.permute.xlu0 %2263  ;;  %22407 = vst [vmem:[#allocation19_spill] sm:$0xff] %v18747_v45 }
 0x2e6   :  { %15403 = vmatprep.subr.bf16.mxu1 %v22343_v10  ;;  %2836 = vmatpush1.msra.mxu0 %v22394_v34  ;;  %v18668_v34 = vsub.f32 %v3794_v43, %v3845_v35 }
 0x2e7   :  { %15303 = vmatprep.subr.bf16.mxu0 %v22344_v37  ;;  %2885 = vmatmul.mubr.f32.vlgmr.msra.gmra.mrb[8].mxu0 %v17987_v56 }
 0x2e8   :  { %15305 = vmatpush1.bf16.msra.mxu0 %v22345_v53  ;;  %3614 = vmatmul.mubr.f32.gmra.mrb[10].mxu1 %v22337_v15 }
 0x2e9   :  { %15405 = vmatpush1.bf16.msra.mxu1 %v22347_v33  ;;  %15307 = vmatprep.subr.bf16.mxu0 %v22348_v12 }
 0x2ea   :  { %15407 = vmatprep.subr.bf16.mxu1 %v22349_v27  ;;  %3702 = vmatprep.mubr.f32.mxu1 %v22329_v51 }
 0x2eb   :  { %2890 = vmatprep.mubr.f32.mxu0 %v22329_v51 }
 0x2ec   :  { %15309 = vmatpush1.bf16.msra.mxu0 %v22350_v30 }
 0x2ed   :  { %15409 = vmatpush1.bf16.msra.mxu1 %v22351_v48  ;;  %15311 = vmatprep.subr.bf16.mxu0 %v22352_v4 }
 0x2ee   :  { %15411 = vmatprep.subr.bf16.mxu1 %v22353_v2  ;;  %2892 = vmatmul.mubr.f32.gmra.mrb[10].mxu0 %v22337_v15 }
 0x2ef   :  { %2980 = vmatprep.mubr.f32.mxu0 %v22329_v51 }
 0x2f0   :  { %15313 = vmatpush1.bf16.msra.mxu0 %v22354_v22 }
 0x2f1   :  { %15413 = vmatpush1.bf16.msra.mxu1 %v22395_v26  ;;  %15315 = vmatprep.subr.bf16.mxu0 %v22396_v3  ;;  %v18670_v26 = vsub.f32 %v3795_v16, %v3848_v9  ;;  %v18673_v3 = vsub.f32 %v3796_v46, %v3851_v50 }
 0x2f2   :  { %3653 = vmatprep.subr.mxu1 %v22397_v18  ;;  %v18676_v18 = vpack.c.bf16 %v3839_v57, %v3836_v59  ;;  %v18743_v59 = vpack.c.bf16 %v3869_v32, %v3866_v13  ;;  %v18745_v57 = vsub.f32 %v3801_v21, %v3866_v13  ;;  %v3807_v21 = vld [vmem:[%s21984_s12 + $0xa0] sm:$0xff]  ;;  %v3810_v13 = vld [vmem:[%s21984_s12 + $0xb8] sm:$0xff] }
 0x2f3   :  { %v3884_v55 = vand.u32 4294901760, %v3807_v21 }
 0x2f4   :  { %15317 = vmatpush1.bf16.msra.mxu0 %v22398_v38  ;;  %v18682_v38 = vpack.c.bf16 %v3845_v35, %v3842_v1  ;;  %22405 = vst [vmem:[#allocation23_spill] sm:$0xff] %v18743_v59  ;;  %22406 = vst [vmem:[#allocation25_spill] sm:$0xff] %v18745_v57 }
 0x2f5   :  { %3655 = vmatpush1.msra.mxu1 %v22358_v29  ;;  %2931 = vmatprep.subr.mxu0 %v18292_v14 }
 0x2f6   :  { %3704 = vmatmul.mubr.f32.vlgmr.msra.gmra.mrb[8].mxu1 %v17987_v56  ;;  %15630 = vmatprep.subr.bf16.mxu1 %v22085_v62  ;;  %22399 = vst [vmem:[#allocation35_spill] sm:$0xff] %v18682_v38 }
 0x2f7   :  { %3709 = vmatprep.mubr.f32.mxu1 %v22329_v51  ;;  %15632 = vmatpush1.bf16.msra.mxu1 %v18639_v7 }
 0x2f8   :  { %2933 = vmatpush1.msra.mxu0 %v18294_v61  ;;  %15633 = vmatprep.subr.bf16.mxu1 %v22085_v62 }
 0x2f9   :  { %2982 = vmatmul.mubr.f32.vlgmr.msra.gmra.mrb[8].mxu0 %v17987_v56  ;;  %15414 = vmatprep.subr.bf16.mxu0 %v22085_v62 }
 0x2fa   :  { %3711 = vmatmul.mubr.f32.gmra.mrb[10].mxu1 %v22337_v15  ;;  %2987 = vmatprep.mubr.f32.mxu0 %v22329_v51 }
 0x2fb   :  { %v2259_v28 = vpop.permute.xlu1 %2258  ;;  %15416 = vmatpush1.bf16.msra.mxu0 %v18639_v7  ;;  %15635 = vmatpush1.bf16.msra.mxu1 %v18653_v41 }
 0x2fc   :  { %15417 = vmatprep.subr.bf16.mxu0 %v22085_v62  ;;  %15636 = vmatprep.subr.bf16.mxu1 %v22085_v62 }
 0x2fd   :  { %2989 = vmatmul.mubr.f32.gmra.mrb[10].mxu0 %v22337_v15 }
 0x2ff   :  { %15419 = vmatpush1.bf16.msra.mxu0 %v18653_v41  ;;  %15638 = vmatpush1.bf16.msra.mxu1 %v18676_v18 }
 0x300   :  { %15420 = vmatprep.subr.bf16.mxu0 %v22085_v62  ;;  %15639 = vmatprep.subr.bf16.mxu1 %v22085_v62 }
 0x303   :  { %15422 = vmatpush1.bf16.msra.mxu0 %v18676_v18  ;;  %15641 = vmatpush1.bf16.msra.mxu1 %v18682_v38 }
 0x304   :  { %15423 = vmatprep.subr.bf16.mxu0 %v22085_v62  ;;  %15642 = vmatprep.subr.bf16.mxu1 %v22085_v62 }
 0x307   :  { %15425 = vmatpush1.bf16.msra.mxu0 %v18682_v38 }
 0x308   :  { %15426 = vmatprep.subr.bf16.mxu0 %v22085_v62 }
 0x3c9   :  { %v3705_v17 = vpop.f32.mrb[8].mxu1 }
 0x3ca   :  { %v18574_v49 = vadd.f32 %v3705_v17, %v2259_v28  ;;  %v3707_v29 = vpop.f32.mrb[9].mxu1 }
 0x3cb   :  { %v16539_v14 = vadd.f32 %v3707_v29, %v2259_v28  ;;  %v3797_v29 = vld [vmem:[%s21984_s12 + $0x50] sm:$0xff] }
 0x3cc   :  { %v3719_v10 = vmax.f32 %v18574_v49, 0.0  ;;  %v2983_v37 = vpop.f32.mrb[8].mxu0  ;;  %v3804_v49 = vld [vmem:[%s21984_s12 + $0x88] sm:$0xff] }
 0x3cd   :  { %v3720_v53 = vmax.f32 %v16539_v14, 0.0  ;;  %v3712_v61 = vpop.f32.mrb[10].mxu1  ;;  %v18577_v33 = vadd.f32 %v2983_v37, %v2259_v28  ;;  %v2985_v56 = vpop.f32.mrb[9].mxu0  ;;  %v3798_v14 = vld [vmem:[%s21984_s12 + $0x58] sm:$0xff]  ;;  %v3875_v46 = vand.u32 4294901760, %v3804_v49 }
 0x3ce   :  { %v18579_v12 = vadd.f32 %v3712_v61, %v2264_v40  ;;  %v3714_v27 = vpop.f32.mrb[11].mxu1  ;;  %v16535_v30 = vadd.f32 %v2985_v56, %v2259_v28  ;;  %4675 = vrot.lane.b32.xlu1 %v3719_v10, %s17009_s2  ;;  %v18688_v28 = vpack.c.bf16 %v3851_v50, %v3848_v9  ;;  %v3857_v37 = vand.u32 4294901760, %v3798_v14 }
 0x3cf   :  { %3728 = vst.msk [vmem:[#allocation5 + $0x18] sm:$0xff] %vm1562_vm3, %v3720_v53  ;;  %v3717_v15 = vmax.f32 %v18577_v33, 0.0  ;;  %v16541_v48 = vadd.f32 %v3714_v27, %v2264_v40  ;;  %v3799_v27 = vld [vmem:[%s21984_s12 + $0x60] sm:$0xff] }
 0x3d0   :  { %v3723_v4 = vmax.f32 %v18579_v12, 0.0  ;;  %v18587_v2 = vmax.f32 %v16535_v30, 0.0  ;;  %v2990_v22 = vpop.f32.mrb[10].mxu0  ;;  %22400 = vst [vmem:[#allocation16_spill] sm:$0xff] %v18688_v28  ;;  %15428 = vmatpush1.bf16.msra.mxu0 %v18688_v28  ;;  %15644 = vmatpush1.bf16.msra.mxu1 %v18688_v28  ;;  %v18707_v56 = vsub.f32 %v3798_v14, %v3857_v37  ;;  %v3800_v30 = vld [vmem:[%s21984_s12 + $0x68] sm:$0xff] }
 0x3d1   :  { %v3724_v20 = vmax.f32 %v16541_v48, 0.0  ;;  %v18589_v60 = vadd.f32 %v2990_v22, %v2264_v40  ;;  %v2992_v8 = vpop.f32.mrb[11].mxu0  ;;  %15429 = vmatprep.subr.bf16.mxu0 %v22085_v62  ;;  %15645 = vmatprep.subr.bf16.mxu1 %v22085_v62  ;;  %v3860_v48 = vand.u32 4294901760, %v3799_v27  ;;  %v3863_v22 = vand.u32 4294901760, %v3800_v30 }
 0x3d2   :  { %v16537_v25 = vadd.f32 %v2992_v8, %v2264_v40  ;;  %4673 = vrot.lane.b32.xlu1 %v18587_v2, %s17009_s2  ;;  %v3854_v40 = vand.u32 4294901760, %v3797_v29 }
 0x3d3   :  { %3732 = vst.msk [vmem:[#allocation5 + $0x38] sm:$0xff] %vm1562_vm3, %v3724_v20  ;;  %v22090_v36 = vmax.f32 %v18589_v60, 0.0  ;;  %v18719_v8 = vpack.c.bf16 %v3863_v22, %v3860_v48  ;;  %v18723_v31 = vsub.f32 %v3800_v30, %v3863_v22  ;;  %vm3819_vm3 = vcmask 1040384  }
 0x3d4   :  { %v18595_v42 = vmax.f32 %v16537_v25, 0.0  ;;  %v18703_v53 = vpack.c.bf16 %v3857_v37, %v3854_v40  ;;  %v18705_v61 = vsub.f32 %v3797_v29, %v3854_v40  ;;  %v18721_v25 = vsub.f32 %v3799_v27, %v3860_v48 }
 0x3d5   :  { %22402 = vst [vmem:[#allocation32_spill] sm:$0xff] %v18719_v8  ;;  %22404 = vst [vmem:[#allocation17_spill] sm:$0xff] %v18723_v31 }
 0x3d6   :  { %v18597_v58 = vld [vmem:[#allocation5 + $0x18] sm:$0xff]  ;;  %22401 = vst [vmem:[#allocation29_spill] sm:$0xff] %v18703_v53  ;;  %15431 = vmatpush1.bf16.msra.mxu0 %v18703_v53  ;;  %15647 = vmatpush1.bf16.msra.mxu1 %v18703_v53  ;;  %22403 = vst [vmem:[#allocation21_spill] sm:$0xff] %v18721_v25 }
 0x3d7   :  { %4677 = vrot.lane.b32.xlu0 %v18597_v58, %s17009_s2  ;;  %15432 = vmatprep.subr.bf16.mxu0 %v22085_v62 }
 0x3d8   :  { %15648 = vmatprep.subr.bf16.mxu1 %v22085_v62 }
 0x3da   :  { %v18601_v63 = vld [vmem:[#allocation5 + $0x38] sm:$0xff]  ;;  %15434 = vmatpush1.bf16.msra.mxu0 %v18719_v8  ;;  %15650 = vmatpush1.bf16.msra.mxu1 %v18719_v8 }
 0x3db   :  { %4681 = vrot.lane.b32.xlu0 %v3723_v4, %s17009_s2  ;;  %4683 = vrot.lane.b32.xlu1 %v18601_v63, %s17009_s2 }
 0x3dc   :  { %15435 = vmatprep.subr.bf16.mxu0 %v22085_v62  ;;  %15651 = vmatprep.subr.bf16.mxu1 %v22085_v62 }
 0x3de   :  { %15437 = vmatpush1.bf16.msra.mxu0 %v18743_v59  ;;  %15653 = vmatpush1.bf16.msra.mxu1 %v18743_v59 }
 0x3df   :  { %4679 = vrot.lane.b32.xlu0 %v18595_v42, %s17009_s2  ;;  %3747 = vrot.lane.b32.xlu1 %v3717_v15, %s17009_s2 }
 0x3e0   :  { %15438 = vmatprep.subr.bf16.mxu0 %v22085_v62  ;;  %15654 = vmatprep.subr.bf16.mxu1 %v22085_v62 }
 0x3e3   :  { %3749 = vrot.lane.b32.xlu0 %v18587_v2, %s17009_s2 }
 0x440   :  { %v4676_v17 = vpop.permute.xlu1 %4675 }
 0x444   :  { %v4674_v20 = vpop.permute.xlu1 %4673 }
 0x445   :  { %v4685_v39 = vsel %vm1736_vm15, %v4674_v20, %v4676_v17  ;;  %v3806_v20 = vld [vmem:[%s21984_s12 + $0x98] sm:$0xff] }
 0x446   :  { %v18761_v1 = vmax.f32 %v18587_v2, %v4685_v39  ;;  %v3893_v39 = vand.u32 4294901760, %v3810_v13 }
 0x449   :  { %v4678_v5 = vpop.permute.xlu0 %4677 }
 0x44a   :  { %v4686_v0 = vsel %vm1736_vm15, %v4676_v17, %v4678_v5  ;;  %v18733_v6 = vmax.f32 %v18597_v58, %v4678_v5  ;;  %v3803_v58 = vld [vmem:[%s21984_s12 + $0x80] sm:$0xff]  ;;  %v18771_v17 = vsub.f32 %v3804_v49, %v3875_v46  ;;  %v3809_v5 = vld [vmem:[%s21984_s12 + $0xb0] sm:$0xff] }
 0x44b   :  { %v18740_v19 = vmax.f32 %v3719_v10, %v4686_v0  ;;  %v3872_v16 = vand.u32 4294901760, %v3803_v58  ;;  %v3890_v0 = vand.u32 4294901760, %v3809_v5 }
 0x44c   :  { %4711 = vrot.lane.b32.xlu0 %v18733_v6, %s17011_s27  ;;  %22410 = vst [vmem:[#allocation26_spill] sm:$0xff] %v18771_v17 }
 0x44d   :  { %4709 = vrot.lane.b32.xlu1 %v18740_v19, %s17011_s27  ;;  %v4682_v10 = vpop.permute.xlu0 %4681  ;;  %v4684_v43 = vpop.permute.xlu1 %4683  ;;  %v18767_v9 = vpack.c.bf16 %v3875_v46, %v3872_v16  ;;  %v18769_v50 = vsub.f32 %v3803_v58, %v3872_v16  ;;  %v18842_v46 = vsub.f32 %v3809_v5, %v3890_v0 }
 0x44e   :  { %v4688_v35 = vsel %vm1736_vm15, %v4682_v10, %v4684_v43  ;;  %v18796_v27 = vmax.f32 %v18601_v63, %v4684_v43  ;;  %v3805_v63 = vld [vmem:[%s21984_s12 + $0x90] sm:$0xff]  ;;  %v18838_v43 = vsub.f32 %v3807_v21, %v3884_v55 }
 0x44f   :  { %22408 = vst [vmem:[#allocation20_spill] sm:$0xff] %v18767_v9  ;;  %22409 = vst [vmem:[#allocation18_spill] sm:$0xff] %v18769_v50  ;;  %v18781_v14 = vmax.f32 %v3723_v4, %v4688_v35  ;;  %15440 = vmatpush1.bf16.msra.mxu0 %v18767_v9  ;;  %15656 = vmatpush1.bf16.msra.mxu1 %v18767_v9  ;;  %v3878_v33 = vand.u32 4294901760, %v3805_v63  ;;  %v22420_v9 = vmax.f32 %v18589_v60, 0.0 }
 0x450   :  { %3751 = vrot.lane.b32.xlu0 %v22090_v36, %s17009_s2  ;;  %15441 = vmatprep.subr.bf16.mxu0 %v22085_v62  ;;  %22414 = vst [vmem:[#allocation31_spill] sm:$0xff] %v18838_v43  ;;  %22416 = vst [vmem:[#allocation36_spill] sm:$0xff] %v18842_v46 }
 0x451   :  { %4707 = vrot.lane.b32.xlu1 %v18761_v1, %s17011_s27  ;;  %v4680_v29 = vpop.permute.xlu0 %4679  ;;  %15657 = vmatprep.subr.bf16.mxu1 %v22085_v62  ;;  %v3748_v4 = vpop.permute.xlu1 %3747  ;;  %v18834_v49 = vsub.f32 %v3805_v63, %v3878_v33  ;;  %v22083_v63 = vand.u32 4294901760, %v18721_v25 }
 0x452   :  { %v4687_v40 = vsel %vm1736_vm15, %v4680_v29, %v4682_v10  ;;  %v18847_v29 = vsub.f32 %v3810_v13, %v3893_v39 }
 0x453   :  { %v18793_v12 = vmax.f32 %v18595_v42, %v4687_v40  ;;  %22412 = vst [vmem:[#allocation30_spill] sm:$0xff] %v18834_v49  ;;  %v3811_v40 = vld [vmem:[%s21984_s12 + $0xc0] sm:$0x1]  ;;  %v4031_v21 = vsub.f32 %v18721_v25, %v22083_v63 }
 0x454   :  { %4715 = vrot.lane.b32.xlu0 %v18781_v14, %s17011_s27  ;;  %22418 = vst [vmem:[#allocation41_spill] sm:$0xff] %v18847_v29 }
 0x455   :  { %3753 = vrot.lane.b32.xlu1 %v18595_v42, %s17009_s2  ;;  %v3750_v37 = vpop.permute.xlu0 %3749 }
 0x456   :  { %v3755_v30 = vsel %vm1736_vm15, %v3748_v4, %v3750_v37  ;;  %v18808_v22 = vmax.f32 %v18587_v2, %v3750_v37  ;;  %v3808_v2 = vld [vmem:[%s21984_s12 + $0xa8] sm:$0xff]  ;;  %v18856_v37 = vpack.c.bf16 %v3893_v39, %v3890_v0  ;;  %v18861_v4 = vsel %vm3819_vm3, %v3811_v40, 0 }
 0x457   :  { %v18805_v48 = vmax.f32 %v3717_v15, %v3755_v30  ;;  %v3881_v15 = vand.u32 4294901760, %v3806_v20  ;;  %v3887_v32 = vand.u32 4294901760, %v3808_v2  ;;  %v18866_v30 = vand.u32 4294901760, %v18861_v4 }
 0x458   :  { %4713 = vrot.lane.b32.xlu0 %v18793_v12, %s17011_s27  ;;  %22419 = vst [vmem:[#allocation22_spill] sm:$0xff] %v18856_v37 }
 0x459   :  { %4717 = vrot.lane.b32.xlu1 %v18796_v27, %s17011_s27  ;;  %v18832_v58 = vpack.c.bf16 %v3881_v15, %v3878_v33  ;;  %v18836_v10 = vsub.f32 %v3806_v20, %v3881_v15  ;;  %v18840_v16 = vsub.f32 %v3808_v2, %v3887_v32  ;;  %v18845_v35 = vpack.c.bf16 %v3887_v32, %v3884_v55 }
 0x45a   :  { %v22084_v20 = vand.u32 4294901760, %v18723_v31  ;;  %v4032_v2 = vand.u32 4294901760, %v4031_v21  ;;  %v22087_v21 = vand.u32 4294901760, %v18747_v45 }
 0x45b   :  { %22411 = vst [vmem:[#allocation27_spill] sm:$0xff] %v18832_v58  ;;  %22413 = vst [vmem:[#allocation28_spill] sm:$0xff] %v18836_v10  ;;  %15443 = vmatpush1.bf16.msra.mxu0 %v18832_v58  ;;  %15659 = vmatpush1.bf16.msra.mxu1 %v18832_v58  ;;  %v22105_v60 = vand.u32 4294901760, %v18840_v16 }
 0x45c   :  { %3769 = vrot.lane.b32.xlu0 %v18805_v48, %s17011_s27  ;;  %22415 = vst [vmem:[#allocation33_spill] sm:$0xff] %v18840_v16  ;;  %22417 = vst [vmem:[#allocation34_spill] sm:$0xff] %v18845_v35  ;;  %15444 = vmatprep.subr.bf16.mxu0 %v22085_v62  ;;  %v4038_v33 = vsub.f32 %v18723_v31, %v22084_v20  ;;  %v22089_v20 = vand.u32 4294901760, %v18745_v57 }
 0x45d   :  { %3771 = vrot.lane.b32.xlu1 %v18808_v22, %s17011_s27  ;;  %15660 = vmatprep.subr.bf16.mxu1 %v22085_v62 }
 0x45e   :  { %v4039_v55 = vand.u32 4294901760, %v4038_v33  ;;  %v22088_v33 = vand.u32 4294901760, %v18769_v50 }
 0x45f   :  { %15446 = vmatpush1.bf16.msra.mxu0 %v18845_v35  ;;  %15662 = vmatpush1.bf16.msra.mxu1 %v18845_v35 }
 0x460   :  { %15447 = vmatprep.subr.bf16.mxu0 %v22085_v62  ;;  %15663 = vmatprep.subr.bf16.mxu1 %v22085_v62  ;;  %v18883_v0 = vpack.c.bf16 %v4039_v55, %v4032_v2  ;;  %v22094_v2 = vand.u32 4294901760, %v18834_v49  ;;  %v22097_v55 = vand.u32 4294901760, %v18836_v10 }
 0x463   :  { %15449 = vmatpush1.bf16.msra.mxu0 %v18856_v37  ;;  %15665 = vmatpush1.bf16.msra.mxu1 %v18856_v37 }
 0x464   :  { %3895 = vmatprep.subr.mxu0 %v22329_v51  ;;  %4863 = vmatprep.subr.mxu1 %v22329_v51 }
 0x467   :  { %3897 = vmatpush1.msra.mxu0 %v18866_v30 }
 0x468   :  { %15450 = vmatprep.subr.bf16.mxu0 %v22085_v62 }
 0x4be   :  { %v4712_v15 = vpop.permute.xlu0 %4711 }
 0x4bf   :  { %v4731_v5 = vmax.f32 %v18733_v6, %v4712_v15  ;;  %v4710_v13 = vpop.permute.xlu1 %4709  ;;  %v22091_v6 = vand.u32 4294901760, %v18771_v17 }
 0x4c0   :  { %v4720_v32 = vsel %vm1870_vm1, %v4710_v13, %v4712_v15 }
 0x4c1   :  { %4770 = vrot.lane.b32.xlu0 %v4731_v5, %s17006_s0  ;;  %v4730_v39 = vmax.f32 %v18740_v19, %v4720_v32  ;;  %v4045_v5 = vsub.f32 %v18745_v57, %v22089_v20  ;;  %v4052_v32 = vsub.f32 %v18747_v45, %v22087_v21 }
 0x4c2   :  { %v3752_v40 = vpop.permute.xlu0 %3751 }
 0x4c3   :  { %4768 = vrot.lane.b32.xlu1 %v4730_v39, %s17006_s0  ;;  %v4708_v63 = vpop.permute.xlu1 %4707  ;;  %v4059_v39 = vsub.f32 %v18769_v50, %v22088_v33  ;;  %v4046_v20 = vand.u32 4294901760, %v4045_v5  ;;  %v4053_v36 = vand.u32 4294901760, %v4052_v32 }
 0x4c4   :  { %v4719_v15 = vsel %vm1870_vm1, %v4708_v63, %v4710_v13  ;;  %v4066_v63 = vsub.f32 %v18771_v17, %v22091_v6  ;;  %v4080_v13 = vsub.f32 %v18836_v10, %v22097_v55 }
 0x4c5   :  { %v4729_v19 = vmax.f32 %v18761_v1, %v4719_v15  ;;  %v4073_v1 = vsub.f32 %v18834_v49, %v22094_v2  ;;  %v4759_v15 = vld [vmem:[%s21984_s12 + $0xc0] sm:$0x1]  ;;  %v4060_v6 = vand.u32 4294901760, %v4059_v39  ;;  %v18930_v21 = vpack.c.bf16 %v4053_v36, %v4046_v20  ;;  %s17017_s12 = smov 8  }
 0x4c6   :  { %v4716_v62 = vpop.permute.xlu0 %4715  ;;  %v18920_v37 = vsel %vm3819_vm3, %v4759_v15, 0  ;;  %v4067_v55 = vand.u32 4294901760, %v4066_v63  ;;  %v22422_v39 = vmov 0.0|0.0  }
 0x4c7   :  { %v3754_v33 = vpop.permute.xlu1 %3753  ;;  %4766 = vrot.lane.b32.xlu1 %v4729_v19, %s17006_s0  ;;  %v4074_v58 = vand.u32 4294901760, %v4073_v1  ;;  %v4081_v19 = vand.u32 4294901760, %v4080_v13  ;;  %v18933_v5 = vand.u32 4294901760, %v18920_v37  ;;  %v4094_v13 = vsub.f32 %v18840_v16, %v22105_v60 }
 0x4c8   :  { %v3756_v2 = vsel %vm1736_vm15, %v3752_v40, %v3754_v33  ;;  %v18924_v35 = vmax.f32 %v18595_v42, %v3754_v33  ;;  %v18937_v40 = vpack.c.bf16 %v4067_v55, %v4060_v6  ;;  %v22421_v42 = vand.u32 4294901760, %v18838_v43 }
 0x4c9   :  { %v18928_v59 = vmax.f32 %v22420_v9, %v3756_v2  ;;  %v22104_v9 = vand.u32 4294901760, %v18842_v46  ;;  %v18946_v20 = vpack.c.bf16 %v4081_v19, %v4074_v58  ;;  %4865 = vmatpush1.msra.mxu1 %v18933_v5  ;;  %v22106_v2 = vand.u32 4294901760, %v18847_v29 }
 0x4ca   :  { %3775 = vrot.lane.b32.xlu0 %v18924_v35, %s17011_s27  ;;  %v4714_v32 = vpop.permute.xlu0 %4713  ;;  %v4087_v33 = vsub.f32 %v18838_v43, %v22421_v42  ;;  %15666 = vmatprep.subr.bf16.mxu1 %v22422_v39  ;;  %vm6801_vm15 = vcmask 269312  }
 0x4cb   :  { %v4718_v36 = vpop.permute.xlu1 %4717  ;;  %3773 = vrot.lane.b32.xlu1 %v18928_v59, %s17011_s27  ;;  %v4101_v58 = vsub.f32 %v18842_v46, %v22104_v9  ;;  %v4108_v15 = vsub.f32 %v18847_v29, %v22106_v2  ;;  %v4721_v19 = vsel %vm1870_vm1, %v4714_v32, %v4716_v62 }
 0x4cc   :  { %v4722_v6 = vsel %vm1870_vm1, %v4716_v62, %v4718_v36  ;;  %v4734_v55 = vmax.f32 %v18796_v27, %v4718_v36  ;;  %v4088_v63 = vand.u32 4294901760, %v4087_v33  ;;  %v4095_v36 = vand.u32 4294901760, %v4094_v13 }
 0x4cd   :  { %v4733_v1 = vmax.f32 %v18781_v14, %v4722_v6  ;;  %v22111_v14 = vand.u32 4294901760, %v18643_v23  ;;  %v4102_v6 = vand.u32 4294901760, %v4101_v58  ;;  %v4109_v9 = vand.u32 4294901760, %v4108_v15 }
 0x4ce   :  { %v3770_v27 = vpop.permute.xlu0 %3769  ;;  %v22110_v62 = vand.u32 4294901760, %v18645_v44  ;;  %v4732_v32 = vmax.f32 %v18793_v12, %v4721_v19  ;;  %v18973_v8 = vpack.c.bf16 %v4095_v36, %v4088_v63  ;;  %v22109_v13 = vand.u32 4294901760, %v18655_v24 }
 0x4cf   :  { %v3772_v33 = vpop.permute.xlu1 %3771  ;;  %4776 = vrot.lane.b32.xlu1 %v4734_v55, %s17006_s0  ;;  %4774 = vrot.lane.b32.xlu0 %v4733_v1, %s17006_s0  ;;  %v18975_v55 = vpack.c.bf16 %v4109_v9, %v4102_v6  ;;  %v22118_v19 = vand.u32 4294901760, %v18657_v52 }
 0x4d0   :  { %v3784_v60 = vmax.f32 %v18808_v22, %v3772_v33  ;;  %v3777_v2 = vsel %vm1870_vm1, %v3770_v27, %v3772_v33  ;;  %v22423_v22 = vand.u32 4294901760, %v18641_v54  ;;  %v3968_v63 = vsub.f32 %v18655_v24, %v22109_v13 }
 0x4d1   :  { %v3783_v42 = vmax.f32 %v18805_v48, %v3777_v2  ;;  %v3954_v48 = vsub.f32 %v18643_v23, %v22111_v14  ;;  %v3961_v2 = vsub.f32 %v18645_v44, %v22110_v62  ;;  %v22119_v27 = vand.u32 4294901760, %v18660_v47 }
 0x4d2   :  { %v3814_v1 = vsel %vm3812_vm9, %v3784_v60, 0  ;;  %v3947_v12 = vsub.f32 %v18641_v54, %v22423_v22  ;;  %v3975_v13 = vsub.f32 %v18657_v52, %v22118_v19  ;;  %v3969_v28 = vand.u32 4294901760, %v3968_v63 }
 0x4d3   :  { %v18979_v58 = vand.u32 4294901760, %v3814_v1  ;;  %v18981_v15 = vand.u32 4294901760, %v3783_v42  ;;  %4772 = vrot.lane.b32.xlu0 %v4732_v32, %s17006_s0  ;;  %v3955_v32 = vand.u32 4294901760, %v3954_v48  ;;  %v3962_v22 = vand.u32 4294901760, %v3961_v2  ;;  %s17018_s0 = smov 57  }
 0x4d4   :  { %v3948_v6 = vand.u32 4294901760, %v3947_v12  ;;  %v3982_v62 = vsub.f32 %v18660_v47, %v22119_v27  ;;  %v22127_v12 = vand.u32 4294901760, %v18666_v11  ;;  %v22126_v48 = vand.u32 4294901760, %v18668_v34 }
 0x4d5   :  { %v18991_v9 = vsub.f32 %v3814_v1, %v18979_v58  ;;  %v18994_v60 = vsub.f32 %v3783_v42, %v18981_v15  ;;  %v3976_v2 = vand.u32 4294901760, %v3975_v13  ;;  %v19029_v38 = vpack.c.bf16 %v3969_v28, %v3962_v22 }
 0x4d6   :  { %v3989_v19 = vsub.f32 %v18666_v11, %v22127_v12  ;;  %v3996_v27 = vsub.f32 %v18668_v34, %v22126_v48  ;;  %v22124_v63 = vand.u32 4294901760, %v18673_v3 }
 0x4d7   :  { %v22114_v33 = vand.u32 4294901760, %v18994_v60  ;;  %v22117_v36 = vand.u32 4294901760, %v18991_v9 }
 0x4d8   :  { %v4010_v28 = vsub.f32 %v18673_v3, %v22124_v63  ;;  %v19078_v63 = vpack.c.bf16 %v18836_v10, %v18834_v49 }
 0x4d9   :  { %v3921_v42 = vsub.f32 %v18994_v60, %v22114_v33  ;;  %v3915_v1 = vsub.f32 %v18991_v9, %v22117_v36  ;;  %v19020_v33 = vpack.c.bf16 %v3955_v32, %v3948_v6  ;;  %v3983_v36 = vand.u32 4294901760, %v3982_v62 }
 0x4da   :  { %v22125_v6 = vand.u32 4294901760, %v18670_v26  ;;  %v3997_v62 = vand.u32 4294901760, %v3996_v27  ;;  %v22122_v32 = vand.u32 4294901760, %v18705_v61 }
 0x4db   :  { %v3922_v14 = vand.u32 4294901760, %v3921_v42  ;;  %v3916_v53 = vand.u32 4294901760, %v3915_v1  ;;  %v22123_v42 = vand.u32 4294901760, %v18707_v56  ;;  %v4011_v1 = vand.u32 4294901760, %v4010_v28 }
 0x4dc   :  { %v4003_v13 = vsub.f32 %v18670_v26, %v22125_v6  ;;  %v4017_v22 = vsub.f32 %v18705_v61, %v22122_v32  ;;  %v19070_v32 = vpack.c.bf16 %v18771_v17, %v18769_v50 }
 0x4dd   :  { %3917 = vmatprep.mubr.f32.mxu0 %v3916_v53  ;;  %v19034_v53 = vpack.c.bf16 %v3983_v36, %v3976_v2  ;;  %v4024_v2 = vsub.f32 %v18707_v56, %v22123_v42 }
 0x4de   :  { %3923 = vmatmul.mubr.f32.vlgmr.msra.gmra.mrb[12].mxu0 %v3922_v14  ;;  %v3990_v14 = vand.u32 4294901760, %v3989_v19  ;;  %v19050_v19 = vpack.c.bf16 %v18723_v31, %v18721_v25  ;;  %v4004_v27 = vand.u32 4294901760, %v4003_v13  ;;  %v4018_v13 = vand.u32 4294901760, %v4017_v22 }
 0x4df   :  { %15452 = vmatpush1.bf16.msra.mxu0 %v19020_v33  ;;  %v4025_v28 = vand.u32 4294901760, %v4024_v2  ;;  %v19096_v22 = vsub.f32 %v18861_v4, %v18866_v30 }
 0x4e0   :  { %15453 = vmatprep.subr.bf16.mxu0 %v22422_v39  ;;  %v19046_v36 = vpack.c.bf16 %v3997_v62, %v3990_v14  ;;  %v19062_v14 = vpack.c.bf16 %v18747_v45, %v18745_v57  ;;  %v19065_v62 = vpack.c.bf16 %v4011_v1, %v4004_v27  ;;  %v19085_v27 = vpack.c.bf16 %v18840_v16, %v18838_v43 }
 0x4e1   :  { %v19073_v42 = vpack.c.bf16 %v4025_v28, %v4018_v13  ;;  %v19091_v1 = vpack.c.bf16 %v18847_v29, %v18842_v46  ;;  %v22130_v2 = vand.u32 4294901760, %v19096_v22 }
 0x4e3   :  { %15455 = vmatpush1.bf16.msra.mxu0 %v19029_v38  ;;  %v4115_v13 = vsub.f32 %v19096_v22, %v22130_v2 }
 0x4e4   :  { %15456 = vmatprep.subr.bf16.mxu0 %v22422_v39 }
 0x4e5   :  { %v4116_v4 = vand.u32 4294901760, %v4115_v13 }
 0x4e7   :  { %15458 = vmatpush1.bf16.msra.mxu0 %v19034_v53 }
 0x4e8   :  { %15459 = vmatprep.subr.bf16.mxu0 %v22422_v39 }
 0x4eb   :  { %15461 = vmatpush1.bf16.msra.mxu0 %v19046_v36 }
 0x4ec   :  { %15462 = vmatprep.subr.bf16.mxu0 %v22422_v39 }
 0x4ef   :  { %15464 = vmatpush1.bf16.msra.mxu0 %v19065_v62 }
 0x4f0   :  { %15465 = vmatprep.subr.bf16.mxu0 %v22422_v39 }
 0x4f3   :  { %15467 = vmatpush1.bf16.msra.mxu0 %v19073_v42 }
 0x4f4   :  { %15468 = vmatprep.subr.bf16.mxu0 %v22422_v39 }
 0x4f7   :  { %15470 = vmatpush1.bf16.msra.mxu0 %v18883_v0 }
 0x4f8   :  { %15471 = vmatprep.subr.bf16.mxu0 %v22422_v39 }
 0x4fb   :  { %15473 = vmatpush1.bf16.msra.mxu0 %v18930_v21 }
 0x4fc   :  { %15474 = vmatprep.subr.bf16.mxu0 %v22422_v39 }
 0x4ff   :  { %15476 = vmatpush1.bf16.msra.mxu0 %v18937_v40 }
 0x500   :  { %15477 = vmatprep.subr.bf16.mxu0 %v22422_v39 }
 0x503   :  { %15479 = vmatpush1.bf16.msra.mxu0 %v18946_v20 }
 0x504   :  { %15480 = vmatprep.subr.bf16.mxu0 %v22422_v39 }
 0x507   :  { %15482 = vmatpush1.bf16.msra.mxu0 %v18973_v8 }
 0x508   :  { %15483 = vmatprep.subr.bf16.mxu0 %v22422_v39 }
 0x50b   :  { %15485 = vmatpush1.bf16.msra.mxu0 %v18975_v55 }
 0x50c   :  { %4111 = vmatprep.subr.mxu0 %v22329_v51 }
 0x50f   :  { %4117 = vmatpush1.msra.mxu0 %v4116_v4 }
 0x510   :  { %15486 = vmatprep.subr.bf16.mxu0 %v22422_v39 }
 0x533   :  { %v4771_v28 = vpop.permute.xlu0 %4770 }
 0x535   :  { %v4769_v6 = vpop.permute.xlu1 %4768 }
 0x536   :  { %v4779_v48 = vsel %vm2113_vm12, %v4769_v6, %v4771_v28 }
 0x537   :  { %v4784_v12 = vsel %vm3812_vm9, %v4779_v48, 0 }
 0x538   :  { %v19113_v29 = vand.u32 4294901760, %v4784_v12 }
 0x539   :  { %v4767_v46 = vpop.permute.xlu1 %4766 }
 0x53a   :  { %v19116_v2 = vsub.f32 %v4784_v12, %v19113_v29  ;;  %v4778_v16 = vsel %vm2113_vm12, %v4767_v46, %v4769_v6 }
 0x53b   :  { %v19119_v13 = vand.u32 4294901760, %v4778_v16 }
 0x53c   :  { %v3776_v43 = vpop.permute.xlu0 %3775  ;;  %v22139_v4 = vand.u32 4294901760, %v19116_v2 }
 0x53d   :  { %v19123_v10 = vsub.f32 %v4778_v16, %v19119_v13  ;;  %v3786_v28 = vmax.f32 %v18924_v35, %v3776_v43  ;;  %v3774_v49 = vpop.permute.xlu1 %3773 }
 0x53e   :  { %v3778_v48 = vsel %vm1870_vm1, %v3774_v49, %v3776_v43  ;;  %v4883_v12 = vsub.f32 %v19116_v2, %v22139_v4  ;;  %vm6747_vm1 = vcmask 212144  }
 0x53f   :  { %v22140_v17 = vand.u32 4294901760, %v19123_v10  ;;  %v3817_v46 = vsel %vm3812_vm9, %v3786_v28, 0  ;;  %v3785_v6 = vmax.f32 %v18928_v59, %v3778_v48 }
 0x540   :  { %v19133_v50 = vand.u32 4294901760, %v3817_v46  ;;  %v4884_v45 = vand.u32 4294901760, %v4883_v12 }
 0x541   :  { %v4889_v16 = vsub.f32 %v19123_v10, %v22140_v17  ;;  %v19138_v35 = vand.u32 4294901760, %v3785_v6  ;;  %v4777_v49 = vpop.permute.xlu1 %4776  ;;  %v4775_v43 = vpop.permute.xlu0 %4774 }
 0x542   :  { %v19141_v57 = vsub.f32 %v3817_v46, %v19133_v50  ;;  %4885 = vmatprep.mubr.f32.mxu1 %v4884_v45  ;;  %v4781_v4 = vsel %vm2113_vm12, %v4775_v43, %v4777_v49 }
 0x543   :  { %v4890_v28 = vand.u32 4294901760, %v4889_v16  ;;  %v19145_v59 = vsub.f32 %v3785_v6, %v19138_v35  ;;  %v4786_v48 = vsel %vm3812_vm9, %v4781_v4, 0 }
 0x544   :  { %v19148_v12 = vand.u32 4294901760, %v4786_v48  ;;  %v3929_v17 = vand.u32 4294901760, %v19141_v57 }
 0x545   :  { %4891 = vmatmul.mubr.f32.vlgmr.msra.gmra.mrb[12].mxu1 %v4890_v28  ;;  %v4773_v31 = vpop.permute.xlu0 %4772  ;;  %v3935_v25 = vand.u32 4294901760, %v19145_v59 }
 0x546   :  { %v19153_v46 = vsub.f32 %v4786_v48, %v19148_v12  ;;  %15668 = vmatpush1.bf16.msra.mxu1 %v19020_v33  ;;  %v4780_v45 = vsel %vm2113_vm12, %v4773_v31, %v4775_v43  ;;  %v3930_v6 = vsub.f32 %v19141_v57, %v3929_v17  ;;  %vm4658_vm12 = vcmask 465984  }
 0x547   :  { %v19160_v4 = vand.u32 4294901760, %v4780_v45  ;;  %15669 = vmatprep.subr.bf16.mxu1 %v22422_v39  ;;  %v3936_v16 = vsub.f32 %v19145_v59, %v3935_v25 }
 0x548   :  { %v3931_v49 = vand.u32 4294901760, %v3930_v6  ;;  %v4897_v28 = vand.u32 4294901760, %v19153_v46 }
 0x549   :  { %v19168_v48 = vsub.f32 %v4780_v45, %v19160_v4  ;;  %v3937_v33 = vand.u32 4294901760, %v3936_v16  ;;  %v19179_v45 = vpack.c.bf16 %v18643_v23, %v18641_v54 }
 0x54a   :  { %15671 = vmatpush1.bf16.msra.mxu1 %v19029_v38  ;;  %3932 = vmatprep.mubr.f32.mxu0 %v3931_v49  ;;  %v4898_v31 = vsub.f32 %v19153_v46, %v4897_v28  ;;  %v15490_v49 = vpack.c.bf16 %v18655_v24, %v18645_v44 }
 0x54b   :  { %3938 = vmatmul.mubr.f32.gmra.mrb[14].mxu0 %v3937_v33  ;;  %15672 = vmatprep.subr.bf16.mxu1 %v22422_v39  ;;  %v4903_v43 = vand.u32 4294901760, %v19168_v48  ;;  %v15499_v33 = vpack.c.bf16 %v18673_v3, %v18670_v26 }
 0x54c   :  { %4133 = vmatprep.mubr.f32.mxu0 %v18979_v58  ;;  %v4899_v6 = vand.u32 4294901760, %v4898_v31  ;;  %v22435_v31 = vand.u32 4294901760, %v18641_v54  ;;  %v22438_v54 = vand.u32 4294901760, %v18645_v44 }
 0x54d   :  { %v4904_v38 = vsub.f32 %v19168_v48, %v4903_v43 }
 0x54e   :  { %15674 = vmatpush1.bf16.msra.mxu1 %v19034_v53  ;;  %4900 = vmatprep.mubr.f32.mxu1 %v4899_v6  ;;  %v15493_v53 = vpack.c.bf16 %v18660_v47, %v18657_v52  ;;  %v22436_v6 = vand.u32 4294901760, %v18643_v23  ;;  %v22439_v23 = vand.u32 4294901760, %v18655_v24  ;;  %v22442_v24 = vand.u32 4294901760, %v18666_v11 }
 0x54f   :  { %4135 = vmatmul.mubr.f32.vlgmr.msra.gmra.mrb[12].mxu0 %v18981_v15  ;;  %15675 = vmatprep.subr.bf16.mxu1 %v22422_v39  ;;  %v4905_v16 = vand.u32 4294901760, %v4904_v38  ;;  %v22437_v38 = vand.u32 4294901760, %v18994_v60 }
 0x550   :  { %15488 = vmatpush1.bf16.msra.mxu0 %v19179_v45  ;;  %4140 = vmatprep.mubr.f32.mxu0 %v19133_v50 }
 0x551   :  { %4906 = vmatmul.mubr.f32.gmra.mrb[14].mxu1 %v4905_v16  ;;  %15489 = vmatprep.subr.bf16.mxu0 %v22422_v39 }
 0x552   :  { %15677 = vmatpush1.bf16.msra.mxu1 %v19046_v36  ;;  %5101 = vmatprep.mubr.f32.mxu1 %v19113_v29  ;;  %v15496_v36 = vpack.c.bf16 %v18668_v34, %v18666_v11  ;;  %v22446_v11 = vand.u32 4294901760, %v18705_v61 }
 0x553   :  { %4142 = vmatmul.mubr.f32.gmra.mrb[14].mxu0 %v19138_v35  ;;  %15678 = vmatprep.subr.bf16.mxu1 %v22422_v39 }
 0x554   :  { %15491 = vmatpush1.bf16.msra.mxu0 %v15490_v49  ;;  %4263 = vmatprep.mubr.f32.mxu0 %v18991_v9 }
 0x555   :  { %15492 = vmatprep.subr.bf16.mxu0 %v22422_v39 }
 0x556   :  { %15680 = vmatpush1.bf16.msra.mxu1 %v19065_v62  ;;  %v15502_v62 = vpack.c.bf16 %v18707_v56, %v18705_v61  ;;  %v22452_v61 = vld [vmem:[#allocation25_spill] sm:$0xff] }
 0x557   :  { %15681 = vmatprep.subr.bf16.mxu1 %v22422_v39 }
 0x558   :  { %15494 = vmatpush1.bf16.msra.mxu0 %v15493_v53 }
 0x559   :  { %15495 = vmatprep.subr.bf16.mxu0 %v22422_v39 }
 0x55a   :  { %15683 = vmatpush1.bf16.msra.mxu1 %v19073_v42  ;;  %v19220_v42 = vsub.f32 %v18920_v37, %v18933_v5 }
 0x55b   :  { %15684 = vmatprep.subr.bf16.mxu1 %v22422_v39 }
 0x55c   :  { %15497 = vmatpush1.bf16.msra.mxu0 %v15496_v36 }
 0x55d   :  { %15498 = vmatprep.subr.bf16.mxu0 %v22422_v39 }
 0x55e   :  { %15686 = vmatpush1.bf16.msra.mxu1 %v18883_v0  ;;  %v5082_v0 = vand.u32 4294901760, %v19220_v42 }
 0x55f   :  { %15687 = vmatprep.subr.bf16.mxu1 %v22422_v39 }
 0x560   :  { %15500 = vmatpush1.bf16.msra.mxu0 %v15499_v33  ;;  %v5083_v37 = vsub.f32 %v19220_v42, %v5082_v0 }
 0x561   :  { %15501 = vmatprep.subr.bf16.mxu0 %v22422_v39 }
 0x562   :  { %15689 = vmatpush1.bf16.msra.mxu1 %v18930_v21  ;;  %v5084_v21 = vand.u32 4294901760, %v5083_v37 }
 0x563   :  { %15690 = vmatprep.subr.bf16.mxu1 %v22422_v39 }
 0x564   :  { %15503 = vmatpush1.bf16.msra.mxu0 %v15502_v62 }
 0x565   :  { %15504 = vmatprep.subr.bf16.mxu0 %v22422_v39 }
 0x566   :  { %15692 = vmatpush1.bf16.msra.mxu1 %v18937_v40  ;;  %v22425_v40 = vld [vmem:[#allocation35_spill] sm:$0xff] }
 0x567   :  { %15693 = vmatprep.subr.bf16.mxu1 %v22422_v39 }
 0x568   :  { %15506 = vmatpush1.bf16.msra.mxu0 %v19050_v19 }
 0x569   :  { %15507 = vmatprep.subr.bf16.mxu0 %v22422_v39 }
 0x56a   :  { %15695 = vmatpush1.bf16.msra.mxu1 %v18946_v20  ;;  %v22426_v20 = vld [vmem:[#allocation16_spill] sm:$0xff] }
 0x56b   :  { %15696 = vmatprep.subr.bf16.mxu1 %v22422_v39 }
 0x56c   :  { %15509 = vmatpush1.bf16.msra.mxu0 %v19062_v14 }
 0x56d   :  { %15510 = vmatprep.subr.bf16.mxu0 %v22422_v39 }
 0x56e   :  { %15698 = vmatpush1.bf16.msra.mxu1 %v18973_v8  ;;  %v22424_v8 = vand.u32 4294901760, %v18991_v9  ;;  %v22428_v9 = vld [vmem:[#allocation32_spill] sm:$0xff] }
 0x56f   :  { %15699 = vmatprep.subr.bf16.mxu1 %v22422_v39 }
 0x570   :  { %15512 = vmatpush1.bf16.msra.mxu0 %v19070_v32 }
 0x571   :  { %15513 = vmatprep.subr.bf16.mxu0 %v22422_v39 }
 0x572   :  { %15701 = vmatpush1.bf16.msra.mxu1 %v18975_v55  ;;  %v22427_v55 = vld [vmem:[#allocation29_spill] sm:$0xff] }
 0x573   :  { %5079 = vmatprep.subr.mxu1 %v22329_v51 }
 0x574   :  { %15515 = vmatpush1.bf16.msra.mxu0 %v19078_v63 }
 0x575   :  { %15516 = vmatprep.subr.bf16.mxu0 %v22422_v39 }
 0x576   :  { %5085 = vmatpush1.msra.mxu1 %v5084_v21  ;;  %v22456_v21 = vld [vmem:[#allocation18_spill] sm:$0xff] }
 0x577   :  { %5103 = vmatmul.mubr.f32.vlgmr.msra.gmra.mrb[12].mxu1 %v19119_v13  ;;  %15702 = vmatprep.subr.bf16.mxu1 %v22422_v39 }
 0x578   :  { %15518 = vmatpush1.bf16.msra.mxu0 %v19085_v27  ;;  %5108 = vmatprep.mubr.f32.mxu1 %v19148_v12 }
 0x579   :  { %15704 = vmatpush1.bf16.msra.mxu1 %v19179_v45  ;;  %15519 = vmatprep.subr.bf16.mxu0 %v22422_v39  ;;  %v19316_v45 = vpack.c.bf16 %v22436_v6, %v22435_v31 }
 0x57a   :  { %15705 = vmatprep.subr.bf16.mxu1 %v22422_v39 }
 0x57b   :  { %5110 = vmatmul.mubr.f32.gmra.mrb[14].mxu1 %v19160_v4 }
 0x57c   :  { %15521 = vmatpush1.bf16.msra.mxu0 %v19091_v1  ;;  %5231 = vmatprep.mubr.f32.mxu1 %v19116_v2 }
 0x57d   :  { %15707 = vmatpush1.bf16.msra.mxu1 %v15490_v49  ;;  %4243 = vmatprep.subr.mxu0 %v22329_v51  ;;  %v22450_v49 = vld [vmem:[#allocation17_spill] sm:$0xff] }
 0x57e   :  { %15708 = vmatprep.subr.bf16.mxu1 %v22422_v39 }
 0x580   :  { %4246 = vmatpush1.msra.mxu0 %v19096_v22 }
 0x581   :  { %15710 = vmatpush1.bf16.msra.mxu1 %v15493_v53  ;;  %4266 = vmatmul.mubr.f32.vlgmr.msra.gmra.mrb[12].mxu0 %v18994_v60  ;;  %v22451_v53 = vand.u32 4294901760, %v22450_v49  ;;  %v22471_v49 = vld [vmem:[#allocation41_spill] sm:$0xff] }
 0x582   :  { %15522 = vmatprep.subr.bf16.mxu0 %v22422_v39  ;;  %4272 = vmatprep.mubr.f32.mxu0 %v19141_v57  ;;  %v22440_v57 = vand.u32 4294901760, %v18657_v52  ;;  %v22444_v52 = vand.u32 4294901760, %v18670_v26  ;;  %v22448_v26 = vld [vmem:[#allocation21_spill] sm:$0xff] }
 0x583   :  { %15524 = vmatpush1.bf16.msra.mxu0 %v18639_v7  ;;  %15711 = vmatprep.subr.bf16.mxu1 %v22422_v39 }
 0x584   :  { %15525 = vmatprep.subr.bf16.mxu0 %v22422_v39 }
 0x585   :  { %15713 = vmatpush1.bf16.msra.mxu1 %v15496_v36  ;;  %4275 = vmatmul.mubr.f32.gmra.mrb[14].mxu0 %v19145_v59 }
 0x586   :  { %4372 = vmatprep.mubr.f32.mxu0 %v22424_v8  ;;  %15714 = vmatprep.subr.bf16.mxu1 %v22422_v39  ;;  %v22457_v8 = vand.u32 4294901760, %v22456_v21 }
 0x587   :  { %15527 = vmatpush1.bf16.msra.mxu0 %v18653_v41 }
 0x588   :  { %15528 = vmatprep.subr.bf16.mxu0 %v22422_v39 }
 0x589   :  { %15716 = vmatpush1.bf16.msra.mxu1 %v15499_v33  ;;  %v22454_v33 = vld [vmem:[#allocation19_spill] sm:$0xff] }
 0x58a   :  { %15717 = vmatprep.subr.bf16.mxu1 %v22422_v39 }
 0x58b   :  { %15530 = vmatpush1.bf16.msra.mxu0 %v18676_v18 }
 0x58c   :  { %15531 = vmatprep.subr.bf16.mxu0 %v22422_v39 }
 0x58d   :  { %15719 = vmatpush1.bf16.msra.mxu1 %v15502_v62  ;;  %v22455_v62 = vand.u32 4294901760, %v22454_v33 }
 0x58e   :  { %15720 = vmatprep.subr.bf16.mxu1 %v22422_v39 }
 0x58f   :  { %15533 = vmatpush1.bf16.msra.mxu0 %v22425_v40 }
 0x590   :  { %15534 = vmatprep.subr.bf16.mxu0 %v22422_v39 }
 0x591   :  { %15722 = vmatpush1.bf16.msra.mxu1 %v19050_v19  ;;  %v22429_v19 = vld [vmem:[#allocation23_spill] sm:$0xff] }
 0x592   :  { %15723 = vmatprep.subr.bf16.mxu1 %v22422_v39 }
 0x593   :  { %15536 = vmatpush1.bf16.msra.mxu0 %v22426_v20 }
 0x594   :  { %15537 = vmatprep.subr.bf16.mxu0 %v22422_v39 }
 0x595   :  { %15725 = vmatpush1.bf16.msra.mxu1 %v19062_v14  ;;  %v22430_v14 = vld [vmem:[#allocation20_spill] sm:$0xff] }
 0x596   :  { %15726 = vmatprep.subr.bf16.mxu1 %v22422_v39 }
 0x597   :  { %15539 = vmatpush1.bf16.msra.mxu0 %v22427_v55 }
 0x598   :  { %15540 = vmatprep.subr.bf16.mxu0 %v22422_v39 }
 0x599   :  { %15728 = vmatpush1.bf16.msra.mxu1 %v19070_v32  ;;  %v22431_v32 = vld [vmem:[#allocation27_spill] sm:$0xff] }
 0x59a   :  { %15729 = vmatprep.subr.bf16.mxu1 %v22422_v39 }
 0x59b   :  { %15542 = vmatpush1.bf16.msra.mxu0 %v22428_v9 }
 0x59c   :  { %15543 = vmatprep.subr.bf16.mxu0 %v22422_v39 }
 0x59d   :  { %15731 = vmatpush1.bf16.msra.mxu1 %v19078_v63  ;;  %v22432_v63 = vld [vmem:[#allocation34_spill] sm:$0xff] }
 0x59e   :  { %15732 = vmatprep.subr.bf16.mxu1 %v22422_v39 }
 0x59f   :  { %15545 = vmatpush1.bf16.msra.mxu0 %v22429_v19 }
 0x5a0   :  { %15546 = vmatprep.subr.bf16.mxu0 %v22422_v39 }
 0x5a1   :  { %15734 = vmatpush1.bf16.msra.mxu1 %v19085_v27  ;;  %v22433_v27 = vld [vmem:[#allocation22_spill] sm:$0xff] }
 0x5a2   :  { %15735 = vmatprep.subr.bf16.mxu1 %v22422_v39 }
 0x5a3   :  { %15548 = vmatpush1.bf16.msra.mxu0 %v22430_v14 }
 0x5a4   :  { %15549 = vmatprep.subr.bf16.mxu0 %v22422_v39 }
 0x5a5   :  { %15737 = vmatpush1.bf16.msra.mxu1 %v19091_v1  ;;  %v22434_v1 = vand.u32 4294901760, %v19116_v2  ;;  %v15562_v2 = vpack.c.bf16 %v22439_v23, %v22438_v54  ;;  %v22462_v23 = vld [vmem:[#allocation28_spill] sm:$0xff] }
 0x5a6   :  { %5211 = vmatprep.subr.mxu1 %v22329_v51 }
 0x5a7   :  { %15551 = vmatpush1.bf16.msra.mxu0 %v22431_v32 }
 0x5a8   :  { %15552 = vmatprep.subr.bf16.mxu0 %v22422_v39 }
 0x5a9   :  { %5214 = vmatpush1.msra.mxu1 %v19220_v42 }
 0x5aa   :  { %5234 = vmatmul.mubr.f32.vlgmr.msra.gmra.mrb[12].mxu1 %v19123_v10  ;;  %15738 = vmatprep.subr.bf16.mxu1 %v22422_v39 }
 0x5ab   :  { %15554 = vmatpush1.bf16.msra.mxu0 %v22432_v63  ;;  %5240 = vmatprep.mubr.f32.mxu1 %v19153_v46  ;;  %v13705_v46 = vld [vmem:[%s21982_s10 + $0x7] ss:$0 sm:$0xff] }
 0x5ac   :  { %15740 = vmatpush1.bf16.msra.mxu1 %v18639_v7  ;;  %15555 = vmatprep.subr.bf16.mxu0 %v22422_v39 }
 0x5ad   :  { %15741 = vmatprep.subr.bf16.mxu1 %v22422_v39 }
 0x5ae   :  { %5243 = vmatmul.mubr.f32.gmra.mrb[14].mxu1 %v19168_v48 }
 0x5af   :  { %15557 = vmatpush1.bf16.msra.mxu0 %v22433_v27  ;;  %5340 = vmatprep.mubr.f32.mxu1 %v22434_v1  ;;  %v22458_v1 = vld [vmem:[#allocation26_spill] sm:$0xff] }
 0x5b0   :  { %15743 = vmatpush1.bf16.msra.mxu1 %v18653_v41  ;;  %4352 = vmatprep.subr.mxu0 %v22329_v51  ;;  %v22459_v31 = vand.u32 4294901760, %v22458_v1 }
 0x5b1   :  { %15744 = vmatprep.subr.bf16.mxu1 %v22422_v39 }
 0x5b2   :  { %v15583_v6 = vpack.c.bf16 %v22459_v31, %v22457_v8 }
 0x5b3   :  { %4354 = vmatpush1.msra.mxu0 %v18866_v30 }
 0x5b4   :  { %15746 = vmatpush1.bf16.msra.mxu1 %v18676_v18  ;;  %4376 = vmatmul.mubr.f32.vlgmr.msra.gmra.mrb[12].mxu0 %v22437_v38  ;;  %v22460_v38 = vld [vmem:[#allocation30_spill] sm:$0xff] }
 0x5b5   :  { %15558 = vmatprep.subr.bf16.mxu0 %v22422_v39  ;;  %4383 = vmatprep.mubr.f32.mxu0 %v3929_v17  ;;  %v22441_v17 = vand.u32 4294901760, %v18660_v47  ;;  %v22445_v47 = vand.u32 4294901760, %v18673_v3  ;;  %v22449_v3 = vand.u32 4294901760, %v22448_v26  ;;  %v22461_v54 = vand.u32 4294901760, %v22460_v38  ;;  %v22469_v26 = vld [vmem:[#allocation36_spill] sm:$0xff] }
 0x5b6   :  { %15560 = vmatpush1.bf16.msra.mxu0 %v19316_v45  ;;  %15747 = vmatprep.subr.bf16.mxu1 %v22422_v39 }
 0x5b7   :  { %15561 = vmatprep.subr.bf16.mxu0 %v22422_v39  ;;  %v15565_v44 = vpack.c.bf16 %v22441_v17, %v22440_v57  ;;  %v15571_v59 = vpack.c.bf16 %v22445_v47, %v22444_v52  ;;  %v15577_v36 = vpack.c.bf16 %v22451_v53, %v22449_v3  ;;  %v22463_v57 = vand.u32 4294901760, %v22462_v23  ;;  %v22466_v52 = vld [vmem:[#allocation33_spill] sm:$0xff] }
 0x5b8   :  { %15749 = vmatpush1.bf16.msra.mxu1 %v22425_v40  ;;  %4387 = vmatmul.mubr.f32.gmra.mrb[14].mxu0 %v3935_v25  ;;  %v22443_v25 = vand.u32 4294901760, %v18668_v34  ;;  %v22447_v34 = vand.u32 4294901760, %v18707_v56  ;;  %v22453_v56 = vand.u32 4294901760, %v22452_v61  ;;  %v22467_v47 = vand.u32 4294901760, %v22466_v52 }
 0x5b9   :  { %4532 = vmatprep.mubr.f32.mxu0 %v18979_v58  ;;  %15750 = vmatprep.subr.bf16.mxu1 %v22422_v39  ;;  %v15586_v17 = vpack.c.bf16 %v22463_v57, %v22461_v54  ;;  %v22470_v3 = vand.u32 4294901760, %v22469_v26  ;;  %v22472_v53 = vand.u32 4294901760, %v22471_v49 }
 0x5ba   :  { %15563 = vmatpush1.bf16.msra.mxu0 %v15562_v2  ;;  %v15568_v60 = vpack.c.bf16 %v22443_v25, %v22442_v24  ;;  %v15574_v16 = vpack.c.bf16 %v22447_v34, %v22446_v11  ;;  %v15580_v37 = vpack.c.bf16 %v22455_v62, %v22453_v56  ;;  %v22464_v24 = vld [vmem:[#allocation31_spill] sm:$0xff]  ;;  %v22468_v34 = vand.u32 4294901760, %v19123_v10 }
 0x5bb   :  { %15564 = vmatprep.subr.bf16.mxu0 %v22422_v39  ;;  %v22465_v25 = vand.u32 4294901760, %v22464_v24  ;;  %v15592_v61 = vpack.c.bf16 %v22472_v53, %v22470_v3  ;;  %v22473_v10 = vand.u32 4294901760, %v19096_v22  ;;  %v13701_v22 = vld [vmem:[%s21982_s10 + $0x3] ss:$0 sm:$0xff] }
 0x5bc   :  { %15752 = vmatpush1.bf16.msra.mxu1 %v22426_v20 }
 0x5bd   :  { %15753 = vmatprep.subr.bf16.mxu1 %v22422_v39  ;;  %v15589_v11 = vpack.c.bf16 %v22467_v47, %v22465_v25 }
 0x5be   :  { %15566 = vmatpush1.bf16.msra.mxu0 %v15565_v44 }
 0x5bf   :  { %15567 = vmatprep.subr.bf16.mxu0 %v22422_v39 }
 0x5c0   :  { %15755 = vmatpush1.bf16.msra.mxu1 %v22427_v55 }
 0x5c1   :  { %15756 = vmatprep.subr.bf16.mxu1 %v22422_v39 }
 0x5c2   :  { %15569 = vmatpush1.bf16.msra.mxu0 %v15568_v60 }
 0x5c3   :  { %15570 = vmatprep.subr.bf16.mxu0 %v22422_v39 }
 0x5c4   :  { %15758 = vmatpush1.bf16.msra.mxu1 %v22428_v9 }
 0x5c5   :  { %15759 = vmatprep.subr.bf16.mxu1 %v22422_v39 }
 0x5c6   :  { %15572 = vmatpush1.bf16.msra.mxu0 %v15571_v59 }
 0x5c7   :  { %15573 = vmatprep.subr.bf16.mxu0 %v22422_v39 }
 0x5c8   :  { %15761 = vmatpush1.bf16.msra.mxu1 %v22429_v19 }
 0x5c9   :  { %15762 = vmatprep.subr.bf16.mxu1 %v22422_v39 }
 0x5ca   :  { %15575 = vmatpush1.bf16.msra.mxu0 %v15574_v16 }
 0x5cb   :  { %15576 = vmatprep.subr.bf16.mxu0 %v22422_v39 }
 0x5cc   :  { %15764 = vmatpush1.bf16.msra.mxu1 %v22430_v14 }
 0x5cd   :  { %15765 = vmatprep.subr.bf16.mxu1 %v22422_v39 }
 0x5ce   :  { %15578 = vmatpush1.bf16.msra.mxu0 %v15577_v36 }
 0x5cf   :  { %15579 = vmatprep.subr.bf16.mxu0 %v22422_v39 }
 0x5d0   :  { %15767 = vmatpush1.bf16.msra.mxu1 %v22431_v32 }
 0x5d1   :  { %15768 = vmatprep.subr.bf16.mxu1 %v22422_v39 }
 0x5d2   :  { %15581 = vmatpush1.bf16.msra.mxu0 %v15580_v37 }
 0x5d3   :  { %15582 = vmatprep.subr.bf16.mxu0 %v22422_v39 }
 0x5d4   :  { %15770 = vmatpush1.bf16.msra.mxu1 %v22432_v63 }
 0x5d5   :  { %15771 = vmatprep.subr.bf16.mxu1 %v22422_v39 }
 0x5d6   :  { %15584 = vmatpush1.bf16.msra.mxu0 %v15583_v6 }
 0x5d7   :  { %15585 = vmatprep.subr.bf16.mxu0 %v22422_v39 }
 0x5d8   :  { %15773 = vmatpush1.bf16.msra.mxu1 %v22433_v27 }
 0x5d9   :  { %5320 = vmatprep.subr.mxu1 %v22329_v51 }
 0x5da   :  { %15587 = vmatpush1.bf16.msra.mxu0 %v15586_v17 }
 0x5db   :  { %15588 = vmatprep.subr.bf16.mxu0 %v22422_v39 }
 0x5dc   :  { %5322 = vmatpush1.msra.mxu1 %v18933_v5 }
 0x5dd   :  { %5344 = vmatmul.mubr.f32.vlgmr.msra.gmra.mrb[12].mxu1 %v22468_v34  ;;  %15774 = vmatprep.subr.bf16.mxu1 %v22422_v39 }
 0x5de   :  { %15590 = vmatpush1.bf16.msra.mxu0 %v15589_v11  ;;  %5351 = vmatprep.mubr.f32.mxu1 %v4897_v28  ;;  %v13706_v28 = vld [vmem:[%s21982_s10 + $0x8] ss:$0 sm:$0xff] }
 0x5df   :  { %15776 = vmatpush1.bf16.msra.mxu1 %v19316_v45  ;;  %15591 = vmatprep.subr.bf16.mxu0 %v22422_v39 }
 0x5e0   :  { %15777 = vmatprep.subr.bf16.mxu1 %v22422_v39 }
 0x5e1   :  { %5355 = vmatmul.mubr.f32.gmra.mrb[14].mxu1 %v4903_v43 }
 0x5e2   :  { %15593 = vmatpush1.bf16.msra.mxu0 %v15592_v61  ;;  %5500 = vmatprep.mubr.f32.mxu1 %v19113_v29 }
 0x5e3   :  { %15779 = vmatpush1.bf16.msra.mxu1 %v15562_v2  ;;  %4512 = vmatprep.subr.mxu0 %v22329_v51 }
 0x5e4   :  { %15780 = vmatprep.subr.bf16.mxu1 %v22422_v39 }
 0x5e6   :  { %4516 = vmatpush1.msra.mxu0 %v22473_v10 }
 0x5e7   :  { %15782 = vmatpush1.bf16.msra.mxu1 %v15565_v44  ;;  %4534 = vmatmul.mubr.f32.vlgmr.msra.gmra.mrb[12].mxu0 %v18981_v15 }
 0x5e8   :  { %15594 = vmatprep.subr.bf16.mxu0 %v22422_v39  ;;  %4539 = vmatprep.mubr.f32.mxu0 %v19133_v50 }
 0x5e9   :  { %15596 = vmatpush1.bf16.msra.mxu0 %v18639_v7  ;;  %15783 = vmatprep.subr.bf16.mxu1 %v22422_v39 }
 0x5ea   :  { %15597 = vmatprep.subr.bf16.mxu0 %v22422_v39 }
 0x5eb   :  { %15785 = vmatpush1.bf16.msra.mxu1 %v15568_v60  ;;  %4541 = vmatmul.mubr.f32.gmra.mrb[14].mxu0 %v19138_v35 }
 0x5ec   :  { %4636 = vmatprep.mubr.f32.mxu0 %v18979_v58  ;;  %15786 = vmatprep.subr.bf16.mxu1 %v22422_v39 }
 0x5ed   :  { %15599 = vmatpush1.bf16.msra.mxu0 %v18653_v41 }
 0x5ee   :  { %15600 = vmatprep.subr.bf16.mxu0 %v22422_v39 }
 0x5ef   :  { %15788 = vmatpush1.bf16.msra.mxu1 %v15571_v59 }
 0x5f0   :  { %15789 = vmatprep.subr.bf16.mxu1 %v22422_v39 }
 0x5f1   :  { %15602 = vmatpush1.bf16.msra.mxu0 %v18676_v18 }
 0x5f2   :  { %15603 = vmatprep.subr.bf16.mxu0 %v22422_v39 }
 0x5f3   :  { %15791 = vmatpush1.bf16.msra.mxu1 %v15574_v16 }
 0x5f4   :  { %15792 = vmatprep.subr.bf16.mxu1 %v22422_v39 }
 0x5f5   :  { %15605 = vmatpush1.bf16.msra.mxu0 %v22425_v40 }
 0x5f6   :  { %15606 = vmatprep.subr.bf16.mxu0 %v22422_v39 }
 0x5f7   :  { %15794 = vmatpush1.bf16.msra.mxu1 %v15577_v36 }
 0x5f8   :  { %15795 = vmatprep.subr.bf16.mxu1 %v22422_v39 }
 0x5f9   :  { %15608 = vmatpush1.bf16.msra.mxu0 %v22426_v20 }
 0x5fa   :  { %15609 = vmatprep.subr.bf16.mxu0 %v22422_v39 }
 0x5fb   :  { %15797 = vmatpush1.bf16.msra.mxu1 %v15580_v37 }
 0x5fc   :  { %15798 = vmatprep.subr.bf16.mxu1 %v22422_v39 }
 0x5fd   :  { %15611 = vmatpush1.bf16.msra.mxu0 %v22427_v55 }
 0x5fe   :  { %15612 = vmatprep.subr.bf16.mxu0 %v22422_v39 }
 0x5ff   :  { %15800 = vmatpush1.bf16.msra.mxu1 %v15583_v6 }
 0x600   :  { %15801 = vmatprep.subr.bf16.mxu1 %v22422_v39 }
 0x601   :  { %15614 = vmatpush1.bf16.msra.mxu0 %v22428_v9 }
 0x602   :  { %15615 = vmatprep.subr.bf16.mxu0 %v22422_v39 }
 0x603   :  { %15803 = vmatpush1.bf16.msra.mxu1 %v15586_v17 }
 0x604   :  { %15804 = vmatprep.subr.bf16.mxu1 %v22422_v39 }
 0x605   :  { %15617 = vmatpush1.bf16.msra.mxu0 %v22429_v19 }
 0x606   :  { %15618 = vmatprep.subr.bf16.mxu0 %v22422_v39 }
 0x607   :  { %15806 = vmatpush1.bf16.msra.mxu1 %v15589_v11 }
 0x608   :  { %15807 = vmatprep.subr.bf16.mxu1 %v22422_v39 }
 0x609   :  { %15620 = vmatpush1.bf16.msra.mxu0 %v22430_v14 }
 0x60a   :  { %15621 = vmatprep.subr.bf16.mxu0 %v22422_v39 }
 0x60b   :  { %15809 = vmatpush1.bf16.msra.mxu1 %v15592_v61 }
 0x60c   :  { %5480 = vmatprep.subr.mxu1 %v22329_v51 }
 0x60d   :  { %15623 = vmatpush1.bf16.msra.mxu0 %v22431_v32 }
 0x60e   :  { %15624 = vmatprep.subr.bf16.mxu0 %v22422_v39 }
 0x60f   :  { %5484 = vmatpush1.msra.mxu1 %v5082_v0 }
 0x610   :  { %5502 = vmatmul.mubr.f32.vlgmr.msra.gmra.mrb[12].mxu1 %v19119_v13  ;;  %15810 = vmatprep.subr.bf16.mxu1 %v22422_v39 }
 0x611   :  { %15626 = vmatpush1.bf16.msra.mxu0 %v22432_v63  ;;  %5507 = vmatprep.mubr.f32.mxu1 %v19148_v12 }
 0x612   :  { %15812 = vmatpush1.bf16.msra.mxu1 %v18639_v7  ;;  %15627 = vmatprep.subr.bf16.mxu0 %v22422_v39 }
 0x613   :  { %15813 = vmatprep.subr.bf16.mxu1 %v22422_v39 }
 0x614   :  { %5509 = vmatmul.mubr.f32.gmra.mrb[14].mxu1 %v19160_v4 }
 0x615   :  { %15629 = vmatpush1.bf16.msra.mxu0 %v22433_v27  ;;  %5604 = vmatprep.mubr.f32.mxu1 %v19113_v29 }
 0x616   :  { %15815 = vmatpush1.bf16.msra.mxu1 %v18653_v41  ;;  %4618 = vmatprep.subr.mxu0 %v22329_v51 }
 0x617   :  { %15816 = vmatprep.subr.bf16.mxu1 %v22422_v39 }
 0x619   :  { %4620 = vmatpush1.msra.mxu0 %v18866_v30 }
 0x61a   :  { %15818 = vmatpush1.bf16.msra.mxu1 %v18676_v18  ;;  %4638 = vmatmul.mubr.f32.vlgmr.msra.gmra.mrb[12].mxu0 %v18981_v15 }
 0x61b   :  { %4643 = vmatprep.mubr.f32.mxu0 %v19133_v50  ;;  %15819 = vmatprep.subr.bf16.mxu1 %v22422_v39 }
 0x61c   :  { %15846 = vmatprep.subr.bf16.mxu0 %v22422_v39 }
 0x61e   :  { %15821 = vmatpush1.bf16.msra.mxu1 %v22425_v40  ;;  %4645 = vmatmul.mubr.f32.gmra.mrb[14].mxu0 %v19138_v35  ;;  %v13703_v35 = vld [vmem:[%s21982_s10 + $0x5] ss:$0 sm:$0xff]  ;;  %v13698_v40 = vld [vmem:[%s21982_s10] ss:$0 sm:$0xff] }
 0x61f   :  { %15822 = vmatprep.subr.bf16.mxu1 %v22422_v39 }
 0x622   :  { %15824 = vmatpush1.bf16.msra.mxu1 %v22426_v20 }
 0x623   :  { %15825 = vmatprep.subr.bf16.mxu1 %v22422_v39 }
 0x626   :  { %15827 = vmatpush1.bf16.msra.mxu1 %v22427_v55 }
 0x627   :  { %15828 = vmatprep.subr.bf16.mxu1 %v22422_v39 }
 0x62a   :  { %15830 = vmatpush1.bf16.msra.mxu1 %v22428_v9 }
 0x62b   :  { %15831 = vmatprep.subr.bf16.mxu1 %v22422_v39 }
 0x62e   :  { %15833 = vmatpush1.bf16.msra.mxu1 %v22429_v19 }
 0x62f   :  { %15834 = vmatprep.subr.bf16.mxu1 %v22422_v39 }
 0x632   :  { %15836 = vmatpush1.bf16.msra.mxu1 %v22430_v14 }
 0x633   :  { %15837 = vmatprep.subr.bf16.mxu1 %v22422_v39 }
 0x636   :  { %15839 = vmatpush1.bf16.msra.mxu1 %v22431_v32 }
 0x637   :  { %15840 = vmatprep.subr.bf16.mxu1 %v22422_v39 }
 0x63a   :  { %15842 = vmatpush1.bf16.msra.mxu1 %v22432_v63 }
 0x63b   :  { %15843 = vmatprep.subr.bf16.mxu1 %v22422_v39 }
 0x63e   :  { %15845 = vmatpush1.bf16.msra.mxu1 %v22433_v27 }
 0x63f   :  { %5586 = vmatprep.subr.mxu1 %v22329_v51 }
 0x642   :  { %5588 = vmatpush1.msra.mxu1 %v18933_v5  ;;  %v13699_v5 = vld [vmem:[%s21982_s10 + $0x1] ss:$0 sm:$0xff] }
 0x643   :  { %5606 = vmatmul.mubr.f32.vlgmr.msra.gmra.mrb[12].mxu1 %v19119_v13  ;;  %v13700_v13 = vld [vmem:[%s21982_s10 + $0x2] ss:$0 sm:$0xff] }
 0x644   :  { %5611 = vmatprep.mubr.f32.mxu1 %v19148_v12  ;;  %v13702_v12 = vld [vmem:[%s21982_s10 + $0x4] ss:$0 sm:$0xff] }
 0x647   :  { %5613 = vmatmul.mubr.f32.gmra.mrb[14].mxu1 %v19160_v4  ;;  %v13704_v4 = vld [vmem:[%s21982_s10 + $0x6] ss:$0 sm:$0xff]  ;;  %s17022_s10 = smov 121  }
 0x6ed   :  { %v4639_v7 = vpop.f32.mrb[12].mxu0 }
 0x6ee   :  { %4652 = vrot.lane.b32.xlu1 %v4639_v7, %s17017_s12  ;;  %v4641_v41 = vpop.f32.mrb[13].mxu0 }
 0x6f1   :  { %v4646_v18 = vpop.f32.mrb[14].mxu0 }
 0x6f2   :  { %4654 = vrot.lane.b32.xlu0 %v4646_v18, %s17017_s12  ;;  %v4648_v50 = vpop.f32.mrb[15].mxu0  ;;  %v5850_v18 = vld [vmem:[%s22474_s24] sm:$0xff] }
 0x716   :  { %v5607_v29 = vpop.f32.mrb[12].mxu1 }
 0x717   :  { %5620 = vrot.lane.b32.xlu1 %v5607_v29, %s17018_s0  ;;  %v5609_v30 = vpop.f32.mrb[13].mxu1 }
 0x718   :  { %v5852_v30 = vld [vmem:[%s22474_s24 + $0x10] sm:$0xff] }
 0x71a   :  { %v5614_v58 = vpop.f32.mrb[14].mxu1 }
 0x71b   :  { %5648 = vrot.lane.b32.xlu1 %v13699_v5, %s22143_s22  ;;  %5622 = vrot.lane.b32.xlu0 %v5614_v58, %s17018_s0  ;;  %v5616_v15 = vpop.f32.mrb[15].mxu1  ;;  %s17020_s22 = smov 9   ;;  %v5851_v58 = vld [vmem:[%s22474_s24 + $0x8] sm:$0xff] }
 0x71f   :  { %5694 = vrot.lane.b32.xlu1 %v13701_v22, %s17019_s7  ;;  %5671 = vrot.lane.b32.xlu0 %v13700_v13, %s22144_s3  ;;  %s17023_s3 = smov 120   ;;  %v5853_v13 = vld [vmem:[%s22474_s24 + $0x18] sm:$0xff] }
 0x723   :  { %5740 = vrot.lane.b32.xlu1 %v13703_v35, %s17020_s22  ;;  %5717 = vrot.lane.b32.xlu0 %v13702_v12, %s17017_s12 }
 0x727   :  { %5786 = vrot.lane.b32.xlu1 %v13705_v46, %s17002_s30  ;;  %5763 = vrot.lane.b32.xlu0 %v13704_v4, %s17021_s28  ;;  %s22475_s28 = sld [smem:[#allocation77_spill]] }
 0x72b   :  { %5809 = vrot.lane.b32.xlu0 %v13706_v28, %s17003_s25  ;;  %s17024_s25 = smov 119  }
 0x72d   :  { %v5825_v29 = vld [vmem:[%s22475_s28 + $0x8] sm:$0xff] }
 0x72e   :  { %v5875_v5 = vsel %vm1604_vm2, %v5825_v29, 0 }
 0x72f   :  { %v19583_v15 = vand.u32 4294901760, %v5875_v5 }
 0x731   :  { %v19586_v22 = vsub.f32 %v5875_v5, %v19583_v15 }
 0x733   :  { %v22145_v35 = vand.u32 4294901760, %v19586_v22 }
 0x735   :  { %v5971_v12 = vsub.f32 %v19586_v22, %v22145_v35 }
 0x737   :  { %v5972_v46 = vand.u32 4294901760, %v5971_v12 }
 0x739   :  { %5973 = vmatprep.mubr.f32.mxu0 %v5972_v46 }
 0x760   :  { %v4653_v48 = vpop.permute.xlu1 %4652 }
 0x761   :  { %4659 = vst.msk [vmem:[#allocation6] sm:$0xff] %vm4658_vm12, %v4653_v48 }
 0x764   :  { %v4655_v43 = vpop.permute.xlu0 %4654 }
 0x765   :  { %4660 = vst.msk [vmem:[#allocation6 + $0x8] sm:$0xff] %vm4658_vm12, %v4655_v43 }
 0x789   :  { %v5621_v42 = vpop.permute.xlu1 %5620 }
 0x78a   :  { %5627 = vst.msk [vmem:[#allocation6] sm:$0xff] %vm5626_vm14, %v5621_v42 }
 0x78d   :  { %v5623_v0 = vpop.permute.xlu0 %5622  ;;  %v5649_v55 = vpop.permute.xlu1 %5648 }
 0x78e   :  { %5628 = vst.msk [vmem:[#allocation6 + $0x8] sm:$0xff] %vm5626_vm14, %v5623_v0 }
 0x791   :  { %v5629_v20 = vld [vmem:[#allocation6] sm:$0xff]  ;;  %v5672_v14 = vpop.permute.xlu0 %5671  ;;  %v5695_v45 = vpop.permute.xlu1 %5694 }
 0x792   :  { %v5636_v9 = vmul.f32 %v13698_v40, %v5629_v20  ;;  %v5651_v19 = vmul.f32 %v5649_v55, %v5629_v20  ;;  %v5674_v27 = vmul.f32 %v5672_v14, %v5629_v20  ;;  %v5697_v44 = vmul.f32 %v5695_v45, %v5629_v20 }
 0x794   :  { %5638 = vst.msk [vmem:[#allocation7] sm:$0xff] %vm2070_vm6, %v5636_v9  ;;  %5655 = vrot.lane.b32.xlu1 %v5651_v19, %s17009_s2 }
 0x795   :  { %v5630_v32 = vld [vmem:[#allocation6 + $0x8] sm:$0xff]  ;;  %v5718_v59 = vpop.permute.xlu0 %5717  ;;  %v5741_v37 = vpop.permute.xlu1 %5740 }
 0x796   :  { %v5637_v63 = vmul.f32 %v13698_v40, %v5630_v32  ;;  %v5652_v2 = vmul.f32 %v5649_v55, %v5630_v32  ;;  %v5675_v60 = vmul.f32 %v5672_v14, %v5630_v32  ;;  %v5720_v56 = vmul.f32 %v5718_v59, %v5629_v20 }
 0x797   :  { %v5698_v62 = vmul.f32 %v5695_v45, %v5630_v32  ;;  %v5743_v31 = vmul.f32 %v5741_v37, %v5629_v20  ;;  %v5721_v54 = vmul.f32 %v5718_v59, %v5630_v32  ;;  %v5744_v11 = vmul.f32 %v5741_v37, %v5630_v32 }
 0x798   :  { %5639 = vst.msk [vmem:[#allocation7 + $0x8] sm:$0xff] %vm2070_vm6, %v5637_v63  ;;  %5678 = vrot.lane.b32.xlu1 %v5674_v27, %s17008_s9  ;;  %5657 = vrot.lane.b32.xlu0 %v5652_v2, %s17009_s2 }
 0x799   :  { %v5764_v23 = vpop.permute.xlu0 %5763  ;;  %v5787_v34 = vpop.permute.xlu1 %5786 }
 0x79a   :  { %v5766_v25 = vmul.f32 %v5764_v23, %v5629_v20  ;;  %v5789_v49 = vmul.f32 %v5787_v34, %v5629_v20  ;;  %v5767_v61 = vmul.f32 %v5764_v23, %v5630_v32  ;;  %v5790_v41 = vmul.f32 %v5787_v34, %v5630_v32 }
 0x79b   :  { %v5832_v16 = vld [vmem:[#allocation7] sm:$0xff] }
 0x79c   :  { %5701 = vrot.lane.b32.xlu1 %v5697_v44, %s17022_s10  ;;  %v5887_v36 = vand.u32 4294901760, %v5832_v16  ;;  %5680 = vrot.lane.b32.xlu0 %v5675_v60, %s17008_s9 }
 0x79d   :  { %v5810_v10 = vpop.permute.xlu0 %5809 }
 0x79e   :  { %v19545_v33 = vsub.f32 %v5832_v16, %v5887_v36  ;;  %v5812_v7 = vmul.f32 %v5810_v10, %v5629_v20  ;;  %v5813_v50 = vmul.f32 %v5810_v10, %v5630_v32 }
 0x79f   :  { %v5833_v21 = vld [vmem:[#allocation7 + $0x8] sm:$0xff] }
 0x7a0   :  { %5724 = vrot.lane.b32.xlu1 %v5720_v56, %s17023_s3  ;;  %v5890_v8 = vand.u32 4294901760, %v5833_v21  ;;  %v6032_v1 = vand.u32 4294901760, %v19545_v33  ;;  %5703 = vrot.lane.b32.xlu0 %v5698_v62, %s17022_s10 }
 0x7a2   :  { %v19550_v6 = vpack.c.bf16 %v5890_v8, %v5887_v36  ;;  %v19552_v38 = vsub.f32 %v5833_v21, %v5890_v8  ;;  %v6033_v57 = vsub.f32 %v19545_v33, %v6032_v1 }
 0x7a4   :  { %15848 = vmatpush1.bf16.msra.mxu0 %v19550_v6  ;;  %5747 = vrot.lane.b32.xlu1 %v5743_v31, %s17024_s25  ;;  %v6039_v17 = vand.u32 4294901760, %v19552_v38  ;;  %v6034_v26 = vand.u32 4294901760, %v6033_v57 }
 0x7a5   :  { %5726 = vrot.lane.b32.xlu0 %v5721_v54, %s17023_s3  ;;  %15849 = vmatprep.subr.bf16.mxu0 %v22422_v39 }
 0x7a6   :  { %v6040_v52 = vsub.f32 %v19552_v38, %v6039_v17  ;;  %v19562_v47 = vpack.c.bf16 %v6039_v17, %v6032_v1 }
 0x7a8   :  { %5770 = vrot.lane.b32.xlu1 %v5766_v25, %s17025_s4  ;;  %v6041_v3 = vand.u32 4294901760, %v6040_v52  ;;  %v5824_v25 = vld [vmem:[%s22475_s28] sm:$0xff] }
 0x7a9   :  { %5749 = vrot.lane.b32.xlu0 %v5744_v11, %s17024_s25  ;;  %v5827_v11 = vld [vmem:[%s22475_s28 + $0x18] sm:$0xff]  ;;  %s17034_s25 = smov 122  }
 0x7aa   :  { %v19564_v53 = vpack.c.bf16 %v6041_v3, %v6034_v26  ;;  %v5878_v29 = vsel %vm1604_vm2, %v5827_v11, 0 }
 0x7ac   :  { %5793 = vrot.lane.b32.xlu1 %v5789_v49, %s17011_s27 }
 0x7ad   :  { %5772 = vrot.lane.b32.xlu0 %v5767_v61, %s17025_s4  ;;  %s17026_s4 = smov 79  }
 0x7b0   :  { %5816 = vrot.lane.b32.xlu1 %v5812_v7, %s17010_s6 }
 0x7b1   :  { %5795 = vrot.lane.b32.xlu0 %v5790_v41, %s17011_s27  ;;  %s17033_s27 = smov 123  }
 0x7b4   :  { %5856 = vperm.xlu1 %16973, %v5850_v18  }
 0x7b5   :  { %5818 = vrot.lane.b32.xlu0 %v5813_v50, %s17010_s6  ;;  %v19645_v50 = vand.u32 4294901760, %v5824_v25  ;;  %s22523_s6 = smov 1  }
 0x7b8   :  { %5866 = vperm.xlu1 %16973, %v5852_v30  }
 0x7b9   :  { %5861 = vperm.xlu0 %16972, %v5851_v58  }
 0x7bd   :  { %5871 = vperm.xlu0 %16972, %v5853_v13  }
 0x806   :  { %v5656_v4 = vpop.permute.xlu1 %5655 }
 0x807   :  { %5661 = vst.msk [vmem:[#allocation7 + $0x10] sm:$0xff] %vm2070_vm6, %v5656_v4  ;;  %v5826_v4 = vld [vmem:[%s22475_s28 + $0x10] sm:$0xff] }
 0x80a   :  { %v5679_v28 = vpop.permute.xlu1 %5678  ;;  %v5658_v48 = vpop.permute.xlu0 %5657 }
 0x80b   :  { %5684 = vst.msk [vmem:[#allocation7 + $0x20] sm:$0xff] %vm2070_vm6, %v5679_v28  ;;  %5662 = vst.msk [vmem:[#allocation7 + $0x18] sm:$0xff] %vm2070_vm6, %v5658_v48  ;;  %v5829_v28 = vld [vmem:[%s22475_s28 + $0x28] sm:$0xff] }
 0x80e   :  { %v5702_v43 = vpop.permute.xlu1 %5701  ;;  %v5834_v42 = vld [vmem:[#allocation7 + $0x10] sm:$0xff]  ;;  %v5681_v0 = vpop.permute.xlu0 %5680 }
 0x80f   :  { %5707 = vst.msk [vmem:[#allocation7 + $0x30] sm:$0xff] %vm2070_vm6, %v5702_v43  ;;  %5685 = vst.msk [vmem:[#allocation7 + $0x28] sm:$0xff] %vm2070_vm6, %v5681_v0  ;;  %v5893_v40 = vand.u32 4294901760, %v5834_v42 }
 0x811   :  { %v19602_v32 = vsub.f32 %v5834_v42, %v5893_v40 }
 0x812   :  { %v5725_v20 = vpop.permute.xlu1 %5724  ;;  %v5836_v55 = vld [vmem:[#allocation7 + $0x20] sm:$0xff]  ;;  %v5704_v9 = vpop.permute.xlu0 %5703  ;;  %v5835_v19 = vld [vmem:[#allocation7 + $0x18] sm:$0xff] }
 0x813   :  { %5730 = vst.msk [vmem:[#allocation7 + $0x40] sm:$0xff] %vm2070_vm6, %v5725_v20  ;;  %5708 = vst.msk [vmem:[#allocation7 + $0x38] sm:$0xff] %vm2070_vm6, %v5704_v9  ;;  %v5896_v14 = vand.u32 4294901760, %v5835_v19  ;;  %v5899_v63 = vand.u32 4294901760, %v5836_v55  ;;  %v22154_v36 = vand.u32 4294901760, %v19602_v32  ;;  %v19675_v9 = vsub.f32 %v5824_v25, %v19645_v50 }
 0x815   :  { %v19604_v45 = vpack.c.bf16 %v5896_v14, %v5893_v40  ;;  %v19606_v2 = vsub.f32 %v5835_v19, %v5896_v14  ;;  %v19614_v62 = vsub.f32 %v5836_v55, %v5899_v63  ;;  %v19671_v40 = vand.u32 4294901760, %v5878_v29 }
 0x816   :  { %v5748_v27 = vpop.permute.xlu1 %5747  ;;  %v5838_v44 = vld [vmem:[#allocation7 + $0x30] sm:$0xff]  ;;  %v5837_v59 = vld [vmem:[#allocation7 + $0x28] sm:$0xff] }
 0x817   :  { %5753 = vst.msk [vmem:[#allocation7 + $0x50] sm:$0xff] %vm2070_vm6, %v5748_v27  ;;  %v5727_v60 = vpop.permute.xlu0 %5726  ;;  %15851 = vmatpush1.bf16.msra.mxu0 %v19604_v45  ;;  %v5902_v16 = vand.u32 4294901760, %v5837_v59  ;;  %v22155_v56 = vand.u32 4294901760, %v19606_v2  ;;  %v5905_v37 = vand.u32 4294901760, %v5838_v44  ;;  %v22152_v3 = vand.u32 4294901760, %v19614_v62 }
 0x818   :  { %5731 = vst.msk [vmem:[#allocation7 + $0x48] sm:$0xff] %vm2070_vm6, %v5727_v60  ;;  %15852 = vmatprep.subr.bf16.mxu0 %v22422_v39  ;;  %v19686_v27 = vand.u32 4294901760, %v5826_v4 }
 0x819   :  { %v19616_v8 = vpack.c.bf16 %v5902_v16, %v5899_v63  ;;  %v19618_v1 = vsub.f32 %v5837_v59, %v5902_v16  ;;  %v19624_v54 = vpack.c.bf16 %v22155_v56, %v22154_v36  ;;  %v19637_v34 = vsub.f32 %v5838_v44, %v5905_v37 }
 0x81a   :  { %v5771_v21 = vpop.permute.xlu1 %5770  ;;  %v5840_v31 = vld [vmem:[#allocation7 + $0x40] sm:$0xff]  ;;  %v5839_v57 = vld [vmem:[#allocation7 + $0x38] sm:$0xff]  ;;  %v5881_v44 = vsel %vm1604_vm2, %v5829_v28, 0 }
 0x81b   :  { %22476 = vst [vmem:[#allocation24_spill] sm:$0xff] %v19624_v54  ;;  %5776 = vst.msk [vmem:[#allocation7 + $0x60] sm:$0xff] %vm2070_vm6, %v5771_v21  ;;  %v5750_v23 = vpop.permute.xlu0 %5749  ;;  %15854 = vmatpush1.bf16.msra.mxu0 %v19616_v8  ;;  %v5908_v17 = vand.u32 4294901760, %v5839_v57  ;;  %v22153_v52 = vand.u32 4294901760, %v19618_v1  ;;  %v5911_v26 = vand.u32 4294901760, %v5840_v31  ;;  %v22150_v46 = vand.u32 4294901760, %v19637_v34 }
 0x81c   :  { %5754 = vst.msk [vmem:[#allocation7 + $0x58] sm:$0xff] %vm2070_vm6, %v5750_v23  ;;  %15855 = vmatprep.subr.bf16.mxu0 %v22422_v39  ;;  %v19698_v23 = vsub.f32 %v5878_v29, %v19671_v40  ;;  %v19703_v11 = vand.u32 4294901760, %v5881_v44  ;;  %v5828_v29 = vld [vmem:[%s22475_s28 + $0x20] sm:$0xff] }
 0x81d   :  { %v19640_v61 = vpack.c.bf16 %v5908_v17, %v5905_v37  ;;  %v19642_v10 = vsub.f32 %v5839_v57, %v5908_v17  ;;  %v19652_v30 = vpack.c.bf16 %v22153_v52, %v22152_v3  ;;  %v19658_v13 = vsub.f32 %v5840_v31, %v5911_v26  ;;  %v5831_v57 = vld [vmem:[%s22475_s28 + $0x38] sm:$0xff] }
 0x81e   :  { %v5794_v49 = vpop.permute.xlu1 %5793  ;;  %v5842_v7 = vld [vmem:[#allocation7 + $0x50] sm:$0xff]  ;;  %v19732_v35 = vsub.f32 %v5881_v44, %v19703_v11  ;;  %v19734_v24 = vand.u32 4294901760, %v5828_v29  ;;  %v5830_v44 = vld [vmem:[%s22475_s28 + $0x30] sm:$0xff]  ;;  %s17028_s28 = smov 13  }
 0x81f   :  { %5799 = vst.msk [vmem:[#allocation7 + $0x70] sm:$0xff] %vm2070_vm6, %v5794_v49  ;;  %v5773_v41 = vpop.permute.xlu0 %5772  ;;  %v5841_v18 = vld [vmem:[#allocation7 + $0x48] sm:$0xff]  ;;  %22477 = vst [vmem:[#allocation37_spill] sm:$0xff] %v19652_v30  ;;  %15857 = vmatpush1.bf16.msra.mxu0 %v19640_v61  ;;  %v22151_v58 = vand.u32 4294901760, %v19642_v10  ;;  %v5917_v12 = vand.u32 4294901760, %v5842_v7  ;;  %v22146_v16 = vand.u32 4294901760, %v19658_v13 }
 0x820   :  { %5777 = vst.msk [vmem:[#allocation7 + $0x68] sm:$0xff] %vm2070_vm6, %v5773_v41  ;;  %v5914_v5 = vand.u32 4294901760, %v5841_v18  ;;  %15858 = vmatprep.subr.bf16.mxu0 %v22422_v39  ;;  %v19766_v36 = vsub.f32 %v5828_v29, %v19734_v24  ;;  %v19768_v56 = vand.u32 4294901760, %v5830_v44  ;;  %v22490_v30 = vand.u32 4294901760, %v19614_v62 }
 0x821   :  { %v19681_v19 = vpack.c.bf16 %v22151_v58, %v22150_v46  ;;  %v19690_v60 = vsub.f32 %v5842_v7, %v5917_v12  ;;  %v22157_v7 = vand.u32 4294901760, %v19675_v9 }
 0x822   :  { %v5817_v48 = vpop.permute.xlu1 %5816  ;;  %v19667_v43 = vpack.c.bf16 %v5914_v5, %v5911_v26  ;;  %v19669_v42 = vsub.f32 %v5841_v18, %v5914_v5  ;;  %v5844_v0 = vld [vmem:[#allocation7 + $0x60] sm:$0xff]  ;;  %v19716_v18 = vsub.f32 %v5826_v4, %v19686_v27  ;;  %v22156_v4 = vand.u32 4294901760, %v19698_v23 }
 0x823   :  { %5822 = vst.msk [vmem:[#allocation7 + $0x80] sm:$0xff] %vm2070_vm6, %v5817_v48  ;;  %v5796_v20 = vpop.permute.xlu0 %5795  ;;  %v5843_v55 = vld [vmem:[#allocation7 + $0x58] sm:$0xff]  ;;  %22478 = vst [vmem:[#allocation38_spill] sm:$0xff] %v19681_v19  ;;  %v5923_v59 = vand.u32 4294901760, %v5844_v0  ;;  %v22147_v28 = vand.u32 4294901760, %v19690_v60  ;;  %v5884_v48 = vsel %vm1604_vm2, %v5831_v57, 0 }
 0x824   :  { %5800 = vst.msk [vmem:[#allocation7 + $0x78] sm:$0xff] %vm2070_vm6, %v5796_v20  ;;  %15860 = vmatpush1.bf16.msra.mxu0 %v19667_v43  ;;  %v5920_v14 = vand.u32 4294901760, %v5843_v55  ;;  %v22149_v63 = vand.u32 4294901760, %v19669_v42  ;;  %v5986_v3 = vsub.f32 %v19698_v23, %v22156_v4 }
 0x825   :  { %15861 = vmatprep.subr.bf16.mxu0 %v22422_v39  ;;  %v19722_v5 = vsub.f32 %v5844_v0, %v5923_v59 }
 0x826   :  { %v19693_v37 = vpack.c.bf16 %v5920_v14, %v5917_v12  ;;  %v19695_v21 = vsub.f32 %v5843_v55, %v5920_v14  ;;  %v5846_v31 = vld [vmem:[#allocation7 + $0x70] sm:$0xff]  ;;  %v19709_v26 = vpack.c.bf16 %v22149_v63, %v22146_v16 }
 0x827   :  { %v5819_v17 = vpop.permute.xlu0 %5818  ;;  %v5845_v25 = vld [vmem:[#allocation7 + $0x68] sm:$0xff]  ;;  %v5929_v12 = vand.u32 4294901760, %v5846_v31  ;;  %v22158_v63 = vand.u32 4294901760, %v19722_v5 }
 0x828   :  { %22479 = vst [vmem:[#allocation40_spill] sm:$0xff] %v19709_v26  ;;  %5823 = vst.msk [vmem:[#allocation7 + $0x88] sm:$0xff] %vm2070_vm6, %v5819_v17  ;;  %15863 = vmatpush1.bf16.msra.mxu0 %v19693_v37  ;;  %v5926_v49 = vand.u32 4294901760, %v5845_v25  ;;  %v22148_v41 = vand.u32 4294901760, %v19695_v21  ;;  %v19800_v26 = vsub.f32 %v5830_v44, %v19768_v56 }
 0x829   :  { %15864 = vmatprep.subr.bf16.mxu0 %v22422_v39  ;;  %v19750_v16 = vsub.f32 %v5846_v31, %v5929_v12 }
 0x82a   :  { %v19726_v20 = vpack.c.bf16 %v5926_v49, %v5923_v59  ;;  %v19728_v55 = vsub.f32 %v5845_v25, %v5926_v49  ;;  %v5848_v14 = vld [vmem:[#allocation7 + $0x80] sm:$0xff]  ;;  %v19740_v0 = vpack.c.bf16 %v22148_v41, %v22147_v28  ;;  %v19744_v49 = vand.u32 4294901760, %v5884_v48 }
 0x82b   :  { %v5847_v17 = vld [vmem:[#allocation7 + $0x78] sm:$0xff]  ;;  %v5935_v57 = vand.u32 4294901760, %v5848_v14  ;;  %v5977_v28 = vsub.f32 %v19675_v9, %v22157_v7  ;;  %v22161_v41 = vand.u32 4294901760, %v19716_v18 }
 0x82c   :  { %22480 = vst [vmem:[#allocation39_spill] sm:$0xff] %v19740_v0  ;;  %15866 = vmatpush1.bf16.msra.mxu0 %v19726_v20  ;;  %v5932_v59 = vand.u32 4294901760, %v5847_v17  ;;  %v22159_v25 = vand.u32 4294901760, %v19728_v55  ;;  %v19781_v7 = vsub.f32 %v5884_v48, %v19744_v49  ;;  %v22483_v48 = vand.u32 4294901760, %v19732_v35 }
 0x82d   :  { %15867 = vmatprep.subr.bf16.mxu0 %v22422_v39  ;;  %v5978_v29 = vand.u32 4294901760, %v5977_v28  ;;  %v5992_v31 = vsub.f32 %v19716_v18, %v22161_v41  ;;  %v22487_v28 = vand.u32 4294901760, %v19618_v1 }
 0x82e   :  { %v19757_v46 = vpack.c.bf16 %v5932_v59, %v5929_v12  ;;  %v19759_v58 = vsub.f32 %v5847_v17, %v5932_v59  ;;  %v19774_v12 = vpack.c.bf16 %v22159_v25, %v22158_v63  ;;  %v19777_v59 = vsub.f32 %v5848_v14, %v5935_v57 }
 0x82f   :  { %v5849_v52 = vld [vmem:[#allocation7 + $0x88] sm:$0xff]  ;;  %v22162_v63 = vand.u32 4294901760, %v19750_v16  ;;  %v22482_v14 = vand.u32 4294901760, %v19606_v2  ;;  %v6001_v0 = vsub.f32 %v19732_v35, %v22483_v48 }
 0x830   :  { %22481 = vst [vmem:[#allocation35_spill] sm:$0xff] %v19774_v12  ;;  %15869 = vmatpush1.bf16.msra.mxu0 %v19757_v46  ;;  %v5938_v17 = vand.u32 4294901760, %v5849_v52  ;;  %v5987_v12 = vand.u32 4294901760, %v5986_v3  ;;  %v22163_v48 = vand.u32 4294901760, %v19777_v59 }
 0x831   :  { %15870 = vmatprep.subr.bf16.mxu0 %v22422_v39  ;;  %v6054_v4 = vsub.f32 %v19606_v2, %v22482_v14  ;;  %v22489_v14 = vand.u32 4294901760, %v19766_v36  ;;  %v6002_v54 = vand.u32 4294901760, %v6001_v0 }
 0x832   :  { %v19788_v25 = vpack.c.bf16 %v5938_v17, %v5935_v57  ;;  %v19790_v51 = vsub.f32 %v5849_v52, %v5938_v17  ;;  %v22484_v57 = vand.u32 4294901760, %v19759_v58  ;;  %v22486_v17 = vand.u32 4294901760, %v19602_v32 }
 0x833   :  { %v6055_v44 = vand.u32 4294901760, %v6054_v4 }
 0x834   :  { %v19806_v52 = vpack.c.bf16 %v22484_v57, %v22162_v63  ;;  %15872 = vmatpush1.bf16.msra.mxu0 %v19788_v25  ;;  %v6047_v3 = vsub.f32 %v19602_v32, %v22486_v17  ;;  %v22164_v41 = vand.u32 4294901760, %v19790_v51  ;;  %v6068_v57 = vsub.f32 %v19618_v1, %v22487_v28 }
 0x835   :  { %15873 = vmatprep.subr.bf16.mxu0 %v22422_v39  ;;  %v5993_v17 = vand.u32 4294901760, %v5992_v31  ;;  %v6061_v28 = vsub.f32 %v19614_v62, %v22490_v30 }
 0x836   :  { %22485 = vst [vmem:[#allocation16_spill] sm:$0xff] %v19806_v52  ;;  %v19823_v63 = vpack.c.bf16 %v22164_v41, %v22163_v48  ;;  %v6007_v52 = vsub.f32 %v19766_v36, %v22489_v14  ;;  %v6048_v4 = vand.u32 4294901760, %v6047_v3  ;;  %v22491_v48 = vand.u32 4294901760, %v19781_v7 }
 0x837   :  { %5979 = vmatmul.mubr.f32.vlgmr.msra.gmra.mrb[16].mxu0 %v5978_v29  ;;  %v6069_v41 = vand.u32 4294901760, %v6068_v57  ;;  %v22492_v14 = vand.u32 4294901760, %v19642_v10  ;;  %v22493_v3 = vand.u32 4294901760, %v19800_v26  ;;  %v6062_v0 = vand.u32 4294901760, %v6061_v28 }
 0x838   :  { %22488 = vst [vmem:[#allocation29_spill] sm:$0xff] %v19823_v63  ;;  %15875 = vmatpush1.bf16.msra.mxu0 %v19564_v53  ;;  %5988 = vmatprep.mubr.f32.mxu0 %v5987_v12  ;;  %v6016_v29 = vsub.f32 %v19781_v7, %v22491_v48  ;;  %v15877_v31 = vpack.c.bf16 %v6055_v44, %v6048_v4  ;;  %v6008_v53 = vand.u32 4294901760, %v6007_v52  ;;  %v22494_v12 = vand.u32 4294901760, %v19637_v34 }
 0x839   :  { %15876 = vmatprep.subr.bf16.mxu0 %v22422_v39  ;;  %v6082_v19 = vsub.f32 %v19642_v10, %v22492_v14  ;;  %v6022_v30 = vsub.f32 %v19800_v26, %v22493_v3  ;;  %v15880_v44 = vpack.c.bf16 %v6069_v41, %v6062_v0  ;;  %v22495_v4 = vand.u32 4294901760, %v19669_v42 }
 0x83a   :  { %v6075_v48 = vsub.f32 %v19637_v34, %v22494_v12  ;;  %v6017_v63 = vand.u32 4294901760, %v6016_v29  ;;  %v22496_v28 = vand.u32 4294901760, %v19658_v13  ;;  %v22497_v41 = vand.u32 4294901760, %v19695_v21 }
 0x83b   :  { %5994 = vmatmul.mubr.f32.gmra.mrb[18].mxu0 %v5993_v17  ;;  %v6083_v57 = vand.u32 4294901760, %v6082_v19  ;;  %v6096_v52 = vsub.f32 %v19669_v42, %v22495_v4  ;;  %v6023_v17 = vand.u32 4294901760, %v6022_v30  ;;  %v22499_v12 = vand.u32 4294901760, %v19728_v55 }
 0x83c   :  { %15878 = vmatpush1.bf16.msra.mxu0 %v15877_v31  ;;  %6003 = vmatprep.mubr.f32.mxu0 %v6002_v54  ;;  %v6076_v14 = vand.u32 4294901760, %v6075_v48  ;;  %v6089_v31 = vsub.f32 %v19658_v13, %v22496_v28  ;;  %v6110_v19 = vsub.f32 %v19695_v21, %v22497_v41 }
 0x83d   :  { %15879 = vmatprep.subr.bf16.mxu0 %v22422_v39  ;;  %v6097_v29 = vand.u32 4294901760, %v6096_v52  ;;  %v6124_v48 = vsub.f32 %v19728_v55, %v22499_v12 }
 0x83e   :  { %v15883_v54 = vpack.c.bf16 %v6083_v57, %v6076_v14  ;;  %v6090_v3 = vand.u32 4294901760, %v6089_v31  ;;  %v6111_v0 = vand.u32 4294901760, %v6110_v19  ;;  %v22500_v57 = vand.u32 4294901760, %v19722_v5 }
 0x83f   :  { %6009 = vmatmul.mubr.f32.gmra.mrb[20].mxu0 %v6008_v53  ;;  %v22498_v53 = vand.u32 4294901760, %v19690_v60  ;;  %v22501_v14 = vand.u32 4294901760, %v19759_v58 }
 0x840   :  { %15881 = vmatpush1.bf16.msra.mxu0 %v15880_v44  ;;  %6018 = vmatprep.mubr.f32.mxu0 %v6017_v63  ;;  %v15886_v63 = vpack.c.bf16 %v6097_v29, %v6090_v3  ;;  %v6117_v4 = vsub.f32 %v19722_v5, %v22500_v57  ;;  %v22503_v3 = vand.u32 4294901760, %v19790_v51 }
 0x841   :  { %15882 = vmatprep.subr.bf16.mxu0 %v22422_v39  ;;  %v6103_v30 = vsub.f32 %v19690_v60, %v22498_v53  ;;  %v6138_v28 = vsub.f32 %v19759_v58, %v22501_v14 }
 0x842   :  { %v6118_v31 = vand.u32 4294901760, %v6117_v4  ;;  %v6152_v53 = vsub.f32 %v19790_v51, %v22503_v3  ;;  %v22505_v4 = vpack.c.bf16 %v19552_v38, %v19545_v33  ;;  %v15910_v33 = vpack.c.bf16 %v19642_v10, %v19637_v34 }
 0x843   :  { %6024 = vmatmul.mubr.f32.gmra.mrb[22].mxu0 %v6023_v17  ;;  %v6104_v44 = vand.u32 4294901760, %v6103_v30  ;;  %v6125_v17 = vand.u32 4294901760, %v6124_v48  ;;  %v6139_v19 = vand.u32 4294901760, %v6138_v28  ;;  %v15913_v38 = vpack.c.bf16 %v19669_v42, %v19658_v13 }
 0x844   :  { %15884 = vmatpush1.bf16.msra.mxu0 %v15883_v54  ;;  %6184 = vmatprep.mubr.f32.mxu0 %v19583_v15  ;;  %v22502_v54 = vand.u32 4294901760, %v19750_v16  ;;  %v6153_v48 = vand.u32 4294901760, %v6152_v53  ;;  %v22508_v34 = vand.u32 4294901760, %v19698_v23  ;;  %v22509_v10 = vand.u32 4294901760, %v19716_v18  ;;  %v6796_v53 = vld [vmem:[%s21985_s13] sm:$0xff] }
 0x845   :  { %15885 = vmatprep.subr.bf16.mxu0 %v22422_v39  ;;  %v15889_v52 = vpack.c.bf16 %v6111_v0, %v6104_v44  ;;  %v15892_v41 = vpack.c.bf16 %v6125_v17, %v6118_v31  ;;  %v15907_v17 = vpack.c.bf16 %v19618_v1, %v19614_v62  ;;  %v15922_v62 = vpack.c.bf16 %v19759_v58, %v19750_v16  ;;  %v22510_v58 = vld [vmem:[#allocation24_spill] sm:$0xff] }
 0x846   :  { %v6131_v29 = vsub.f32 %v19750_v16, %v22502_v54  ;;  %v15925_v1 = vpack.c.bf16 %v19790_v51, %v19777_v59  ;;  %v22506_v51 = vand.u32 4294901760, %v19586_v22  ;;  %v22511_v13 = vand.u32 4294901760, %v19732_v35  ;;  %v22516_v16 = vld [vmem:[#allocation38_spill] sm:$0xff] }
 0x847   :  { %v22512_v42 = vand.u32 4294901760, %v19766_v36 }
 0x848   :  { %15887 = vmatpush1.bf16.msra.mxu0 %v15886_v63  ;;  %v6132_v30 = vand.u32 4294901760, %v6131_v29  ;;  %v22504_v63 = vand.u32 4294901760, %v19777_v59 }
 0x849   :  { %15888 = vmatprep.subr.bf16.mxu0 %v22422_v39 }
 0x84a   :  { %v6145_v0 = vsub.f32 %v19777_v59, %v22504_v63  ;;  %v15895_v12 = vpack.c.bf16 %v6139_v19, %v6132_v30  ;;  %v6797_v30 = vld [vmem:[%s21985_s13 + $0x8] sm:$0xff]  ;;  %v6798_v63 = vld [vmem:[%s21985_s13 + $0x10] sm:$0xff] }
 0x84c   :  { %15890 = vmatpush1.bf16.msra.mxu0 %v15889_v52  ;;  %v6146_v44 = vand.u32 4294901760, %v6145_v0  ;;  %v15904_v52 = vpack.c.bf16 %v19606_v2, %v19602_v32  ;;  %v15916_v32 = vpack.c.bf16 %v19695_v21, %v19690_v60  ;;  %v15919_v2 = vpack.c.bf16 %v19728_v55, %v19722_v5  ;;  %v22519_v21 = vld [vmem:[#allocation35_spill] sm:$0xff]  ;;  %v6800_v0 = vld [vmem:[%s21985_s13 + $0x20] sm:$0x1] }
 0x84d   :  { %15891 = vmatprep.subr.bf16.mxu0 %v22422_v39  ;;  %v22515_v60 = vand.u32 4294901760, %v19800_v26 }
 0x84e   :  { %v15898_v57 = vpack.c.bf16 %v6153_v48, %v6146_v44  ;;  %v6821_v48 = vand.u32 4294901760, %v6797_v30  ;;  %v6799_v44 = vld [vmem:[%s21985_s13 + $0x18] sm:$0xff] }
 0x850   :  { %15893 = vmatpush1.bf16.msra.mxu0 %v15892_v41 }
 0x851   :  { %15894 = vmatprep.subr.bf16.mxu0 %v22422_v39 }
 0x854   :  { %15896 = vmatpush1.bf16.msra.mxu0 %v15895_v12  ;;  %v6818_v12 = vand.u32 4294901760, %v6796_v53 }
 0x855   :  { %15897 = vmatprep.subr.bf16.mxu0 %v22422_v39 }
 0x858   :  { %15899 = vmatpush1.bf16.msra.mxu0 %v15898_v57  ;;  %v6824_v57 = vand.u32 4294901760, %v6798_v63 }
 0x859   :  { %15900 = vmatprep.subr.bf16.mxu0 %v22422_v39 }
 0x85b   :  { %6186 = vmatmul.mubr.f32.vlgmr.msra.gmra.mrb[16].mxu0 %v19645_v50 }
 0x85c   :  { %15902 = vmatpush1.bf16.msra.mxu0 %v22505_v4  ;;  %6191 = vmatprep.mubr.f32.mxu0 %v19671_v40  ;;  %v6827_v4 = vand.u32 4294901760, %v6799_v44 }
 0x85d   :  { %15903 = vmatprep.subr.bf16.mxu0 %v22422_v39 }
 0x85f   :  { %6193 = vmatmul.mubr.f32.gmra.mrb[18].mxu0 %v19686_v27 }
 0x860   :  { %15905 = vmatpush1.bf16.msra.mxu0 %v15904_v52  ;;  %6198 = vmatprep.mubr.f32.mxu0 %v19703_v11 }
 0x861   :  { %15906 = vmatprep.subr.bf16.mxu0 %v22422_v39 }
 0x863   :  { %6200 = vmatmul.mubr.f32.gmra.mrb[20].mxu0 %v19734_v24 }
 0x864   :  { %15908 = vmatpush1.bf16.msra.mxu0 %v15907_v17  ;;  %6205 = vmatprep.mubr.f32.mxu0 %v19744_v49 }
 0x865   :  { %15909 = vmatprep.subr.bf16.mxu0 %v22422_v39 }
 0x867   :  { %6207 = vmatmul.mubr.f32.gmra.mrb[22].mxu0 %v19768_v56 }
 0x868   :  { %15911 = vmatpush1.bf16.msra.mxu0 %v15910_v33  ;;  %6314 = vmatprep.mubr.f32.mxu0 %v19586_v22  ;;  %v22507_v22 = vand.u32 4294901760, %v19675_v9  ;;  %v20052_v33 = vpack.c.bf16 %v6821_v48, %v6818_v12 }
 0x869   :  { %15912 = vmatprep.subr.bf16.mxu0 %v22422_v39 }
 0x86a   :  { %16009 = vmatprep.subr.bf16.mxu1 %v20052_v33 }
 0x86b   :  { %16011 = vmatpush3.bf16.msra.mxu1 %v20052_v33 }
 0x86c   :  { %15914 = vmatpush1.bf16.msra.mxu0 %v15913_v38  ;;  %v6929_v38 = vsub.f32 %v6796_v53, %v6818_v12 }
 0x86d   :  { %15915 = vmatprep.subr.bf16.mxu0 %v22422_v39 }
 0x870   :  { %15917 = vmatpush1.bf16.msra.mxu0 %v15916_v32  ;;  %v6936_v32 = vsub.f32 %v6797_v30, %v6821_v48 }
 0x871   :  { %15918 = vmatprep.subr.bf16.mxu0 %v22422_v39 }
 0x874   :  { %15920 = vmatpush1.bf16.msra.mxu0 %v15919_v2  ;;  %v6815_v2 = vsel %vm3819_vm3, %v6800_v0, 0 }
 0x875   :  { %15921 = vmatprep.subr.bf16.mxu0 %v22422_v39 }
 0x878   :  { %15923 = vmatpush1.bf16.msra.mxu0 %v15922_v62 }
 0x879   :  { %15924 = vmatprep.subr.bf16.mxu0 %v22422_v39 }
 0x87c   :  { %15926 = vmatpush1.bf16.msra.mxu0 %v15925_v1 }
 0x87d   :  { %15927 = vmatprep.subr.bf16.mxu0 %v22422_v39 }
 0x87f   :  { %6317 = vmatmul.mubr.f32.vlgmr.msra.gmra.mrb[16].mxu0 %v19675_v9  ;;  %v22513_v9 = vld [vmem:[#allocation37_spill] sm:$0xff] }
 0x880   :  { %15929 = vmatpush1.bf16.msra.mxu0 %v19550_v6  ;;  %6323 = vmatprep.mubr.f32.mxu0 %v19698_v23  ;;  %v22520_v23 = vld [vmem:[#allocation16_spill] sm:$0xff] }
 0x881   :  { %15930 = vmatprep.subr.bf16.mxu0 %v22422_v39 }
 0x883   :  { %6326 = vmatmul.mubr.f32.gmra.mrb[18].mxu0 %v19716_v18 }
 0x884   :  { %15932 = vmatpush1.bf16.msra.mxu0 %v19604_v45  ;;  %6332 = vmatprep.mubr.f32.mxu0 %v19732_v35  ;;  %v22517_v35 = vld [vmem:[#allocation40_spill] sm:$0xff] }
 0x885   :  { %15933 = vmatprep.subr.bf16.mxu0 %v22422_v39 }
 0x887   :  { %6335 = vmatmul.mubr.f32.gmra.mrb[20].mxu0 %v19766_v36  ;;  %v22518_v36 = vld [vmem:[#allocation39_spill] sm:$0xff] }
 0x888   :  { %15935 = vmatpush1.bf16.msra.mxu0 %v19616_v8  ;;  %6341 = vmatprep.mubr.f32.mxu0 %v19781_v7 }
 0x889   :  { %15936 = vmatprep.subr.bf16.mxu0 %v22422_v39 }
 0x88b   :  { %6344 = vmatmul.mubr.f32.gmra.mrb[22].mxu0 %v19800_v26  ;;  %v22521_v26 = vld [vmem:[#allocation29_spill] sm:$0xff] }
 0x88c   :  { %15938 = vmatpush1.bf16.msra.mxu0 %v19640_v61  ;;  %6434 = vmatprep.mubr.f32.mxu0 %v22506_v51  ;;  %v20059_v51 = vpack.c.bf16 %v6827_v4, %v6824_v57 }
 0x88d   :  { %15939 = vmatprep.subr.bf16.mxu0 %v22422_v39 }
 0x88e   :  { %16013 = vmatprep.subr.bf16.mxu1 %v20059_v51 }
 0x88f   :  { %16015 = vmatpush3.bf16.msra.mxu1 %v20059_v51 }
 0x890   :  { %15941 = vmatpush1.bf16.msra.mxu0 %v19667_v43 }
 0x891   :  { %15942 = vmatprep.subr.bf16.mxu0 %v22422_v39 }
 0x894   :  { %15944 = vmatpush1.bf16.msra.mxu0 %v19693_v37 }
 0x895   :  { %15945 = vmatprep.subr.bf16.mxu0 %v22422_v39 }
 0x898   :  { %15947 = vmatpush1.bf16.msra.mxu0 %v19726_v20 }
 0x899   :  { %15948 = vmatprep.subr.bf16.mxu0 %v22422_v39 }
 0x89c   :  { %15950 = vmatpush1.bf16.msra.mxu0 %v19757_v46 }
 0x89d   :  { %15951 = vmatprep.subr.bf16.mxu0 %v22422_v39 }
 0x8a0   :  { %15953 = vmatpush1.bf16.msra.mxu0 %v19788_v25 }
 0x8a1   :  { %15954 = vmatprep.subr.bf16.mxu0 %v22422_v39 }
 0x8a3   :  { %6438 = vmatmul.mubr.f32.vlgmr.msra.gmra.mrb[16].mxu0 %v22507_v22  ;;  %v6930_v22 = vand.u32 4294901760, %v6929_v38 }
 0x8a4   :  { %15956 = vmatpush1.bf16.msra.mxu0 %v19562_v47  ;;  %6445 = vmatprep.mubr.f32.mxu0 %v22508_v34  ;;  %v22514_v47 = vand.u32 4294901760, %v19781_v7  ;;  %v6937_v34 = vand.u32 4294901760, %v6936_v32 }
 0x8a5   :  { %15957 = vmatprep.subr.bf16.mxu0 %v22422_v39 }
 0x8a7   :  { %6449 = vmatmul.mubr.f32.gmra.mrb[18].mxu0 %v22509_v10  ;;  %v6943_v10 = vsub.f32 %v6798_v63, %v6824_v57 }
 0x8a8   :  { %15959 = vmatpush1.bf16.msra.mxu0 %v22510_v58  ;;  %6456 = vmatprep.mubr.f32.mxu0 %v22511_v13  ;;  %v6950_v58 = vsub.f32 %v6799_v44, %v6827_v4  ;;  %v20066_v13 = vand.u32 4294901760, %v6815_v2 }
 0x8a9   :  { %15960 = vmatprep.subr.bf16.mxu0 %v22422_v39 }
 0x8aa   :  { %14444 = vmatprep.subr.mxu1 %v20066_v13 }
 0x8ab   :  { %6460 = vmatmul.mubr.f32.gmra.mrb[20].mxu0 %v22512_v42  ;;  %14445 = vmatpush3.msra.mxu1 %v20066_v13 }
 0x8ac   :  { %15962 = vmatpush1.bf16.msra.mxu0 %v22513_v9  ;;  %6467 = vmatprep.mubr.f32.mxu0 %v22514_v47  ;;  %v6931_v47 = vsub.f32 %v6929_v38, %v6930_v22 }
 0x8ad   :  { %15963 = vmatprep.subr.bf16.mxu0 %v22422_v39 }
 0x8af   :  { %6471 = vmatmul.mubr.f32.gmra.mrb[22].mxu0 %v22515_v60  ;;  %v6938_v60 = vsub.f32 %v6936_v32, %v6937_v34 }
 0x8b0   :  { %15965 = vmatpush1.bf16.msra.mxu0 %v22516_v16  ;;  %6595 = vmatprep.mubr.f32.mxu0 %v19583_v15 }
 0x8b1   :  { %15966 = vmatprep.subr.bf16.mxu0 %v22422_v39 }
 0x8b4   :  { %15968 = vmatpush1.bf16.msra.mxu0 %v22517_v35 }
 0x8b5   :  { %15969 = vmatprep.subr.bf16.mxu0 %v22422_v39 }
 0x8b8   :  { %15971 = vmatpush1.bf16.msra.mxu0 %v22518_v36  ;;  %v6944_v36 = vand.u32 4294901760, %v6943_v10 }
 0x8b9   :  { %15972 = vmatprep.subr.bf16.mxu0 %v22422_v39 }
 0x8bc   :  { %15974 = vmatpush1.bf16.msra.mxu0 %v22519_v21  ;;  %v6951_v21 = vand.u32 4294901760, %v6950_v58 }
 0x8bd   :  { %15975 = vmatprep.subr.bf16.mxu0 %v22422_v39 }
 0x8c0   :  { %15977 = vmatpush1.bf16.msra.mxu0 %v22520_v23  ;;  %v6932_v23 = vand.u32 4294901760, %v6931_v47 }
 0x8c1   :  { %15978 = vmatprep.subr.bf16.mxu0 %v22422_v39 }
 0x8c4   :  { %15980 = vmatpush1.bf16.msra.mxu0 %v22521_v26  ;;  %v6939_v26 = vand.u32 4294901760, %v6938_v60 }
 0x8c5   :  { %15981 = vmatprep.subr.bf16.mxu0 %v22422_v39 }
 0x8c7   :  { %6597 = vmatmul.mubr.f32.vlgmr.msra.gmra.mrb[16].mxu0 %v19645_v50 }
 0x8c8   :  { %15983 = vmatpush1.bf16.msra.mxu0 %v19550_v6  ;;  %6602 = vmatprep.mubr.f32.mxu0 %v19671_v40  ;;  %v5857_v6 = vpop.permute.xlu1 %5856 }
 0x8c9   :  { %15984 = vmatprep.subr.bf16.mxu0 %v22422_v39 }
 0x8cb   :  { %6604 = vmatmul.mubr.f32.gmra.mrb[18].mxu0 %v19686_v27 }
 0x8cc   :  { %15986 = vmatpush1.bf16.msra.mxu0 %v19604_v45  ;;  %6609 = vmatprep.mubr.f32.mxu0 %v19703_v11 }
 0x8cd   :  { %15987 = vmatprep.subr.bf16.mxu0 %v22422_v39 }
 0x8cf   :  { %6611 = vmatmul.mubr.f32.gmra.mrb[20].mxu0 %v19734_v24 }
 0x8d0   :  { %15989 = vmatpush1.bf16.msra.mxu0 %v19616_v8  ;;  %6616 = vmatprep.mubr.f32.mxu0 %v19744_v49 }
 0x8d1   :  { %15990 = vmatprep.subr.bf16.mxu0 %v22422_v39 }
 0x8d3   :  { %6618 = vmatmul.mubr.f32.gmra.mrb[22].mxu0 %v19768_v56 }
 0x8d4   :  { %15992 = vmatpush1.bf16.msra.mxu0 %v19640_v61  ;;  %6706 = vmatprep.mubr.f32.mxu0 %v19583_v15 }
 0x8d5   :  { %15993 = vmatprep.subr.bf16.mxu0 %v22422_v39 }
 0x8d8   :  { %15995 = vmatpush1.bf16.msra.mxu0 %v19667_v43 }
 0x8d9   :  { %15996 = vmatprep.subr.bf16.mxu0 %v22422_v39 }
 0x8dc   :  { %15998 = vmatpush1.bf16.msra.mxu0 %v19693_v37  ;;  %v5867_v37 = vpop.permute.xlu1 %5866 }
 0x8dd   :  { %15999 = vmatprep.subr.bf16.mxu0 %v22422_v39 }
 0x8e0   :  { %16001 = vmatpush1.bf16.msra.mxu0 %v19726_v20 }
 0x8e1   :  { %16002 = vmatprep.subr.bf16.mxu0 %v22422_v39 }
 0x8e4   :  { %16004 = vmatpush1.bf16.msra.mxu0 %v19757_v46  ;;  %v5862_v46 = vpop.permute.xlu0 %5861 }
 0x8e5   :  { %16005 = vmatprep.subr.bf16.mxu0 %v22422_v39 }
 0x8e8   :  { %16007 = vmatpush1.bf16.msra.mxu0 %v19788_v25 }
 0x8eb   :  { %6708 = vmatmul.mubr.f32.vlgmr.msra.gmra.mrb[16].mxu0 %v19645_v50 }
 0x8ec   :  { %6713 = vmatprep.mubr.f32.mxu0 %v19671_v40 }
 0x8ef   :  { %6715 = vmatmul.mubr.f32.gmra.mrb[18].mxu0 %v19686_v27 }
 0x8f0   :  { %6720 = vmatprep.mubr.f32.mxu0 %v19703_v11 }
 0x8f3   :  { %6722 = vmatmul.mubr.f32.gmra.mrb[20].mxu0 %v19734_v24 }
 0x8f4   :  { %6727 = vmatprep.mubr.f32.mxu0 %v19744_v49 }
 0x8f7   :  { %6729 = vmatmul.mubr.f32.gmra.mrb[22].mxu0 %v19768_v56  ;;  %v5872_v56 = vpop.permute.xlu0 %5871 }
 0x9be   :  { %v6709_v15 = vpop.f32.mrb[16].mxu0 }
 0x9bf   :  { %v16542_v45 = vadd.f32 %v6709_v15, %v5857_v6  ;;  %v6711_v8 = vpop.f32.mrb[17].mxu0  ;;  %v6945_v6 = vsub.f32 %v6943_v10, %v6944_v36  ;;  %v6952_v15 = vsub.f32 %v6950_v58, %v6951_v21 }
 0x9c0   :  { %v20073_v8 = vpack.c.bf16 %v6936_v32, %v6929_v38 }
 0x9c1   :  { %v6734_v61 = vmax.f32 %v16542_v45, 0.0 }
 0x9c2   :  { %v6716_v43 = vpop.f32.mrb[18].mxu0 }
 0x9c3   :  { %6738 = vst.msk [vmem:[#allocation8] sm:$0xff] %vm2070_vm6, %v6734_v61  ;;  %v16543_v50 = vadd.f32 %v6716_v43, %v5862_v46  ;;  %v6718_v40 = vpop.f32.mrb[19].mxu0  ;;  %v20076_v46 = vpack.c.bf16 %v6939_v26, %v6932_v23  ;;  %v6946_v43 = vand.u32 4294901760, %v6945_v6 }
 0x9c5   :  { %v6735_v27 = vmax.f32 %v16543_v50, 0.0  ;;  %v6953_v50 = vand.u32 4294901760, %v6952_v15  ;;  %16017 = vmatprep.subr.bf16.mxu1 %v20076_v46 }
 0x9c6   :  { %v6723_v11 = vpop.f32.mrb[20].mxu0 }
 0x9c7   :  { %6739 = vst.msk [vmem:[#allocation8 + $0x8] sm:$0xff] %vm2070_vm6, %v6735_v27  ;;  %v16544_v24 = vadd.f32 %v6723_v11, %v5867_v37  ;;  %v6725_v7 = vpop.f32.mrb[21].mxu0  ;;  %v20079_v40 = vpack.c.bf16 %v6953_v50, %v6946_v43  ;;  %v20082_v27 = vpack.c.bf16 %v6950_v58, %v6943_v10  ;;  %v20085_v37 = vpack.c.bf16 %v6937_v34, %v6930_v22 }
 0x9c8   :  { %v20087_v11 = vpack.c.bf16 %v6951_v21, %v6944_v36  ;;  %v7513_v36 = vld [vmem:[%s21985_s13 + $0x20] sm:$0x1]  ;;  %s17027_s13 = smov 4  }
 0x9c9   :  { %v6736_v18 = vmax.f32 %v16544_v24, 0.0  ;;  %v7535_v21 = vsel %vm3819_vm3, %v7513_v36, 0 }
 0x9ca   :  { %v6730_v5 = vpop.f32.mrb[22].mxu0  ;;  %v6752_v20 = vld [vmem:[#allocation8] sm:$0xff]  ;;  %v20160_v23 = vand.u32 4294901760, %v7535_v21 }
 0x9cb   :  { %6740 = vst.msk [vmem:[#allocation8 + $0x10] sm:$0xff] %vm2070_vm6, %v6736_v18  ;;  %v16545_v55 = vadd.f32 %v6730_v5, %v5872_v56  ;;  %v6732_v25 = vpop.f32.mrb[23].mxu0  ;;  %6760 = vrot.lane.b32.xlu1 %v6752_v20, %s17009_s2 }
 0x9cd   :  { %v6737_v49 = vmax.f32 %v16545_v55, 0.0 }
 0x9ce   :  { %v6753_v59 = vld [vmem:[#allocation8 + $0x8] sm:$0xff] }
 0x9cf   :  { %6741 = vst.msk [vmem:[#allocation8 + $0x18] sm:$0xff] %vm2070_vm6, %v6737_v49  ;;  %7473 = vrot.lane.b32.xlu1 %v6752_v20, %s17009_s2  ;;  %6762 = vrot.lane.b32.xlu0 %v6753_v59, %s17009_s2  ;;  %vm8198_vm6 = vcmask 146432  }
 0x9d2   :  { %v6754_v14 = vld [vmem:[#allocation8 + $0x10] sm:$0xff] }
 0x9d3   :  { %6764 = vrot.lane.b32.xlu1 %v6754_v14, %s17009_s2  ;;  %7475 = vrot.lane.b32.xlu0 %v6753_v59, %s17009_s2 }
 0x9d6   :  { %v6755_v28 = vld [vmem:[#allocation8 + $0x18] sm:$0xff] }
 0x9d7   :  { %7477 = vrot.lane.b32.xlu1 %v6754_v14, %s17009_s2  ;;  %6766 = vrot.lane.b32.xlu0 %v6755_v28, %s17009_s2 }
 0x9db   :  { %7479 = vrot.lane.b32.xlu0 %v6755_v28, %s17009_s2 }
 0xa3d   :  { %v6761_v31 = vpop.permute.xlu1 %6760 }
 0xa3e   :  { %v20025_v54 = vmax.f32 %v6752_v20, %v6761_v31 }
 0xa40   :  { %6780 = vrot.lane.b32.xlu1 %v20025_v54, %s17022_s10 }
 0xa41   :  { %v7474_v29 = vpop.permute.xlu1 %7473  ;;  %v6763_v41 = vpop.permute.xlu0 %6762 }
 0xa42   :  { %v20029_v19 = vmax.f32 %v6752_v20, %v7474_v29  ;;  %v20031_v3 = vmax.f32 %v6753_v59, %v6763_v41  ;;  %v6957_v29 = vsub.f32 %v6815_v2, %v20066_v13 }
 0xa44   :  { %7493 = vrot.lane.b32.xlu1 %v20029_v19, %s17022_s10  ;;  %6782 = vrot.lane.b32.xlu0 %v20031_v3, %s17022_s10  ;;  %v6958_v57 = vand.u32 4294901760, %v6957_v29 }
 0xa45   :  { %v6765_v52 = vpop.permute.xlu1 %6764  ;;  %v7476_v17 = vpop.permute.xlu0 %7475 }
 0xa46   :  { %v20055_v62 = vmax.f32 %v6754_v14, %v6765_v52  ;;  %v20057_v1 = vmax.f32 %v6753_v59, %v7476_v17  ;;  %v6959_v34 = vsub.f32 %v6957_v29, %v6958_v57 }
 0xa48   :  { %6784 = vrot.lane.b32.xlu1 %v20055_v62, %s17022_s10  ;;  %7495 = vrot.lane.b32.xlu0 %v20057_v1, %s17022_s10  ;;  %v6960_v60 = vand.u32 4294901760, %v6959_v34  ;;  %v13710_v34 = vld [vmem:[%s21983_s11 + $0x3] ss:$0 sm:$0xff] }
 0xa49   :  { %v7478_v42 = vpop.permute.xlu1 %7477  ;;  %v6767_v9 = vpop.permute.xlu0 %6766 }
 0xa4a   :  { %v7487_v16 = vmax.f32 %v6754_v14, %v7478_v42  ;;  %v6775_v35 = vmax.f32 %v6755_v28, %v6767_v9 }
 0xa4c   :  { %7497 = vrot.lane.b32.xlu1 %v7487_v16, %s17022_s10  ;;  %6786 = vrot.lane.b32.xlu0 %v6775_v35, %s17022_s10 }
 0xa4d   :  { %v7480_v45 = vpop.permute.xlu0 %7479 }
 0xa4e   :  { %v7488_v61 = vmax.f32 %v6755_v28, %v7480_v45 }
 0xa50   :  { %7499 = vrot.lane.b32.xlu0 %v7488_v61, %s17022_s10 }
 0xab2   :  { %v6781_v24 = vpop.permute.xlu1 %6780 }
 0xab3   :  { %v6792_v7 = vmax.f32 %v20025_v54, %v6781_v24  ;;  %v7677_v24 = vsub.f32 %v7535_v21, %v20160_v23 }
 0xab5   :  { %v6803_v18 = vsel %vm6801_vm15, %v6792_v7, 0 }
 0xab6   :  { %v20091_v56 = vand.u32 4294901760, %v6803_v18  ;;  %v7494_v5 = vpop.permute.xlu1 %7493  ;;  %v6783_v20 = vpop.permute.xlu0 %6782 }
 0xab7   :  { %v7505_v55 = vmax.f32 %v20029_v19, %v7494_v5  ;;  %v6793_v25 = vmax.f32 %v20031_v3, %v6783_v20 }
 0xab8   :  { %v20096_v49 = vsub.f32 %v6803_v18, %v20091_v56 }
 0xab9   :  { %v6806_v59 = vsel %vm6801_vm15, %v6793_v25, 0  ;;  %7518 = vrot.lane.b32.xlu1 %v7505_v55, %s17026_s4 }
 0xaba   :  { %v20100_v14 = vand.u32 4294901760, %v6806_v59  ;;  %v6785_v28 = vpop.permute.xlu1 %6784  ;;  %v7496_v31 = vpop.permute.xlu0 %7495  ;;  %v6889_v54 = vand.u32 4294901760, %v20096_v49 }
 0xabb   :  { %v6794_v41 = vmax.f32 %v20055_v62, %v6785_v28  ;;  %v7506_v19 = vmax.f32 %v20057_v1, %v7496_v31 }
 0xabc   :  { %v6898_v3 = vsub.f32 %v6806_v59, %v20100_v14  ;;  %v6890_v53 = vsub.f32 %v20096_v49, %v6889_v54 }
 0xabd   :  { %v6809_v30 = vsel %vm6801_vm15, %v6794_v41, 0  ;;  %7520 = vrot.lane.b32.xlu0 %v7506_v19, %s17026_s4 }
 0xabe   :  { %v6899_v63 = vand.u32 4294901760, %v6898_v3  ;;  %v20110_v0 = vand.u32 4294901760, %v6809_v30  ;;  %v7498_v12 = vpop.permute.xlu1 %7497  ;;  %v6787_v48 = vpop.permute.xlu0 %6786  ;;  %v6891_v44 = vand.u32 4294901760, %v6890_v53 }
 0xabf   :  { %v7507_v4 = vmax.f32 %v7487_v16, %v7498_v12  ;;  %v6795_v52 = vmax.f32 %v6775_v35, %v6787_v48 }
 0xac0   :  { %v6900_v17 = vsub.f32 %v6898_v3, %v6899_v63  ;;  %v6908_v38 = vsub.f32 %v6809_v30, %v20110_v0  ;;  %14446 = vmatprep.mubr.f32.mxu1 %v6891_v44 }
 0xac1   :  { %v6812_v32 = vsel %vm6801_vm15, %v6795_v52, 0  ;;  %7522 = vrot.lane.b32.xlu1 %v7507_v4, %s17026_s4 }
 0xac2   :  { %v6901_v2 = vand.u32 4294901760, %v6900_v17  ;;  %v20115_v62 = vand.u32 4294901760, %v6812_v32  ;;  %v7500_v1 = vpop.permute.xlu0 %7499  ;;  %v6909_v22 = vand.u32 4294901760, %v6908_v38 }
 0xac3   :  { %v7508_v10 = vmax.f32 %v7488_v61, %v7500_v1  ;;  %v13714_v1 = vld [vmem:[%s21983_s11 + $0x7] ss:$0 sm:$0xff] }
 0xac4   :  { %v6918_v58 = vsub.f32 %v6812_v32, %v20115_v62  ;;  %14447 = vmatmul.mubr.f32.vlgmr.msra.gmra.mrb[16].mxu1 %v6901_v2  ;;  %v6910_v42 = vsub.f32 %v6908_v38, %v6909_v22  ;;  %v13711_v32 = vld [vmem:[%s21983_s11 + $0x4] ss:$0 sm:$0xff]  ;;  %v13713_v2 = vld [vmem:[%s21983_s11 + $0x6] ss:$0 sm:$0xff] }
 0xac5   :  { %7524 = vrot.lane.b32.xlu0 %v7508_v10, %s17026_s4  ;;  %16019 = vmatpush3.bf16.msra.mxu1 %v20076_v46  ;;  %s17030_s4 = smov 6  }
 0xac6   :  { %v6911_v9 = vand.u32 4294901760, %v6910_v42  ;;  %16021 = vmatprep.subr.bf16.mxu1 %v20079_v40  ;;  %v6919_v47 = vand.u32 4294901760, %v6918_v58 }
 0xac8   :  { %14449 = vmatprep.mubr.f32.mxu1 %v6911_v9  ;;  %v6920_v16 = vsub.f32 %v6918_v58, %v6919_v47 }
 0xac9   :  { %16023 = vmatpush3.bf16.msra.mxu1 %v20079_v40 }
 0xaca   :  { %v6921_v35 = vand.u32 4294901760, %v6920_v16  ;;  %14460 = vmatprep.subr.mxu1 %v6960_v60 }
 0xacc   :  { %14450 = vmatmul.mubr.f32.gmra.mrb[18].mxu1 %v6921_v35 }
 0xacd   :  { %14462 = vmatprep.mubr.f32.mxu1 %v20091_v56  ;;  %14461 = vmatpush3.msra.mxu1 %v6960_v60 }
 0xace   :  { %16025 = vmatprep.subr.bf16.mxu1 %v20073_v8 }
 0xad0   :  { %14463 = vmatmul.mubr.f32.vlgmr.msra.gmra.mrb[16].mxu1 %v20100_v14 }
 0xad1   :  { %16027 = vmatpush3.bf16.msra.mxu1 %v20073_v8  ;;  %14465 = vmatprep.mubr.f32.mxu1 %v20110_v0 }
 0xad2   :  { %16029 = vmatprep.subr.bf16.mxu1 %v20082_v27 }
 0xad4   :  { %14466 = vmatmul.mubr.f32.gmra.mrb[18].mxu1 %v20115_v62 }
 0xad5   :  { %16031 = vmatpush3.bf16.msra.mxu1 %v20082_v27  ;;  %14478 = vmatprep.mubr.f32.mxu1 %v20096_v49  ;;  %v20187_v49 = vand.u32 4294901760, %v7677_v24 }
 0xad6   :  { %14476 = vmatprep.subr.mxu1 %v6957_v29 }
 0xad7   :  { %v7679_v19 = vsub.f32 %v7677_v24, %v20187_v49 }
 0xad9   :  { %14477 = vmatpush3.msra.mxu1 %v6957_v29 }
 0xada   :  { %14479 = vmatmul.mubr.f32.vlgmr.msra.gmra.mrb[16].mxu1 %v6898_v3  ;;  %16033 = vmatprep.subr.bf16.mxu1 %v20052_v33 }
 0xadb   :  { %14481 = vmatprep.mubr.f32.mxu1 %v6908_v38  ;;  %16035 = vmatpush3.bf16.msra.mxu1 %v20052_v33  ;;  %v13712_v38 = vld [vmem:[%s21983_s11 + $0x5] ss:$0 sm:$0xff] }
 0xadc   :  { %16037 = vmatprep.subr.bf16.mxu1 %v20059_v51 }
 0xade   :  { %14482 = vmatmul.mubr.f32.gmra.mrb[18].mxu1 %v6918_v58 }
 0xadf   :  { %16039 = vmatpush3.bf16.msra.mxu1 %v20059_v51  ;;  %14494 = vmatprep.mubr.f32.mxu1 %v6889_v54 }
 0xae0   :  { %14492 = vmatprep.subr.mxu1 %v20066_v13 }
 0xae3   :  { %14493 = vmatpush3.msra.mxu1 %v20066_v13 }
 0xae4   :  { %14495 = vmatmul.mubr.f32.vlgmr.msra.gmra.mrb[16].mxu1 %v6899_v63  ;;  %16041 = vmatprep.subr.bf16.mxu1 %v20085_v37 }
 0xae5   :  { %14497 = vmatprep.mubr.f32.mxu1 %v6909_v22  ;;  %16043 = vmatpush3.bf16.msra.mxu1 %v20085_v37  ;;  %v13709_v22 = vld [vmem:[%s21983_s11 + $0x2] ss:$0 sm:$0xff] }
 0xae6   :  { %16045 = vmatprep.subr.bf16.mxu1 %v20087_v11 }
 0xae8   :  { %14498 = vmatmul.mubr.f32.gmra.mrb[18].mxu1 %v6919_v47  ;;  %v13707_v47 = vld [vmem:[%s21983_s11] ss:$0 sm:$0xff] }
 0xae9   :  { %16047 = vmatpush3.bf16.msra.mxu1 %v20087_v11  ;;  %14510 = vmatprep.mubr.f32.mxu1 %v20091_v56 }
 0xaea   :  { %14508 = vmatprep.subr.mxu1 %v6958_v57 }
 0xaed   :  { %14509 = vmatpush3.msra.mxu1 %v6958_v57 }
 0xaee   :  { %14511 = vmatmul.mubr.f32.vlgmr.msra.gmra.mrb[16].mxu1 %v20100_v14  ;;  %16049 = vmatprep.subr.bf16.mxu1 %v20052_v33 }
 0xaef   :  { %14513 = vmatprep.mubr.f32.mxu1 %v20110_v0  ;;  %16051 = vmatpush3.bf16.msra.mxu1 %v20052_v33 }
 0xaf0   :  { %16053 = vmatprep.subr.bf16.mxu1 %v20059_v51 }
 0xaf2   :  { %14514 = vmatmul.mubr.f32.gmra.mrb[18].mxu1 %v20115_v62 }
 0xaf3   :  { %16055 = vmatpush3.bf16.msra.mxu1 %v20059_v51  ;;  %14526 = vmatprep.mubr.f32.mxu1 %v20091_v56 }
 0xaf4   :  { %14524 = vmatprep.subr.mxu1 %v20066_v13 }
 0xaf7   :  { %14525 = vmatpush3.msra.mxu1 %v20066_v13 }
 0xaf8   :  { %14527 = vmatmul.mubr.f32.vlgmr.msra.gmra.mrb[16].mxu1 %v20100_v14  ;;  %16057 = vmatprep.subr.bf16.mxu1 %v20052_v33 }
 0xaf9   :  { %14529 = vmatprep.mubr.f32.mxu1 %v20110_v0  ;;  %16059 = vmatpush3.bf16.msra.mxu1 %v20052_v33  ;;  %v7680_v0 = vand.u32 4294901760, %v7679_v19 }
 0xafa   :  { %16061 = vmatprep.subr.bf16.mxu1 %v20059_v51 }
 0xafc   :  { %14530 = vmatmul.mubr.f32.gmra.mrb[18].mxu1 %v20115_v62  ;;  %v13708_v62 = vld [vmem:[%s21983_s11 + $0x1] ss:$0 sm:$0xff] }
 0xafd   :  { %16063 = vmatpush3.bf16.msra.mxu1 %v20059_v51 }
 0xafe   :  { %14540 = vmatprep.subr.mxu1 %v20160_v23 }
 0xb01   :  { %14541 = vmatpush3.msra.mxu1 %v20160_v23 }
 0xb02   :  { %16065 = vmatprep.subr.bf16.mxu1 %v20076_v46 }
 0xb2b   :  { %v7519_v13 = vpop.permute.xlu1 %7518 }
 0xb2c   :  { %v7526_v26 = vsel %vm6801_vm15, %v7519_v13, 0 }
 0xb2d   :  { %v20169_v6 = vand.u32 4294901760, %v7526_v26 }
 0xb2f   :  { %v20172_v15 = vsub.f32 %v7526_v26, %v20169_v6  ;;  %v7521_v45 = vpop.permute.xlu0 %7520 }
 0xb30   :  { %v7528_v61 = vsel %vm6801_vm15, %v7521_v45, 0 }
 0xb31   :  { %v7609_v43 = vand.u32 4294901760, %v20172_v15  ;;  %v20176_v50 = vand.u32 4294901760, %v7528_v61 }
 0xb33   :  { %v20180_v7 = vsub.f32 %v7528_v61, %v20176_v50  ;;  %v7523_v18 = vpop.permute.xlu1 %7522  ;;  %v7610_v56 = vsub.f32 %v20172_v15, %v7609_v43 }
 0xb34   :  { %v7530_v5 = vsel %vm6801_vm15, %v7523_v18, 0 }
 0xb35   :  { %v7619_v20 = vand.u32 4294901760, %v20180_v7  ;;  %v20185_v55 = vand.u32 4294901760, %v7530_v5  ;;  %v7611_v25 = vand.u32 4294901760, %v7610_v56 }
 0xb37   :  { %v7620_v59 = vsub.f32 %v20180_v7, %v7619_v20  ;;  %v7628_v14 = vsub.f32 %v7530_v5, %v20185_v55  ;;  %14542 = vmatprep.mubr.f32.mxu1 %v7611_v25  ;;  %v7525_v28 = vpop.permute.xlu0 %7524 }
 0xb38   :  { %v7532_v31 = vsel %vm6801_vm15, %v7525_v28, 0 }
 0xb39   :  { %v7621_v54 = vand.u32 4294901760, %v7620_v59  ;;  %v7629_v29 = vand.u32 4294901760, %v7628_v14  ;;  %v20192_v41 = vand.u32 4294901760, %v7532_v31 }
 0xb3b   :  { %v7638_v3 = vsub.f32 %v7532_v31, %v20192_v41  ;;  %14543 = vmatmul.mubr.f32.vlgmr.msra.gmra.mrb[20].mxu1 %v7621_v54  ;;  %v7630_v53 = vsub.f32 %v7628_v14, %v7629_v29 }
 0xb3c   :  { %16067 = vmatpush3.bf16.msra.mxu1 %v20076_v46 }
 0xb3d   :  { %v7639_v30 = vand.u32 4294901760, %v7638_v3  ;;  %v7631_v63 = vand.u32 4294901760, %v7630_v53  ;;  %16069 = vmatprep.subr.bf16.mxu1 %v20079_v40 }
 0xb3f   :  { %14545 = vmatprep.mubr.f32.mxu1 %v7631_v63  ;;  %v7640_v12 = vsub.f32 %v7638_v3, %v7639_v30 }
 0xb40   :  { %16071 = vmatpush3.bf16.msra.mxu1 %v20079_v40 }
 0xb41   :  { %v7641_v48 = vand.u32 4294901760, %v7640_v12  ;;  %14556 = vmatprep.subr.mxu1 %v7680_v0 }
 0xb43   :  { %14546 = vmatmul.mubr.f32.gmra.mrb[22].mxu1 %v7641_v48 }
 0xb44   :  { %14558 = vmatprep.mubr.f32.mxu1 %v20169_v6  ;;  %14557 = vmatpush3.msra.mxu1 %v7680_v0 }
 0xb45   :  { %16073 = vmatprep.subr.bf16.mxu1 %v20073_v8 }
 0xb47   :  { %14559 = vmatmul.mubr.f32.vlgmr.msra.gmra.mrb[20].mxu1 %v20176_v50 }
 0xb48   :  { %16075 = vmatpush3.bf16.msra.mxu1 %v20073_v8  ;;  %14561 = vmatprep.mubr.f32.mxu1 %v20185_v55  ;;  %v22522_v8 = vmov 0.0  }
 0xb49   :  { %16077 = vmatprep.subr.bf16.mxu1 %v20082_v27  ;;  %6744 = vst.msk [vmem:[#allocation9 + $0x8] sm:$0xff] %vm6742_vm0, %v22522_v8  ;;  %6743 = vst.msk [vmem:[#allocation9] sm:$0xff] %vm6742_vm0, %v22522_v8 }
 0xb4a   :  { %6745 = vst.msk [vmem:[#allocation9 + $0x10] sm:$0xff] %vm6742_vm0, %v22522_v8  ;;  %6746 = vst.msk [vmem:[#allocation9 + $0x18] sm:$0xff] %vm6742_vm0, %v22522_v8 }
 0xb4b   :  { %14562 = vmatmul.mubr.f32.gmra.mrb[22].mxu1 %v20192_v41  ;;  %6749 = vst.msk [vmem:[#allocation9 + $0x8] sm:$0xff] %vm6747_vm1, %v22522_v8  ;;  %6748 = vst.msk [vmem:[#allocation9] sm:$0xff] %vm6747_vm1, %v22522_v8 }
 0xb4c   :  { %16079 = vmatpush3.bf16.msra.mxu1 %v20082_v27  ;;  %14574 = vmatprep.mubr.f32.mxu1 %v20172_v15  ;;  %6750 = vst.msk [vmem:[#allocation9 + $0x10] sm:$0xff] %vm6747_vm1, %v22522_v8  ;;  %6751 = vst.msk [vmem:[#allocation9 + $0x18] sm:$0xff] %vm6747_vm1, %v22522_v8 }
 0xb4d   :  { %14572 = vmatprep.subr.mxu1 %v7677_v24 }
 0xb50   :  { %14573 = vmatpush3.msra.mxu1 %v7677_v24 }
 0xb51   :  { %14575 = vmatmul.mubr.f32.vlgmr.msra.gmra.mrb[20].mxu1 %v20180_v7  ;;  %16081 = vmatprep.subr.bf16.mxu1 %v20052_v33 }
 0xb52   :  { %14577 = vmatprep.mubr.f32.mxu1 %v7628_v14  ;;  %16083 = vmatpush3.bf16.msra.mxu1 %v20052_v33 }
 0xb53   :  { %16085 = vmatprep.subr.bf16.mxu1 %v20059_v51 }
 0xb55   :  { %14578 = vmatmul.mubr.f32.gmra.mrb[22].mxu1 %v7638_v3 }
 0xb56   :  { %16087 = vmatpush3.bf16.msra.mxu1 %v20059_v51  ;;  %14590 = vmatprep.mubr.f32.mxu1 %v7609_v43 }
 0xb57   :  { %14588 = vmatprep.subr.mxu1 %v20160_v23 }
 0xb5a   :  { %14589 = vmatpush3.msra.mxu1 %v20160_v23 }
 0xb5b   :  { %14591 = vmatmul.mubr.f32.vlgmr.msra.gmra.mrb[20].mxu1 %v7619_v20  ;;  %16089 = vmatprep.subr.bf16.mxu1 %v20085_v37 }
 0xb5c   :  { %14593 = vmatprep.mubr.f32.mxu1 %v7629_v29  ;;  %16091 = vmatpush3.bf16.msra.mxu1 %v20085_v37 }
 0xb5d   :  { %16093 = vmatprep.subr.bf16.mxu1 %v20087_v11 }
 0xb5f   :  { %14594 = vmatmul.mubr.f32.gmra.mrb[22].mxu1 %v7639_v30 }
 0xb60   :  { %16095 = vmatpush3.bf16.msra.mxu1 %v20087_v11  ;;  %14606 = vmatprep.mubr.f32.mxu1 %v20169_v6 }
 0xb61   :  { %14604 = vmatprep.subr.mxu1 %v20187_v49 }
 0xb64   :  { %14605 = vmatpush3.msra.mxu1 %v20187_v49 }
 0xb65   :  { %14607 = vmatmul.mubr.f32.vlgmr.msra.gmra.mrb[20].mxu1 %v20176_v50  ;;  %16097 = vmatprep.subr.bf16.mxu1 %v20052_v33 }
 0xb66   :  { %14609 = vmatprep.mubr.f32.mxu1 %v20185_v55  ;;  %16099 = vmatpush3.bf16.msra.mxu1 %v20052_v33 }
 0xb67   :  { %16101 = vmatprep.subr.bf16.mxu1 %v20059_v51 }
 0xb69   :  { %14610 = vmatmul.mubr.f32.gmra.mrb[22].mxu1 %v20192_v41 }
 0xb6a   :  { %16103 = vmatpush3.bf16.msra.mxu1 %v20059_v51  ;;  %14622 = vmatprep.mubr.f32.mxu1 %v20169_v6 }
 0xb6b   :  { %14620 = vmatprep.subr.mxu1 %v20160_v23 }
 0xb6e   :  { %14621 = vmatpush3.msra.mxu1 %v20160_v23 }
 0xb6f   :  { %14623 = vmatmul.mubr.f32.vlgmr.msra.gmra.mrb[20].mxu1 %v20176_v50 }
 0xb70   :  { %14625 = vmatprep.mubr.f32.mxu1 %v20185_v55 }
 0xb73   :  { %14626 = vmatmul.mubr.f32.gmra.mrb[22].mxu1 %v20192_v41 }
 0xbcb   :  { %v14528_v46 = vpop.f32.mrb[16].mxu1 }
 0xbcc   :  { %v7422_v33 = vpop.f32.mrb[17].mxu1  ;;  %7450 = vrot.lane.b32.xlu0 %v14528_v46, %s17027_s13 }
 0xbcd   :  { %7448 = vrot.lane.b32.xlu1 %v7422_v33, %s17027_s13 }
 0xbcf   :  { %v14531_v40 = vpop.f32.mrb[18].mxu1 }
 0xbd0   :  { %v7434_v27 = vpop.f32.mrb[19].mxu1  ;;  %7454 = vrot.lane.b32.xlu0 %v14531_v40, %s17027_s13 }
 0xbd1   :  { %7452 = vrot.lane.b32.xlu1 %v7434_v27, %s17027_s13 }
 0xc3e   :  { %v7451_v51 = vpop.permute.xlu0 %7450 }
 0xc3f   :  { %7462 = vst.msk [vmem:[#allocation9 + $0x8] sm:$0xff] %vm7460_vm4, %v7451_v51  ;;  %v7449_v37 = vpop.permute.xlu1 %7448 }
 0xc40   :  { %7461 = vst.msk [vmem:[#allocation9] sm:$0xff] %vm7460_vm4, %v7449_v37 }
 0xc42   :  { %v14624_v11 = vpop.f32.mrb[20].mxu1  ;;  %v7455_v44 = vpop.permute.xlu0 %7454 }
 0xc43   :  { %7464 = vst.msk [vmem:[#allocation9 + $0x18] sm:$0xff] %vm7460_vm4, %v7455_v44  ;;  %v7453_v57 = vpop.permute.xlu1 %7452  ;;  %8170 = vrot.lane.b32.xlu0 %v14624_v11, %s17028_s28  ;;  %v8142_v4 = vpop.f32.mrb[21].mxu1 }
 0xc44   :  { %7463 = vst.msk [vmem:[#allocation9 + $0x10] sm:$0xff] %vm7460_vm4, %v7453_v57  ;;  %8168 = vrot.lane.b32.xlu1 %v8142_v4, %s17028_s28 }
 0xc46   :  { %v14627_v52 = vpop.f32.mrb[22].mxu1 }
 0xc47   :  { %8174 = vrot.lane.b32.xlu0 %v14627_v52, %s17028_s28  ;;  %v8154_v17 = vpop.f32.mrb[23].mxu1 }
 0xc48   :  { %8172 = vrot.lane.b32.xlu1 %v8154_v17, %s17028_s28  ;;  %s22531_s28 = sld [smem:[#allocation79_spill]] }
 0xc4b   :  { %8361 = vrot.lane.b32.xlu0 %v13712_v38, %s17029_s29  ;;  %s17031_s29 = smov 3  }
 0xc4c   :  { %8324 = vrot.lane.b32.xlu1 %v13711_v32, %s17027_s13  ;;  %s22524_s13 = smov 2  }
 0xc4f   :  { %8398 = vrot.lane.b32.xlu0 %v13713_v2, %s17030_s4  ;;  %s17035_s4 = smov 125  }
 0xc50   :  { %8213 = vrot.lane.b32.xlu1 %v13708_v62, %s22523_s6 }
 0xc53   :  { %8435 = vrot.lane.b32.xlu0 %v13714_v1, %s17019_s7  ;;  %s17032_s7 = smov 124  }
 0xc54   :  { %8250 = vrot.lane.b32.xlu1 %v13709_v22, %s22524_s13 }
 0xc58   :  { %8287 = vrot.lane.b32.xlu1 %v13710_v34, %s17031_s29 }
 0xcb5   :  { %v8171_v10 = vpop.permute.xlu0 %8170 }
 0xcb6   :  { %8182 = vst.msk [vmem:[#allocation9 + $0x8] sm:$0xff] %vm8180_vm5, %v8171_v10  ;;  %v8169_v58 = vpop.permute.xlu1 %8168 }
 0xcb7   :  { %8181 = vst.msk [vmem:[#allocation9] sm:$0xff] %vm8180_vm5, %v8169_v58 }
 0xcb9   :  { %v8175_v42 = vpop.permute.xlu0 %8174 }
 0xcba   :  { %8184 = vst.msk [vmem:[#allocation9 + $0x18] sm:$0xff] %vm8180_vm5, %v8175_v42  ;;  %v8173_v9 = vpop.permute.xlu1 %8172 }
 0xcbb   :  { %8183 = vst.msk [vmem:[#allocation9 + $0x10] sm:$0xff] %vm8180_vm5, %v8173_v9 }
 0xcbd   :  { %v20270_v60 = vld [vmem:[#allocation9 + $0x8] sm:$0xff]  ;;  %v20279_v26 = vpop.permute.xlu0 %8361 }
 0xcbe   :  { %v8195_v16 = vmul.f32 %v13707_v47, %v20270_v60  ;;  %v20273_v35 = vld [vmem:[#allocation9] sm:$0xff]  ;;  %v8325_v36 = vpop.permute.xlu1 %8324  ;;  %v8365_v50 = vmul.f32 %v20279_v26, %v20270_v60 }
 0xcbf   :  { %v8194_v21 = vmul.f32 %v13707_v47, %v20273_v35  ;;  %v8327_v23 = vmul.f32 %v8325_v36, %v20273_v35  ;;  %v8328_v13 = vmul.f32 %v8325_v36, %v20270_v60  ;;  %v8364_v43 = vmul.f32 %v20279_v26, %v20273_v35 }
 0xcc0   :  { %8200 = vst.msk [vmem:[#allocation10 + $0x8] sm:$0xff] %vm8198_vm6, %v8195_v16  ;;  %v8500_v16 = vld [vmem:[%s22531_s28 + $0x8] sm:$0xff] }
 0xcc1   :  { %8199 = vst.msk [vmem:[#allocation10] sm:$0xff] %vm8198_vm6, %v8194_v21  ;;  %v20282_v6 = vld [vmem:[#allocation9 + $0x18] sm:$0xff]  ;;  %8335 = vrot.lane.b32.xlu0 %v8327_v23, %s17032_s7  ;;  %8337 = vrot.lane.b32.xlu1 %v8328_v13, %s17032_s7  ;;  %v8399_v5 = vpop.permute.xlu0 %8398 }
 0xcc2   :  { %v8197_v15 = vmul.f32 %v13707_v47, %v20282_v6  ;;  %v20287_v45 = vld [vmem:[#allocation9 + $0x10] sm:$0xff]  ;;  %v8214_v24 = vpop.permute.xlu1 %8213  ;;  %v8401_v59 = vmul.f32 %v8399_v5, %v20273_v35  ;;  %v8402_v14 = vmul.f32 %v8399_v5, %v20270_v60  ;;  %v8330_v44 = vmul.f32 %v8325_v36, %v20282_v6 }
 0xcc3   :  { %v8196_v61 = vmul.f32 %v13707_v47, %v20287_v45  ;;  %v8216_v7 = vmul.f32 %v8214_v24, %v20273_v35  ;;  %v8217_v18 = vmul.f32 %v8214_v24, %v20270_v60  ;;  %v8329_v11 = vmul.f32 %v8325_v36, %v20287_v45  ;;  %v13715_v47 = vld [vmem:[%s21983_s11 + $0x8] ss:$0 sm:$0xff] }
 0xcc4   :  { %8202 = vst.msk [vmem:[#allocation10 + $0x18] sm:$0xff] %vm8198_vm6, %v8197_v15  ;;  %v8367_v4 = vmul.f32 %v20279_v26, %v20282_v6  ;;  %v8366_v17 = vmul.f32 %v20279_v26, %v20287_v45  ;;  %v8219_v38 = vmul.f32 %v8214_v24, %v20282_v6  ;;  %v8404_v32 = vmul.f32 %v8399_v5, %v20282_v6 }
 0xcc5   :  { %8201 = vst.msk [vmem:[#allocation10 + $0x10] sm:$0xff] %vm8198_vm6, %v8196_v61  ;;  %8374 = vrot.lane.b32.xlu1 %v8365_v50, %s17033_s27  ;;  %8372 = vrot.lane.b32.xlu0 %v8364_v43, %s17033_s27  ;;  %v8436_v48 = vpop.permute.xlu0 %8435  ;;  %v8218_v2 = vmul.f32 %v8214_v24, %v20287_v45  ;;  %v8403_v62 = vmul.f32 %v8399_v5, %v20287_v45  ;;  %v20398_v36 = vand.u32 4294901760, %v8500_v16 }
 0xcc6   :  { %v8251_v31 = vpop.permute.xlu1 %8250  ;;  %v8438_v27 = vmul.f32 %v8436_v48, %v20273_v35  ;;  %v8439_v51 = vmul.f32 %v8436_v48, %v20270_v60  ;;  %v8440_v10 = vmul.f32 %v8436_v48, %v20287_v45  ;;  %v8441_v58 = vmul.f32 %v8436_v48, %v20282_v6 }
 0xcc7   :  { %v20300_v56 = vld [vmem:[#allocation10 + $0x8] sm:$0xff]  ;;  %v8253_v63 = vmul.f32 %v8251_v31, %v20273_v35  ;;  %v8254_v0 = vmul.f32 %v8251_v31, %v20270_v60  ;;  %v8256_v1 = vmul.f32 %v8251_v31, %v20282_v6  ;;  %v8255_v22 = vmul.f32 %v8251_v31, %v20287_v45  ;;  %22532 = vst [vmem:[#allocation21_spill] sm:$0xff] %v20398_v36 }
 0xcc8   :  { %v20302_v20 = vld [vmem:[#allocation10] sm:$0xff]  ;;  %v8635_v55 = vand.u32 4294901760, %v20300_v56  ;;  %v20402_v21 = vsub.f32 %v8500_v16, %v20398_v36 }
 0xcc9   :  { %8226 = vrot.lane.b32.xlu1 %v8217_v18, %s17009_s2  ;;  %8224 = vrot.lane.b32.xlu0 %v8216_v7, %s17009_s2  ;;  %v8632_v25 = vand.u32 4294901760, %v20302_v20 }
 0xcca   :  { %v20311_v49 = vsub.f32 %v20300_v56, %v8635_v55  ;;  %v8288_v57 = vpop.permute.xlu1 %8287  ;;  %22533 = vst [vmem:[#allocation17_spill] sm:$0xff] %v20402_v21  ;;  %v8729_v23 = vand.u32 4294901760, %v20402_v21 }
 0xccb   :  { %v20315_v28 = vld [vmem:[#allocation10 + $0x18] sm:$0xff]  ;;  %v20320_v54 = vsub.f32 %v20302_v20, %v8632_v25  ;;  %v8290_v52 = vmul.f32 %v8288_v57, %v20273_v35  ;;  %v8291_v34 = vmul.f32 %v8288_v57, %v20270_v60  ;;  %v8292_v42 = vmul.f32 %v8288_v57, %v20287_v45 }
 0xccc   :  { %22525 = vst [vmem:[#allocation32_spill] sm:$0xff] %v20311_v49  ;;  %v20322_v29 = vld [vmem:[#allocation10 + $0x10] sm:$0xff]  ;;  %v22184_v41 = vand.u32 4294901760, %v20315_v28  ;;  %v8858_v19 = vand.u32 4294901760, %v20311_v49  ;;  %v8293_v9 = vmul.f32 %v8288_v57, %v20282_v6  ;;  %v8730_v13 = vsub.f32 %v20402_v21, %v8729_v23  ;;  %9429 = vmatprep.mubr.f32.mxu0 %v8729_v23 }
 0xccd   :  { %22526 = vst [vmem:[#allocation23_spill] sm:$0xff] %v20320_v54  ;;  %8411 = vrot.lane.b32.xlu1 %v8402_v14, %s17034_s25  ;;  %8409 = vrot.lane.b32.xlu0 %v8401_v59, %s17034_s25  ;;  %v22185_v3 = vand.u32 4294901760, %v20322_v29  ;;  %v8851_v30 = vand.u32 4294901760, %v20320_v54 }
 0xcce   :  { %v20332_v53 = vsub.f32 %v20315_v28, %v22184_v41  ;;  %v8731_v26 = vand.u32 4294901760, %v8730_v13 }
 0xccf   :  { %v20340_v12 = vsub.f32 %v20322_v29, %v22185_v3  ;;  %v20347_v33 = vpack.c.bf16 %v8858_v19, %v8851_v30  ;;  %v20583_v3 = vsub.f32 %v20320_v54, %v8851_v30 }
 0xcd0   :  { %22527 = vst [vmem:[#allocation20_spill] sm:$0xff] %v20332_v53  ;;  %v22186_v46 = vand.u32 4294901760, %v20332_v53  ;;  %8732 = vmatprep.mubr.f32.mxu1 %v8731_v26 }
 0xcd1   :  { %22528 = vst [vmem:[#allocation27_spill] sm:$0xff] %v20340_v12  ;;  %22529 = vst [vmem:[#allocation34_spill] sm:$0xff] %v20347_v33  ;;  %8263 = vrot.lane.b32.xlu1 %v8254_v0, %s17008_s9  ;;  %8261 = vrot.lane.b32.xlu0 %v8253_v63, %s17008_s9  ;;  %v22181_v40 = vand.u32 4294901760, %v20340_v12 }
 0xcd3   :  { %v20358_v37 = vpack.c.bf16 %v22186_v46, %v22181_v40  ;;  %v20570_v40 = vsub.f32 %v20311_v49, %v8858_v19 }
 0xcd5   :  { %22530 = vst [vmem:[#allocation22_spill] sm:$0xff] %v20358_v37  ;;  %8448 = vrot.lane.b32.xlu1 %v8439_v51, %s17022_s10  ;;  %8446 = vrot.lane.b32.xlu0 %v8438_v27, %s17022_s10  ;;  %v20422_v51 = vpack.c.bf16 %v8635_v55, %v8632_v25 }
 0xcd9   :  { %8341 = vrot.lane.b32.xlu1 %v8330_v44, %s17032_s7  ;;  %8339 = vrot.lane.b32.xlu0 %v8329_v11, %s17032_s7 }
 0xcdd   :  { %8378 = vrot.lane.b32.xlu1 %v8367_v4, %s17033_s27  ;;  %8298 = vrot.lane.b32.xlu0 %v8290_v52, %s17035_s4 }
 0xce1   :  { %8230 = vrot.lane.b32.xlu1 %v8219_v38, %s17009_s2  ;;  %8376 = vrot.lane.b32.xlu0 %v8366_v17, %s17033_s27 }
 0xce5   :  { %8415 = vrot.lane.b32.xlu1 %v8404_v32, %s17034_s25  ;;  %8228 = vrot.lane.b32.xlu0 %v8218_v2, %s17009_s2 }
 0xce9   :  { %8267 = vrot.lane.b32.xlu1 %v8256_v1, %s17008_s9  ;;  %8413 = vrot.lane.b32.xlu0 %v8403_v62, %s17034_s25 }
 0xced   :  { %8300 = vrot.lane.b32.xlu1 %v8291_v34, %s17035_s4  ;;  %8265 = vrot.lane.b32.xlu0 %v8255_v22, %s17008_s9 }
 0xcf1   :  { %8452 = vrot.lane.b32.xlu1 %v8441_v58, %s17022_s10  ;;  %8450 = vrot.lane.b32.xlu0 %v8440_v10, %s17022_s10 }
 0xcf5   :  { %8304 = vrot.lane.b32.xlu1 %v8293_v9, %s17035_s4  ;;  %8302 = vrot.lane.b32.xlu0 %v8292_v42, %s17035_s4 }
 0xcf9   :  { %8472 = vrot.lane.b32.xlu0 %v13715_v47, %s17017_s12 }
 0xd33   :  { %v8338_v15 = vpop.permute.xlu1 %8337  ;;  %v8336_v61 = vpop.permute.xlu0 %8335 }
 0xd34   :  { %8348 = vst.msk [vmem:[#allocation10 + $0x88] sm:$0xff] %vm8198_vm6, %v8338_v15  ;;  %8347 = vst.msk [vmem:[#allocation10 + $0x80] sm:$0xff] %vm8198_vm6, %v8336_v61 }
 0xd37   :  { %v8375_v43 = vpop.permute.xlu1 %8374  ;;  %v8373_v50 = vpop.permute.xlu0 %8372 }
 0xd38   :  { %8385 = vst.msk [vmem:[#allocation10 + $0xa8] sm:$0xff] %vm8198_vm6, %v8375_v43  ;;  %8384 = vst.msk [vmem:[#allocation10 + $0xa0] sm:$0xff] %vm8198_vm6, %v8373_v50 }
 0xd3b   :  { %v8227_v24 = vpop.permute.xlu1 %8226  ;;  %v8225_v7 = vpop.permute.xlu0 %8224  ;;  %v8539_v18 = vld [vmem:[#allocation10 + $0x80] sm:$0xff]  ;;  %v8540_v5 = vld [vmem:[#allocation10 + $0x88] sm:$0xff] }
 0xd3c   :  { %8237 = vst.msk [vmem:[#allocation10 + $0x28] sm:$0xff] %vm8198_vm6, %v8227_v24  ;;  %8236 = vst.msk [vmem:[#allocation10 + $0x20] sm:$0xff] %vm8198_vm6, %v8225_v7  ;;  %v8680_v59 = vand.u32 4294901760, %v8539_v18  ;;  %v8683_v14 = vand.u32 4294901760, %v8540_v5 }
 0xd3e   :  { %v20412_v31 = vpack.c.bf16 %v8683_v14, %v8680_v59  ;;  %v20414_v63 = vsub.f32 %v8539_v18, %v8680_v59  ;;  %v20416_v0 = vsub.f32 %v8540_v5, %v8683_v14 }
 0xd3f   :  { %v8412_v48 = vpop.permute.xlu1 %8411  ;;  %v8410_v27 = vpop.permute.xlu0 %8409  ;;  %v20424_v11 = vld [vmem:[#allocation10 + $0xa0] sm:$0xff]  ;;  %v20426_v44 = vld [vmem:[#allocation10 + $0xa8] sm:$0xff] }
 0xd40   :  { %22534 = vst [vmem:[#allocation25_spill] sm:$0xff] %v20414_v63  ;;  %22535 = vst [vmem:[#allocation19_spill] sm:$0xff] %v20416_v0  ;;  %16105 = vmatprep.subr.bf16.mxu1 %v20412_v31  ;;  %16201 = vmatprep.subr.bf16.mxu0 %v20412_v31  ;;  %v22180_v57 = vand.u32 4294901760, %v20424_v11  ;;  %v22179_v20 = vand.u32 4294901760, %v20426_v44  ;;  %v22170_v56 = vand.u32 4294901760, %v20414_v63  ;;  %v22169_v55 = vand.u32 4294901760, %v20416_v0 }
 0xd41   :  { %8422 = vst.msk [vmem:[#allocation10 + $0xc8] sm:$0xff] %vm8198_vm6, %v8412_v48  ;;  %8421 = vst.msk [vmem:[#allocation10 + $0xc0] sm:$0xff] %vm8198_vm6, %v8410_v27  ;;  %16107 = vmatpush3.bf16.msra.mxu1 %v20422_v51  ;;  %16203 = vmatpush3.bf16.msra.mxu0 %v20422_v51 }
 0xd42   :  { %v20441_v25 = vsub.f32 %v20424_v11, %v22180_v57  ;;  %v20446_v4 = vsub.f32 %v20426_v44, %v22179_v20  ;;  %v20456_v2 = vpack.c.bf16 %v22169_v55, %v22170_v56 }
 0xd43   :  { %v8264_v52 = vpop.permute.xlu1 %8263  ;;  %v8262_v17 = vpop.permute.xlu0 %8261  ;;  %v20448_v38 = vld [vmem:[#allocation10 + $0x20] sm:$0xff]  ;;  %v20450_v32 = vld [vmem:[#allocation10 + $0x28] sm:$0xff] }
 0xd44   :  { %22536 = vst [vmem:[#allocation18_spill] sm:$0xff] %v20456_v2  ;;  %8274 = vst.msk [vmem:[#allocation10 + $0x48] sm:$0xff] %vm8198_vm6, %v8264_v52  ;;  %v22178_v62 = vand.u32 4294901760, %v20448_v38  ;;  %v22175_v1 = vand.u32 4294901760, %v20450_v32  ;;  %v22168_v22 = vand.u32 4294901760, %v20441_v25  ;;  %v22167_v34 = vand.u32 4294901760, %v20446_v4 }
 0xd45   :  { %8273 = vst.msk [vmem:[#allocation10 + $0x40] sm:$0xff] %vm8198_vm6, %v8262_v17 }
 0xd46   :  { %v20467_v10 = vsub.f32 %v20448_v38, %v22178_v62  ;;  %v20472_v58 = vsub.f32 %v20450_v32, %v22175_v1  ;;  %v20482_v23 = vpack.c.bf16 %v22167_v34, %v22168_v22  ;;  %v8502_v22 = vld [vmem:[%s22531_s28 + $0x18] sm:$0xff] }
 0xd47   :  { %v8449_v42 = vpop.permute.xlu1 %8448  ;;  %v8447_v9 = vpop.permute.xlu0 %8446 }
 0xd48   :  { %v20474_v47 = vld [vmem:[#allocation10 + $0xc0] sm:$0xff]  ;;  %v20476_v16 = vld [vmem:[#allocation10 + $0xc8] sm:$0xff]  ;;  %22537 = vst [vmem:[#allocation26_spill] sm:$0xff] %v20482_v23  ;;  %8459 = vst.msk [vmem:[#allocation10 + $0xe8] sm:$0xff] %vm8198_vm6, %v8449_v42  ;;  %v22166_v15 = vand.u32 4294901760, %v20467_v10  ;;  %v22165_v61 = vand.u32 4294901760, %v20472_v58 }
 0xd49   :  { %8458 = vst.msk [vmem:[#allocation10 + $0xe0] sm:$0xff] %vm8198_vm6, %v8447_v9  ;;  %v22174_v13 = vand.u32 4294901760, %v20474_v47  ;;  %v22173_v26 = vand.u32 4294901760, %v20476_v16  ;;  %v8499_v9 = vld [vmem:[%s22531_s28] sm:$0xff] }
 0xd4a   :  { %v20508_v59 = vpack.c.bf16 %v22165_v61, %v22166_v15 }
 0xd4b   :  { %v20493_v43 = vsub.f32 %v20474_v47, %v22174_v13  ;;  %v20498_v50 = vsub.f32 %v20476_v16, %v22173_v26  ;;  %v8342_v24 = vpop.permute.xlu1 %8341  ;;  %v8340_v7 = vpop.permute.xlu0 %8339  ;;  %v20502_v5 = vld [vmem:[#allocation10 + $0x48] sm:$0xff]  ;;  %v20550_v26 = vand.u32 4294901760, %v8499_v9 }
 0xd4c   :  { %v20500_v18 = vld [vmem:[#allocation10 + $0x40] sm:$0xff]  ;;  %22538 = vst [vmem:[#allocation30_spill] sm:$0xff] %v20508_v59  ;;  %8350 = vst.msk [vmem:[#allocation10 + $0x98] sm:$0xff] %vm8198_vm6, %v8342_v24  ;;  %v22171_v48 = vand.u32 4294901760, %v20502_v5 }
 0xd4d   :  { %8349 = vst.msk [vmem:[#allocation10 + $0x90] sm:$0xff] %vm8198_vm6, %v8340_v7  ;;  %v22172_v14 = vand.u32 4294901760, %v20500_v18  ;;  %v22177_v27 = vand.u32 4294901760, %v20493_v43  ;;  %v22176_v52 = vand.u32 4294901760, %v20498_v50  ;;  %v8503_v24 = vld [vmem:[%s22531_s28 + $0x20] sm:$0xff]  ;;  %22540 = vst [vmem:[#allocation31_spill] sm:$0xff] %v20550_v26  ;;  %v20587_v46 = vsub.f32 %v8499_v9, %v20550_v26 }
 0xd4e   :  { %v20524_v42 = vsub.f32 %v20502_v5, %v22171_v48  ;;  %v20552_v13 = vand.u32 4294901760, %v8503_v24 }
 0xd4f   :  { %v20519_v17 = vsub.f32 %v20500_v18, %v22172_v14  ;;  %v8379_v7 = vpop.permute.xlu1 %8378  ;;  %v8299_v61 = vpop.permute.xlu0 %8298  ;;  %v20534_v34 = vld [vmem:[#allocation10 + $0xe8] sm:$0xff]  ;;  %v20543_v55 = vpack.c.bf16 %v22176_v52, %v22177_v27  ;;  %22546 = vst [vmem:[#allocation38_spill] sm:$0xff] %v20587_v46 }
 0xd50   :  { %v20532_v15 = vld [vmem:[#allocation10 + $0xe0] sm:$0xff]  ;;  %8387 = vst.msk [vmem:[#allocation10 + $0xb8] sm:$0xff] %vm8198_vm6, %v8379_v7  ;;  %8310 = vst.msk [vmem:[#allocation10 + $0x60] sm:$0xff] %vm8198_vm6, %v8299_v61  ;;  %v22183_v48 = vand.u32 4294901760, %v20534_v34  ;;  %v22188_v1 = vand.u32 4294901760, %v20524_v42  ;;  %v20565_v7 = vand.u32 4294901760, %v8502_v22  ;;  %v20590_v39 = vsub.f32 %v8503_v24, %v20552_v13 }
 0xd51   :  { %22539 = vst [vmem:[#allocation28_spill] sm:$0xff] %v20543_v55  ;;  %v22182_v56 = vand.u32 4294901760, %v20532_v15  ;;  %v22189_v14 = vand.u32 4294901760, %v20519_v17  ;;  %22541 = vst [vmem:[#allocation33_spill] sm:$0xff] %v20552_v13  ;;  %v22551_v55 = vand.u32 4294901760, %v20322_v29  ;;  %v22558_v29 = vand.u32 4294901760, %v20426_v44 }
 0xd52   :  { %v20563_v61 = vsub.f32 %v20534_v34, %v22183_v48  ;;  %22544 = vst [vmem:[#allocation24_spill] sm:$0xff] %v20565_v7  ;;  %22547 = vst [vmem:[#allocation40_spill] sm:$0xff] %v20590_v39  ;;  %v20606_v9 = vsub.f32 %v8502_v22, %v20565_v7  ;;  %v8860_v44 = vand.u32 4294901760, %v20570_v40  ;;  %v22560_v22 = vand.u32 4294901760, %v20448_v38 }
 0xd53   :  { %v20558_v52 = vsub.f32 %v20532_v15, %v22182_v56  ;;  %v8231_v27 = vpop.permute.xlu1 %8230  ;;  %v8377_v62 = vpop.permute.xlu0 %8376  ;;  %v8542_v57 = vld [vmem:[#allocation10 + $0x98] sm:$0xff]  ;;  %v20576_v56 = vpack.c.bf16 %v22188_v1, %v22189_v14  ;;  %v22548_v1 = vand.u32 4294901760, %v20332_v53  ;;  %v22553_v14 = vand.u32 4294901760, %v20340_v12 }
 0xd54   :  { %22543 = vst [vmem:[#allocation41_spill] sm:$0xff] %v20563_v61  ;;  %v8541_v20 = vld [vmem:[#allocation10 + $0x90] sm:$0xff]  ;;  %8239 = vst.msk [vmem:[#allocation10 + $0x38] sm:$0xff] %vm8198_vm6, %v8231_v27  ;;  %v8689_v41 = vand.u32 4294901760, %v8542_v57 }
 0xd55   :  { %22542 = vst [vmem:[#allocation36_spill] sm:$0xff] %v20558_v52  ;;  %22545 = vst [vmem:[#allocation37_spill] sm:$0xff] %v20576_v56  ;;  %v8686_v48 = vand.u32 4294901760, %v8541_v20  ;;  %v8873_v27 = vsub.f32 %v20332_v53, %v22548_v1  ;;  %v22552_v1 = vand.u32 4294901760, %v20315_v28  ;;  %v8866_v37 = vsub.f32 %v20340_v12, %v22553_v14 }
 0xd56   :  { %8386 = vst.msk [vmem:[#allocation10 + $0xb0] sm:$0xff] %vm8198_vm6, %v8377_v62  ;;  %v8506_v62 = vld [vmem:[%s22531_s28 + $0x38] sm:$0xff]  ;;  %v20603_v19 = vsub.f32 %v8542_v57, %v8689_v41  ;;  %22550 = vst [vmem:[#allocation35_spill] sm:$0xff] %v20606_v9  ;;  %v22557_v28 = vand.u32 4294901760, %v20424_v11 }
 0xd57   :  { %v20599_v30 = vpack.c.bf16 %v8689_v41, %v8686_v48  ;;  %v20601_v8 = vsub.f32 %v8541_v20, %v8686_v48  ;;  %v8416_v24 = vpop.permute.xlu1 %8415  ;;  %v8229_v56 = vpop.permute.xlu0 %8228  ;;  %v20612_v59 = vpack.c.bf16 %v22552_v1, %v22551_v55  ;;  %v8546_v23 = vld [vmem:[#allocation10 + $0xb8] sm:$0xff]  ;;  %v22554_v20 = vand.u32 4294901760, %v20558_v52 }
 0xd58   :  { %v22555_v41 = vand.u32 4294901760, %v20563_v61  ;;  %8424 = vst.msk [vmem:[#allocation10 + $0xd8] sm:$0xff] %vm8198_vm6, %v8416_v24  ;;  %8238 = vst.msk [vmem:[#allocation10 + $0x30] sm:$0xff] %vm8198_vm6, %v8229_v56  ;;  %v20631_v55 = vpack.c.bf16 %v22558_v29, %v22557_v28  ;;  %v20635_v48 = vand.u32 4294901760, %v8506_v62  ;;  %v8505_v56 = vld [vmem:[%s22531_s28 + $0x30] sm:$0xff]  ;;  %v8701_v24 = vand.u32 4294901760, %v8546_v23 }
 0xd59   :  { %22549 = vst [vmem:[#allocation39_spill] sm:$0xff] %v20601_v8  ;;  %16109 = vmatprep.subr.bf16.mxu1 %v20599_v30  ;;  %16205 = vmatprep.subr.bf16.mxu0 %v20599_v30  ;;  %v8853_v1 = vand.u32 4294901760, %v20583_v3  ;;  %v8874_v28 = vand.u32 4294901760, %v8873_v27  ;;  %v8867_v2 = vand.u32 4294901760, %v8866_v37  ;;  %v20655_v21 = vand.u32 4294901760, %v8505_v56  ;;  %v8509_v37 = vld [vmem:[%s22531_s28 + $0x50] sm:$0xff] }
 0xd5a   :  { %v20621_v57 = vpack.c.bf16 %v22555_v41, %v22554_v20  ;;  %22559 = vst [vmem:[#allocation29_spill] sm:$0xff] %v20635_v48  ;;  %16111 = vmatpush3.bf16.msra.mxu1 %v20612_v59  ;;  %16207 = vmatpush3.bf16.msra.mxu0 %v20612_v59  ;;  %v22564_v3 = vand.u32 4294901760, %v20601_v8  ;;  %v22565_v20 = vand.u32 4294901760, %v20603_v19  ;;  %v20673_v27 = vsub.f32 %v8546_v23, %v8701_v24 }
 0xd5b   :  { %16113 = vmatprep.subr.bf16.mxu1 %v20631_v55  ;;  %16209 = vmatprep.subr.bf16.mxu0 %v20631_v55  ;;  %v8268_v29 = vpop.permute.xlu1 %8267  ;;  %v8414_v14 = vpop.permute.xlu0 %8413  ;;  %v8530_v33 = vld [vmem:[#allocation10 + $0x38] sm:$0xff]  ;;  %22563 = vst [vmem:[#allocation43_spill] sm:$0xff] %v20655_v21  ;;  %v22571_v23 = vand.u32 4294901760, %v20606_v9  ;;  %v20697_v13 = vpack.c.bf16 %v8860_v44, %v8853_v1 }
 0xd5c   :  { %22556 = vst [vmem:[#allocation16_spill] sm:$0xff] %v20621_v57  ;;  %v22561_v57 = vand.u32 4294901760, %v20450_v32  ;;  %v20661_v7 = vpack.c.bf16 %v22565_v20, %v22564_v3  ;;  %8276 = vst.msk [vmem:[#allocation10 + $0x58] sm:$0xff] %vm8198_vm6, %v8268_v29  ;;  %v20666_v32 = vsub.f32 %v8506_v62, %v20635_v48  ;;  %v8508_v62 = vld [vmem:[%s22531_s28 + $0x48] sm:$0xff]  ;;  %v22570_v3 = vand.u32 4294901760, %v20590_v39 }
 0xd5d   :  { %v8545_v40 = vld [vmem:[#allocation10 + $0xb0] sm:$0xff]  ;;  %8423 = vst.msk [vmem:[#allocation10 + $0xd0] sm:$0xff] %vm8198_vm6, %v8414_v14  ;;  %v22581_v36 = vand.u32 4294901760, %v20673_v27 }
 0xd5e   :  { %v20653_v11 = vpack.c.bf16 %v22561_v57, %v22560_v22  ;;  %22566 = vst [vmem:[#allocation44_spill] sm:$0xff] %v20661_v7  ;;  %v8698_v38 = vand.u32 4294901760, %v8545_v40  ;;  %22567 = vst [vmem:[#allocation45_spill] sm:$0xff] %v20666_v32  ;;  %v8653_v57 = vand.u32 4294901760, %v8530_v33  ;;  %v22568_v22 = vand.u32 4294901760, %v20587_v46 }
 0xd5f   :  { %v20690_v41 = vsub.f32 %v20590_v39, %v22570_v3  ;;  %v20695_v7 = vsub.f32 %v20606_v9, %v22571_v23  ;;  %v8266_v48 = vpop.permute.xlu0 %8265  ;;  %v8529_v53 = vld [vmem:[#allocation10 + $0x30] sm:$0xff]  ;;  %v8550_v12 = vld [vmem:[#allocation10 + $0xd8] sm:$0xff]  ;;  %v8512_v23 = vld [vmem:[%s22531_s28 + $0x68] sm:$0xff] }
 0xd60   :  { %22562 = vst [vmem:[#allocation42_spill] sm:$0xff] %v20653_v11  ;;  %16115 = vmatpush3.bf16.msra.mxu1 %v20653_v11  ;;  %16211 = vmatpush3.bf16.msra.mxu0 %v20653_v11  ;;  %v20678_v20 = vsub.f32 %v20587_v46, %v22568_v22  ;;  %v20683_v14 = vpack.c.bf16 %v8701_v24, %v8698_v38  ;;  %v8301_v22 = vpop.permute.xlu1 %8300  ;;  %8275 = vst.msk [vmem:[#allocation10 + $0x50] sm:$0xff] %vm8198_vm6, %v8266_v48  ;;  %v8650_v3 = vand.u32 4294901760, %v8529_v53 }
 0xd61   :  { %v20685_v29 = vsub.f32 %v8545_v40, %v8698_v38  ;;  %v20699_v24 = vpack.c.bf16 %v8874_v28, %v8867_v2  ;;  %v20702_v40 = vsub.f32 %v8505_v56, %v20655_v21  ;;  %v20704_v38 = vand.u32 4294901760, %v8509_v37  ;;  %8311 = vst.msk [vmem:[#allocation10 + $0x68] sm:$0xff] %vm8198_vm6, %v8301_v22 }
 0xd62   :  { %22569 = vst [vmem:[#allocation46_spill] sm:$0xff] %v20683_v14  ;;  %16117 = vmatprep.subr.bf16.mxu1 %v20683_v14  ;;  %16213 = vmatprep.subr.bf16.mxu0 %v20683_v14  ;;  %v20712_v2 = vand.u32 4294901760, %v8508_v62  ;;  %v20714_v1 = vsub.f32 %v8530_v33, %v8653_v57  ;;  %v8713_v56 = vand.u32 4294901760, %v8550_v12  ;;  %v20718_v21 = vpack.c.bf16 %v8653_v57, %v8650_v3  ;;  %v8511_v33 = vld [vmem:[%s22531_s28 + $0x60] sm:$0xff] }
 0xd63   :  { %22572 = vst [vmem:[#allocation47_spill] sm:$0xff] %v20702_v40  ;;  %22573 = vst [vmem:[#allocation48_spill] sm:$0xff] %v20704_v38  ;;  %v20720_v48 = vsub.f32 %v8529_v53, %v8650_v3  ;;  %v8451_v28 = vpop.permute.xlu0 %8450  ;;  %v22576_v22 = vand.u32 4294901760, %v20474_v47  ;;  %v22577_v57 = vand.u32 4294901760, %v20476_v16  ;;  %v8534_v26 = vld [vmem:[#allocation10 + $0x58] sm:$0xff]  ;;  %v20738_v49 = vsub.f32 %v8509_v37, %v20704_v38 }
 0xd64   :  { %22574 = vst [vmem:[#allocation49_spill] sm:$0xff] %v20712_v2  ;;  %22575 = vst [vmem:[#allocation50_spill] sm:$0xff] %v20718_v21  ;;  %v8453_v44 = vpop.permute.xlu1 %8452  ;;  %v8549_v3 = vld [vmem:[#allocation10 + $0xd0] sm:$0xff]  ;;  %v22580_v54 = vand.u32 4294901760, %v20685_v29  ;;  %16119 = vmatpush3.bf16.msra.mxu1 %v20718_v21  ;;  %16215 = vmatpush3.bf16.msra.mxu0 %v20718_v21  ;;  %v22583_v16 = vand.u32 4294901760, %v20666_v32  ;;  %v20766_v9 = vand.u32 4294901760, %v8511_v33 }
 0xd65   :  { %v20734_v53 = vpack.c.bf16 %v22577_v57, %v22576_v22  ;;  %22579 = vst [vmem:[#allocation52_spill] sm:$0xff] %v20738_v49  ;;  %8461 = vst.msk [vmem:[#allocation10 + $0xf8] sm:$0xff] %vm8198_vm6, %v8453_v44  ;;  %v8710_v47 = vand.u32 4294901760, %v8549_v3  ;;  %v20756_v22 = vsub.f32 %v8508_v62, %v20712_v2  ;;  %v8535_v44 = vld [vmem:[#allocation10 + $0x60] sm:$0xff]  ;;  %v20764_v57 = vand.u32 4294901760, %v8512_v23 }
 0xd66   :  { %v20744_v61 = vpack.c.bf16 %v22581_v36, %v22580_v54  ;;  %8460 = vst.msk [vmem:[#allocation10 + $0xf0] sm:$0xff] %vm8198_vm6, %v8451_v28  ;;  %v20753_v37 = vsub.f32 %v20666_v32, %v22583_v16  ;;  %v20761_v36 = vsub.f32 %v8550_v12, %v8713_v56  ;;  %22586 = vst [vmem:[#allocation56_spill] sm:$0xff] %v20766_v9  ;;  %v22587_v16 = vand.u32 4294901760, %v20500_v18 }
 0xd67   :  { %22578 = vst [vmem:[#allocation51_spill] sm:$0xff] %v20734_v53  ;;  %22584 = vst [vmem:[#allocation54_spill] sm:$0xff] %v20756_v22  ;;  %16121 = vmatprep.subr.bf16.mxu1 %v20734_v53  ;;  %16217 = vmatprep.subr.bf16.mxu0 %v20734_v53  ;;  %v22588_v62 = vand.u32 4294901760, %v20502_v5  ;;  %v20774_v54 = vpack.c.bf16 %v8713_v56, %v8710_v47  ;;  %v20776_v2 = vsub.f32 %v8549_v3, %v8710_v47  ;;  %v8303_v32 = vpop.permute.xlu0 %8302  ;;  %v8533_v53 = vld [vmem:[#allocation10 + $0x50] sm:$0xff]  ;;  %v20803_v56 = vld [vmem:[%s22531_s28 + $0x80] sm:$0xff] }
 0xd68   :  { %22582 = vst [vmem:[#allocation53_spill] sm:$0xff] %v20744_v61  ;;  %22585 = vst [vmem:[#allocation55_spill] sm:$0xff] %v20764_v57  ;;  %v8665_v38 = vand.u32 4294901760, %v8534_v26  ;;  %v8305_v12 = vpop.permute.xlu1 %8304  ;;  %v8536_v21 = vld [vmem:[#allocation10 + $0x68] sm:$0xff]  ;;  %v22591_v28 = vand.u32 4294901760, %v20414_v63  ;;  %v22592_v18 = vand.u32 4294901760, %v20702_v40  ;;  %v20822_v14 = vsub.f32 %v8511_v33, %v20766_v9 }
 0xd69   :  { %v20772_v61 = vpack.c.bf16 %v22588_v62, %v22587_v16  ;;  %22590 = vst [vmem:[#allocation58_spill] sm:$0xff] %v20774_v54  ;;  %v22593_v3 = vand.u32 4294901760, %v20720_v48  ;;  %v22594_v47 = vand.u32 4294901760, %v20714_v1  ;;  %8313 = vst.msk [vmem:[#allocation10 + $0x78] sm:$0xff] %vm8198_vm6, %v8305_v12  ;;  %v8668_v62 = vand.u32 4294901760, %v8535_v44 }
 0xd6a   :  { %v20781_v52 = vsub.f32 %v20414_v63, %v22591_v28  ;;  %v20786_v5 = vsub.f32 %v20702_v40, %v22592_v18  ;;  %8312 = vst.msk [vmem:[#allocation10 + $0x70] sm:$0xff] %vm8198_vm6, %v8303_v32  ;;  %v8662_v28 = vand.u32 4294901760, %v8533_v53  ;;  %v8671_v18 = vand.u32 4294901760, %v8536_v21 }
 0xd6b   :  { %22589 = vst [vmem:[#allocation57_spill] sm:$0xff] %v20772_v61  ;;  %v20793_v16 = vpack.c.bf16 %v22594_v47, %v22593_v3  ;;  %16123 = vmatpush3.bf16.msra.mxu1 %v20772_v61  ;;  %16219 = vmatpush3.bf16.msra.mxu0 %v20772_v61  ;;  %v22596_v32 = vand.u32 4294901760, %v20416_v0  ;;  %v20812_v47 = vsub.f32 %v8512_v23, %v20764_v57  ;;  %v22598_v11 = vand.u32 4294901760, %v20532_v15 }
 0xd6c   :  { %16125 = vmatprep.subr.bf16.mxu1 %v20774_v54  ;;  %16221 = vmatprep.subr.bf16.mxu0 %v20774_v54  ;;  %v20817_v63 = vsub.f32 %v8533_v53, %v8662_v28  ;;  %v20819_v61 = vsub.f32 %v8534_v26, %v8665_v38  ;;  %v8473_v54 = vpop.permute.xlu0 %8472  ;;  %v20830_v23 = vsub.f32 %v8536_v21, %v8671_v18  ;;  %v8554_v40 = vld [vmem:[#allocation10 + $0xf8] sm:$0xff]  ;;  %v22601_v26 = vand.u32 4294901760, %v20776_v2 }
 0xd6d   :  { %22595 = vst [vmem:[#allocation59_spill] sm:$0xff] %v20793_v16  ;;  %v8971_v12 = vsub.f32 %v20416_v0, %v22596_v32  ;;  %22597 = vst [vmem:[#allocation60_spill] sm:$0xff] %v20812_v47  ;;  %v20815_v16 = vpack.c.bf16 %v8665_v38, %v8662_v28  ;;  %v22599_v32 = vand.u32 4294901760, %v20534_v34  ;;  %v8553_v57 = vld [vmem:[#allocation10 + $0xf0] sm:$0xff]  ;;  %v20833_v0 = vand.u32 4294901760, %v20803_v56 }
 0xd6e   :  { %v22602_v38 = vand.u32 4294901760, %v20761_v36  ;;  %v8475_v53 = vmul.f32 %v8473_v54, %v20273_v35  ;;  %v8476_v15 = vmul.f32 %v8473_v54, %v20270_v60  ;;  %v20844_v34 = vsub.f32 %v8535_v44, %v8668_v62 }
 0xd6f   :  { %v20828_v3 = vpack.c.bf16 %v22599_v32, %v22598_v11  ;;  %22600 = vst [vmem:[#allocation61_spill] sm:$0xff] %v20833_v0  ;;  %16127 = vmatpush3.bf16.msra.mxu1 %v20815_v16  ;;  %v8965_v21 = vand.u32 4294901760, %v20781_v52  ;;  %16223 = vmatpush3.bf16.msra.mxu0 %v20815_v16  ;;  %v8722_v11 = vand.u32 4294901760, %v8553_v57  ;;  %v8725_v28 = vand.u32 4294901760, %v8554_v40 }
 0xd70   :  { %v20839_v33 = vpack.c.bf16 %v22602_v38, %v22601_v26  ;;  %v8972_v32 = vand.u32 4294901760, %v8971_v12  ;;  %8485 = vrot.lane.b32.xlu0 %v8476_v15, %s17023_s3  ;;  %v20852_v60 = vpack.c.bf16 %v8671_v18, %v8668_v62  ;;  %v22604_v35 = vand.u32 4294901760, %v20601_v8  ;;  %8483 = vrot.lane.b32.xlu1 %v8475_v53, %s17023_s3  ;;  %v8538_v18 = vld [vmem:[#allocation10 + $0x78] sm:$0xff] }
 0xd71   :  { %16129 = vmatprep.subr.bf16.mxu1 %v20828_v3  ;;  %16225 = vmatprep.subr.bf16.mxu0 %v20828_v3  ;;  %v22605_v52 = vand.u32 4294901760, %v20603_v19  ;;  %v20862_v12 = vpack.c.bf16 %v8725_v28, %v8722_v11  ;;  %v20864_v26 = vsub.f32 %v8553_v57, %v8722_v11  ;;  %v20866_v9 = vsub.f32 %v8554_v40, %v8725_v28  ;;  %v8537_v62 = vld [vmem:[#allocation10 + $0x70] sm:$0xff]  ;;  %v8514_v57 = vld [vmem:[%s22531_s28 + $0x78] sm:$0xff] }
 0xd72   :  { %22603 = vst [vmem:[#allocation62_spill] sm:$0xff] %v20839_v33  ;;  %v8978_v44 = vsub.f32 %v20601_v8, %v22604_v35  ;;  %v8478_v35 = vmul.f32 %v8473_v54, %v20282_v6  ;;  %v8674_v8 = vand.u32 4294901760, %v8537_v62  ;;  %v8477_v53 = vmul.f32 %v8473_v54, %v20287_v45 }
 0xd73   :  { %v8985_v38 = vsub.f32 %v20603_v19, %v22605_v52  ;;  %16131 = vmatpush3.bf16.msra.mxu1 %v20852_v60  ;;  %v8677_v52 = vand.u32 4294901760, %v8538_v18  ;;  %16227 = vmatpush3.bf16.msra.mxu0 %v20852_v60  ;;  %v22606_v11 = vand.u32 4294901760, %v20817_v63  ;;  %v22607_v6 = vand.u32 4294901760, %v20819_v61 }
 0xd74   :  { %16133 = vmatprep.subr.bf16.mxu1 %v20862_v12  ;;  %16229 = vmatprep.subr.bf16.mxu0 %v20862_v12  ;;  %v20887_v45 = vsub.f32 %v8537_v62, %v8674_v8  ;;  %v22610_v62 = vand.u32 4294901760, %v20830_v23 }
 0xd75   :  { %v20881_v28 = vpack.c.bf16 %v22607_v6, %v22606_v11  ;;  %8489 = vrot.lane.b32.xlu0 %v8478_v35, %s17023_s3  ;;  %v20885_v15 = vpack.c.bf16 %v8677_v52, %v8674_v8  ;;  %v20889_v54 = vsub.f32 %v8538_v18, %v8677_v52  ;;  %8487 = vrot.lane.b32.xlu1 %v8477_v53, %s17023_s3  ;;  %v8560_v6 = vld [vmem:[%s21980_s8 + $0x8] sm:$0xff]  ;;  %v8979_v35 = vand.u32 4294901760, %v8978_v44  ;;  %v8559_v52 = vld [vmem:[%s21980_s8] sm:$0xff] }
 0xd76   :  { %v16136_v11 = vpack.c.bf16 %v8972_v32, %v8965_v21  ;;  %v8986_v33 = vand.u32 4294901760, %v8985_v38  ;;  %v22609_v8 = vand.u32 4294901760, %v20844_v34  ;;  %v22612_v21 = vand.u32 4294901760, %v20441_v25 }
 0xd77   :  { %22608 = vst [vmem:[#allocation63_spill] sm:$0xff] %v20881_v28  ;;  %16135 = vmatpush3.bf16.msra.mxu1 %v20885_v15  ;;  %v22613_v53 = vand.u32 4294901760, %v20446_v4  ;;  %16231 = vmatpush3.bf16.msra.mxu0 %v20885_v15  ;;  %v20928_v28 = vand.u32 4294901760, %v8514_v57  ;;  %v22618_v38 = vand.u32 4294901760, %v20866_v9 }
 0xd78   :  { %v20903_v18 = vpack.c.bf16 %v22610_v62, %v22609_v8  ;;  %v8992_v32 = vsub.f32 %v20441_v25, %v22612_v21  ;;  %16137 = vmatprep.subr.bf16.mxu1 %v16136_v11  ;;  %v22614_v8 = vand.u32 4294901760, %v20738_v49  ;;  %16265 = vmatprep.subr.bf16.mxu0 %v20412_v31  ;;  %v22620_v11 = vand.u32 4294901760, %v20812_v47 }
 0xd79   :  { %v8999_v44 = vsub.f32 %v20446_v4, %v22613_v53  ;;  %22616 = vst [vmem:[#allocation65_spill] sm:$0xff] %v20928_v28  ;;  %v22617_v53 = vand.u32 4294901760, %v20864_v26  ;;  %8574 = vperm.xlu0 %16972, %v8560_v6   ;;  %v22622_v31 = vand.u32 4294901760, %v20889_v54  ;;  %8569 = vperm.xlu1 %16973, %v8559_v52  }
 0xd7a   :  { %22611 = vst [vmem:[#allocation64_spill] sm:$0xff] %v20903_v18  ;;  %v20921_v62 = vsub.f32 %v20738_v49, %v22614_v8  ;;  %v22615_v18 = vand.u32 4294901760, %v20756_v22  ;;  %v20940_v8 = vsub.f32 %v20812_v47, %v22620_v11  ;;  %v16140_v11 = vpack.c.bf16 %v8986_v33, %v8979_v35  ;;  %v8561_v33 = vld [vmem:[%s21980_s8 + $0x10] sm:$0xff] }
 0xd7b   :  { %v20934_v40 = vpack.c.bf16 %v22618_v38, %v22617_v53  ;;  %v22621_v38 = vand.u32 4294901760, %v20887_v45  ;;  %v22624_v53 = vand.u32 4294901760, %v20678_v20  ;;  %v8761_v49 = vand.u32 4294901760, %v20753_v37  ;;  %v8562_v37 = vld [vmem:[%s21980_s8 + $0x18] sm:$0xff] }
 0xd7c   :  { %v20926_v21 = vsub.f32 %v20756_v22, %v22615_v18  ;;  %v20945_v18 = vsub.f32 %v20803_v56, %v20833_v0  ;;  %v8518_v22 = vld [vmem:[%s22531_s28 + $0x98] sm:$0xff]  ;;  %v22625_v56 = vand.u32 4294901760, %v20467_v10  ;;  %v22626_v0 = vand.u32 4294901760, %v20472_v58 }
 0xd7d   :  { %22619 = vst [vmem:[#allocation66_spill] sm:$0xff] %v20934_v40  ;;  %v20954_v6 = vpack.c.bf16 %v22622_v31, %v22621_v38  ;;  %8738 = vmatmul.mubr.f32.vlgmr.msra.gmra.mrb[24].mxu1 %v22624_v53  ;;  %v8517_v38 = vld [vmem:[%s22531_s28 + $0x90] sm:$0xff]  ;;  %v22627_v20 = vand.u32 4294901760, %v20587_v46  ;;  %v8993_v35 = vand.u32 4294901760, %v8992_v32  ;;  %v9000_v52 = vand.u32 4294901760, %v8999_v44  ;;  %8584 = vperm.xlu0 %16972, %v8562_v37   ;;  %v8564_v37 = vld [vmem:[%s21980_s8 + $0x28] sm:$0xff] }
 0xd7e   :  { %v8880_v40 = vsub.f32 %v20467_v10, %v22625_v56  ;;  %v8887_v47 = vsub.f32 %v20472_v58, %v22626_v0  ;;  %16139 = vmatpush3.bf16.msra.mxu1 %v20697_v13  ;;  %v8767_v0 = vand.u32 4294901760, %v20786_v5  ;;  %v22628_v31 = vand.u32 4294901760, %v20685_v29  ;;  %8579 = vperm.xlu1 %16973, %v8561_v33  }
 0xd7f   :  { %22623 = vst [vmem:[#allocation67_spill] sm:$0xff] %v20954_v6  ;;  %9433 = vmatmul.mubr.f32.vlgmr.msra.gmra.mrb[24].mxu0 %v22627_v20  ;;  %16141 = vmatprep.subr.bf16.mxu1 %v16140_v11  ;;  %v20985_v20 = vsub.f32 %v8514_v57, %v20928_v28  ;;  %v20987_v6 = vand.u32 4294901760, %v8518_v22  ;;  %v22630_v5 = vand.u32 4294901760, %v20690_v41  ;;  %v22631_v32 = vand.u32 4294901760, %v20673_v27 }
 0xd80   :  { %v9006_v53 = vsub.f32 %v20685_v29, %v22628_v31  ;;  %16267 = vmatpush3.bf16.msra.mxu0 %v20422_v51  ;;  %v22632_v51 = vand.u32 4294901760, %v20822_v14  ;;  %v21001_v57 = vand.u32 4294901760, %v8517_v38  ;;  %v8881_v41 = vand.u32 4294901760, %v8880_v40 }
 0xd81   :  { %22629 = vst [vmem:[#allocation68_spill] sm:$0xff] %v20987_v6  ;;  %16269 = vmatprep.subr.bf16.mxu0 %v20599_v30  ;;  %8747 = vmatprep.mubr.f32.mxu1 %v22630_v5  ;;  %v9013_v44 = vsub.f32 %v20673_v27, %v22631_v32  ;;  %v8521_v30 = vld [vmem:[%s22531_s28 + $0xb0] sm:$0xff]  ;;  %v8888_v5 = vand.u32 4294901760, %v8887_v47  ;;  %v22634_v56 = vand.u32 4294901760, %v20720_v48  ;;  %v22635_v31 = vand.u32 4294901760, %v20695_v7  ;;  %v8563_v7 = vld [vmem:[%s21980_s8 + $0x20] sm:$0xff] }
 0xd82   :  { %v20998_v11 = vsub.f32 %v20822_v14, %v22632_v51  ;;  %22633 = vst [vmem:[#allocation69_spill] sm:$0xff] %v21001_v57  ;;  %v8520_v51 = vld [vmem:[%s22531_s28 + $0xa8] sm:$0xff]  ;;  %v16144_v46 = vpack.c.bf16 %v9000_v52, %v8993_v35  ;;  %v9007_v40 = vand.u32 4294901760, %v9006_v53  ;;  %v22636_v47 = vand.u32 4294901760, %v20493_v43  ;;  %16143 = vmatpush3.bf16.msra.mxu1 %v20699_v24  ;;  %8594 = vperm.xlu0 %16972, %v8564_v37  }
 0xd83   :  { %v8894_v32 = vsub.f32 %v20720_v48, %v22634_v56  ;;  %8753 = vmatmul.mubr.f32.gmra.mrb[26].mxu1 %v22635_v31  ;;  %v22637_v56 = vand.u32 4294901760, %v20498_v50  ;;  %v22638_v28 = vand.u32 4294901760, %v20590_v39  ;;  %v22639_v35 = vand.u32 4294901760, %v20714_v1  ;;  %8589 = vperm.xlu1 %16973, %v8563_v7  }
 0xd84   :  { %v9020_v33 = vsub.f32 %v20493_v43, %v22636_v47  ;;  %16271 = vmatpush3.bf16.msra.mxu0 %v20612_v59  ;;  %v21036_v31 = vsub.f32 %v8518_v22, %v20987_v6  ;;  %v21038_v47 = vand.u32 4294901760, %v8521_v30  ;;  %16145 = vmatprep.subr.bf16.mxu1 %v16144_v46  ;;  %v9014_v24 = vand.u32 4294901760, %v9013_v44 }
 0xd85   :  { %v9027_v13 = vsub.f32 %v20498_v50, %v22637_v56  ;;  %9440 = vmatprep.mubr.f32.mxu0 %v22638_v28  ;;  %v8901_v52 = vsub.f32 %v20714_v1, %v22639_v35  ;;  %16273 = vmatprep.subr.bf16.mxu0 %v20631_v55  ;;  %v22641_v59 = vand.u32 4294901760, %v20519_v17  ;;  %v21045_v56 = vsub.f32 %v8517_v38, %v21001_v57  ;;  %v8566_v38 = vld [vmem:[%s21980_s8 + $0x38] sm:$0xff] }
 0xd86   :  { %22640 = vst [vmem:[#allocation70_spill] sm:$0xff] %v21038_v47  ;;  %v21047_v39 = vand.u32 4294901760, %v8520_v51  ;;  %8762 = vmatprep.mubr.f32.mxu1 %v8761_v49  ;;  %v16146_v35 = vpack.c.bf16 %v8888_v5, %v8881_v41  ;;  %v8895_v22 = vand.u32 4294901760, %v8894_v32  ;;  %v22643_v53 = vand.u32 4294901760, %v20524_v42  ;;  %v22646_v32 = vld [vmem:[#allocation42_spill] sm:$0xff]  ;;  %8604 = vperm.xlu0 %16972, %v8566_v38   ;;  %v22655_v38 = vld [vmem:[#allocation41_spill] sm:$0xff] }
 0xd87   :  { %v8908_v28 = vsub.f32 %v20519_v17, %v22641_v59  ;;  %v22644_v55 = vand.u32 4294901760, %v20945_v18  ;;  %8768 = vmatmul.mubr.f32.gmra.mrb[28].mxu1 %v8767_v0  ;;  %v16148_v59 = vpack.c.bf16 %v9014_v24, %v9007_v40  ;;  %v9021_v49 = vand.u32 4294901760, %v9020_v33  ;;  %v22648_v24 = vld [vmem:[#allocation46_spill] sm:$0xff] }
 0xd88   :  { %22642 = vst [vmem:[#allocation71_spill] sm:$0xff] %v21047_v39  ;;  %v8915_v46 = vsub.f32 %v20524_v42, %v22643_v53  ;;  %v9028_v37 = vand.u32 4294901760, %v9027_v13  ;;  %v22645_v41 = vand.u32 4294901760, %v20776_v2  ;;  %16147 = vmatpush3.bf16.msra.mxu1 %v16146_v35  ;;  %16275 = vmatpush3.bf16.msra.mxu0 %v22646_v32  ;;  %v8565_v53 = vld [vmem:[%s21980_s8 + $0x30] sm:$0xff]  ;;  %v8902_v7 = vand.u32 4294901760, %v8901_v52 }
 0xd89   :  { %v21055_v44 = vsub.f32 %v20945_v18, %v22644_v55  ;;  %v22647_v0 = vand.u32 4294901760, %v20985_v20  ;;  %v21074_v13 = vsub.f32 %v8521_v30, %v21038_v47  ;;  %16149 = vmatprep.subr.bf16.mxu1 %v16148_v59  ;;  %16277 = vmatprep.subr.bf16.mxu0 %v22648_v24  ;;  %v8909_v35 = vand.u32 4294901760, %v8908_v28  ;;  %v22652_v28 = vld [vmem:[#allocation36_spill] sm:$0xff] }
 0xd8a   :  { %v9034_v5 = vsub.f32 %v20776_v2, %v22645_v41  ;;  %v22649_v55 = vand.u32 4294901760, %v20761_v36  ;;  %v22255_v52 = vand.u32 4294901760, %v21045_v56  ;;  %v21082_v32 = vsub.f32 %v8520_v51, %v21047_v39  ;;  %8599 = vperm.xlu1 %16973, %v8565_v53  }
 0xd8b   :  { %v21070_v40 = vsub.f32 %v20985_v20, %v22647_v0  ;;  %v22650_v0 = vand.u32 4294901760, %v20921_v62  ;;  %v16150_v33 = vpack.c.bf16 %v8902_v7, %v8895_v22  ;;  %v8916_v30 = vand.u32 4294901760, %v8915_v46  ;;  %v11488_v62 = vld [vmem:[%s21988_s16 + $0x8] sm:$0xff] }
 0xd8c   :  { %v9041_v41 = vsub.f32 %v20761_v36, %v22649_v55  ;;  %v22651_v59 = vand.u32 4294901760, %v20817_v63  ;;  %v22653_v47 = vand.u32 4294901760, %v22652_v28  ;;  %v22654_v55 = vand.u32 4294901760, %v20926_v21  ;;  %v11487_v21 = vld [vmem:[%s21988_s16] sm:$0xff]  ;;  %11498 = vperm.xlu0 %16972, %v11488_v62  }
 0xd8d   :  { %8777 = vmatprep.mubr.f32.mxu1 %v22650_v0  ;;  %v16152_v51 = vpack.c.bf16 %v9028_v37, %v9021_v49  ;;  %v8797_v22 = vand.u32 4294901760, %v20998_v11  ;;  %v9035_v46 = vand.u32 4294901760, %v9034_v5  ;;  %v22656_v7 = vand.u32 4294901760, %v22655_v38  ;;  %16151 = vmatpush3.bf16.msra.mxu1 %v16150_v33  ;;  %v22660_v33 = vld [vmem:[#allocation51_spill] sm:$0xff] }
 0xd8e   :  { %v8922_v24 = vsub.f32 %v20817_v63, %v22651_v59  ;;  %v9048_v57 = vsub.f32 %v22652_v28, %v22653_v47  ;;  %8783 = vmatmul.mubr.f32.gmra.mrb[30].mxu1 %v22654_v55  ;;  %v22657_v59 = vld [vmem:[#allocation50_spill] sm:$0xff]  ;;  %v8806_v47 = vand.u32 4294901760, %v21055_v44  ;;  %v8812_v49 = vand.u32 4294901760, %v21070_v40  ;;  %11493 = vperm.xlu1 %16973, %v11487_v21  }
 0xd8f   :  { %v9055_v0 = vsub.f32 %v22655_v38, %v22656_v7  ;;  %16279 = vmatpush3.bf16.msra.mxu0 %v22657_v59  ;;  %v22658_v37 = vand.u32 4294901760, %v20819_v61  ;;  %v22659_v5 = vand.u32 4294901760, %v21036_v31  ;;  %16153 = vmatprep.subr.bf16.mxu1 %v16152_v51  ;;  %v9042_v55 = vand.u32 4294901760, %v9041_v41 }
 0xd90   :  { %16281 = vmatprep.subr.bf16.mxu0 %v22660_v33  ;;  %v8826_v7 = vsub.f32 %v21045_v56, %v22255_v52  ;;  %v8834_v44 = vand.u32 4294901760, %v21074_v13  ;;  %v22661_v59 = vand.u32 4294901760, %v20940_v8  ;;  %v8923_v39 = vand.u32 4294901760, %v8922_v24  ;;  %v11490_v33 = vld [vmem:[%s21988_s16 + $0x18] sm:$0xff]  ;;  %v11489_v24 = vld [vmem:[%s21988_s16 + $0x10] sm:$0xff] }
 0xd91   :  { %v8929_v11 = vsub.f32 %v20819_v61, %v22658_v37  ;;  %v8820_v53 = vsub.f32 %v21036_v31, %v22659_v5  ;;  %v16154_v37 = vpack.c.bf16 %v8916_v30, %v8909_v35  ;;  %v9049_v6 = vand.u32 4294901760, %v9048_v57  ;;  %v22665_v30 = vld [vmem:[#allocation57_spill] sm:$0xff]  ;;  %11508 = vperm.xlu0 %16972, %v11490_v33   ;;  %v12196_v33 = vld [vmem:[%s21990_s18] sm:$0xff] }
 0xd92   :  { %8792 = vmatprep.mubr.f32.mxu1 %v22661_v59  ;;  %v22662_v51 = vand.u32 4294901760, %v20830_v23  ;;  %v16156_v41 = vpack.c.bf16 %v9042_v55, %v9035_v46  ;;  %v9056_v52 = vand.u32 4294901760, %v9055_v0  ;;  %v22663_v40 = vand.u32 4294901760, %v20864_v26  ;;  %v22667_v0 = vld [vmem:[#allocation58_spill] sm:$0xff]  ;;  %11503 = vperm.xlu1 %16973, %v11489_v24  }
 0xd93   :  { %8798 = vmatmul.mubr.f32.gmra.mrb[32].mxu1 %v8797_v22  ;;  %v22664_v35 = vand.u32 4294901760, %v20866_v9  ;;  %16283 = vmatpush3.bf16.msra.mxu0 %v22665_v30  ;;  %v8930_v62 = vand.u32 4294901760, %v8929_v11  ;;  %v22666_v22 = vand.u32 4294901760, %v20844_v34  ;;  %v8821_v21 = vand.u32 4294901760, %v8820_v53 }
 0xd94   :  { %v8943_v5 = vsub.f32 %v20830_v23, %v22662_v51  ;;  %v9062_v8 = vsub.f32 %v20864_v26, %v22663_v40  ;;  %16155 = vmatpush3.bf16.msra.mxu1 %v16154_v37  ;;  %16285 = vmatprep.subr.bf16.mxu0 %v22667_v0  ;;  %v8827_v55 = vand.u32 4294901760, %v8826_v7  ;;  %v8835_v40 = vsub.f32 %v21074_v13, %v8834_v44  ;;  %v12197_v7 = vld [vmem:[%s21990_s18 + $0x8] sm:$0xff] }
 0xd95   :  { %v9069_v57 = vsub.f32 %v20866_v9, %v22664_v35  ;;  %v8936_v46 = vsub.f32 %v20844_v34, %v22666_v22  ;;  %16157 = vmatprep.subr.bf16.mxu1 %v16156_v41  ;;  %8807 = vmatprep.mubr.f32.mxu1 %v8806_v47  ;;  %v16158_v59 = vpack.c.bf16 %v8930_v62, %v8923_v39  ;;  %v22668_v51 = vand.u32 4294901760, %v20887_v45  ;;  %v13215_v62 = vld [vmem:[#allocation11] sm:$0x1]  ;;  %v22672_v0 = vld [vmem:[#allocation19_spill] sm:$0xff] }
 0xd96   :  { %v8944_v37 = vand.u32 4294901760, %v8943_v5  ;;  %v22669_v35 = vand.u32 4294901760, %v20889_v54  ;;  %v16160_v53 = vpack.c.bf16 %v9056_v52, %v9049_v6  ;;  %v9063_v30 = vand.u32 4294901760, %v9062_v8  ;;  %12205 = vperm.xlu0 %16972, %v12197_v7   ;;  %12200 = vperm.xlu1 %16973, %v12196_v33   ;;  %v22682_v7 = vld [vmem:[#allocation33_spill] sm:$0xff]  ;;  %v22687_v33 = vld [vmem:[#allocation24_spill] sm:$0xff] }
 0xd97   :  { %v8950_v11 = vsub.f32 %v20887_v45, %v22668_v51  ;;  %8813 = vmatmul.mubr.f32.gmra.mrb[34].mxu1 %v8812_v49  ;;  %v9070_v47 = vand.u32 4294901760, %v9069_v57  ;;  %v22670_v39 = vand.u32 4294901760, %v21082_v32  ;;  %16287 = vmatpush3.bf16.msra.mxu0 %v20815_v16  ;;  %v8937_v24 = vand.u32 4294901760, %v8936_v46  ;;  %v12745_v16 = vld [vmem:[%s21992_s20] sm:$0xff]  ;;  %v22671_v46 = vld [vmem:[#allocation25_spill] sm:$0xff] }
 0xd98   :  { %v8957_v41 = vsub.f32 %v20889_v54, %v22669_v35  ;;  %16159 = vmatpush3.bf16.msra.mxu1 %v16158_v59  ;;  %16289 = vmatprep.subr.bf16.mxu0 %v20828_v3  ;;  %v8836_v52 = vand.u32 4294901760, %v8835_v40  ;;  %v22675_v40 = vld [vmem:[#allocation32_spill] sm:$0xff] }
 0xd99   :  { %v8841_v5 = vsub.f32 %v21082_v32, %v22670_v39  ;;  %16161 = vmatprep.subr.bf16.mxu1 %v16160_v53  ;;  %8822 = vmatprep.mubr.f32.mxu1 %v8821_v21  ;;  %v16162_v6 = vpack.c.bf16 %v8944_v37, %v8937_v24  ;;  %v8951_v49 = vand.u32 4294901760, %v8950_v11  ;;  %v16164_v57 = vpack.c.bf16 %v9070_v47, %v9063_v30  ;;  %v22676_v37 = vld [vmem:[#allocation35_spill] sm:$0xff]  ;;  %v22684_v30 = vld [vmem:[#allocation20_spill] sm:$0xff] }
 0xd9a   :  { %v8958_v8 = vand.u32 4294901760, %v8957_v41  ;;  %13218 = vperm.xlu0 %16972, %v13215_v62   ;;  %12748 = vperm.xlu1 %16973, %v12745_v16   ;;  %v16168_v21 = vpack.c.bf16 %v22672_v0, %v22671_v46  ;;  %v22677_v51 = vand.u32 4294901760, %v22676_v37  ;;  %v22679_v11 = vld [vmem:[#allocation39_spill] sm:$0xff]  ;;  %v22680_v41 = vld [vmem:[#allocation45_spill] sm:$0xff]  ;;  %v16176_v24 = vpack.c.bf16 %v20446_v4, %v20441_v25  ;;  %v22694_v16 = vld [vmem:[#allocation60_spill] sm:$0xff] }
 0xd9b   :  { %8828 = vmatmul.mubr.f32.gmra.mrb[36].mxu1 %v8827_v55  ;;  %v8842_v22 = vand.u32 4294901760, %v8841_v5  ;;  %16291 = vmatpush3.bf16.msra.mxu0 %v20852_v60  ;;  %v22673_v60 = vld [vmem:[#allocation21_spill] sm:$0xff]  ;;  %v22674_v55 = vld [vmem:[#allocation23_spill] sm:$0xff]  ;;  %v16172_v35 = vpack.c.bf16 %v20603_v19, %v22679_v11  ;;  %v22681_v53 = vand.u32 4294901760, %v22680_v41  ;;  %v22695_v25 = vand.u32 4294901760, %v22694_v16  ;;  %v22696_v4 = vld [vmem:[#allocation48_spill] sm:$0xff] }
 0xd9c   :  { %16163 = vmatpush3.bf16.msra.mxu1 %v16162_v6  ;;  %16293 = vmatprep.subr.bf16.mxu0 %v20862_v12  ;;  %v16166_v3 = vpack.c.bf16 %v8958_v8, %v8951_v49  ;;  %v16170_v59 = vpack.c.bf16 %v22675_v40, %v22674_v55  ;;  %v22678_v12 = vld [vmem:[#allocation31_spill] sm:$0xff]  ;;  %v22688_v6 = vld [vmem:[#allocation52_spill] sm:$0xff]  ;;  %v16178_v49 = vpack.c.bf16 %v20472_v58, %v20467_v10  ;;  %v22691_v8 = vld [vmem:[#allocation54_spill] sm:$0xff]  ;;  %v22697_v10 = vand.u32 4294901760, %v20822_v14 }
 0xd9d   :  { %16165 = vmatprep.subr.bf16.mxu1 %v16164_v57  ;;  %8837 = vmatprep.mubr.f32.mxu1 %v8836_v52  ;;  %v22685_v39 = vld [vmem:[#allocation47_spill] sm:$0xff]  ;;  %v22689_v19 = vand.u32 4294901760, %v22688_v6  ;;  %v22690_v52 = vld [vmem:[#allocation29_spill] sm:$0xff]  ;;  %v22692_v57 = vand.u32 4294901760, %v22691_v8  ;;  %v16184_v46 = vpack.c.bf16 %v20498_v50, %v20493_v43  ;;  %v16186_v0 = vpack.c.bf16 %v20524_v42, %v20519_v17  ;;  %v22717_v11 = vld [vmem:[#allocation44_spill] sm:$0xff] }
 0xd9e   :  { %9444 = vmatmul.mubr.f32.gmra.mrb[26].mxu0 %v22677_v51  ;;  %v22686_v5 = vand.u32 4294901760, %v22685_v39  ;;  %v22693_v62 = vld [vmem:[#allocation43_spill] sm:$0xff]  ;;  %v22698_v58 = vld [vmem:[#allocation49_spill] sm:$0xff]  ;;  %v22703_v43 = vand.u32 4294901760, %v21036_v31  ;;  %v16190_v55 = vpack.c.bf16 %v20819_v61, %v20817_v63  ;;  %v22705_v17 = vand.u32 4294901760, %v21045_v56 }
 0xd9f   :  { %8843 = vmatmul.mubr.f32.gmra.mrb[38].mxu1 %v8842_v22  ;;  %16295 = vmatpush3.bf16.msra.mxu0 %v20885_v15  ;;  %v22683_v15 = vld [vmem:[#allocation27_spill] sm:$0xff]  ;;  %v16180_v22 = vpack.c.bf16 %v20673_v27, %v20685_v29  ;;  %v22699_v27 = vand.u32 4294901760, %v20945_v18  ;;  %v22704_v50 = vld [vmem:[#allocation61_spill] sm:$0xff]  ;;  %v16192_v40 = vpack.c.bf16 %v22655_v38, %v22652_v28  ;;  %v22708_v63 = vand.u32 4294901760, %v21082_v32  ;;  %v22710_v28 = vld [vmem:[#allocation70_spill] sm:$0xff] }
 0xda0   :  { %16167 = vmatpush3.bf16.msra.mxu1 %v16166_v3  ;;  %9073 = vmatprep.mubr.f32.mxu1 %v22673_v60  ;;  %v16174_v47 = vpack.c.bf16 %v22684_v30, %v22683_v15  ;;  %v16182_v3 = vpack.c.bf16 %v20714_v1, %v20720_v48  ;;  %v22700_v29 = vld [vmem:[#allocation55_spill] sm:$0xff]  ;;  %v22701_v1 = vand.u32 4294901760, %v20985_v20  ;;  %v22702_v48 = vld [vmem:[#allocation56_spill] sm:$0xff]  ;;  %v22706_v42 = vld [vmem:[#allocation65_spill] sm:$0xff]  ;;  %v16198_v38 = vpack.c.bf16 %v20889_v54, %v20887_v45 }
 0xda1   :  { %16169 = vmatprep.subr.bf16.mxu1 %v16168_v21  ;;  %9451 = vmatprep.mubr.f32.mxu0 %v22681_v53  ;;  %v16188_v21 = vpack.c.bf16 %v20761_v36, %v20776_v2  ;;  %v22707_v2 = vld [vmem:[#allocation68_spill] sm:$0xff]  ;;  %v16194_v36 = vpack.c.bf16 %v20830_v23, %v20844_v34  ;;  %v22709_v61 = vld [vmem:[#allocation69_spill] sm:$0xff]  ;;  %v22711_v23 = vld [vmem:[#allocation71_spill] sm:$0xff] }
 0xda2   :  { %9455 = vmatmul.mubr.f32.gmra.mrb[28].mxu0 %v22686_v5  ;;  %v22712_v34 = vld [vmem:[#allocation17_spill] sm:$0xff]  ;;  %v22715_v45 = vld [vmem:[#allocation34_spill] sm:$0xff]  ;;  %v22716_v54 = vld [vmem:[#allocation40_spill] sm:$0xff] }
 0xda3   :  { %9075 = vmatmul.mubr.f32.vlgmr.msra.gmra.mrb[40].mxu1 %v22678_v12  ;;  %9462 = vmatprep.mubr.f32.mxu0 %v22689_v19  ;;  %v22718_v53 = vld [vmem:[#allocation22_spill] sm:$0xff]  ;;  %v22723_v5 = vld [vmem:[#allocation28_spill] sm:$0xff] }
 0xda4   :  { %16171 = vmatpush3.bf16.msra.mxu1 %v16170_v59  ;;  %9080 = vmatprep.mubr.f32.mxu1 %v22682_v7  ;;  %v16196_v59 = vpack.c.bf16 %v20866_v9, %v20864_v26  ;;  %v8501_v9 = vld [vmem:[%s22531_s28 + $0x10] sm:$0xff]  ;;  %v22714_v26 = vld [vmem:[#allocation38_spill] sm:$0xff] }
 0xda5   :  { %16173 = vmatprep.subr.bf16.mxu1 %v16172_v35  ;;  %v8608_v51 = vsel %vm2180_vm13, %v8501_v9, 0  ;;  %v22719_v15 = vld [vmem:[#allocation26_spill] sm:$0xff] }
 0xda6   :  { %9466 = vmatmul.mubr.f32.gmra.mrb[30].mxu0 %v22692_v57  ;;  %v21259_v35 = vand.u32 4294901760, %v8608_v51  ;;  %v22725_v19 = vld [vmem:[#allocation62_spill] sm:$0xff] }
 0xda7   :  { %9082 = vmatmul.mubr.f32.gmra.mrb[42].mxu1 %v22687_v33  ;;  %9473 = vmatprep.mubr.f32.mxu0 %v22695_v25  ;;  %v22729_v57 = vld [vmem:[#allocation66_spill] sm:$0xff] }
 0xda8   :  { %16175 = vmatpush3.bf16.msra.mxu1 %v16174_v47  ;;  %9087 = vmatprep.mubr.f32.mxu1 %v22690_v52  ;;  %v21268_v30 = vsub.f32 %v8608_v51, %v21259_v35  ;;  %v22721_v47 = vld [vmem:[#allocation53_spill] sm:$0xff] }
 0xda9   :  { %16177 = vmatprep.subr.bf16.mxu1 %v16176_v24  ;;  %v8510_v25 = vld [vmem:[%s22531_s28 + $0x58] sm:$0xff] }
 0xdaa   :  { %9477 = vmatmul.mubr.f32.gmra.mrb[32].mxu0 %v22697_v10 }
 0xdab   :  { %9089 = vmatmul.mubr.f32.gmra.mrb[44].mxu1 %v22693_v62  ;;  %9484 = vmatprep.mubr.f32.mxu0 %v22699_v27  ;;  %v8522_v27 = vld [vmem:[%s22531_s28 + $0xb8] sm:$0xff] }
 0xdac   :  { %16179 = vmatpush3.bf16.msra.mxu1 %v16178_v49  ;;  %9094 = vmatprep.mubr.f32.mxu1 %v22696_v4 }
 0xdad   :  { %16181 = vmatprep.subr.bf16.mxu1 %v16180_v22 }
 0xdae   :  { %9488 = vmatmul.mubr.f32.gmra.mrb[34].mxu0 %v22701_v1  ;;  %v8617_v1 = vsel %vm2180_vm13, %v8510_v25, 0 }
 0xdaf   :  { %9096 = vmatmul.mubr.f32.gmra.mrb[46].mxu1 %v22698_v58  ;;  %9495 = vmatprep.mubr.f32.mxu0 %v22703_v43 }
 0xdb0   :  { %16183 = vmatpush3.bf16.msra.mxu1 %v16182_v3  ;;  %9101 = vmatprep.mubr.f32.mxu1 %v22700_v29 }
 0xdb1   :  { %16185 = vmatprep.subr.bf16.mxu1 %v16184_v46 }
 0xdb2   :  { %9499 = vmatmul.mubr.f32.gmra.mrb[36].mxu0 %v22705_v17 }
 0xdb3   :  { %9103 = vmatmul.mubr.f32.gmra.mrb[48].mxu1 %v22702_v48  ;;  %9506 = vmatprep.mubr.f32.mxu0 %v8834_v44  ;;  %v22713_v44 = vld [vmem:[#allocation18_spill] sm:$0xff] }
 0xdb4   :  { %16187 = vmatpush3.bf16.msra.mxu1 %v16186_v0  ;;  %9108 = vmatprep.mubr.f32.mxu1 %v22704_v50 }
 0xdb5   :  { %16189 = vmatprep.subr.bf16.mxu1 %v16188_v21 }
 0xdb6   :  { %9510 = vmatmul.mubr.f32.gmra.mrb[38].mxu0 %v22708_v63 }
 0xdb7   :  { %9110 = vmatmul.mubr.f32.gmra.mrb[50].mxu1 %v22706_v42  ;;  %9829 = vmatprep.mubr.f32.mxu0 %v22673_v60 }
 0xdb8   :  { %16191 = vmatpush3.bf16.msra.mxu1 %v16190_v55  ;;  %9115 = vmatprep.mubr.f32.mxu1 %v22707_v2 }
 0xdb9   :  { %16193 = vmatprep.subr.bf16.mxu1 %v16192_v40  ;;  %v8629_v40 = vsel %vm2180_vm13, %v8522_v27, 0 }
 0xdba   :  { %9831 = vmatmul.mubr.f32.vlgmr.msra.gmra.mrb[40].mxu0 %v22678_v12 }
 0xdbb   :  { %9117 = vmatmul.mubr.f32.gmra.mrb[52].mxu1 %v22709_v61  ;;  %9836 = vmatprep.mubr.f32.mxu0 %v22682_v7 }
 0xdbc   :  { %16195 = vmatpush3.bf16.msra.mxu1 %v16194_v36  ;;  %9122 = vmatprep.mubr.f32.mxu1 %v22710_v28  ;;  %v21362_v36 = vand.u32 4294901760, %v8617_v1 }
 0xdbd   :  { %16197 = vmatprep.subr.bf16.mxu1 %v16196_v59 }
 0xdbe   :  { %9838 = vmatmul.mubr.f32.gmra.mrb[42].mxu0 %v22687_v33  ;;  %v21378_v51 = vsub.f32 %v8617_v1, %v21362_v36 }
 0xdbf   :  { %9124 = vmatmul.mubr.f32.gmra.mrb[54].mxu1 %v22711_v23  ;;  %9843 = vmatprep.mubr.f32.mxu0 %v22690_v52 }
 0xdc0   :  { %16199 = vmatpush3.bf16.msra.mxu1 %v16198_v38  ;;  %9259 = vmatprep.mubr.f32.mxu1 %v22712_v34  ;;  %v21369_v38 = vand.u32 4294901760, %v8629_v40 }
 0xdc1   :  { %16233 = vmatprep.subr.bf16.mxu1 %v22713_v44 }
 0xdc2   :  { %9845 = vmatmul.mubr.f32.gmra.mrb[44].mxu0 %v22693_v62 }
 0xdc3   :  { %9262 = vmatmul.mubr.f32.vlgmr.msra.gmra.mrb[56].mxu1 %v22714_v26  ;;  %9850 = vmatprep.mubr.f32.mxu0 %v22696_v4 }
 0xdc4   :  { %16235 = vmatpush3.bf16.msra.mxu1 %v22715_v45  ;;  %9268 = vmatprep.mubr.f32.mxu1 %v22716_v54 }
 0xdc5   :  { %16237 = vmatprep.subr.bf16.mxu1 %v22717_v11 }
 0xdc6   :  { %9852 = vmatmul.mubr.f32.gmra.mrb[46].mxu0 %v22698_v58 }
 0xdc7   :  { %9271 = vmatmul.mubr.f32.gmra.mrb[58].mxu1 %v22676_v37  ;;  %9857 = vmatprep.mubr.f32.mxu0 %v22700_v29  ;;  %v22720_v37 = vld [vmem:[#allocation30_spill] sm:$0xff] }
 0xdc8   :  { %16239 = vmatpush3.bf16.msra.mxu1 %v22718_v53  ;;  %9277 = vmatprep.mubr.f32.mxu1 %v22680_v41  ;;  %v9956_v41 = vand.u32 4294901760, %v21268_v30 }
 0xdc9   :  { %16241 = vmatprep.subr.bf16.mxu1 %v22719_v15 }
 0xdca   :  { %9859 = vmatmul.mubr.f32.gmra.mrb[48].mxu0 %v22702_v48  ;;  %v9957_v24 = vsub.f32 %v21268_v30, %v9956_v41 }
 0xdcb   :  { %9280 = vmatmul.mubr.f32.gmra.mrb[60].mxu1 %v22685_v39  ;;  %9864 = vmatprep.mubr.f32.mxu0 %v22704_v50  ;;  %v22722_v39 = vld [vmem:[#allocation59_spill] sm:$0xff] }
 0xdcc   :  { %16243 = vmatpush3.bf16.msra.mxu1 %v22720_v37  ;;  %9286 = vmatprep.mubr.f32.mxu1 %v22688_v6  ;;  %v22724_v6 = vld [vmem:[#allocation37_spill] sm:$0xff]  ;;  %v9958_v49 = vand.u32 4294901760, %v9957_v24 }
 0xdcd   :  { %16245 = vmatprep.subr.bf16.mxu1 %v22721_v47  ;;  %v21392_v47 = vsub.f32 %v8629_v40, %v21369_v38 }
 0xdce   :  { %9866 = vmatmul.mubr.f32.gmra.mrb[50].mxu0 %v22706_v42 }
 0xdcf   :  { %9289 = vmatmul.mubr.f32.gmra.mrb[62].mxu1 %v22691_v8  ;;  %9871 = vmatprep.mubr.f32.mxu0 %v22707_v2  ;;  %v22727_v8 = vld [vmem:[#allocation16_spill] sm:$0xff] }
 0xdd0   :  { %16247 = vmatpush3.bf16.msra.mxu1 %v22722_v39  ;;  %9295 = vmatprep.mubr.f32.mxu1 %v22694_v16 }
 0xdd1   :  { %16249 = vmatprep.subr.bf16.mxu1 %v22723_v5 }
 0xdd2   :  { %9873 = vmatmul.mubr.f32.gmra.mrb[52].mxu0 %v22709_v61 }
 0xdd3   :  { %9298 = vmatmul.mubr.f32.gmra.mrb[64].mxu1 %v20822_v14  ;;  %9878 = vmatprep.mubr.f32.mxu0 %v22710_v28  ;;  %v22726_v14 = vld [vmem:[#allocation63_spill] sm:$0xff] }
 0xdd4   :  { %16251 = vmatpush3.bf16.msra.mxu1 %v22724_v6  ;;  %9304 = vmatprep.mubr.f32.mxu1 %v20945_v18  ;;  %v22728_v18 = vld [vmem:[#allocation64_spill] sm:$0xff] }
 0xdd5   :  { %16253 = vmatprep.subr.bf16.mxu1 %v22725_v19 }
 0xdd6   :  { %9880 = vmatmul.mubr.f32.gmra.mrb[54].mxu0 %v22711_v23 }
 0xdd7   :  { %9307 = vmatmul.mubr.f32.gmra.mrb[66].mxu1 %v20985_v20  ;;  %14636 = vmatprep.mubr.f32.mxu0 %v9958_v49  ;;  %v22730_v20 = vld [vmem:[#allocation67_spill] sm:$0xff] }
 0xdd8   :  { %16255 = vmatpush3.bf16.msra.mxu1 %v22726_v14  ;;  %9313 = vmatprep.mubr.f32.mxu1 %v21036_v31  ;;  %v8504_v31 = vld [vmem:[%s22531_s28 + $0x28] sm:$0xff]  ;;  %v9986_v14 = vand.u32 4294901760, %v21378_v51 }
 0xdd9   :  { %16257 = vmatprep.subr.bf16.mxu1 %v22727_v8 }
 0xddb   :  { %9316 = vmatmul.mubr.f32.gmra.mrb[68].mxu1 %v21045_v56  ;;  %v8513_v56 = vld [vmem:[%s22531_s28 + $0x70] sm:$0xff] }
 0xddc   :  { %16259 = vmatpush3.bf16.msra.mxu1 %v22728_v18  ;;  %9322 = vmatprep.mubr.f32.mxu1 %v21074_v13  ;;  %v8516_v13 = vld [vmem:[%s22531_s28 + $0x88] sm:$0xff] }
 0xddd   :  { %16261 = vmatprep.subr.bf16.mxu1 %v22729_v57 }
 0xddf   :  { %9325 = vmatmul.mubr.f32.gmra.mrb[70].mxu1 %v21082_v32  ;;  %v8611_v32 = vsel %vm2180_vm13, %v8504_v31, 0 }
 0xde0   :  { %16263 = vmatpush3.bf16.msra.mxu1 %v22730_v20  ;;  %9676 = vmatprep.mubr.f32.mxu1 %v22673_v60  ;;  %v8507_v60 = vld [vmem:[%s22531_s28 + $0x40] sm:$0xff]  ;;  %v21326_v16 = vand.u32 4294901760, %v8611_v32 }
 0xde2   :  { %v8486_v22 = vpop.permute.xlu0 %8485  ;;  %v8484_v3 = vpop.permute.xlu1 %8483 }
 0xde3   :  { %9678 = vmatmul.mubr.f32.vlgmr.msra.gmra.mrb[72].mxu1 %v22678_v12  ;;  %v8620_v12 = vsel %vm2180_vm13, %v8513_v56, 0  ;;  %8496 = vst.msk [vmem:[#allocation10 + $0x108] sm:$0xff] %vm8198_vm6, %v8486_v22  ;;  %8495 = vst.msk [vmem:[#allocation10 + $0x100] sm:$0xff] %vm8198_vm6, %v8484_v3  ;;  %v9987_v22 = vsub.f32 %v21378_v51, %v9986_v14 }
 0xde4   :  { %9683 = vmatprep.mubr.f32.mxu1 %v22682_v7  ;;  %v8623_v7 = vsel %vm2180_vm13, %v8516_v13, 0  ;;  %v21334_v10 = vand.u32 4294901760, %v8620_v12  ;;  %v10026_v13 = vand.u32 4294901760, %v21392_v47 }
 0xde5   :  { %v21337_v46 = vand.u32 4294901760, %v8623_v7  ;;  %v9988_v40 = vand.u32 4294901760, %v9987_v22 }
 0xde6   :  { %v21353_v55 = vsub.f32 %v8620_v12, %v21334_v10  ;;  %v10027_v1 = vsub.f32 %v21392_v47, %v10026_v13 }
 0xde7   :  { %9685 = vmatmul.mubr.f32.gmra.mrb[74].mxu1 %v22687_v33  ;;  %v8519_v33 = vld [vmem:[%s22531_s28 + $0xa0] sm:$0xff]  ;;  %v8490_v21 = vpop.permute.xlu0 %8489  ;;  %v8488_v43 = vpop.permute.xlu1 %8487 }
 0xde8   :  { %9690 = vmatprep.mubr.f32.mxu1 %v22690_v52  ;;  %v8614_v52 = vsel %vm2180_vm13, %v8507_v60, 0  ;;  %8498 = vst.msk [vmem:[#allocation10 + $0x118] sm:$0xff] %vm8198_vm6, %v8490_v21  ;;  %8497 = vst.msk [vmem:[#allocation10 + $0x110] sm:$0xff] %vm8198_vm6, %v8488_v43  ;;  %v9996_v9 = vand.u32 4294901760, %v21353_v55 }
 0xde9   :  { %v21343_v0 = vand.u32 4294901760, %v8614_v52 }
 0xdea   :  { %v8556_v59 = vld [vmem:[#allocation10 + $0x108] sm:$0xff]  ;;  %v8555_v34 = vld [vmem:[#allocation10 + $0x100] sm:$0xff] }
 0xdeb   :  { %9692 = vmatmul.mubr.f32.gmra.mrb[76].mxu1 %v22693_v62  ;;  %v8626_v62 = vsel %vm2180_vm13, %v8519_v33, 0  ;;  %v21365_v63 = vsub.f32 %v8614_v52, %v21343_v0  ;;  %v9889_v44 = vand.u32 4294901760, %v8556_v59  ;;  %v9886_v45 = vand.u32 4294901760, %v8555_v34 }
 0xdec   :  { %9697 = vmatprep.mubr.f32.mxu1 %v22696_v4  ;;  %v21348_v4 = vsub.f32 %v8611_v32, %v21326_v16  ;;  %v21355_v17 = vand.u32 4294901760, %v8626_v62 }
 0xded   :  { %v9976_v11 = vand.u32 4294901760, %v21365_v63  ;;  %v21389_v37 = vsub.f32 %v8555_v34, %v9886_v45 }
 0xdee   :  { %v21374_v26 = vsub.f32 %v8626_v62, %v21355_v17 }
 0xdef   :  { %9699 = vmatmul.mubr.f32.gmra.mrb[78].mxu1 %v22698_v58  ;;  %v21360_v58 = vsub.f32 %v8623_v7, %v21337_v46  ;;  %v8558_v53 = vld [vmem:[#allocation10 + $0x118] sm:$0xff]  ;;  %v8557_v39 = vld [vmem:[#allocation10 + $0x110] sm:$0xff]  ;;  %v10037_v49 = vand.u32 4294901760, %v21389_v37  ;;  %v9977_v18 = vsub.f32 %v21365_v63, %v9976_v11 }
 0xdf0   :  { %9704 = vmatprep.mubr.f32.mxu1 %v22700_v29  ;;  %v9966_v29 = vand.u32 4294901760, %v21348_v4  ;;  %v9895_v5 = vand.u32 4294901760, %v8558_v53  ;;  %v10016_v6 = vand.u32 4294901760, %v21374_v26  ;;  %v9892_v19 = vand.u32 4294901760, %v8557_v39 }
 0xdf1   :  { %v10006_v54 = vand.u32 4294901760, %v21360_v58  ;;  %v10038_v31 = vsub.f32 %v21389_v37, %v10037_v49  ;;  %v9978_v52 = vand.u32 4294901760, %v9977_v18 }
 0xdf2   :  { %v9967_v15 = vsub.f32 %v21348_v4, %v9966_v29  ;;  %v21415_v57 = vsub.f32 %v8558_v53, %v9895_v5  ;;  %v21418_v20 = vpack.c.bf16 %v9895_v5, %v9892_v19  ;;  %v21423_v56 = vsub.f32 %v8557_v39, %v9892_v19 }
 0xdf3   :  { %9706 = vmatmul.mubr.f32.gmra.mrb[80].mxu1 %v22702_v48  ;;  %v21380_v48 = vsub.f32 %v8556_v59, %v9889_v44  ;;  %v10039_v33 = vand.u32 4294901760, %v10038_v31 }
 0xdf4   :  { %9711 = vmatprep.mubr.f32.mxu1 %v22704_v50  ;;  %v21384_v50 = vpack.c.bf16 %v9889_v44, %v9886_v45  ;;  %v10058_v12 = vand.u32 4294901760, %v21415_v57  ;;  %v9968_v7 = vand.u32 4294901760, %v9967_v15  ;;  %v10028_v44 = vand.u32 4294901760, %v10027_v1 }
 0xdf5   :  { %v10044_v24 = vand.u32 4294901760, %v21380_v48  ;;  %v16316_v45 = vpack.c.bf16 %v21415_v57, %v21423_v56 }
 0xdf6   :  { %16297 = vmatprep.subr.bf16.mxu0 %v21384_v50  ;;  %16530 = vmatprep.subr.bf16.mxu1 %v21384_v50  ;;  %v10059_v25 = vsub.f32 %v21415_v57, %v10058_v12 }
 0xdf7   :  { %9713 = vmatmul.mubr.f32.gmra.mrb[82].mxu1 %v22706_v42  ;;  %v9997_v42 = vsub.f32 %v21353_v55, %v9996_v9  ;;  %16299 = vmatpush3.bf16.msra.mxu0 %v21384_v50  ;;  %v10045_v8 = vsub.f32 %v21380_v48, %v10044_v24  ;;  %v16328_v53 = vpack.c.bf16 %v10044_v24, %v10037_v49 }
 0xdf8   :  { %9718 = vmatprep.mubr.f32.mxu1 %v22707_v2  ;;  %v10007_v2 = vsub.f32 %v21360_v58, %v10006_v54  ;;  %16532 = vmatpush3.bf16.msra.mxu1 %v21384_v50  ;;  %v10060_v21 = vand.u32 4294901760, %v10059_v25  ;;  %v8570_v49 = vpop.permute.xlu1 %8569 }
 0xdf9   :  { %v10046_v32 = vand.u32 4294901760, %v10045_v8  ;;  %v9998_v60 = vand.u32 4294901760, %v9997_v42  ;;  %16301 = vmatprep.subr.bf16.mxu0 %v21418_v20  ;;  %16531 = vmatprep.subr.bf16.mxu1 %v21418_v20 }
 0xdfa   :  { %v10008_v62 = vand.u32 4294901760, %v10007_v2 }
 0xdfb   :  { %9720 = vmatmul.mubr.f32.gmra.mrb[84].mxu1 %v22709_v61  ;;  %v10017_v61 = vsub.f32 %v21374_v26, %v10016_v6  ;;  %16303 = vmatpush3.bf16.msra.mxu0 %v21418_v20  ;;  %v16304_v3 = vpack.c.bf16 %v10046_v32, %v10039_v33 }
 0xdfc   :  { %9725 = vmatprep.mubr.f32.mxu1 %v22710_v28  ;;  %v10051_v28 = vand.u32 4294901760, %v21423_v56  ;;  %16533 = vmatpush3.bf16.msra.mxu1 %v21418_v20 }
 0xdfd   :  { %v10018_v43 = vand.u32 4294901760, %v10017_v61  ;;  %16305 = vmatprep.subr.bf16.mxu1 %v16304_v3 }
 0xdfe   :  { %v10052_v27 = vsub.f32 %v21423_v56, %v10051_v28  ;;  %14637 = vmatmul.mubr.f32.vlgmr.msra.gmra.mrb[56].mxu0 %v9968_v7 }
 0xdff   :  { %9727 = vmatmul.mubr.f32.gmra.mrb[86].mxu1 %v22711_v23  ;;  %14639 = vmatprep.mubr.f32.mxu0 %v9978_v52  ;;  %v16312_v23 = vpack.c.bf16 %v21380_v48, %v21389_v37  ;;  %v16332_v48 = vpack.c.bf16 %v10058_v12, %v10051_v28  ;;  %v8580_v52 = vpop.permute.xlu1 %8579 }
 0xe00   :  { %14642 = vmatprep.mubr.f32.mxu1 %v9998_v60  ;;  %v10053_v59 = vand.u32 4294901760, %v10052_v27 }
 0xe02   :  { %v16308_v34 = vpack.c.bf16 %v10060_v21, %v10053_v59  ;;  %14640 = vmatmul.mubr.f32.gmra.mrb[58].mxu0 %v9988_v40 }
 0xe03   :  { %14643 = vmatmul.mubr.f32.vlgmr.msra.gmra.mrb[88].mxu1 %v10008_v62 }
 0xe04   :  { %16307 = vmatpush3.bf16.msra.mxu1 %v16304_v3  ;;  %14645 = vmatprep.mubr.f32.mxu1 %v10018_v43 }
 0xe05   :  { %16309 = vmatprep.subr.bf16.mxu1 %v16308_v34 }
 0xe07   :  { %14646 = vmatmul.mubr.f32.gmra.mrb[90].mxu1 %v10028_v44 }
 0xe08   :  { %16311 = vmatpush3.bf16.msra.mxu1 %v16308_v34  ;;  %14656 = vmatprep.mubr.f32.mxu1 %v21259_v35 }
 0xe09   :  { %16313 = vmatprep.subr.bf16.mxu1 %v16312_v23 }
 0xe0b   :  { %14657 = vmatmul.mubr.f32.vlgmr.msra.gmra.mrb[92].mxu1 %v21326_v16 }
 0xe0c   :  { %16315 = vmatpush3.bf16.msra.mxu1 %v16312_v23  ;;  %14659 = vmatprep.mubr.f32.mxu1 %v21343_v0 }
 0xe0d   :  { %16317 = vmatprep.subr.bf16.mxu1 %v16316_v45 }
 0xe0f   :  { %14660 = vmatmul.mubr.f32.gmra.mrb[94].mxu1 %v21362_v36 }
 0xe10   :  { %16319 = vmatpush3.bf16.msra.mxu1 %v16316_v45  ;;  %14662 = vmatprep.mubr.f32.mxu1 %v21334_v10 }
 0xe11   :  { %16321 = vmatprep.subr.bf16.mxu1 %v21384_v50 }
 0xe13   :  { %14663 = vmatmul.mubr.f32.gmra.mrb[88].mxu1 %v21337_v46 }
 0xe14   :  { %14665 = vmatprep.mubr.f32.mxu1 %v21355_v17 }
 0xe17   :  { %14666 = vmatmul.mubr.f32.gmra.mrb[90].mxu1 %v21369_v38 }
 0xe18   :  { %14676 = vmatprep.mubr.f32.mxu1 %v21268_v30 }
 0xe1b   :  { %14677 = vmatmul.mubr.f32.vlgmr.msra.gmra.mrb[92].mxu1 %v21348_v4 }
 0xe1c   :  { %16323 = vmatpush3.bf16.msra.mxu1 %v21384_v50  ;;  %14679 = vmatprep.mubr.f32.mxu1 %v21365_v63 }
 0xe1d   :  { %16325 = vmatprep.subr.bf16.mxu1 %v21418_v20 }
 0xe1f   :  { %14680 = vmatmul.mubr.f32.gmra.mrb[94].mxu1 %v21378_v51 }
 0xe20   :  { %16327 = vmatpush3.bf16.msra.mxu1 %v21418_v20  ;;  %14682 = vmatprep.mubr.f32.mxu1 %v21353_v55 }
 0xe21   :  { %16329 = vmatprep.subr.bf16.mxu1 %v16328_v53 }
 0xe23   :  { %14683 = vmatmul.mubr.f32.gmra.mrb[88].mxu1 %v21360_v58 }
 0xe24   :  { %14685 = vmatprep.mubr.f32.mxu1 %v21374_v26 }
 0xe27   :  { %14686 = vmatmul.mubr.f32.gmra.mrb[90].mxu1 %v21392_v47 }
 0xe28   :  { %14696 = vmatprep.mubr.f32.mxu1 %v9956_v41 }
 0xe2b   :  { %14697 = vmatmul.mubr.f32.vlgmr.msra.gmra.mrb[92].mxu1 %v9966_v29 }
 0xe2c   :  { %16331 = vmatpush3.bf16.msra.mxu1 %v16328_v53  ;;  %14699 = vmatprep.mubr.f32.mxu1 %v9976_v11 }
 0xe2d   :  { %16333 = vmatprep.subr.bf16.mxu1 %v16332_v48 }
 0xe2f   :  { %14700 = vmatmul.mubr.f32.gmra.mrb[94].mxu1 %v9986_v14 }
 0xe30   :  { %16335 = vmatpush3.bf16.msra.mxu1 %v16332_v48  ;;  %14702 = vmatprep.mubr.f32.mxu1 %v9996_v9 }
 0xe31   :  { %16337 = vmatprep.subr.bf16.mxu1 %v21384_v50 }
 0xe33   :  { %14703 = vmatmul.mubr.f32.gmra.mrb[88].mxu1 %v10006_v54 }
 0xe34   :  { %14705 = vmatprep.mubr.f32.mxu1 %v10016_v6 }
 0xe37   :  { %14706 = vmatmul.mubr.f32.gmra.mrb[90].mxu1 %v10026_v13  ;;  %v8575_v13 = vpop.permute.xlu0 %8574 }
 0xe38   :  { %14716 = vmatprep.mubr.f32.mxu1 %v21259_v35 }
 0xe3b   :  { %14717 = vmatmul.mubr.f32.vlgmr.msra.gmra.mrb[92].mxu1 %v21326_v16  ;;  %v8585_v59 = vpop.permute.xlu0 %8584 }
 0xe3c   :  { %16339 = vmatpush3.bf16.msra.mxu1 %v21384_v50  ;;  %14719 = vmatprep.mubr.f32.mxu1 %v21343_v0 }
 0xe3d   :  { %16341 = vmatprep.subr.bf16.mxu1 %v21418_v20 }
 0xe3f   :  { %14720 = vmatmul.mubr.f32.gmra.mrb[94].mxu1 %v21362_v36 }
 0xe40   :  { %16343 = vmatpush3.bf16.msra.mxu1 %v21418_v20  ;;  %14722 = vmatprep.mubr.f32.mxu1 %v21334_v10 }
 0xe43   :  { %14723 = vmatmul.mubr.f32.gmra.mrb[88].mxu1 %v21337_v46 }
 0xe44   :  { %14725 = vmatprep.mubr.f32.mxu1 %v21355_v17 }
 0xe47   :  { %14726 = vmatmul.mubr.f32.gmra.mrb[90].mxu1 %v21369_v38 }
 0xe48   :  { %14736 = vmatprep.mubr.f32.mxu1 %v21259_v35 }
 0xe4b   :  { %14737 = vmatmul.mubr.f32.vlgmr.msra.gmra.mrb[92].mxu1 %v21326_v16 }
 0xe4c   :  { %14739 = vmatprep.mubr.f32.mxu1 %v21343_v0 }
 0xe4f   :  { %14740 = vmatmul.mubr.f32.gmra.mrb[94].mxu1 %v21362_v36 }
 0xe50   :  { %14742 = vmatprep.mubr.f32.mxu1 %v21334_v10  ;;  %v13856_v30 = vpop.f32.mrb[24].mxu1 }
 0xe51   :  { %v13857_v41 = vpop.f32.mrb[25].mxu1 }
 0xe52   :  { %v14024_v4 = vpop.f32.mrb[24].mxu0  ;;  %v13858_v55 = vadd.f32 %v13857_v41, %v13856_v30 }
 0xe53   :  { %14743 = vmatmul.mubr.f32.gmra.mrb[88].mxu1 %v21337_v46  ;;  %v14025_v58 = vpop.f32.mrb[25].mxu0 }
 0xe54   :  { %14745 = vmatprep.mubr.f32.mxu1 %v21355_v17  ;;  %v21513_v35 = vadd.f32 %v14025_v58, %v14024_v4  ;;  %v8740_v8 = vadd.f32 %v13858_v55, %v8570_v49  ;;  %v8590_v4 = vpop.permute.xlu1 %8589 }
 0xe56   :  { %v13859_v16 = vpop.f32.mrb[26].mxu1 }
 0xe57   :  { %14746 = vmatmul.mubr.f32.gmra.mrb[90].mxu1 %v21369_v38  ;;  %v13860_v63 = vpop.f32.mrb[27].mxu1 }
 0xe58   :  { %v13861_v0 = vadd.f32 %v13860_v63, %v13859_v16 }
 0xe5a   :  { %v13862_v29 = vpop.f32.mrb[28].mxu1  ;;  %v8755_v12 = vadd.f32 %v13861_v0, %v8575_v13 }
 0xe5b   :  { %v13863_v36 = vpop.f32.mrb[29].mxu1 }
 0xe5c   :  { %v13864_v9 = vadd.f32 %v13863_v36, %v13862_v29 }
 0xe5e   :  { %v8770_v62 = vadd.f32 %v13864_v9, %v8580_v52 }
 0xe61   :  { %v13865_v10 = vpop.f32.mrb[30].mxu1 }
 0xe62   :  { %v13866_v26 = vpop.f32.mrb[31].mxu1 }
 0xe63   :  { %v13867_v46 = vadd.f32 %v13866_v26, %v13865_v10  ;;  %v8595_v10 = vpop.permute.xlu0 %8594 }
 0xe65   :  { %v8785_v23 = vadd.f32 %v13867_v46, %v8585_v59 }
 0xe66   :  { %v13868_v54 = vpop.f32.mrb[32].mxu1 }
 0xe67   :  { %v13869_v17 = vpop.f32.mrb[33].mxu1 }
 0xe68   :  { %v13870_v51 = vadd.f32 %v13869_v17, %v13868_v54 }
 0xe6a   :  { %v13871_v11 = vpop.f32.mrb[34].mxu1  ;;  %v8800_v16 = vadd.f32 %v13870_v51, %v8590_v4 }
 0xe6b   :  { %v13872_v50 = vpop.f32.mrb[35].mxu1 }
 0xe6c   :  { %v13873_v15 = vadd.f32 %v13872_v50, %v13871_v11 }
 0xe6e   :  { %v13874_v37 = vpop.f32.mrb[36].mxu1  ;;  %v8815_v54 = vadd.f32 %v13873_v15, %v8595_v10 }
 0xe6f   :  { %v13875_v38 = vpop.f32.mrb[37].mxu1 }
 0xe70   :  { %v21515_v47 = vadd.f32 %v13875_v38, %v13874_v37 }
 0xe71   :  { %v14027_v42 = vpop.f32.mrb[26].mxu0 }
 0xe72   :  { %v13877_v39 = vpop.f32.mrb[38].mxu1  ;;  %v14028_v19 = vpop.f32.mrb[27].mxu0 }
 0xe73   :  { %v13878_v5 = vpop.f32.mrb[39].mxu1  ;;  %v21519_v14 = vadd.f32 %v14028_v19, %v14027_v42 }
 0xe74   :  { %v21517_v24 = vadd.f32 %v13878_v5, %v13877_v39  ;;  %v8600_v39 = vpop.permute.xlu1 %8599 }
 0xe75   :  { %v14030_v57 = vpop.f32.mrb[28].mxu0  ;;  %v8830_v42 = vadd.f32 %v21515_v47, %v8600_v39 }
 0xe76   :  { %v13912_v6 = vpop.f32.mrb[40].mxu1  ;;  %v14031_v56 = vpop.f32.mrb[29].mxu0 }
 0xe77   :  { %v13913_v2 = vpop.f32.mrb[41].mxu1  ;;  %v21523_v60 = vadd.f32 %v14031_v56, %v14030_v57 }
 0xe78   :  { %v13914_v18 = vadd.f32 %v13913_v2, %v13912_v6 }
 0xe79   :  { %v14033_v7 = vpop.f32.mrb[30].mxu0 }
 0xe7a   :  { %v21521_v20 = vadd.f32 %v13914_v18, %v8740_v8  ;;  %v13915_v31 = vpop.f32.mrb[42].mxu1  ;;  %v14034_v28 = vpop.f32.mrb[31].mxu0 }
 0xe7b   :  { %v13916_v32 = vpop.f32.mrb[43].mxu1  ;;  %v21527_v3 = vadd.f32 %v14034_v28, %v14033_v7  ;;  %v8605_v18 = vpop.permute.xlu0 %8604 }
 0xe7c   :  { %v13917_v61 = vadd.f32 %v13916_v32, %v13915_v31  ;;  %v8845_v31 = vadd.f32 %v21517_v24, %v8605_v18 }
 0xe7d   :  { %v14036_v1 = vpop.f32.mrb[32].mxu0 }
 0xe7e   :  { %v21525_v33 = vadd.f32 %v13917_v61, %v8755_v12  ;;  %v13918_v22 = vpop.f32.mrb[44].mxu1  ;;  %v14037_v40 = vpop.f32.mrb[33].mxu0 }
 0xe7f   :  { %v13919_v25 = vpop.f32.mrb[45].mxu1  ;;  %v21531_v44 = vadd.f32 %v14037_v40, %v14036_v1 }
 0xe80   :  { %v13920_v27 = vadd.f32 %v13919_v25, %v13918_v22 }
 0xe81   :  { %v14039_v53 = vpop.f32.mrb[34].mxu0 }
 0xe82   :  { %v21529_v21 = vadd.f32 %v13920_v27, %v8770_v62  ;;  %v13921_v43 = vpop.f32.mrb[46].mxu1  ;;  %v14040_v41 = vpop.f32.mrb[35].mxu0 }
 0xe83   :  { %v13922_v34 = vpop.f32.mrb[47].mxu1  ;;  %v21535_v58 = vadd.f32 %v14040_v41, %v14039_v53 }
 0xe84   :  { %v13923_v45 = vadd.f32 %v13922_v34, %v13921_v43 }
 0xe85   :  { %v14042_v0 = vpop.f32.mrb[36].mxu0 }
 0xe86   :  { %v21533_v48 = vadd.f32 %v13923_v45, %v8785_v23  ;;  %v13924_v30 = vpop.f32.mrb[48].mxu1  ;;  %v14043_v9 = vpop.f32.mrb[37].mxu0 }
 0xe87   :  { %v13925_v55 = vpop.f32.mrb[49].mxu1  ;;  %v21539_v46 = vadd.f32 %v14043_v9, %v14042_v0 }
 0xe88   :  { %v13926_v63 = vadd.f32 %v13925_v55, %v13924_v30 }
 0xe89   :  { %v14045_v11 = vpop.f32.mrb[38].mxu0 }
 0xe8a   :  { %v21537_v29 = vadd.f32 %v13926_v63, %v8800_v16  ;;  %v13927_v36 = vpop.f32.mrb[50].mxu1  ;;  %v14046_v38 = vpop.f32.mrb[39].mxu0 }
 0xe8b   :  { %v13928_v26 = vpop.f32.mrb[51].mxu1  ;;  %v21543_v51 = vadd.f32 %v14046_v38, %v14045_v11 }
 0xe8c   :  { %v13929_v17 = vadd.f32 %v13928_v26, %v13927_v36 }
 0xe8d   :  { %v14136_v19 = vpop.f32.mrb[40].mxu0 }
 0xe8e   :  { %v21541_v50 = vadd.f32 %v13929_v17, %v8815_v54  ;;  %v13930_v37 = vpop.f32.mrb[52].mxu1  ;;  %v14137_v8 = vpop.f32.mrb[41].mxu0 }
 0xe8f   :  { %v13931_v5 = vpop.f32.mrb[53].mxu1  ;;  %v21548_v57 = vadd.f32 %v14137_v8, %v14136_v19 }
 0xe90   :  { %v13932_v6 = vadd.f32 %v13931_v5, %v13930_v37 }
 0xe91   :  { %v14139_v13 = vpop.f32.mrb[42].mxu0 }
 0xe92   :  { %v21546_v49 = vadd.f32 %v13932_v6, %v8830_v42  ;;  %v13933_v2 = vpop.f32.mrb[54].mxu1  ;;  %v14140_v61 = vpop.f32.mrb[43].mxu0 }
 0xe93   :  { %v13934_v15 = vpop.f32.mrb[55].mxu1  ;;  %v21553_v47 = vadd.f32 %v14140_v61, %v14139_v13  ;;  %v10680_v13 = vld [vmem:[%s21986_s14 + $0x8] sm:$0xff] }
 0xe94   :  { %v13935_v56 = vadd.f32 %v13934_v15, %v13933_v2  ;;  %v10714_v61 = vand.u32 4294901760, %v10680_v13 }
 0xe95   :  { %v14142_v28 = vpop.f32.mrb[44].mxu0 }
 0xe96   :  { %v21551_v32 = vadd.f32 %v13935_v56, %v8845_v31  ;;  %v13968_v12 = vpop.f32.mrb[56].mxu1  ;;  %v14143_v62 = vpop.f32.mrb[45].mxu0 }
 0xe97   :  { %v13969_v7 = vpop.f32.mrb[57].mxu1  ;;  %v21556_v1 = vadd.f32 %v14143_v62, %v14142_v28 }
 0xe98   :  { %v13970_v22 = vadd.f32 %v13969_v7, %v13968_v12  ;;  %v10681_v7 = vld [vmem:[%s21986_s14 + $0x10] sm:$0x3] }
 0xe99   :  { %v14145_v40 = vpop.f32.mrb[46].mxu0 }
 0xe9a   :  { %v9264_v52 = vadd.f32 %v13970_v22, %v21521_v20  ;;  %v13971_v25 = vpop.f32.mrb[58].mxu1  ;;  %v14146_v23 = vpop.f32.mrb[47].mxu0  ;;  %v21600_v22 = vsel %vm10706_vm7, %v10681_v7, 0 }
 0xe9b   :  { %v13972_v27 = vpop.f32.mrb[59].mxu1  ;;  %v21562_v53 = vadd.f32 %v14146_v23, %v14145_v40 }
 0xe9c   :  { %v21559_v24 = vadd.f32 %v21513_v35, %v9264_v52  ;;  %v13973_v43 = vadd.f32 %v13972_v27, %v13971_v25  ;;  %v21605_v52 = vand.u32 4294901760, %v21600_v22 }
 0xe9d   :  { %v14148_v41 = vpop.f32.mrb[48].mxu0 }
 0xe9e   :  { %v9273_v59 = vadd.f32 %v13973_v43, %v21525_v33  ;;  %v13974_v34 = vpop.f32.mrb[60].mxu1  ;;  %v14149_v16 = vpop.f32.mrb[49].mxu0 }
 0xe9f   :  { %v13975_v45 = vpop.f32.mrb[61].mxu1  ;;  %v21568_v63 = vadd.f32 %v14149_v16, %v14148_v41 }
 0xea0   :  { %v21565_v30 = vadd.f32 %v21519_v14, %v9273_v59  ;;  %v13976_v20 = vadd.f32 %v13975_v45, %v13974_v34  ;;  %v10867_v59 = vsub.f32 %v10680_v13, %v10714_v61 }
 0xea1   :  { %v14151_v36 = vpop.f32.mrb[50].mxu0 }
 0xea2   :  { %v9282_v4 = vadd.f32 %v13976_v20, %v21529_v21  ;;  %v13977_v55 = vpop.f32.mrb[62].mxu1  ;;  %v14152_v26 = vpop.f32.mrb[51].mxu0  ;;  %v10868_v20 = vand.u32 4294901760, %v10867_v59 }
 0xea3   :  { %v13978_v35 = vpop.f32.mrb[63].mxu1  ;;  %v21574_v54 = vadd.f32 %v14152_v26, %v14151_v36 }
 0xea4   :  { %v21571_v0 = vadd.f32 %v21523_v60, %v9282_v4  ;;  %v13979_v33 = vadd.f32 %v13978_v35, %v13977_v55 }
 0xea5   :  { %v14154_v11 = vpop.f32.mrb[52].mxu0 }
 0xea6   :  { %v9291_v9 = vadd.f32 %v13979_v33, %v21533_v48  ;;  %v13980_v10 = vpop.f32.mrb[64].mxu1  ;;  %v14155_v39 = vpop.f32.mrb[53].mxu0 }
 0xea7   :  { %v13981_v14 = vpop.f32.mrb[65].mxu1  ;;  %v21580_v5 = vadd.f32 %v14155_v39, %v14154_v11 }
 0xea8   :  { %v21577_v17 = vadd.f32 %v21527_v3, %v9291_v9  ;;  %v13982_v21 = vadd.f32 %v13981_v14, %v13980_v10 }
 0xea9   :  { %v14157_v6 = vpop.f32.mrb[54].mxu0 }
 0xeaa   :  { %v9300_v37 = vadd.f32 %v13982_v21, %v21537_v29  ;;  %v13983_v38 = vpop.f32.mrb[66].mxu1  ;;  %v14158_v8 = vpop.f32.mrb[55].mxu0 }
 0xeab   :  { %v13984_v60 = vpop.f32.mrb[67].mxu1  ;;  %v21586_v18 = vadd.f32 %v14158_v8, %v14157_v6 }
 0xeac   :  { %v21583_v42 = vadd.f32 %v21531_v44, %v9300_v37  ;;  %v13985_v48 = vadd.f32 %v13984_v60, %v13983_v38  ;;  %v10679_v44 = vld [vmem:[%s21986_s14] sm:$0xff] }
 0xead   :  { %v10711_v12 = vand.u32 4294901760, %v10679_v44 }
 0xeae   :  { %v9309_v19 = vadd.f32 %v13985_v48, %v21541_v50  ;;  %v13986_v2 = vpop.f32.mrb[68].mxu1 }
 0xeaf   :  { %v13987_v3 = vpop.f32.mrb[69].mxu1  ;;  %v21602_v28 = vpack.c.bf16 %v10714_v61, %v10711_v12 }
 0xeb0   :  { %v9490_v15 = vadd.f32 %v21535_v58, %v9309_v19  ;;  %v13988_v29 = vadd.f32 %v13987_v3, %v13986_v2 }
 0xeb1   :  { %16345 = vmatprep.subr.bf16.mxu0 %v21602_v28 }
 0xeb2   :  { %v9318_v31 = vadd.f32 %v13988_v29, %v21546_v49  ;;  %v13989_v56 = vpop.f32.mrb[70].mxu1  ;;  %16347 = vmatpush3.bf16.msra.mxu0 %v21602_v28 }
 0xeb3   :  { %v13990_v50 = vpop.f32.mrb[71].mxu1  ;;  %14752 = vmatprep.subr.mxu0 %v21605_v52 }
 0xeb4   :  { %v9501_v58 = vadd.f32 %v21539_v46, %v9318_v31  ;;  %v13991_v49 = vadd.f32 %v13990_v50, %v13989_v56  ;;  %v10860_v46 = vsub.f32 %v10679_v44, %v10711_v12 }
 0xeb6   :  { %v9327_v25 = vadd.f32 %v13991_v49, %v21551_v32  ;;  %v14080_v62 = vpop.f32.mrb[72].mxu1  ;;  %v10861_v45 = vand.u32 4294901760, %v10860_v46  ;;  %14753 = vmatpush3.msra.mxu0 %v21605_v52  ;;  %v21624_v6 = vpack.c.bf16 %v10867_v59, %v10860_v46 }
 0xeb7   :  { %v14081_v27 = vpop.f32.mrb[73].mxu1 }
 0xeb8   :  { %v9512_v43 = vadd.f32 %v21543_v51, %v9327_v25  ;;  %v14082_v40 = vadd.f32 %v14081_v27, %v14080_v62  ;;  %v10862_v55 = vsub.f32 %v10860_v46, %v10861_v45  ;;  %v10869_v51 = vsub.f32 %v10867_v59, %v10868_v20 }
 0xeb9   :  { %v21635_v59 = vsub.f32 %v21600_v22, %v21605_v52 }
 0xeba   :  { %v9680_v34 = vadd.f32 %v14082_v40, %v21559_v24  ;;  %v14083_v23 = vpop.f32.mrb[74].mxu1  ;;  %v10863_v33 = vand.u32 4294901760, %v10862_v55  ;;  %v10870_v36 = vand.u32 4294901760, %v10869_v51  ;;  %v21631_v40 = vpack.c.bf16 %v10868_v20, %v10861_v45 }
 0xebb   :  { %v14084_v41 = vpop.f32.mrb[75].mxu1 }
 0xebc   :  { %v14085_v32 = vadd.f32 %v14084_v41, %v14083_v23  ;;  %v9833_v4 = vadd.f32 %v21548_v57, %v9680_v34  ;;  %v21617_v26 = vpack.c.bf16 %v10870_v36, %v10863_v33 }
 0xebe   :  { %v9687_v16 = vadd.f32 %v14085_v32, %v21565_v30  ;;  %v14086_v35 = vpop.f32.mrb[76].mxu1  ;;  %16349 = vmatprep.subr.bf16.mxu0 %v21617_v26 }
 0xebf   :  { %v14087_v9 = vpop.f32.mrb[77].mxu1 }
 0xec0   :  { %v14088_v10 = vadd.f32 %v14087_v9, %v14086_v35  ;;  %v9840_v24 = vadd.f32 %v21553_v47, %v9687_v16 }
 0xec2   :  { %v9694_v14 = vadd.f32 %v14088_v10, %v21571_v0  ;;  %v14089_v21 = vpop.f32.mrb[78].mxu1 }
 0xec3   :  { %v14090_v57 = vpop.f32.mrb[79].mxu1 }
 0xec4   :  { %v14091_v11 = vadd.f32 %v14090_v57, %v14089_v21  ;;  %v9847_v37 = vadd.f32 %v21556_v1, %v9694_v14 }
 0xec6   :  { %v9701_v30 = vadd.f32 %v14091_v11, %v21577_v17  ;;  %v14092_v38 = vpop.f32.mrb[80].mxu1 }
 0xec7   :  { %v14093_v39 = vpop.f32.mrb[81].mxu1 }
 0xec8   :  { %v14094_v60 = vadd.f32 %v14093_v39, %v14092_v38  ;;  %v9854_v48 = vadd.f32 %v21562_v53, %v9701_v30 }
 0xeca   :  { %v9708_v47 = vadd.f32 %v14094_v60, %v21583_v42  ;;  %v14095_v19 = vpop.f32.mrb[82].mxu1 }
 0xecb   :  { %v14096_v0 = vpop.f32.mrb[83].mxu1 }
 0xecc   :  { %v14097_v2 = vadd.f32 %v14096_v0, %v14095_v19  ;;  %v9861_v8 = vadd.f32 %v21568_v63, %v9708_v47 }
 0xece   :  { %v9715_v3 = vadd.f32 %v14097_v2, %v9490_v15  ;;  %v14098_v29 = vpop.f32.mrb[84].mxu1 }
 0xecf   :  { %v14099_v31 = vpop.f32.mrb[85].mxu1 }
 0xed0   :  { %v14100_v1 = vadd.f32 %v14099_v31, %v14098_v29  ;;  %v9868_v17 = vadd.f32 %v21574_v54, %v9715_v3 }
 0xed1   :  { %v14638_v53 = vpop.f32.mrb[56].mxu0 }
 0xed2   :  { %v9722_v56 = vadd.f32 %v14100_v1, %v9501_v58  ;;  %v14101_v44 = vpop.f32.mrb[86].mxu1  ;;  %v9971_v61 = vadd.f32 %v14638_v53, %v9840_v24  ;;  %v9960_v42 = vpop.f32.mrb[57].mxu0 }
 0xed3   :  { %v14102_v13 = vpop.f32.mrb[87].mxu1  ;;  %v9961_v49 = vadd.f32 %v9960_v42, %v9833_v4  ;;  %v21639_v4 = vand.u32 4294901760, %v21635_v59 }
 0xed4   :  { %v14103_v50 = vadd.f32 %v14102_v13, %v14101_v44  ;;  %v9875_v12 = vadd.f32 %v21580_v5, %v9722_v56 }
 0xed5   :  { %v14641_v25 = vpop.f32.mrb[58].mxu0  ;;  %v10876_v14 = vsub.f32 %v21635_v59, %v21639_v4 }
 0xed6   :  { %v9729_v7 = vadd.f32 %v14103_v50, %v9512_v43  ;;  %v9991_v15 = vadd.f32 %v14641_v25, %v9854_v48  ;;  %v9980_v62 = vpop.f32.mrb[59].mxu0 }
 0xed7   :  { %v9981_v27 = vadd.f32 %v9980_v62, %v9847_v37  ;;  %v10877_v56 = vand.u32 4294901760, %v10876_v14 }
 0xed8   :  { %v9882_v63 = vadd.f32 %v21586_v18, %v9729_v7 }
 0xf1e   :  { %v14738_v54 = vpop.f32.mrb[92].mxu1 }
 0xf1f   :  { %v16547_v58 = vadd.f32 %v14738_v54, %v9971_v61  ;;  %v10625_v46 = vpop.f32.mrb[93].mxu1 }
 0xf20   :  { %v16549_v5 = vadd.f32 %v10625_v46, %v9961_v49 }
 0xf21   :  { %v10672_v34 = vmax.f32 %v16547_v58, 0.0 }
 0xf22   :  { %v10671_v23 = vmax.f32 %v16549_v5, 0.0  ;;  %v14741_v43 = vpop.f32.mrb[94].mxu1 }
 0xf23   :  { %v10686_v41 = vsel %vm8198_vm6, %v10672_v34, 0  ;;  %v16551_v32 = vadd.f32 %v14741_v43, %v9991_v15  ;;  %v10637_v18 = vpop.f32.mrb[95].mxu1 }
 0xf24   :  { %v21641_v45 = vand.u32 4294901760, %v10686_v41  ;;  %v10683_v20 = vsel %vm8198_vm6, %v10671_v23, 0  ;;  %v16553_v55 = vadd.f32 %v10637_v18, %v9981_v27 }
 0xf25   :  { %v21644_v51 = vand.u32 4294901760, %v10683_v20  ;;  %v10674_v22 = vmax.f32 %v16551_v32, 0.0 }
 0xf26   :  { %v21647_v16 = vsub.f32 %v10686_v41, %v21641_v45  ;;  %v10673_v35 = vmax.f32 %v16553_v55, 0.0  ;;  %v14744_v33 = vpop.f32.mrb[88].mxu1 }
 0xf27   :  { %v21650_v36 = vsub.f32 %v10683_v20, %v21644_v51  ;;  %v10692_v9 = vsel %vm8198_vm6, %v10674_v22, 0  ;;  %v16554_v10 = vadd.f32 %v14744_v33, %v9868_v17  ;;  %v10649_v24 = vpop.f32.mrb[89].mxu1 }
 0xf28   :  { %v10790_v21 = vand.u32 4294901760, %v21647_v16  ;;  %v21656_v57 = vand.u32 4294901760, %v10692_v9  ;;  %v10689_v11 = vsel %vm8198_vm6, %v10673_v35, 0  ;;  %v16555_v37 = vadd.f32 %v10649_v24, %v9861_v8  ;;  %v11486_v24 = vld [vmem:[%s21987_s15 + $0x18] sm:$0xff] }
 0xf29   :  { %v21659_v30 = vand.u32 4294901760, %v10689_v11  ;;  %v10676_v38 = vmax.f32 %v16554_v10, 0.0  ;;  %v10780_v39 = vand.u32 4294901760, %v21650_v36  ;;  %v11485_v10 = vld [vmem:[%s21987_s15 + $0x10] sm:$0xff] }
 0xf2a   :  { %v10791_v60 = vsub.f32 %v21647_v16, %v10790_v21  ;;  %v21666_v48 = vsub.f32 %v10692_v9, %v21656_v57  ;;  %v10675_v47 = vmax.f32 %v16555_v37, 0.0  ;;  %v14747_v19 = vpop.f32.mrb[90].mxu1 }
 0xf2b   :  { %v21669_v0 = vsub.f32 %v10689_v11, %v21659_v30  ;;  %v10698_v2 = vsel %vm8198_vm6, %v10676_v38, 0  ;;  %v16556_v8 = vadd.f32 %v14747_v19, %v9882_v63  ;;  %v10661_v3 = vpop.f32.mrb[91].mxu1  ;;  %v10781_v29 = vsub.f32 %v21650_v36, %v10780_v39 }
 0xf2c   :  { %v21675_v31 = vand.u32 4294901760, %v10698_v2  ;;  %v10695_v1 = vsel %vm8198_vm6, %v10675_v47, 0  ;;  %v16557_v17 = vadd.f32 %v10661_v3, %v9875_v12  ;;  %v10792_v61 = vand.u32 4294901760, %v10791_v60 }
 0xf2d   :  { %v21678_v44 = vand.u32 4294901760, %v10695_v1  ;;  %v10678_v13 = vmax.f32 %v16556_v8, 0.0  ;;  %v10782_v50 = vand.u32 4294901760, %v10781_v29  ;;  %v10800_v53 = vand.u32 4294901760, %v21669_v0 }
 0xf2e   :  { %v21682_v42 = vsub.f32 %v10698_v2, %v21675_v31  ;;  %v10677_v7 = vmax.f32 %v16557_v17, 0.0  ;;  %v10810_v49 = vand.u32 4294901760, %v21666_v48 }
 0xf2f   :  { %v21686_v25 = vsub.f32 %v10695_v1, %v21678_v44  ;;  %v10704_v63 = vsel %vm8198_vm6, %v10678_v13, 0  ;;  %14754 = vmatprep.mubr.f32.mxu0 %v10782_v50  ;;  %v10801_v12 = vsub.f32 %v21669_v0, %v10800_v53 }
 0xf30   :  { %v21692_v15 = vand.u32 4294901760, %v10704_v63  ;;  %v10701_v62 = vsel %vm8198_vm6, %v10677_v7, 0  ;;  %14755 = vmatmul.mubr.f32.vlgmr.msra.gmra.mrb[60].mxu0 %v10792_v61  ;;  %v10811_v27 = vsub.f32 %v21666_v48, %v10810_v49  ;;  %v10830_v54 = vand.u32 4294901760, %v21682_v42 }
 0xf31   :  { %v21699_v58 = vand.u32 4294901760, %v10701_v62  ;;  %v10802_v46 = vand.u32 4294901760, %v10801_v12  ;;  %v10820_v5 = vand.u32 4294901760, %v21686_v25  ;;  %16351 = vmatpush3.bf16.msra.mxu0 %v21617_v26 }
 0xf32   :  { %v10849_v34 = vsub.f32 %v10704_v63, %v21692_v15  ;;  %v10812_v23 = vand.u32 4294901760, %v10811_v27  ;;  %v10831_v43 = vsub.f32 %v21682_v42, %v10830_v54  ;;  %14770 = vmatprep.subr.mxu0 %v10877_v56 }
 0xf33   :  { %v10839_v41 = vsub.f32 %v10701_v62, %v21699_v58  ;;  %14757 = vmatprep.mubr.f32.mxu0 %v10802_v46  ;;  %v10821_v32 = vsub.f32 %v21686_v25, %v10820_v5 }
 0xf34   :  { %14758 = vmatmul.mubr.f32.gmra.mrb[62].mxu0 %v10812_v23  ;;  %v10850_v18 = vand.u32 4294901760, %v10849_v34  ;;  %v10832_v22 = vand.u32 4294901760, %v10831_v43 }
 0xf35   :  { %v10822_v20 = vand.u32 4294901760, %v10821_v32  ;;  %v10840_v55 = vand.u32 4294901760, %v10839_v41  ;;  %14771 = vmatpush3.msra.mxu0 %v10877_v56 }
 0xf36   :  { %v10851_v35 = vsub.f32 %v10849_v34, %v10850_v18  ;;  %16353 = vmatprep.subr.bf16.mxu0 %v21624_v6 }
 0xf37   :  { %14760 = vmatprep.mubr.f32.mxu0 %v10822_v20  ;;  %v10841_v26 = vsub.f32 %v10839_v41, %v10840_v55 }
 0xf38   :  { %14761 = vmatmul.mubr.f32.gmra.mrb[64].mxu0 %v10832_v22  ;;  %v10852_v9 = vand.u32 4294901760, %v10851_v35 }
 0xf39   :  { %v10842_v33 = vand.u32 4294901760, %v10841_v26 }
 0xf3b   :  { %14763 = vmatprep.mubr.f32.mxu0 %v10842_v33 }
 0xf3c   :  { %14764 = vmatmul.mubr.f32.gmra.mrb[66].mxu0 %v10852_v9 }
 0xf3d   :  { %14772 = vmatprep.mubr.f32.mxu0 %v21644_v51 }
 0xf40   :  { %14773 = vmatmul.mubr.f32.vlgmr.msra.gmra.mrb[60].mxu0 %v21641_v45 }
 0xf41   :  { %14775 = vmatprep.mubr.f32.mxu0 %v21659_v30  ;;  %16355 = vmatpush3.bf16.msra.mxu0 %v21624_v6 }
 0xf42   :  { %14788 = vmatprep.subr.mxu0 %v21635_v59 }
 0xf44   :  { %14776 = vmatmul.mubr.f32.gmra.mrb[62].mxu0 %v21656_v57 }
 0xf45   :  { %14778 = vmatprep.mubr.f32.mxu0 %v21678_v44  ;;  %14789 = vmatpush3.msra.mxu0 %v21635_v59 }
 0xf46   :  { %16357 = vmatprep.subr.bf16.mxu0 %v21602_v28 }
 0xf48   :  { %14779 = vmatmul.mubr.f32.gmra.mrb[64].mxu0 %v21675_v31 }
 0xf49   :  { %14781 = vmatprep.mubr.f32.mxu0 %v21699_v58 }
 0xf4c   :  { %14782 = vmatmul.mubr.f32.gmra.mrb[66].mxu0 %v21692_v15 }
 0xf4d   :  { %14790 = vmatprep.mubr.f32.mxu0 %v21650_v36 }
 0xf50   :  { %14791 = vmatmul.mubr.f32.vlgmr.msra.gmra.mrb[60].mxu0 %v21647_v16 }
 0xf51   :  { %14793 = vmatprep.mubr.f32.mxu0 %v21669_v0  ;;  %16359 = vmatpush3.bf16.msra.mxu0 %v21602_v28 }
 0xf52   :  { %14806 = vmatprep.subr.mxu0 %v21605_v52 }
 0xf54   :  { %14794 = vmatmul.mubr.f32.gmra.mrb[62].mxu0 %v21666_v48 }
 0xf55   :  { %14796 = vmatprep.mubr.f32.mxu0 %v21686_v25  ;;  %14807 = vmatpush3.msra.mxu0 %v21605_v52 }
 0xf56   :  { %16361 = vmatprep.subr.bf16.mxu0 %v21631_v40 }
 0xf58   :  { %14797 = vmatmul.mubr.f32.gmra.mrb[64].mxu0 %v21682_v42 }
 0xf59   :  { %14799 = vmatprep.mubr.f32.mxu0 %v10839_v41 }
 0xf5c   :  { %14800 = vmatmul.mubr.f32.gmra.mrb[66].mxu0 %v10849_v34 }
 0xf5d   :  { %14808 = vmatprep.mubr.f32.mxu0 %v10780_v39 }
 0xf60   :  { %14809 = vmatmul.mubr.f32.vlgmr.msra.gmra.mrb[60].mxu0 %v10790_v21  ;;  %v11519_v21 = vsel %vm11511_vm8, %v11485_v10, 0 }
 0xf61   :  { %14811 = vmatprep.mubr.f32.mxu0 %v10800_v53  ;;  %16363 = vmatpush3.bf16.msra.mxu0 %v21631_v40  ;;  %v21787_v60 = vand.u32 4294901760, %v11519_v21 }
 0xf62   :  { %14824 = vmatprep.subr.mxu0 %v21639_v4 }
 0xf63   :  { %v21799_v13 = vsub.f32 %v11519_v21, %v21787_v60 }
 0xf64   :  { %14812 = vmatmul.mubr.f32.gmra.mrb[62].mxu0 %v10810_v49 }
 0xf65   :  { %14814 = vmatprep.mubr.f32.mxu0 %v10820_v5  ;;  %14825 = vmatpush3.msra.mxu0 %v21639_v4  ;;  %v11619_v23 = vand.u32 4294901760, %v21799_v13 }
 0xf66   :  { %16365 = vmatprep.subr.bf16.mxu0 %v21602_v28 }
 0xf67   :  { %v11620_v10 = vsub.f32 %v21799_v13, %v11619_v23 }
 0xf68   :  { %14815 = vmatmul.mubr.f32.gmra.mrb[64].mxu0 %v10830_v54 }
 0xf69   :  { %14817 = vmatprep.mubr.f32.mxu0 %v10840_v55 }
 0xf6c   :  { %14818 = vmatmul.mubr.f32.gmra.mrb[66].mxu0 %v10850_v18 }
 0xf6d   :  { %14826 = vmatprep.mubr.f32.mxu0 %v21644_v51 }
 0xf70   :  { %14827 = vmatmul.mubr.f32.vlgmr.msra.gmra.mrb[60].mxu0 %v21641_v45 }
 0xf71   :  { %14829 = vmatprep.mubr.f32.mxu0 %v21659_v30  ;;  %16367 = vmatpush3.bf16.msra.mxu0 %v21602_v28  ;;  %v11483_v28 = vld [vmem:[%s21987_s15] sm:$0xff] }
 0xf72   :  { %14842 = vmatprep.subr.mxu0 %v21605_v52 }
 0xf74   :  { %14830 = vmatmul.mubr.f32.gmra.mrb[62].mxu0 %v21656_v57 }
 0xf75   :  { %14832 = vmatprep.mubr.f32.mxu0 %v21678_v44  ;;  %14843 = vmatpush3.msra.mxu0 %v21605_v52  ;;  %v11513_v52 = vsel %vm11511_vm8, %v11483_v28, 0 }
 0xf76   :  { %v21764_v6 = vand.u32 4294901760, %v11513_v52 }
 0xf78   :  { %14833 = vmatmul.mubr.f32.gmra.mrb[64].mxu0 %v21675_v31  ;;  %v21767_v40 = vsub.f32 %v11513_v52, %v21764_v6 }
 0xf79   :  { %14835 = vmatprep.mubr.f32.mxu0 %v21699_v58 }
 0xf7a   :  { %v11599_v59 = vand.u32 4294901760, %v21767_v40 }
 0xf7c   :  { %14836 = vmatmul.mubr.f32.gmra.mrb[66].mxu0 %v21692_v15  ;;  %v11600_v4 = vsub.f32 %v21767_v40, %v11599_v59 }
 0xf7d   :  { %14844 = vmatprep.mubr.f32.mxu0 %v21644_v51  ;;  %v11484_v51 = vld [vmem:[%s21987_s15 + $0x8] sm:$0xff] }
 0xf7e   :  { %v11516_v16 = vsel %vm11511_vm8, %v11484_v51, 0 }
 0xf7f   :  { %v21776_v36 = vand.u32 4294901760, %v11516_v16 }
 0xf80   :  { %14845 = vmatmul.mubr.f32.vlgmr.msra.gmra.mrb[60].mxu0 %v21641_v45  ;;  %v11601_v45 = vand.u32 4294901760, %v11600_v4 }
 0xf81   :  { %14847 = vmatprep.mubr.f32.mxu0 %v21659_v30  ;;  %v21785_v30 = vsub.f32 %v11516_v16, %v21776_v36 }
 0xf82   :  { %14872 = vmatprep.mubr.f32.mxu1 %v11601_v45 }
 0xf83   :  { %v11609_v29 = vand.u32 4294901760, %v21785_v30 }
 0xf84   :  { %14848 = vmatmul.mubr.f32.gmra.mrb[62].mxu0 %v21656_v57  ;;  %v11522_v57 = vsel %vm11511_vm8, %v11486_v24, 0 }
 0xf85   :  { %14850 = vmatprep.mubr.f32.mxu0 %v21678_v44  ;;  %v21789_v48 = vand.u32 4294901760, %v11522_v57  ;;  %v11610_v62 = vsub.f32 %v21785_v30, %v11609_v29 }
 0xf87   :  { %v21802_v50 = vsub.f32 %v11522_v57, %v21789_v48 }
 0xf88   :  { %14851 = vmatmul.mubr.f32.gmra.mrb[64].mxu0 %v21675_v31 }
 0xf89   :  { %14853 = vmatprep.mubr.f32.mxu0 %v21699_v58  ;;  %v11629_v43 = vand.u32 4294901760, %v21802_v50 }
 0xf8c   :  { %14854 = vmatmul.mubr.f32.gmra.mrb[66].mxu0 %v21692_v15 }
0x1053   :  { %v14846_v14 = vpop.f32.mrb[60].mxu0 }
0x1054   :  { %v11528_v11 = vand.u32 4294901760, %v14846_v14  ;;  %v11437_v37 = vpop.f32.mrb[61].mxu0 }
0x1055   :  { %v11525_v38 = vand.u32 4294901760, %v11437_v37 }
0x1056   :  { %v11646_v39 = vsub.f32 %v14846_v14, %v11528_v11 }
0x1057   :  { %v21791_v47 = vpack.c.bf16 %v11528_v11, %v11525_v38  ;;  %v11639_v19 = vsub.f32 %v11437_v37, %v11525_v38  ;;  %v14849_v0 = vpop.f32.mrb[62].mxu0  ;;  %v11611_v37 = vand.u32 4294901760, %v11610_v62 }
0x1058   :  { %v11647_v2 = vand.u32 4294901760, %v11646_v39  ;;  %v11534_v8 = vand.u32 4294901760, %v14849_v0  ;;  %v11449_v3 = vpop.f32.mrb[63].mxu0 }
0x1059   :  { %v11640_v31 = vand.u32 4294901760, %v11639_v19  ;;  %v11531_v1 = vand.u32 4294901760, %v11449_v3  ;;  %16369 = vmatprep.subr.bf16.mxu1 %v21791_v47  ;;  %v21795_v17 = vpack.c.bf16 %v11646_v39, %v11639_v19 }
0x105a   :  { %v11648_v56 = vsub.f32 %v11646_v39, %v11647_v2  ;;  %v11660_v44 = vsub.f32 %v14849_v0, %v11534_v8  ;;  %16371 = vmatpush3.bf16.msra.mxu1 %v21791_v47 }
0x105b   :  { %v11641_v53 = vsub.f32 %v11639_v19, %v11640_v31  ;;  %v21804_v61 = vpack.c.bf16 %v11534_v8, %v11531_v1  ;;  %v11653_v42 = vsub.f32 %v11449_v3, %v11531_v1  ;;  %v14852_v7 = vpop.f32.mrb[64].mxu0  ;;  %v21806_v49 = vpack.c.bf16 %v11647_v2, %v11640_v31 }
0x105c   :  { %v11661_v25 = vand.u32 4294901760, %v11660_v44  ;;  %v11540_v63 = vand.u32 4294901760, %v14852_v7  ;;  %v11461_v12 = vpop.f32.mrb[65].mxu0  ;;  %v11649_v15 = vand.u32 4294901760, %v11648_v56  ;;  %v11630_v2 = vsub.f32 %v21802_v50, %v11629_v43 }
0x105d   :  { %v11654_v27 = vand.u32 4294901760, %v11653_v42  ;;  %v11537_v54 = vand.u32 4294901760, %v11461_v12  ;;  %16373 = vmatprep.subr.bf16.mxu1 %v21804_v61  ;;  %v11642_v58 = vand.u32 4294901760, %v11641_v53  ;;  %v21812_v46 = vpack.c.bf16 %v11660_v44, %v11653_v42 }
0x105e   :  { %v11662_v5 = vsub.f32 %v11660_v44, %v11661_v25  ;;  %v11674_v34 = vsub.f32 %v14852_v7, %v11540_v63  ;;  %16375 = vmatpush3.bf16.msra.mxu1 %v21804_v61  ;;  %v11621_v31 = vand.u32 4294901760, %v11620_v10  ;;  %v11631_v7 = vand.u32 4294901760, %v11630_v2 }
0x105f   :  { %v11655_v41 = vsub.f32 %v11653_v42, %v11654_v27  ;;  %v21817_v32 = vpack.c.bf16 %v11540_v63, %v11537_v54  ;;  %v11667_v18 = vsub.f32 %v11461_v12, %v11537_v54  ;;  %v14855_v20 = vpop.f32.mrb[66].mxu0  ;;  %v16384_v55 = vpack.c.bf16 %v11649_v15, %v11642_v58 }
0x1060   :  { %v11675_v22 = vand.u32 4294901760, %v11674_v34  ;;  %v11546_v35 = vand.u32 4294901760, %v14855_v20  ;;  %v11473_v26 = vpop.f32.mrb[67].mxu0  ;;  %v11663_v33 = vand.u32 4294901760, %v11662_v5  ;;  %v21819_v9 = vpack.c.bf16 %v11661_v25, %v11654_v27 }
0x1061   :  { %v11668_v28 = vand.u32 4294901760, %v11667_v18  ;;  %v11543_v52 = vand.u32 4294901760, %v11473_v26  ;;  %16377 = vmatprep.subr.bf16.mxu1 %v21817_v32  ;;  %v11656_v4 = vand.u32 4294901760, %v11655_v41  ;;  %v16408_v45 = vpack.c.bf16 %v11674_v34, %v11667_v18 }
0x1062   :  { %v11676_v51 = vsub.f32 %v11674_v34, %v11675_v22  ;;  %v11688_v16 = vsub.f32 %v14855_v20, %v11546_v35  ;;  %16379 = vmatpush3.bf16.msra.mxu1 %v21817_v32 }
0x1063   :  { %v11669_v24 = vsub.f32 %v11667_v18, %v11668_v28  ;;  %v21826_v14 = vpack.c.bf16 %v11546_v35, %v11543_v52  ;;  %v11681_v21 = vsub.f32 %v11473_v26, %v11543_v52  ;;  %v16388_v57 = vpack.c.bf16 %v11663_v33, %v11656_v4 }
0x1064   :  { %v11689_v11 = vand.u32 4294901760, %v11688_v16  ;;  %v11677_v38 = vand.u32 4294901760, %v11676_v51  ;;  %v16440_v39 = vpack.c.bf16 %v11675_v22, %v11668_v28 }
0x1065   :  { %v11682_v19 = vand.u32 4294901760, %v11681_v21  ;;  %16381 = vmatprep.subr.bf16.mxu1 %v21826_v14  ;;  %v11670_v0 = vand.u32 4294901760, %v11669_v24  ;;  %v16412_v8 = vpack.c.bf16 %v11688_v16, %v11681_v21 }
0x1066   :  { %v11690_v3 = vsub.f32 %v11688_v16, %v11689_v11  ;;  %16383 = vmatpush3.bf16.msra.mxu1 %v21826_v14 }
0x1067   :  { %v11683_v1 = vsub.f32 %v11681_v21, %v11682_v19  ;;  %16385 = vmatprep.subr.bf16.mxu1 %v16384_v55  ;;  %v16392_v56 = vpack.c.bf16 %v11677_v38, %v11670_v0  ;;  %v16444_v44 = vpack.c.bf16 %v11689_v11, %v11682_v19 }
0x1068   :  { %v11691_v53 = vand.u32 4294901760, %v11690_v3 }
0x1069   :  { %14873 = vmatmul.mubr.f32.vlgmr.msra.gmra.mrb[96].mxu1 %v11611_v37  ;;  %v11684_v42 = vand.u32 4294901760, %v11683_v1 }
0x106a   :  { %16387 = vmatpush3.bf16.msra.mxu1 %v16384_v55  ;;  %14875 = vmatprep.mubr.f32.mxu1 %v11621_v31 }
0x106b   :  { %16389 = vmatprep.subr.bf16.mxu1 %v16388_v57  ;;  %v16396_v25 = vpack.c.bf16 %v11691_v53, %v11684_v42  ;;  %v12744_v53 = vld [vmem:[%s21991_s19] sm:$0xff] }
0x106c   :  { %v12752_v42 = vsel %vm1604_vm2, %v12744_v53, 0  ;;  %vm13674_vm2 = vcmask 8192  }
0x106d   :  { %14876 = vmatmul.mubr.f32.gmra.mrb[98].mxu1 %v11631_v7  ;;  %v12821_v7 = vand.u32 4294901760, %v12752_v42 }
0x106e   :  { %16391 = vmatpush3.bf16.msra.mxu1 %v16388_v57  ;;  %14894 = vmatprep.mubr.f32.mxu1 %v21764_v6 }
0x106f   :  { %16393 = vmatprep.subr.bf16.mxu1 %v16392_v56 }
0x1072   :  { %16395 = vmatpush3.bf16.msra.mxu1 %v16392_v56 }
0x1073   :  { %16397 = vmatprep.subr.bf16.mxu1 %v16396_v25 }
0x1076   :  { %16399 = vmatpush3.bf16.msra.mxu1 %v16396_v25  ;;  %v12822_v25 = vsub.f32 %v12752_v42, %v12821_v7 }
0x1077   :  { %16401 = vmatprep.subr.bf16.mxu1 %v21795_v17 }
0x1079   :  { %14895 = vmatmul.mubr.f32.vlgmr.msra.gmra.mrb[96].mxu1 %v21776_v36 }
0x107a   :  { %16403 = vmatpush3.bf16.msra.mxu1 %v21795_v17  ;;  %14897 = vmatprep.mubr.f32.mxu1 %v21787_v60 }
0x107b   :  { %16405 = vmatprep.subr.bf16.mxu1 %v21812_v46 }
0x107d   :  { %14898 = vmatmul.mubr.f32.gmra.mrb[98].mxu1 %v21789_v48 }
0x107e   :  { %16407 = vmatpush3.bf16.msra.mxu1 %v21812_v46  ;;  %14916 = vmatprep.mubr.f32.mxu1 %v21767_v40  ;;  %v22731_v40 = vmov 0.0  }
0x107f   :  { %16409 = vmatprep.subr.bf16.mxu1 %v16408_v45 }
0x1082   :  { %16411 = vmatpush3.bf16.msra.mxu1 %v16408_v45 }
0x1083   :  { %16413 = vmatprep.subr.bf16.mxu1 %v16412_v8 }
0x1086   :  { %16415 = vmatpush3.bf16.msra.mxu1 %v16412_v8 }
0x1087   :  { %16417 = vmatprep.subr.bf16.mxu1 %v21791_v47 }
0x1089   :  { %14917 = vmatmul.mubr.f32.vlgmr.msra.gmra.mrb[96].mxu1 %v21785_v30 }
0x108a   :  { %16419 = vmatpush3.bf16.msra.mxu1 %v21791_v47  ;;  %14919 = vmatprep.mubr.f32.mxu1 %v21799_v13  ;;  %v11499_v13 = vpop.permute.xlu0 %11498 }
0x108b   :  { %16421 = vmatprep.subr.bf16.mxu1 %v21804_v61 }
0x108d   :  { %14920 = vmatmul.mubr.f32.gmra.mrb[98].mxu1 %v21802_v50 }
0x108e   :  { %16423 = vmatpush3.bf16.msra.mxu1 %v21804_v61  ;;  %14938 = vmatprep.mubr.f32.mxu1 %v11599_v59  ;;  %v11509_v54 = vpop.permute.xlu0 %11508 }
0x108f   :  { %16425 = vmatprep.subr.bf16.mxu1 %v21817_v32 }
0x1092   :  { %16427 = vmatpush3.bf16.msra.mxu1 %v21817_v32 }
0x1093   :  { %16429 = vmatprep.subr.bf16.mxu1 %v21826_v14 }
0x1096   :  { %16431 = vmatpush3.bf16.msra.mxu1 %v21826_v14 }
0x1097   :  { %16433 = vmatprep.subr.bf16.mxu1 %v21806_v49 }
0x1099   :  { %14939 = vmatmul.mubr.f32.vlgmr.msra.gmra.mrb[96].mxu1 %v11609_v29 }
0x109a   :  { %16435 = vmatpush3.bf16.msra.mxu1 %v21806_v49  ;;  %14941 = vmatprep.mubr.f32.mxu1 %v11619_v23 }
0x109b   :  { %16437 = vmatprep.subr.bf16.mxu1 %v21819_v9 }
0x109d   :  { %14942 = vmatmul.mubr.f32.gmra.mrb[98].mxu1 %v11629_v43 }
0x109e   :  { %16439 = vmatpush3.bf16.msra.mxu1 %v21819_v9  ;;  %14960 = vmatprep.mubr.f32.mxu1 %v21764_v6 }
0x109f   :  { %16441 = vmatprep.subr.bf16.mxu1 %v16440_v39 }
0x10a2   :  { %16443 = vmatpush3.bf16.msra.mxu1 %v16440_v39 }
0x10a3   :  { %16445 = vmatprep.subr.bf16.mxu1 %v16444_v44 }
0x10a6   :  { %16447 = vmatpush3.bf16.msra.mxu1 %v16444_v44  ;;  %v22732_v44 = vmov 0.0|0.0  }
0x10a7   :  { %16449 = vmatprep.subr.bf16.mxu1 %v21791_v47 }
0x10a9   :  { %14961 = vmatmul.mubr.f32.vlgmr.msra.gmra.mrb[96].mxu1 %v21776_v36 }
0x10aa   :  { %16451 = vmatpush3.bf16.msra.mxu1 %v21791_v47  ;;  %14963 = vmatprep.mubr.f32.mxu1 %v21787_v60 }
0x10ab   :  { %16453 = vmatprep.subr.bf16.mxu1 %v21804_v61 }
0x10ad   :  { %14964 = vmatmul.mubr.f32.gmra.mrb[98].mxu1 %v21789_v48 }
0x10ae   :  { %16455 = vmatpush3.bf16.msra.mxu1 %v21804_v61  ;;  %14982 = vmatprep.mubr.f32.mxu1 %v21764_v6  ;;  %v12194_v6 = vld [vmem:[%s21989_s17] sm:$0xff]  ;;  %v11494_v61 = vpop.permute.xlu1 %11493 }
0x10af   :  { %16457 = vmatprep.subr.bf16.mxu1 %v21817_v32  ;;  %v12209_v59 = vsel %vm2180_vm13, %v12194_v6, 0  ;;  %v12206_v6 = vpop.permute.xlu0 %12205 }
0x10b0   :  { %v21886_v30 = vand.u32 4294901760, %v12209_v59 }
0x10b2   :  { %16459 = vmatpush3.bf16.msra.mxu1 %v21817_v32  ;;  %v21889_v47 = vsub.f32 %v12209_v59, %v21886_v30  ;;  %v11504_v5 = vpop.permute.xlu1 %11503 }
0x10b3   :  { %16461 = vmatprep.subr.bf16.mxu1 %v21826_v14 }
0x10b4   :  { %v12285_v29 = vand.u32 4294901760, %v21889_v47 }
0x10b6   :  { %16463 = vmatpush3.bf16.msra.mxu1 %v21826_v14 }
0x10b7   :  { %15096 = vmatprep.subr.mxu1 %v22731_v40 }
0x10b9   :  { %14983 = vmatmul.mubr.f32.vlgmr.msra.gmra.mrb[96].mxu1 %v21776_v36  ;;  %v12286_v36 = vsub.f32 %v21889_v47, %v12285_v29 }
0x10ba   :  { %14985 = vmatprep.mubr.f32.mxu1 %v21787_v60 }
0x10bb   :  { %v12287_v60 = vand.u32 4294901760, %v12286_v36  ;;  %v12823_v36 = vand.u32 4294901760, %v12822_v25 }
0x10bd   :  { %14986 = vmatmul.mubr.f32.gmra.mrb[98].mxu1 %v21789_v48  ;;  %14996 = vmatprep.mubr.f32.mxu0 %v12287_v60  ;;  %v12195_v48 = vld [vmem:[%s21989_s17 + $0x8] sm:$0xff] }
0x10be   :  { %v12212_v17 = vsel %vm2180_vm13, %v12195_v48, 0  ;;  %vm17036_vm13 = vmmov 0  }
0x10bf   :  { %v21899_v50 = vand.u32 4294901760, %v12212_v17  ;;  %15098 = vmatprep.mubr.msk.f32.mxu1 %vm17036_vm13, %v22731_v40 }
0x10c1   :  { %v21902_v62 = vsub.f32 %v12212_v17, %v21899_v50 }
0x10c3   :  { %v12295_v18 = vand.u32 4294901760, %v21902_v62 }
0x10c5   :  { %v12296_v4 = vsub.f32 %v21902_v62, %v12295_v18 }
0x10c7   :  { %v12297_v38 = vand.u32 4294901760, %v12296_v4 }
0x118c   :  { %v14984_v49 = vpop.f32.mrb[96].mxu1 }
0x118d   :  { %v16558_v63 = vadd.f32 %v14984_v49, %v11499_v13  ;;  %v12168_v12 = vpop.f32.mrb[97].mxu1 }
0x118e   :  { %v16559_v15 = vadd.f32 %v12168_v12, %v11494_v61 }
0x118f   :  { %v12191_v27 = vmax.f32 %v16558_v63, 0.0 }
0x1190   :  { %v12190_v58 = vmax.f32 %v16559_v15, 0.0  ;;  %v14987_v46 = vpop.f32.mrb[98].mxu1 }
0x1191   :  { %v12218_v34 = vand.u32 4294901760, %v12191_v27  ;;  %v16560_v23 = vadd.f32 %v14987_v46, %v11509_v54  ;;  %v12180_v43 = vpop.f32.mrb[99].mxu1 }
0x1192   :  { %v12215_v41 = vand.u32 4294901760, %v12190_v58  ;;  %v16561_v32 = vadd.f32 %v12180_v43, %v11504_v5 }
0x1193   :  { %v12312_v20 = vsub.f32 %v12191_v27, %v12218_v34  ;;  %v12193_v55 = vmax.f32 %v16560_v23, 0.0 }
0x1194   :  { %v16464_v22 = vpack.c.bf16 %v12218_v34, %v12215_v41  ;;  %v12305_v35 = vsub.f32 %v12190_v58, %v12215_v41  ;;  %v12192_v26 = vmax.f32 %v16561_v32, 0.0  ;;  %v13214_v41 = vld [vmem:[%s21993_s21] sm:$0x1]  ;;  %s17037_s21 = smov [#allocation12]  }
0x1195   :  { %v12313_v33 = vand.u32 4294901760, %v12312_v20  ;;  %v12224_v9 = vand.u32 4294901760, %v12193_v55  ;;  %v13226_v32 = vsel %vm3733_vm10, %v13214_v41, 0  ;;  %s13682_s1 = sshll.u32 %s17037_s21, 4  ;;  %s13683_s1 = int_to_ptr.vmem [resolvable:$true] %s13682_s1 }
0x1196   :  { %v12306_v28 = vand.u32 4294901760, %v12305_v35  ;;  %v12221_v52 = vand.u32 4294901760, %v12192_v26  ;;  %16465 = vmatprep.subr.bf16.mxu0 %v16464_v22  ;;  %v16480_v45 = vpack.c.bf16 %v12312_v20, %v12305_v35  ;;  %s16974_s8 = scalar_lea.vmem %s13683_s1, 16  ;;  %s16978_s3 = scalar_lea.vmem %s13683_s1, 32 }
0x1197   :  { %v12326_v51 = vsub.f32 %v12193_v55, %v12224_v9  ;;  %16467 = vmatpush3.bf16.msra.mxu0 %v16464_v22  ;;  %v12314_v16 = vsub.f32 %v12312_v20, %v12313_v33  ;;  %p16975_p0 = scmp.ne.s32.totalorder %s13683_s1, %s16974_s8  ;;  %p16979_p1 = scmp.lt.s32.totalorder %s13683_s1, %s13683_s1 }
0x1198   :  { %v16468_v10 = vpack.c.bf16 %v12224_v9, %v12221_v52  ;;  %v12319_v24 = vsub.f32 %v12192_v26, %v12221_v52  ;;  %v12307_v14 = vsub.f32 %v12305_v35, %v12306_v28  ;;  %v16496_v21 = vpack.c.bf16 %v12313_v33, %v12306_v28  ;;  %p16980_p2 = scmp.lt.s32.totalorder %s16978_s3, %s16974_s8 }
0x1199   :  { %v12327_v57 = vand.u32 4294901760, %v12326_v51  ;;  %v12315_v11 = vand.u32 4294901760, %v12314_v16 }
0x119a   :  { %v12320_v37 = vand.u32 4294901760, %v12319_v24  ;;  %16469 = vmatprep.subr.bf16.mxu0 %v16468_v10  ;;  %v12308_v39 = vand.u32 4294901760, %v12307_v14  ;;  %v16484_v19 = vpack.c.bf16 %v12326_v51, %v12319_v24  ;;  %v22733_v14 = vld [vmem:[#allocation15_spill] sm:$0xff]  ;;  %p16981_p3 = por %p16980_p2, %p16979_p1 }
0x119b   :  { %16471 = vmatpush3.bf16.msra.mxu0 %v16468_v10  ;;  %v12328_v0 = vsub.f32 %v12326_v51, %v12327_v57 }
0x119c   :  { %v16472_v2 = vpack.c.bf16 %v12315_v11, %v12308_v39  ;;  %v12321_v8 = vsub.f32 %v12319_v24, %v12320_v37  ;;  %v16500_v3 = vpack.c.bf16 %v12327_v57, %v12320_v37  ;;  %v13219_v24 = vpop.permute.xlu0 %13218  ;;  %p16982_p4 = pnand %p16981_p3, %p16975_p0 }
0x119d   :  { %v12329_v31 = vand.u32 4294901760, %v12328_v0 }
0x119e   :  { %14997 = vmatmul.mubr.f32.vlgmr.msra.gmra.mrb[68].mxu0 %v12297_v38  ;;  %16473 = vmatprep.subr.bf16.mxu0 %v16472_v2  ;;  %v12322_v1 = vand.u32 4294901760, %v12321_v8 }
0x119f   :  { %16475 = vmatpush3.bf16.msra.mxu0 %v16472_v2  ;;  %15007 = vmatprep.mubr.f32.mxu0 %v21886_v30 }
0x11a0   :  { %v16476_v56 = vpack.c.bf16 %v12329_v31, %v12322_v1 }
0x11a2   :  { %16477 = vmatprep.subr.bf16.mxu0 %v16476_v56 }
0x11a3   :  { %16479 = vmatpush3.bf16.msra.mxu0 %v16476_v56 }
0x11a4   :  { %16481 = vmatprep.subr.bf16.mxu0 %v16480_v45 }
0x11a6   :  { %15008 = vmatmul.mubr.f32.vlgmr.msra.gmra.mrb[68].mxu0 %v21899_v50 }
0x11a7   :  { %16483 = vmatpush3.bf16.msra.mxu0 %v16480_v45  ;;  %15018 = vmatprep.mubr.f32.mxu0 %v21889_v47 }
0x11a8   :  { %16485 = vmatprep.subr.bf16.mxu0 %v16484_v19 }
0x11ab   :  { %16487 = vmatpush3.bf16.msra.mxu0 %v16484_v19 }
0x11ac   :  { %16489 = vmatprep.subr.bf16.mxu0 %v16464_v22 }
0x11ae   :  { %15019 = vmatmul.mubr.f32.vlgmr.msra.gmra.mrb[68].mxu0 %v21902_v62 }
0x11af   :  { %16491 = vmatpush3.bf16.msra.mxu0 %v16464_v22  ;;  %15029 = vmatprep.mubr.f32.mxu0 %v12285_v29 }
0x11b0   :  { %16493 = vmatprep.subr.bf16.mxu0 %v16468_v10 }
0x11b3   :  { %16495 = vmatpush3.bf16.msra.mxu0 %v16468_v10 }
0x11b4   :  { %16497 = vmatprep.subr.bf16.mxu0 %v16496_v21 }
0x11b6   :  { %15030 = vmatmul.mubr.f32.vlgmr.msra.gmra.mrb[68].mxu0 %v12295_v18  ;;  %v13294_v18 = vand.u32 4294901760, %v13226_v32 }
0x11b7   :  { %16499 = vmatpush3.bf16.msra.mxu0 %v16496_v21  ;;  %15040 = vmatprep.mubr.f32.mxu0 %v21886_v30  ;;  %v13224_v21 = vrot.slane %v13219_v24, %v22733_v14 }
0x11b8   :  { %16501 = vmatprep.subr.bf16.mxu0 %v16500_v3  ;;  %v13295_v20 = vsub.f32 %v13226_v32, %v13294_v18 }
0x11ba   :  { %v13296_v55 = vand.u32 4294901760, %v13295_v20 }
0x11bb   :  { %16503 = vmatpush3.bf16.msra.mxu0 %v16500_v3 }
0x11bc   :  { %16505 = vmatprep.subr.bf16.mxu0 %v16464_v22  ;;  %v13297_v26 = vsub.f32 %v13295_v20, %v13296_v55 }
0x11be   :  { %15041 = vmatmul.mubr.f32.vlgmr.msra.gmra.mrb[68].mxu0 %v21899_v50  ;;  %v13298_v52 = vand.u32 4294901760, %v13297_v26 }
0x11bf   :  { %16507 = vmatpush3.bf16.msra.mxu0 %v16464_v22  ;;  %15051 = vmatprep.mubr.f32.mxu0 %v21886_v30  ;;  %v12201_v30 = vpop.permute.xlu1 %12200 }
0x11c0   :  { %16509 = vmatprep.subr.bf16.mxu0 %v16468_v10 }
0x11c3   :  { %16511 = vmatpush3.bf16.msra.mxu0 %v16468_v10  ;;  %v12749_v22 = vpop.permute.xlu1 %12748 }
0x11c4   :  { %16512 = vmatprep.subr.bf16.mxu0 %v22732_v44 }
0x11c6   :  { %15052 = vmatmul.mubr.f32.vlgmr.msra.gmra.mrb[68].mxu0 %v21899_v50  ;;  %v12824_v50 = vsub.f32 %v12822_v25, %v12823_v36 }
0x11c7   :  { %15058 = vmatprep.mubr.msk.f32.mxu0 %vm17036_vm13, %v22731_v40 }
0x11c8   :  { %v12825_v62 = vand.u32 4294901760, %v12824_v50 }
0x1299   :  { %v15053_v59 = vpop.f32.mrb[68].mxu0 }
0x129a   :  { %v16562_v47 = vadd.f32 %v15053_v59, %v12206_v6  ;;  %v12732_v29 = vpop.f32.mrb[69].mxu0 }
0x129b   :  { %v16563_v60 = vadd.f32 %v12732_v29, %v12201_v30 }
0x129c   :  { %v12743_v48 = vmax.f32 %v16562_v47, 0.0 }
0x129d   :  { %v12742_v17 = vmax.f32 %v16563_v60, 0.0 }
0x129e   :  { %v12758_v13 = vand.u32 4294901760, %v12743_v48 }
0x129f   :  { %v12755_v61 = vand.u32 4294901760, %v12742_v17 }
0x12a0   :  { %v12840_v49 = vsub.f32 %v12743_v48, %v12758_v13 }
0x12a1   :  { %v16513_v63 = vpack.c.bf16 %v12758_v13, %v12755_v61  ;;  %v12833_v12 = vsub.f32 %v12742_v17, %v12755_v61 }
0x12a2   :  { %v12841_v15 = vand.u32 4294901760, %v12840_v49 }
0x12a3   :  { %v12834_v27 = vand.u32 4294901760, %v12833_v12  ;;  %16514 = vmatpush3.bf16.msra.mxu0 %v16513_v63  ;;  %v16519_v54 = vpack.c.bf16 %v12840_v49, %v12833_v12 }
0x12a4   :  { %v12842_v58 = vsub.f32 %v12840_v49, %v12841_v15  ;;  %16515 = vmatprep.subr.bf16.mxu0 %v22732_v44 }
0x12a5   :  { %v12835_v46 = vsub.f32 %v12833_v12, %v12834_v27  ;;  %v16525_v5 = vpack.c.bf16 %v12841_v15, %v12834_v27 }
0x12a6   :  { %v12843_v34 = vand.u32 4294901760, %v12842_v58  ;;  %15059 = vmatmul.mubr.f32.vlgmr.msra.gmra.mrb[70].mxu0 %v12825_v62 }
0x12a7   :  { %v12836_v23 = vand.u32 4294901760, %v12835_v46  ;;  %15065 = vmatprep.mubr.msk.f32.mxu0 %vm17036_vm13, %v22731_v40 }
0x12a9   :  { %v16516_v43 = vpack.c.bf16 %v12843_v34, %v12836_v23 }
0x12ab   :  { %16517 = vmatpush3.bf16.msra.mxu0 %v16516_v43 }
0x12ac   :  { %16518 = vmatprep.subr.bf16.mxu0 %v22732_v44 }
0x12ae   :  { %15066 = vmatmul.mubr.f32.vlgmr.msra.gmra.mrb[70].mxu0 %v12821_v7 }
0x12af   :  { %16520 = vmatpush3.bf16.msra.mxu0 %v16519_v54  ;;  %15072 = vmatprep.mubr.msk.f32.mxu0 %vm17036_vm13, %v22731_v40 }
0x12b0   :  { %16521 = vmatprep.subr.bf16.mxu0 %v22732_v44 }
0x12b6   :  { %15073 = vmatmul.mubr.f32.vlgmr.msra.gmra.mrb[70].mxu0 %v12822_v25 }
0x12b7   :  { %16523 = vmatpush3.bf16.msra.mxu0 %v16513_v63  ;;  %15079 = vmatprep.mubr.msk.f32.mxu0 %vm17036_vm13, %v22731_v40 }
0x12b8   :  { %16524 = vmatprep.subr.bf16.mxu0 %v22732_v44 }
0x12be   :  { %15080 = vmatmul.mubr.f32.vlgmr.msra.gmra.mrb[70].mxu0 %v12823_v36 }
0x12bf   :  { %16526 = vmatpush3.bf16.msra.mxu0 %v16525_v5  ;;  %15086 = vmatprep.mubr.msk.f32.mxu0 %vm17036_vm13, %v22731_v40 }
0x12c0   :  { %16527 = vmatprep.subr.bf16.mxu0 %v22732_v44 }
0x12c6   :  { %15087 = vmatmul.mubr.f32.vlgmr.msra.gmra.mrb[70].mxu0 %v12821_v7 }
0x12c7   :  { %16529 = vmatpush3.bf16.msra.mxu0 %v16513_v63  ;;  %15093 = vmatprep.mubr.msk.f32.mxu0 %vm17036_vm13, %v22731_v40 }
0x12ce   :  { %15094 = vmatmul.mubr.f32.vlgmr.msra.gmra.mrb[70].mxu0 %v12821_v7 }
0x13a1   :  { %v13209_v35 = vpop.f32.mrb[70].mxu0 }
0x13a2   :  { %v16564_v33 = vadd.f32 %v13209_v35, %v12749_v22  ;;  %v15095_v9 = vpop.f32.mrb[71].mxu0 }
0x13a4   :  { %v13213_v28 = vmax.f32 %v16564_v33, 0.0 }
0x13a6   :  { %v13229_v4 = vand.u32 4294901760, %v13213_v28 }
0x13a8   :  { %v13306_v45 = vsub.f32 %v13213_v28, %v13229_v4  ;;  %15097 = vmatpush3.msra.mxu1 %v13229_v4 }
0x13a9   :  { %15099 = vmatmul.mubr.f32.vlgmr.msra.gmra.mrb[100].mxu1 %v13298_v52  ;;  %15101 = vmatprep.subr.mxu1 %v22731_v40 }
0x13aa   :  { %v13307_v51 = vand.u32 4294901760, %v13306_v45  ;;  %15103 = vmatprep.mubr.msk.f32.mxu1 %vm17036_vm13, %v22731_v40 }
0x13ac   :  { %v13308_v16 = vsub.f32 %v13306_v45, %v13307_v51 }
0x13ae   :  { %v13309_v10 = vand.u32 4294901760, %v13308_v16 }
0x13b0   :  { %15102 = vmatpush3.msra.mxu1 %v13309_v10 }
0x13b1   :  { %15104 = vmatmul.mubr.f32.vlgmr.msra.gmra.mrb[100].mxu1 %v13294_v18  ;;  %15106 = vmatprep.subr.mxu1 %v22731_v40 }
0x13b2   :  { %15107 = vmatpush3.msra.mxu1 %v13306_v45  ;;  %15108 = vmatprep.mubr.msk.f32.mxu1 %vm17036_vm13, %v22731_v40 }
0x13b3   :  { %15111 = vmatprep.subr.mxu1 %v22731_v40 }
0x13b9   :  { %15109 = vmatmul.mubr.f32.vlgmr.msra.gmra.mrb[100].mxu1 %v13295_v20 }
0x13ba   :  { %15112 = vmatpush3.msra.mxu1 %v13229_v4  ;;  %15113 = vmatprep.mubr.msk.f32.mxu1 %vm17036_vm13, %v22731_v40 }
0x13bb   :  { %15116 = vmatprep.subr.mxu1 %v22731_v40 }
0x13c1   :  { %15114 = vmatmul.mubr.f32.vlgmr.msra.gmra.mrb[100].mxu1 %v13296_v55 }
0x13c2   :  { %15117 = vmatpush3.msra.mxu1 %v13307_v51  ;;  %15118 = vmatprep.mubr.msk.f32.mxu1 %vm17036_vm13, %v22731_v40 }
0x13c3   :  { %15121 = vmatprep.subr.mxu1 %v22731_v40 }
0x13c9   :  { %15119 = vmatmul.mubr.f32.vlgmr.msra.gmra.mrb[100].mxu1 %v13294_v18 }
0x13ca   :  { %15122 = vmatpush3.msra.mxu1 %v13229_v4  ;;  %15123 = vmatprep.mubr.msk.f32.mxu1 %vm17036_vm13, %v22731_v40 }
0x13d1   :  { %15124 = vmatmul.mubr.f32.vlgmr.msra.gmra.mrb[100].mxu1 %v13294_v18 }
0x14a4   :  { %v13670_v57 = vpop.f32.mrb[100].mxu1 }
0x14a5   :  { %v16565_v11 = vadd.f32 %v13670_v57, %v13224_v21  ;;  %v15125_v37 = vpop.f32.mrb[101].mxu1 }
0x14a7   :  { %13675 = vst.msk [vmem:[#allocation12] sm:$0x1] %vm13674_vm2, %v16565_v11 }
0x14a8   :  { %16985 = shalt.err (!%p16982_p4)
}
0x14a9   :  { %s16986_s22 = scalar_lea.hbm %s21995_s23, 16 }
0x14aa   :  { %p16987_p5 = scmp.ne.s32.totalorder %s21995_s23, %s16986_s22  ;;  %p16990_p6 = scmp.lt.u32.totalorder %s16986_s22, %s21995_s23 }
0x14ac   :  { %p16992_p7 = pnand %p16990_p6, %p16987_p5 }
0x14ae   :  { %16995 = shalt.err (!%p16992_p7)
}
0x14af   :  { %13685 = dma.vmem_to_hbm [thread:$0]  %s13683_s1, 16, %s21995_s23, [#allocation13]  }
0x14b0   :  { %16996 = dma.done.wait [#allocation13], 16  }
0x14b1   :  { %16997 = vsyncadd [#allocation13], 4294967280 }
0x14b2   :  { %13689 = vsyncpa [#allocation13], 1 }

</bundles_post_ra>
